<compile_context>
chip_gen: v6e
topology: v6e:2x2x1
jax: 0.10.0
libtpu: 0.0.40
codegen_flags: <defaults>
</compile_context>

<pallas_src>
import functools

import jax
import jax.numpy as jnp
from jax.experimental import pallas as pl
from jax.experimental.pallas import tpu as pltpu


def _round_up(x, m):
    return (x + m - 1) // m * m


# ----------------------------- fused stage kernel -------------------------- #

def _stage_kernel(*refs, H, W, eps, n_per_group, res_mode):
    # refs:
    #   res_mode == "none": (x, gmat, gmat_t, gamma, beta, wk, bias, out, slab)
    #   res_mode == "proj": (x, gmat, gmat_t, gamma, beta, wk, bias, res_x, res_w, out, slab)
    #   res_mode == "id"  : (x, gmat, gmat_t, gamma, beta, wk, bias, res_x, out, slab)
    if res_mode == "proj":
        (x_ref, gmat_ref, gmatt_ref, gamma_ref, beta_ref, w_ref, bias_ref,
         resx_ref, resw_ref, o_ref, slab_ref) = refs
    elif res_mode == "id":
        (x_ref, gmat_ref, gmatt_ref, gamma_ref, beta_ref, w_ref, bias_ref,
         resx_ref, o_ref, slab_ref) = refs
        resw_ref = None
    else:
        (x_ref, gmat_ref, gmatt_ref, gamma_ref, beta_ref, w_ref, bias_ref,
         o_ref, slab_ref) = refs
        resx_ref = resw_ref = None

    HW = H * W
    Cin = x_ref.shape[2]
    Coutp = o_ref.shape[2]

    x = x_ref[0].astype(jnp.float32)                            # (HW, Cin)

    # ---- GroupNorm statistics (channels stay on the lane axis) ------------ #
    # Single-pass E[x^2]-E[x]^2; fine at this tolerance.  TODO(synk): two-pass
    # (subtract group mean before squaring) for real SD activation magnitudes.
    ch_sum = jnp.sum(x, axis=0, keepdims=True)                  # (1, Cin)
    ch_ssq = jnp.sum(x * x, axis=0, keepdims=True)              # (1, Cin)
    inv_n = 1.0 / float(n_per_group)
    mean_g = jnp.dot(ch_sum, gmat_ref[...], preferred_element_type=jnp.float32) * inv_n
    ex2_g = jnp.dot(ch_ssq, gmat_ref[...], preferred_element_type=jnp.float32) * inv_n
    rstd_g = jax.lax.rsqrt(ex2_g - mean_g * mean_g + eps)       # (1, G)
    mean_c = jnp.dot(mean_g, gmatt_ref[...], preferred_element_type=jnp.float32)
    rstd_c = jnp.dot(rstd_g, gmatt_ref[...], preferred_element_type=jnp.float32)

    scale = rstd_c * gamma_ref[...]
    shift = beta_ref[...] - mean_c * scale
    y = x * scale + shift
    y = y * jax.nn.sigmoid(y)                                   # SiLU

    # ---- kx-im2col write into the zero-bordered bf16 slab ----------------- #
    # lanes [0:Cin] = y(w-1), [Cin:2Cin] = y(w), [2Cin:3Cin] = y(w+1).
    # Row halo (top/bottom W rows) zeroed every step (cheap: 2*W rows; and a
    # program_id==0 guard would be wrong under megacore per-core scratch).
    slab_ref[0:W, :] = jnp.zeros((W, 3 * Cin), slab_ref.dtype)
    slab_ref[W + HW:, :] = jnp.zeros((W, 3 * Cin), slab_ref.dtype)

    col = jax.lax.broadcasted_iota(jnp.int32, (HW, 1), 0) % W
    # sublane rolls go to the XLU; masking stays in f32 (no bf16 VALU on v5e).
    left = jnp.where(col > 0, pltpu.roll(y, shift=1, axis=0), 0.0)        # y(w-1)
    right = jnp.where(col < W - 1, pltpu.roll(y, shift=HW - 1, axis=0), 0.0)  # y(w+1)

    slab_ref[W:W + HW, 0:Cin] = left.astype(slab_ref.dtype)     # cast once
    slab_ref[W:W + HW, Cin:2 * Cin] = y.astype(slab_ref.dtype)
    slab_ref[W:W + HW, 2 * Cin:3 * Cin] = right.astype(slab_ref.dtype)

    # ---- 3x3 conv as 3 matmuls (one per ky), K = 3*Cin, bf16 x bf16 -> f32 - #
    # All slice offsets are multiples of W => sublane-aligned slab reads.
    acc = jnp.zeros((HW, Coutp), jnp.float32)
    for ky in range(3):
        acc = acc + jnp.dot(slab_ref[ky * W:ky * W + HW, :], w_ref[ky],
                            preferred_element_type=jnp.float32)

    acc = acc + bias_ref[0].astype(jnp.float32)                 # (1, Coutp) broadcast

    if res_mode == "proj":                                      # fused 1x1 residual
        acc = acc + jnp.dot(resx_ref[0], resw_ref[...],
                            preferred_element_type=jnp.float32)
    elif res_mode == "id":                                      # exact f32 skip add
        acc = acc + resx_ref[0]

    o_ref[0] = acc.astype(o_ref.dtype)


# ----------------------------- stage wrapper ------------------------------- #

def _fused_stage(x_bpc, gmat, gmat_t, gamma, beta, w_packed, bias, *,
                 H, W, n_per_group, eps=1e-5, out_dtype=jnp.float32,
                 res_x=None, res_w=None):
    # x_bpc: (B, H*W, Cin); w_packed: (3, 3*Cin, Coutp) bf16; bias: (B, 1, Coutp)
    B, HW, Cin = x_bpc.shape
    G = gmat.shape[1]
    Coutp = w_packed.shape[-1]
    if res_x is None:
        res_mode = "none"
    elif res_w is None:
        res_mode = "id"
    else:
        res_mode = "proj"

    in_specs = [
        pl.BlockSpec((1, HW, Cin), lambda b: (b, 0, 0)),
        pl.BlockSpec((Cin, G), lambda b: (0, 0)),
        pl.BlockSpec((G, Cin), lambda b: (0, 0)),
        pl.BlockSpec((1, Cin), lambda b: (0, 0)),
        pl.BlockSpec((1, Cin), lambda b: (0, 0)),
        pl.BlockSpec((3, 3 * Cin, Coutp), lambda b: (0, 0, 0)),
        pl.BlockSpec((1, 1, Coutp), lambda b: (b, 0, 0)),
    ]
    args = [x_bpc, gmat, gmat_t, gamma, beta, w_packed, bias]
    if res_mode != "none":
        Cres = res_x.shape[-1]
        in_specs.append(pl.BlockSpec((1, HW, Cres), lambda b: (b, 0, 0)))
        args.append(res_x)
        if res_mode == "proj":
            in_specs.append(pl.BlockSpec((Cres, Coutp), lambda b: (0, 0)))
            args.append(res_w)

    kernel = functools.partial(_stage_kernel, H=H, W=W, eps=eps,
                               n_per_group=n_per_group, res_mode=res_mode)
    return pl.pallas_call(
        kernel,
        out_shape=jax.ShapeDtypeStruct((B, HW, Coutp), out_dtype),
        grid=(B,),
        in_specs=in_specs,
        out_specs=pl.BlockSpec((1, HW, Coutp), lambda b: (b, 0, 0)),
        scratch_shapes=[pltpu.VMEM(((H + 2) * W, 3 * Cin), jnp.bfloat16)],
        compiler_params=pltpu.CompilerParams(
            dimension_semantics=("parallel",)),
    )(*args)


# ----------------------------- param packing glue -------------------------- #

def _group_matrix(c_real, c_pad, groups):
    gs = c_real // groups
    ch = jnp.arange(c_pad)
    m = ((ch[:, None] // gs) == jnp.arange(groups)[None, :]) & (ch[:, None] < c_real)
    return m.astype(jnp.float32)                                # (c_pad, groups)


def _pad_last(a, target):
    pad = target - a.shape[-1]
    if pad == 0:
        return a
    cfg = [(0, 0)] * (a.ndim - 1) + [(0, pad)]
    return jnp.pad(a, cfg)


def resnet_forward(params, x_nchw, time_vec):
    """Equivalent of Resnet.forward(x, time). x: (B, Cin, H, W), time: (B, 1280)."""
    B, Cin, H, W = x_nchw.shape
    Cout = params["conv0_w"].shape[-1]
    HW = H * W
    G = 32
    Coutp = _round_up(Cout, 128)                 # lane-dense output slab

    # single layout transpose of the input; reused by stage 0 and the residual
    x_pc = x_nchw.transpose(0, 2, 3, 1).reshape(B, HW, Cin)

    # ---- time path (plain JAX): SiLU -> Linear(1280, Cout), folded into conv0 bias
    t = jax.nn.silu(time_vec) @ params["time_w"] + params["time_b"]      # (B, Cout)
    bias0 = _pad_last(params["conv0_b"][None, :] + t, Coutp).reshape(B, 1, Coutp)

    # ---- stage 0: GN(32, Cin) + SiLU + conv3x3(Cin -> Cout) + time bias ----
    gmat0 = _group_matrix(Cin, Cin, G)
    # HWIO (3,3,Cin,Cout) -> (3, 3*Cin, Coutp): row index kx*Cin + ci matches the
    # slab lane layout [y(w-1) | y(w) | y(w+1)].
    w0 = _pad_last(params["conv0_w"].reshape(3, 3 * Cin, Cout), Coutp).astype(jnp.bfloat16)
    gamma0 = params["gn0_g"][None, :]
    beta0 = params["gn0_b"][None, :]

    h = _fused_stage(x_pc, gmat0, gmat0.T, gamma0, beta0, w0, bias0,
                     H=H, W=W, n_per_group=(Cin // G) * HW,
                     out_dtype=jnp.bfloat16)              # (B, HW, Coutp) bf16 in HBM

    # ---- stage 1: GN(32, Cout) + SiLU + conv3x3(Cout -> Cout) + residual ---
    gmat1 = _group_matrix(Cout, Coutp, G)
    w1 = jnp.pad(params["conv1_w"],
                 ((0, 0), (0, 0), (0, Coutp - Cout), (0, Coutp - Cout)))
    w1 = w1.reshape(3, 3 * Coutp, Coutp).astype(jnp.bfloat16)
    gamma1 = _pad_last(params["gn1_g"][None, :], Coutp)
    beta1 = _pad_last(params["gn1_b"][None, :], Coutp)

    if Cin != Cout:                              # learned 1x1 residual projection
        res_x = x_pc.astype(jnp.bfloat16)        # bf16 on the MXU anyway
        res_w = _pad_last(params["res_w"], Coutp).astype(jnp.bfloat16)
        res_b = params["res_b"]
    else:                                        # identity skip: exact f32 add in kernel
        res_x = _pad_last(x_pc, Coutp)
        res_w = None
        res_b = jnp.zeros((Cout,), jnp.float32)
    bias1 = _pad_last((params["conv1_b"] + res_b)[None, :], Coutp)       # fold res bias
    bias1 = jnp.broadcast_to(bias1.reshape(1, 1, Coutp), (B, 1, Coutp))

    out = _fused_stage(h, gmat1, gmat1.T, gamma1, beta1, w1, bias1,
                       H=H, W=W, n_per_group=(Cout // G) * HW,
                       res_x=res_x, res_w=res_w)                         # (B, HW, Coutp)

    out = out[:, :, :Cout].reshape(B, H, W, Cout).transpose(0, 3, 1, 2)  # NCHW
    return out


# ----------------------------- reference (plain JAX, f32) ------------------ #

def _reference(params, x, time_vec):
    silu = lambda v: v * jax.nn.sigmoid(v)

    def gn(v, g, b, groups=32, eps=1e-5):
        B, C, H, W = v.shape
        vg = v.reshape(B, groups, -1)
        m = vg.mean(axis=2, keepdims=True)
        var = vg.var(axis=2, keepdims=True)
        vn = ((vg - m) / jnp.sqrt(var + eps)).reshape(B, C, H, W)
        return vn * g[None, :, None, None] + b[None, :, None, None]

    def conv3(v, w_hwio, b):
        w = jnp.transpose(w_hwio, (3, 2, 0, 1))                  # OIHW
        out = jax.lax.conv_general_dilated(
            v, w, (1, 1), [(1, 1), (1, 1)],
            dimension_numbers=("NCHW", "OIHW", "NCHW"))
        return out + b[None, :, None, None]

    t = silu(time_vec) @ params["time_w"] + params["time_b"]
    h = conv3(silu(gn(x, params["gn0_g"], params["gn0_b"])),
              params["conv0_w"], params["conv0_b"])
    h = h + t[:, :, None, None]
    h = conv3(silu(gn(h, params["gn1_g"], params["gn1_b"])),
              params["conv1_w"], params["conv1_b"])
    res = jnp.einsum("bchw,co->bohw", x, params["res_w"]) + \
        params["res_b"][None, :, None, None]
    return res + h


# ----------------------------- main ---------------------------------------- #

if __name__ == "__main__":
    B, Cin, Cout, H, W = 2, 32, 64, 16, 16   # GroupNorm(32) => channels % 32 == 0

    key = jax.random.PRNGKey(0)
    ks = jax.random.split(key, 14)
    params = {
        "time_w": 0.05 * jax.random.normal(ks[0], (1280, Cout), jnp.float32),
        "time_b": 0.05 * jax.random.normal(ks[1], (Cout,), jnp.float32),
        "gn0_g": 1.0 + 0.05 * jax.random.normal(ks[2], (Cin,), jnp.float32),
        "gn0_b": 0.05 * jax.random.normal(ks[3], (Cin,), jnp.float32),
        "conv0_w": 0.05 * jax.random.normal(ks[4], (3, 3, Cin, Cout), jnp.float32),
        "conv0_b": 0.05 * jax.random.normal(ks[5], (Cout,), jnp.float32),
        "gn1_g": 1.0 + 0.05 * jax.random.normal(ks[6], (Cout,), jnp.float32),
        "gn1_b": 0.05 * jax.random.normal(ks[7], (Cout,), jnp.float32),
        "conv1_w": 0.05 * jax.random.normal(ks[8], (3, 3, Cout, Cout), jnp.float32),
        "conv1_b": 0.05 * jax.random.normal(ks[9], (Cout,), jnp.float32),
        "res_w": 0.05 * jax.random.normal(ks[10], (Cin, Cout), jnp.float32),
        "res_b": 0.05 * jax.random.normal(ks[11], (Cout,), jnp.float32),
    }
    x = jax.random.normal(ks[12], (B, Cin, H, W), jnp.float32)
    time_vec = jax.random.normal(ks[13], (B, 1280), jnp.float32)

    out = jax.jit(resnet_forward)(params, x, time_vec)
    out = jax.block_until_ready(out)
    assert out.shape == (B, Cout, H, W) and out.dtype == jnp.float32

    # Numerics contract: conv inputs/weights and the inter-stage activation are
    # bf16; stats, accumulation and the identity skip stay f32.
    ref = _reference(params, x, time_vec)
    max_err = float(jnp.max(jnp.abs(out - ref)))
    assert max_err < 5e-2, f"mismatch vs reference: max abs err = {max_err}"

    print("KERNEL_OK")
</pallas_src>

<mosaic_0001>
module attributes {stable_mosaic.version = 11 : i64} {
  func.func @_stage_kernel(%arg0: i32, %arg1: memref<1x256x32xf32, #tpu.memory_space<vmem>>, %arg2: memref<32x32xf32, #tpu.memory_space<vmem>>, %arg3: memref<32x32xf32, #tpu.memory_space<vmem>>, %arg4: memref<1x32xf32, #tpu.memory_space<vmem>>, %arg5: memref<1x32xf32, #tpu.memory_space<vmem>>, %arg6: memref<3x96x128xbf16, #tpu.memory_space<vmem>>, %arg7: memref<1x1x128xf32, #tpu.memory_space<vmem>>, %arg8: memref<1x256x128xbf16, #tpu.memory_space<vmem>>, %arg9: memref<288x96xbf16, #tpu.memory_space<vmem>>) attributes {dimension_semantics = [#tpu.dimension_semantics<parallel>], iteration_bounds = array<i64: 2>, scalar_prefetch = 0 : i64, scratch_operands = 1 : i64, tpu.core_type = #tpu.core_type<tc>, window_params = [{transform_indices = @transform_0, window_bounds = array<i64: 1, 256, 32>}, {pipeline_mode = #tpu.pipeline_mode<synchronous>, transform_indices = @transform_1, window_bounds = array<i64: 32, 32>}, {pipeline_mode = #tpu.pipeline_mode<synchronous>, transform_indices = @transform_2, window_bounds = array<i64: 32, 32>}, {pipeline_mode = #tpu.pipeline_mode<synchronous>, transform_indices = @transform_3, window_bounds = array<i64: 1, 32>}, {pipeline_mode = #tpu.pipeline_mode<synchronous>, transform_indices = @transform_4, window_bounds = array<i64: 1, 32>}, {pipeline_mode = #tpu.pipeline_mode<synchronous>, transform_indices = @transform_5, window_bounds = array<i64: 3, 96, 128>}, {transform_indices = @transform_6, window_bounds = array<i64: 1, 1, 128>}, {transform_indices = @transform_7, window_bounds = array<i64: 1, 256, 128>}]} {
    %c0 = arith.constant 0 : index
    %c0_0 = arith.constant 0 : index
    %c0_1 = arith.constant 0 : index
    %0 = vector.load %arg1[%c0, %c0_0, %c0_1] : memref<1x256x32xf32, #tpu.memory_space<vmem>>, vector<1x256x32xf32>
    %1 = vector.shape_cast %0 : vector<1x256x32xf32> to vector<256x32xf32>
    %cst = arith.constant dense<0.000000e+00> : vector<32xf32>
    %2 = vector.multi_reduction <add>, %1, %cst [0] : vector<256x32xf32> to vector<32xf32>
    %3 = vector.shape_cast %2 : vector<32xf32> to vector<1x32xf32>
    %4 = arith.mulf %1, %1 : vector<256x32xf32>
    %cst_2 = arith.constant dense<0.000000e+00> : vector<32xf32>
    %5 = vector.multi_reduction <add>, %4, %cst_2 [0] : vector<256x32xf32> to vector<32xf32>
    %6 = vector.shape_cast %5 : vector<32xf32> to vector<1x32xf32>
    %c0_3 = arith.constant 0 : index
    %c0_4 = arith.constant 0 : index
    %7 = vector.load %arg2[%c0_3, %c0_4] : memref<32x32xf32, #tpu.memory_space<vmem>>, vector<32x32xf32>
    %cst_5 = arith.constant dense<0.000000e+00> : vector<1x32xf32>
    %8 = tpu.matmul %3, %7, %cst_5 {dimension_numbers = #tpu.dot_dimension_numbers<[1], [0], [0], [1], [0, 0, 1, 1], [], []>} : vector<1x32xf32>, vector<32x32xf32>, vector<1x32xf32> -> vector<1x32xf32>
    %cst_6 = arith.constant 3.906250e-03 : f32
    %9 = vector.broadcast %cst_6 : f32 to vector<1x32xf32>
    %10 = arith.mulf %8, %9 : vector<1x32xf32>
    %c0_7 = arith.constant 0 : index
    %c0_8 = arith.constant 0 : index
    %11 = vector.load %arg2[%c0_7, %c0_8] : memref<32x32xf32, #tpu.memory_space<vmem>>, vector<32x32xf32>
    %cst_9 = arith.constant dense<0.000000e+00> : vector<1x32xf32>
    %12 = tpu.matmul %6, %11, %cst_9 {dimension_numbers = #tpu.dot_dimension_numbers<[1], [0], [0], [1], [0, 0, 1, 1], [], []>} : vector<1x32xf32>, vector<32x32xf32>, vector<1x32xf32> -> vector<1x32xf32>
    %cst_10 = arith.constant 3.906250e-03 : f32
    %13 = vector.broadcast %cst_10 : f32 to vector<1x32xf32>
    %14 = arith.mulf %12, %13 : vector<1x32xf32>
    %15 = arith.mulf %10, %10 : vector<1x32xf32>
    %16 = arith.subf %14, %15 : vector<1x32xf32>
    %cst_11 = arith.constant 9.99999974E-6 : f32
    %17 = vector.broadcast %cst_11 : f32 to vector<1x32xf32>
    %18 = arith.addf %16, %17 : vector<1x32xf32>
    %19 = math.rsqrt %18 : vector<1x32xf32>
    %c0_12 = arith.constant 0 : index
    %c0_13 = arith.constant 0 : index
    %20 = vector.load %arg3[%c0_12, %c0_13] : memref<32x32xf32, #tpu.memory_space<vmem>>, vector<32x32xf32>
    %cst_14 = arith.constant dense<0.000000e+00> : vector<1x32xf32>
    %21 = tpu.matmul %10, %20, %cst_14 {dimension_numbers = #tpu.dot_dimension_numbers<[1], [0], [0], [1], [0, 0, 1, 1], [], []>} : vector<1x32xf32>, vector<32x32xf32>, vector<1x32xf32> -> vector<1x32xf32>
    %c0_15 = arith.constant 0 : index
    %c0_16 = arith.constant 0 : index
    %22 = vector.load %arg3[%c0_15, %c0_16] : memref<32x32xf32, #tpu.memory_space<vmem>>, vector<32x32xf32>
    %cst_17 = arith.constant dense<0.000000e+00> : vector<1x32xf32>
    %23 = tpu.matmul %19, %22, %cst_17 {dimension_numbers = #tpu.dot_dimension_numbers<[1], [0], [0], [1], [0, 0, 1, 1], [], []>} : vector<1x32xf32>, vector<32x32xf32>, vector<1x32xf32> -> vector<1x32xf32>
    %c0_18 = arith.constant 0 : index
    %c0_19 = arith.constant 0 : index
    %24 = vector.load %arg4[%c0_18, %c0_19] : memref<1x32xf32, #tpu.memory_space<vmem>>, vector<1x32xf32>
    %25 = arith.mulf %23, %24 : vector<1x32xf32>
    %c0_20 = arith.constant 0 : index
    %c0_21 = arith.constant 0 : index
    %26 = vector.load %arg5[%c0_20, %c0_21] : memref<1x32xf32, #tpu.memory_space<vmem>>, vector<1x32xf32>
    %27 = arith.mulf %21, %25 : vector<1x32xf32>
    %28 = arith.subf %26, %27 : vector<1x32xf32>
    %29 = vector.broadcast %25 : vector<1x32xf32> to vector<256x32xf32>
    %30 = arith.mulf %1, %29 : vector<256x32xf32>
    %31 = vector.broadcast %28 : vector<1x32xf32> to vector<256x32xf32>
    %32 = arith.addf %30, %31 : vector<256x32xf32>
    %33 = arith.negf %32 : vector<256x32xf32>
    %34 = math.exp %33 : vector<256x32xf32>
    %cst_22 = arith.constant 1.000000e+00 : f32
    %35 = vector.broadcast %cst_22 : f32 to vector<256x32xf32>
    %36 = arith.addf %35, %34 : vector<256x32xf32>
    %37 = arith.divf %35, %36 : vector<256x32xf32>
    %38 = arith.mulf %32, %37 : vector<256x32xf32>
    %cst_23 = arith.constant 0.000000e+00 : bf16
    %39 = vector.broadcast %cst_23 : bf16 to vector<16x96xbf16>
    %c0_24 = arith.constant 0 : index
    %c0_25 = arith.constant 0 : index
    %40 = vector.load %arg9[%c0_24, %c0_25] : memref<288x96xbf16, #tpu.memory_space<vmem>>, vector<16x96xbf16>
    tpu.vector_store %arg9[%c0_24, %c0_25], %39 {strides = array<i32>} : memref<288x96xbf16, #tpu.memory_space<vmem>>, vector<16x96xbf16>,
    %cst_26 = arith.constant 0.000000e+00 : bf16
    %41 = vector.broadcast %cst_26 : bf16 to vector<16x96xbf16>
    %c272 = arith.constant 272 : index
    %c0_27 = arith.constant 0 : index
    %42 = vector.load %arg9[%c272, %c0_27] : memref<288x96xbf16, #tpu.memory_space<vmem>>, vector<16x96xbf16>
    tpu.vector_store %arg9[%c272, %c0_27], %41 {strides = array<i32>} : memref<288x96xbf16, #tpu.memory_space<vmem>>, vector<16x96xbf16>,
    %43 = tpu.iota {dimensions = array<i32: 0>} : vector<256x1xi32>
    %c16_i32 = arith.constant 16 : i32
    %c0_i32 = arith.constant 0 : i32
    %44 = arith.cmpi eq, %c16_i32, %c0_i32 : i32
    %c1_i32 = arith.constant 1 : i32
    %45 = arith.select %44, %c1_i32, %c16_i32 : i32
    %46 = vector.broadcast %45 : i32 to vector<256x1xi32>
    %47 = arith.remsi %43, %46 : vector<256x1xi32>
    %c0_i32_28 = arith.constant 0 : i32
    %48 = vector.broadcast %c0_i32_28 : i32 to vector<256x1xi32>
    %49 = arith.cmpi ne, %47, %48 : vector<256x1xi32>
    %c0_i32_29 = arith.constant 0 : i32
    %50 = vector.broadcast %c0_i32_29 : i32 to vector<256x1xi32>
    %51 = arith.cmpi slt, %47, %50 : vector<256x1xi32>
    %c0_i32_30 = arith.constant 0 : i32
    %52 = arith.cmpi slt, %45, %c0_i32_30 : i32
    %53 = vector.broadcast %52 : i1 to vector<256x1xi1>
    %54 = vector.broadcast %53 : vector<256x1xi1> to vector<256x1xi1>
    %55 = arith.xori %51, %54 : vector<256x1xi1>
    %56 = arith.andi %55, %49 : vector<256x1xi1>
    %57 = vector.broadcast %45 : i32 to vector<256x1xi32>
    %58 = arith.addi %47, %57 : vector<256x1xi32>
    %59 = arith.select %56, %58, %47 : vector<256x1xi1>, vector<256x1xi32>
    %c0_i32_31 = arith.constant 0 : i32
    %60 = vector.broadcast %c0_i32_31 : i32 to vector<256x1xi32>
    %61 = arith.cmpi sgt, %59, %60 : vector<256x1xi32>
    %c1_i32_32 = arith.constant 1 : i32
    %62 = tpu.dynamic_rotate %38 by %c1_i32_32 dim 0 : vector<256x32xf32>, i32 -> vector<256x32xf32>
    %cst_33 = arith.constant 0.000000e+00 : f32
    %63 = vector.shape_cast %61 : vector<256x1xi1> to vector<256x1xi1>
    %64 = vector.broadcast %63 : vector<256x1xi1> to vector<256x32xi1>
    %65 = vector.broadcast %cst_33 : f32 to vector<256x32xf32>
    %66 = arith.select %64, %62, %65 : vector<256x32xi1>, vector<256x32xf32>
    %c15_i32 = arith.constant 15 : i32
    %67 = vector.broadcast %c15_i32 : i32 to vector<256x1xi32>
    %68 = arith.cmpi slt, %59, %67 : vector<256x1xi32>
    %c255_i32 = arith.constant 255 : i32
    %69 = tpu.dynamic_rotate %38 by %c255_i32 dim 0 : vector<256x32xf32>, i32 -> vector<256x32xf32>
    %cst_34 = arith.constant 0.000000e+00 : f32
    %70 = vector.shape_cast %68 : vector<256x1xi1> to vector<256x1xi1>
    %71 = vector.broadcast %70 : vector<256x1xi1> to vector<256x32xi1>
    %72 = vector.broadcast %cst_34 : f32 to vector<256x32xf32>
    %73 = arith.select %71, %69, %72 : vector<256x32xi1>, vector<256x32xf32>
    %74 = arith.truncf %66 : vector<256x32xf32> to vector<256x32xbf16>
    %c16 = arith.constant 16 : index
    %c0_35 = arith.constant 0 : index
    %75 = vector.load %arg9[%c16, %c0_35] : memref<288x96xbf16, #tpu.memory_space<vmem>>, vector<256x32xbf16>
    tpu.vector_store %arg9[%c16, %c0_35], %74 {strides = array<i32>} : memref<288x96xbf16, #tpu.memory_space<vmem>>, vector<256x32xbf16>,
    %76 = arith.truncf %38 : vector<256x32xf32> to vector<256x32xbf16>
    %c16_36 = arith.constant 16 : index
    %c32 = arith.constant 32 : index
    %77 = vector.load %arg9[%c16_36, %c32] : memref<288x96xbf16, #tpu.memory_space<vmem>>, vector<256x32xbf16>
    tpu.vector_store %arg9[%c16_36, %c32], %76 {strides = array<i32>} : memref<288x96xbf16, #tpu.memory_space<vmem>>, vector<256x32xbf16>,
    %78 = arith.truncf %73 : vector<256x32xf32> to vector<256x32xbf16>
    %c16_37 = arith.constant 16 : index
    %c64 = arith.constant 64 : index
    %79 = vector.load %arg9[%c16_37, %c64] : memref<288x96xbf16, #tpu.memory_space<vmem>>, vector<256x32xbf16>
    tpu.vector_store %arg9[%c16_37, %c64], %78 {strides = array<i32>} : memref<288x96xbf16, #tpu.memory_space<vmem>>, vector<256x32xbf16>,
    %cst_38 = arith.constant 0.000000e+00 : f32
    %80 = vector.broadcast %cst_38 : f32 to vector<256x128xf32>
    %c0_39 = arith.constant 0 : index
    %c0_40 = arith.constant 0 : index
    %81 = vector.load %arg9[%c0_39, %c0_40] : memref<288x96xbf16, #tpu.memory_space<vmem>>, vector<256x96xbf16>
    %c0_41 = arith.constant 0 : index
    %c0_42 = arith.constant 0 : index
    %c0_43 = arith.constant 0 : index
    %82 = vector.load %arg6[%c0_41, %c0_42, %c0_43] : memref<3x96x128xbf16, #tpu.memory_space<vmem>>, vector<1x96x128xbf16>
    %83 = vector.shape_cast %82 : vector<1x96x128xbf16> to vector<96x128xbf16>
    %cst_44 = arith.constant dense<0.000000e+00> : vector<256x128xf32>
    %84 = tpu.matmul %81, %83, %cst_44 {dimension_numbers = #tpu.dot_dimension_numbers<[1], [0], [0], [1], [0, 0, 1, 1], [], []>} : vector<256x96xbf16>, vector<96x128xbf16>, vector<256x128xf32> -> vector<256x128xf32>
    %85 = arith.addf %80, %84 : vector<256x128xf32>
    %c16_45 = arith.constant 16 : index
    %c0_46 = arith.constant 0 : index
    %86 = vector.load %arg9[%c16_45, %c0_46] : memref<288x96xbf16, #tpu.memory_space<vmem>>, vector<256x96xbf16>
    %c1 = arith.constant 1 : index
    %c0_47 = arith.constant 0 : index
    %c0_48 = arith.constant 0 : index
    %87 = vector.load %arg6[%c1, %c0_47, %c0_48] : memref<3x96x128xbf16, #tpu.memory_space<vmem>>, vector<1x96x128xbf16>
    %88 = vector.shape_cast %87 : vector<1x96x128xbf16> to vector<96x128xbf16>
    %cst_49 = arith.constant dense<0.000000e+00> : vector<256x128xf32>
    %89 = tpu.matmul %86, %88, %cst_49 {dimension_numbers = #tpu.dot_dimension_numbers<[1], [0], [0], [1], [0, 0, 1, 1], [], []>} : vector<256x96xbf16>, vector<96x128xbf16>, vector<256x128xf32> -> vector<256x128xf32>
    %90 = arith.addf %85, %89 : vector<256x128xf32>
    %c32_50 = arith.constant 32 : index
    %c0_51 = arith.constant 0 : index
    %91 = vector.load %arg9[%c32_50, %c0_51] : memref<288x96xbf16, #tpu.memory_space<vmem>>, vector<256x96xbf16>
    %c2 = arith.constant 2 : index
    %c0_52 = arith.constant 0 : index
    %c0_53 = arith.constant 0 : index
    %92 = vector.load %arg6[%c2, %c0_52, %c0_53] : memref<3x96x128xbf16, #tpu.memory_space<vmem>>, vector<1x96x128xbf16>
    %93 = vector.shape_cast %92 : vector<1x96x128xbf16> to vector<96x128xbf16>
    %cst_54 = arith.constant dense<0.000000e+00> : vector<256x128xf32>
    %94 = tpu.matmul %91, %93, %cst_54 {dimension_numbers = #tpu.dot_dimension_numbers<[1], [0], [0], [1], [0, 0, 1, 1], [], []>} : vector<256x96xbf16>, vector<96x128xbf16>, vector<256x128xf32> -> vector<256x128xf32>
    %95 = arith.addf %90, %94 : vector<256x128xf32>
    %c0_55 = arith.constant 0 : index
    %c0_56 = arith.constant 0 : index
    %c0_57 = arith.constant 0 : index
    %96 = vector.load %arg7[%c0_55, %c0_56, %c0_57] : memref<1x1x128xf32, #tpu.memory_space<vmem>>, vector<1x1x128xf32>
    %97 = vector.shape_cast %96 : vector<1x1x128xf32> to vector<1x128xf32>
    %98 = vector.broadcast %97 : vector<1x128xf32> to vector<256x128xf32>
    %99 = arith.addf %95, %98 : vector<256x128xf32>
    %100 = arith.truncf %99 : vector<256x128xf32> to vector<256x128xbf16>
    %c0_58 = arith.constant 0 : index
    %c0_59 = arith.constant 0 : index
    %c0_60 = arith.constant 0 : index
    %101 = vector.load %arg8[%c0_58, %c0_59, %c0_60] : memref<1x256x128xbf16, #tpu.memory_space<vmem>>, vector<1x256x128xbf16>
    %102 = vector.shape_cast %101 : vector<1x256x128xbf16> to vector<256x128xbf16>
    %103 = vector.shape_cast %100 : vector<256x128xbf16> to vector<1x256x128xbf16>
    tpu.vector_store %arg8[%c0_58, %c0_59, %c0_60], %103 {strides = array<i32>} : memref<1x256x128xbf16, #tpu.memory_space<vmem>>, vector<1x256x128xbf16>,
    return
  }
  func.func @transform_0(%arg0: i32) -> (i32, i32, i32) {
    %c0_i32 = arith.constant 0 : i32
    %c0_i32_0 = arith.constant 0 : i32
    %c0_i32_1 = arith.constant 0 : i32
    return %arg0, %c0_i32, %c0_i32_0 : i32, i32, i32
  }
  func.func @transform_1(%arg0: i32) -> (i32, i32) {
    %c0_i32 = arith.constant 0 : i32
    %c0_i32_0 = arith.constant 0 : i32
    %c0_i32_1 = arith.constant 0 : i32
    return %c0_i32, %c0_i32_0 : i32, i32
  }
  func.func @transform_2(%arg0: i32) -> (i32, i32) {
    %c0_i32 = arith.constant 0 : i32
    %c0_i32_0 = arith.constant 0 : i32
    %c0_i32_1 = arith.constant 0 : i32
    return %c0_i32, %c0_i32_0 : i32, i32
  }
  func.func @transform_3(%arg0: i32) -> (i32, i32) {
    %c0_i32 = arith.constant 0 : i32
    %c0_i32_0 = arith.constant 0 : i32
    %c0_i32_1 = arith.constant 0 : i32
    return %c0_i32, %c0_i32_0 : i32, i32
  }
  func.func @transform_4(%arg0: i32) -> (i32, i32) {
    %c0_i32 = arith.constant 0 : i32
    %c0_i32_0 = arith.constant 0 : i32
    %c0_i32_1 = arith.constant 0 : i32
    return %c0_i32, %c0_i32_0 : i32, i32
  }
  func.func @transform_5(%arg0: i32) -> (i32, i32, i32) {
    %c0_i32 = arith.constant 0 : i32
    %c0_i32_0 = arith.constant 0 : i32
    %c0_i32_1 = arith.constant 0 : i32
    %c0_i32_2 = arith.constant 0 : i32
    return %c0_i32, %c0_i32_0, %c0_i32_1 : i32, i32, i32
  }
  func.func @transform_6(%arg0: i32) -> (i32, i32, i32) {
    %c0_i32 = arith.constant 0 : i32
    %c0_i32_0 = arith.constant 0 : i32
    %c0_i32_1 = arith.constant 0 : i32
    return %arg0, %c0_i32, %c0_i32_0 : i32, i32, i32
  }
  func.func @transform_7(%arg0: i32) -> (i32, i32, i32) {
    %c0_i32 = arith.constant 0 : i32
    %c0_i32_0 = arith.constant 0 : i32
    %c0_i32_1 = arith.constant 0 : i32
    return %arg0, %c0_i32, %c0_i32_0 : i32, i32, i32
  }
}

module attributes {stable_mosaic.version = 11 : i64} {
  func.func @_stage_kernel(%arg0: i32, %arg1: memref<1x256x128xbf16, #tpu.memory_space<vmem>>, %arg2: memref<128x32xf32, #tpu.memory_space<vmem>>, %arg3: memref<32x128xf32, #tpu.memory_space<vmem>>, %arg4: memref<1x128xf32, #tpu.memory_space<vmem>>, %arg5: memref<1x128xf32, #tpu.memory_space<vmem>>, %arg6: memref<3x384x128xbf16, #tpu.memory_space<vmem>>, %arg7: memref<1x1x128xf32, #tpu.memory_space<vmem>>, %arg8: memref<1x256x32xbf16, #tpu.memory_space<vmem>>, %arg9: memref<32x128xbf16, #tpu.memory_space<vmem>>, %arg10: memref<1x256x128xf32, #tpu.memory_space<vmem>>, %arg11: memref<288x384xbf16, #tpu.memory_space<vmem>>) attributes {dimension_semantics = [#tpu.dimension_semantics<parallel>], iteration_bounds = array<i64: 2>, scalar_prefetch = 0 : i64, scratch_operands = 1 : i64, tpu.core_type = #tpu.core_type<tc>, window_params = [{transform_indices = @transform_0, window_bounds = array<i64: 1, 256, 128>}, {pipeline_mode = #tpu.pipeline_mode<synchronous>, transform_indices = @transform_1, window_bounds = array<i64: 128, 32>}, {pipeline_mode = #tpu.pipeline_mode<synchronous>, transform_indices = @transform_2, window_bounds = array<i64: 32, 128>}, {pipeline_mode = #tpu.pipeline_mode<synchronous>, transform_indices = @transform_3, window_bounds = array<i64: 1, 128>}, {pipeline_mode = #tpu.pipeline_mode<synchronous>, transform_indices = @transform_4, window_bounds = array<i64: 1, 128>}, {pipeline_mode = #tpu.pipeline_mode<synchronous>, transform_indices = @transform_5, window_bounds = array<i64: 3, 384, 128>}, {transform_indices = @transform_6, window_bounds = array<i64: 1, 1, 128>}, {transform_indices = @transform_7, window_bounds = array<i64: 1, 256, 32>}, {pipeline_mode = #tpu.pipeline_mode<synchronous>, transform_indices = @transform_8, window_bounds = array<i64: 32, 128>}, {transform_indices = @transform_9, window_bounds = array<i64: 1, 256, 128>}]} {
    %c0 = arith.constant 0 : index
    %c0_0 = arith.constant 0 : index
    %c0_1 = arith.constant 0 : index
    %0 = vector.load %arg1[%c0, %c0_0, %c0_1] : memref<1x256x128xbf16, #tpu.memory_space<vmem>>, vector<1x256x128xbf16>
    %1 = vector.shape_cast %0 : vector<1x256x128xbf16> to vector<256x128xbf16>
    %2 = arith.extf %1 : vector<256x128xbf16> to vector<256x128xf32>
    %cst = arith.constant dense<0.000000e+00> : vector<128xf32>
    %3 = vector.multi_reduction <add>, %2, %cst [0] : vector<256x128xf32> to vector<128xf32>
    %4 = vector.shape_cast %3 : vector<128xf32> to vector<1x128xf32>
    %5 = arith.mulf %2, %2 : vector<256x128xf32>
    %cst_2 = arith.constant dense<0.000000e+00> : vector<128xf32>
    %6 = vector.multi_reduction <add>, %5, %cst_2 [0] : vector<256x128xf32> to vector<128xf32>
    %7 = vector.shape_cast %6 : vector<128xf32> to vector<1x128xf32>
    %c0_3 = arith.constant 0 : index
    %c0_4 = arith.constant 0 : index
    %8 = vector.load %arg2[%c0_3, %c0_4] : memref<128x32xf32, #tpu.memory_space<vmem>>, vector<128x32xf32>
    %cst_5 = arith.constant dense<0.000000e+00> : vector<1x32xf32>
    %9 = tpu.matmul %4, %8, %cst_5 {dimension_numbers = #tpu.dot_dimension_numbers<[1], [0], [0], [1], [0, 0, 1, 1], [], []>} : vector<1x128xf32>, vector<128x32xf32>, vector<1x32xf32> -> vector<1x32xf32>
    %cst_6 = arith.constant 0.001953125 : f32
    %10 = vector.broadcast %cst_6 : f32 to vector<1x32xf32>
    %11 = arith.mulf %9, %10 : vector<1x32xf32>
    %c0_7 = arith.constant 0 : index
    %c0_8 = arith.constant 0 : index
    %12 = vector.load %arg2[%c0_7, %c0_8] : memref<128x32xf32, #tpu.memory_space<vmem>>, vector<128x32xf32>
    %cst_9 = arith.constant dense<0.000000e+00> : vector<1x32xf32>
    %13 = tpu.matmul %7, %12, %cst_9 {dimension_numbers = #tpu.dot_dimension_numbers<[1], [0], [0], [1], [0, 0, 1, 1], [], []>} : vector<1x128xf32>, vector<128x32xf32>, vector<1x32xf32> -> vector<1x32xf32>
    %cst_10 = arith.constant 0.001953125 : f32
    %14 = vector.broadcast %cst_10 : f32 to vector<1x32xf32>
    %15 = arith.mulf %13, %14 : vector<1x32xf32>
    %16 = arith.mulf %11, %11 : vector<1x32xf32>
    %17 = arith.subf %15, %16 : vector<1x32xf32>
    %cst_11 = arith.constant 9.99999974E-6 : f32
    %18 = vector.broadcast %cst_11 : f32 to vector<1x32xf32>
    %19 = arith.addf %17, %18 : vector<1x32xf32>
    %20 = math.rsqrt %19 : vector<1x32xf32>
    %c0_12 = arith.constant 0 : index
    %c0_13 = arith.constant 0 : index
    %21 = vector.load %arg3[%c0_12, %c0_13] : memref<32x128xf32, #tpu.memory_space<vmem>>, vector<32x128xf32>
    %cst_14 = arith.constant dense<0.000000e+00> : vector<1x128xf32>
    %22 = tpu.matmul %11, %21, %cst_14 {dimension_numbers = #tpu.dot_dimension_numbers<[1], [0], [0], [1], [0, 0, 1, 1], [], []>} : vector<1x32xf32>, vector<32x128xf32>, vector<1x128xf32> -> vector<1x128xf32>
    %c0_15 = arith.constant 0 : index
    %c0_16 = arith.constant 0 : index
    %23 = vector.load %arg3[%c0_15, %c0_16] : memref<32x128xf32, #tpu.memory_space<vmem>>, vector<32x128xf32>
    %cst_17 = arith.constant dense<0.000000e+00> : vector<1x128xf32>
    %24 = tpu.matmul %20, %23, %cst_17 {dimension_numbers = #tpu.dot_dimension_numbers<[1], [0], [0], [1], [0, 0, 1, 1], [], []>} : vector<1x32xf32>, vector<32x128xf32>, vector<1x128xf32> -> vector<1x128xf32>
    %c0_18 = arith.constant 0 : index
    %c0_19 = arith.constant 0 : index
    %25 = vector.load %arg4[%c0_18, %c0_19] : memref<1x128xf32, #tpu.memory_space<vmem>>, vector<1x128xf32>
    %26 = arith.mulf %24, %25 : vector<1x128xf32>
    %c0_20 = arith.constant 0 : index
    %c0_21 = arith.constant 0 : index
    %27 = vector.load %arg5[%c0_20, %c0_21] : memref<1x128xf32, #tpu.memory_space<vmem>>, vector<1x128xf32>
    %28 = arith.mulf %22, %26 : vector<1x128xf32>
    %29 = arith.subf %27, %28 : vector<1x128xf32>
    %30 = vector.broadcast %26 : vector<1x128xf32> to vector<256x128xf32>
    %31 = arith.mulf %2, %30 : vector<256x128xf32>
    %32 = vector.broadcast %29 : vector<1x128xf32> to vector<256x128xf32>
    %33 = arith.addf %31, %32 : vector<256x128xf32>
    %34 = arith.negf %33 : vector<256x128xf32>
    %35 = math.exp %34 : vector<256x128xf32>
    %cst_22 = arith.constant 1.000000e+00 : f32
    %36 = vector.broadcast %cst_22 : f32 to vector<256x128xf32>
    %37 = arith.addf %36, %35 : vector<256x128xf32>
    %38 = arith.divf %36, %37 : vector<256x128xf32>
    %39 = arith.mulf %33, %38 : vector<256x128xf32>
    %cst_23 = arith.constant 0.000000e+00 : bf16
    %40 = vector.broadcast %cst_23 : bf16 to vector<16x384xbf16>
    %c0_24 = arith.constant 0 : index
    %c0_25 = arith.constant 0 : index
    %41 = vector.load %arg11[%c0_24, %c0_25] : memref<288x384xbf16, #tpu.memory_space<vmem>>, vector<16x384xbf16>
    tpu.vector_store %arg11[%c0_24, %c0_25], %40 {strides = array<i32>} : memref<288x384xbf16, #tpu.memory_space<vmem>>, vector<16x384xbf16>,
    %cst_26 = arith.constant 0.000000e+00 : bf16
    %42 = vector.broadcast %cst_26 : bf16 to vector<16x384xbf16>
    %c272 = arith.constant 272 : index
    %c0_27 = arith.constant 0 : index
    %43 = vector.load %arg11[%c272, %c0_27] : memref<288x384xbf16, #tpu.memory_space<vmem>>, vector<16x384xbf16>
    tpu.vector_store %arg11[%c272, %c0_27], %42 {strides = array<i32>} : memref<288x384xbf16, #tpu.memory_space<vmem>>, vector<16x384xbf16>,
    %44 = tpu.iota {dimensions = array<i32: 0>} : vector<256x1xi32>
    %c16_i32 = arith.constant 16 : i32
    %c0_i32 = arith.constant 0 : i32
    %45 = arith.cmpi eq, %c16_i32, %c0_i32 : i32
    %c1_i32 = arith.constant 1 : i32
    %46 = arith.select %45, %c1_i32, %c16_i32 : i32
    %47 = vector.broadcast %46 : i32 to vector<256x1xi32>
    %48 = arith.remsi %44, %47 : vector<256x1xi32>
    %c0_i32_28 = arith.constant 0 : i32
    %49 = vector.broadcast %c0_i32_28 : i32 to vector<256x1xi32>
    %50 = arith.cmpi ne, %48, %49 : vector<256x1xi32>
    %c0_i32_29 = arith.constant 0 : i32
    %51 = vector.broadcast %c0_i32_29 : i32 to vector<256x1xi32>
    %52 = arith.cmpi slt, %48, %51 : vector<256x1xi32>
    %c0_i32_30 = arith.constant 0 : i32
    %53 = arith.cmpi slt, %46, %c0_i32_30 : i32
    %54 = vector.broadcast %53 : i1 to vector<256x1xi1>
    %55 = vector.broadcast %54 : vector<256x1xi1> to vector<256x1xi1>
    %56 = arith.xori %52, %55 : vector<256x1xi1>
    %57 = arith.andi %56, %50 : vector<256x1xi1>
    %58 = vector.broadcast %46 : i32 to vector<256x1xi32>
    %59 = arith.addi %48, %58 : vector<256x1xi32>
    %60 = arith.select %57, %59, %48 : vector<256x1xi1>, vector<256x1xi32>
    %c0_i32_31 = arith.constant 0 : i32
    %61 = vector.broadcast %c0_i32_31 : i32 to vector<256x1xi32>
    %62 = arith.cmpi sgt, %60, %61 : vector<256x1xi32>
    %c1_i32_32 = arith.constant 1 : i32
    %63 = tpu.dynamic_rotate %39 by %c1_i32_32 dim 0 : vector<256x128xf32>, i32 -> vector<256x128xf32>
    %cst_33 = arith.constant 0.000000e+00 : f32
    %64 = vector.shape_cast %62 : vector<256x1xi1> to vector<256x1xi1>
    %65 = vector.broadcast %64 : vector<256x1xi1> to vector<256x128xi1>
    %66 = vector.broadcast %cst_33 : f32 to vector<256x128xf32>
    %67 = arith.select %65, %63, %66 : vector<256x128xi1>, vector<256x128xf32>
    %c15_i32 = arith.constant 15 : i32
    %68 = vector.broadcast %c15_i32 : i32 to vector<256x1xi32>
    %69 = arith.cmpi slt, %60, %68 : vector<256x1xi32>
    %c255_i32 = arith.constant 255 : i32
    %70 = tpu.dynamic_rotate %39 by %c255_i32 dim 0 : vector<256x128xf32>, i32 -> vector<256x128xf32>
    %cst_34 = arith.constant 0.000000e+00 : f32
    %71 = vector.shape_cast %69 : vector<256x1xi1> to vector<256x1xi1>
    %72 = vector.broadcast %71 : vector<256x1xi1> to vector<256x128xi1>
    %73 = vector.broadcast %cst_34 : f32 to vector<256x128xf32>
    %74 = arith.select %72, %70, %73 : vector<256x128xi1>, vector<256x128xf32>
    %75 = arith.truncf %67 : vector<256x128xf32> to vector<256x128xbf16>
    %c16 = arith.constant 16 : index
    %c0_35 = arith.constant 0 : index
    %76 = vector.load %arg11[%c16, %c0_35] : memref<288x384xbf16, #tpu.memory_space<vmem>>, vector<256x128xbf16>
    tpu.vector_store %arg11[%c16, %c0_35], %75 {strides = array<i32>} : memref<288x384xbf16, #tpu.memory_space<vmem>>, vector<256x128xbf16>,
    %77 = arith.truncf %39 : vector<256x128xf32> to vector<256x128xbf16>
    %c16_36 = arith.constant 16 : index
    %c128 = arith.constant 128 : index
    %78 = vector.load %arg11[%c16_36, %c128] : memref<288x384xbf16, #tpu.memory_space<vmem>>, vector<256x128xbf16>
    tpu.vector_store %arg11[%c16_36, %c128], %77 {strides = array<i32>} : memref<288x384xbf16, #tpu.memory_space<vmem>>, vector<256x128xbf16>,
    %79 = arith.truncf %74 : vector<256x128xf32> to vector<256x128xbf16>
    %c16_37 = arith.constant 16 : index
    %c256 = arith.constant 256 : index
    %80 = vector.load %arg11[%c16_37, %c256] : memref<288x384xbf16, #tpu.memory_space<vmem>>, vector<256x128xbf16>
    tpu.vector_store %arg11[%c16_37, %c256], %79 {strides = array<i32>} : memref<288x384xbf16, #tpu.memory_space<vmem>>, vector<256x128xbf16>,
    %cst_38 = arith.constant 0.000000e+00 : f32
    %81 = vector.broadcast %cst_38 : f32 to vector<256x128xf32>
    %c0_39 = arith.constant 0 : index
    %c0_40 = arith.constant 0 : index
    %82 = vector.load %arg11[%c0_39, %c0_40] : memref<288x384xbf16, #tpu.memory_space<vmem>>, vector<256x384xbf16>
    %c0_41 = arith.constant 0 : index
    %c0_42 = arith.constant 0 : index
    %c0_43 = arith.constant 0 : index
    %83 = vector.load %arg6[%c0_41, %c0_42, %c0_43] : memref<3x384x128xbf16, #tpu.memory_space<vmem>>, vector<1x384x128xbf16>
    %84 = vector.shape_cast %83 : vector<1x384x128xbf16> to vector<384x128xbf16>
    %cst_44 = arith.constant dense<0.000000e+00> : vector<256x128xf32>
    %85 = tpu.matmul %82, %84, %cst_44 {dimension_numbers = #tpu.dot_dimension_numbers<[1], [0], [0], [1], [0, 0, 1, 1], [], []>} : vector<256x384xbf16>, vector<384x128xbf16>, vector<256x128xf32> -> vector<256x128xf32>
    %86 = arith.addf %81, %85 : vector<256x128xf32>
    %c16_45 = arith.constant 16 : index
    %c0_46 = arith.constant 0 : index
    %87 = vector.load %arg11[%c16_45, %c0_46] : memref<288x384xbf16, #tpu.memory_space<vmem>>, vector<256x384xbf16>
    %c1 = arith.constant 1 : index
    %c0_47 = arith.constant 0 : index
    %c0_48 = arith.constant 0 : index
    %88 = vector.load %arg6[%c1, %c0_47, %c0_48] : memref<3x384x128xbf16, #tpu.memory_space<vmem>>, vector<1x384x128xbf16>
    %89 = vector.shape_cast %88 : vector<1x384x128xbf16> to vector<384x128xbf16>
    %cst_49 = arith.constant dense<0.000000e+00> : vector<256x128xf32>
    %90 = tpu.matmul %87, %89, %cst_49 {dimension_numbers = #tpu.dot_dimension_numbers<[1], [0], [0], [1], [0, 0, 1, 1], [], []>} : vector<256x384xbf16>, vector<384x128xbf16>, vector<256x128xf32> -> vector<256x128xf32>
    %91 = arith.addf %86, %90 : vector<256x128xf32>
    %c32 = arith.constant 32 : index
    %c0_50 = arith.constant 0 : index
    %92 = vector.load %arg11[%c32, %c0_50] : memref<288x384xbf16, #tpu.memory_space<vmem>>, vector<256x384xbf16>
    %c2 = arith.constant 2 : index
    %c0_51 = arith.constant 0 : index
    %c0_52 = arith.constant 0 : index
    %93 = vector.load %arg6[%c2, %c0_51, %c0_52] : memref<3x384x128xbf16, #tpu.memory_space<vmem>>, vector<1x384x128xbf16>
    %94 = vector.shape_cast %93 : vector<1x384x128xbf16> to vector<384x128xbf16>
    %cst_53 = arith.constant dense<0.000000e+00> : vector<256x128xf32>
    %95 = tpu.matmul %92, %94, %cst_53 {dimension_numbers = #tpu.dot_dimension_numbers<[1], [0], [0], [1], [0, 0, 1, 1], [], []>} : vector<256x384xbf16>, vector<384x128xbf16>, vector<256x128xf32> -> vector<256x128xf32>
    %96 = arith.addf %91, %95 : vector<256x128xf32>
    %c0_54 = arith.constant 0 : index
    %c0_55 = arith.constant 0 : index
    %c0_56 = arith.constant 0 : index
    %97 = vector.load %arg7[%c0_54, %c0_55, %c0_56] : memref<1x1x128xf32, #tpu.memory_space<vmem>>, vector<1x1x128xf32>
    %98 = vector.shape_cast %97 : vector<1x1x128xf32> to vector<1x128xf32>
    %99 = vector.broadcast %98 : vector<1x128xf32> to vector<256x128xf32>
    %100 = arith.addf %96, %99 : vector<256x128xf32>
    %c0_57 = arith.constant 0 : index
    %c0_58 = arith.constant 0 : index
    %c0_59 = arith.constant 0 : index
    %101 = vector.load %arg8[%c0_57, %c0_58, %c0_59] : memref<1x256x32xbf16, #tpu.memory_space<vmem>>, vector<1x256x32xbf16>
    %102 = vector.shape_cast %101 : vector<1x256x32xbf16> to vector<256x32xbf16>
    %c0_60 = arith.constant 0 : index
    %c0_61 = arith.constant 0 : index
    %103 = vector.load %arg9[%c0_60, %c0_61] : memref<32x128xbf16, #tpu.memory_space<vmem>>, vector<32x128xbf16>
    %cst_62 = arith.constant dense<0.000000e+00> : vector<256x128xf32>
    %104 = tpu.matmul %102, %103, %cst_62 {dimension_numbers = #tpu.dot_dimension_numbers<[1], [0], [0], [1], [0, 0, 1, 1], [], []>} : vector<256x32xbf16>, vector<32x128xbf16>, vector<256x128xf32> -> vector<256x128xf32>
    %105 = arith.addf %100, %104 : vector<256x128xf32>
    %c0_63 = arith.constant 0 : index
    %c0_64 = arith.constant 0 : index
    %c0_65 = arith.constant 0 : index
    %106 = vector.load %arg10[%c0_63, %c0_64, %c0_65] : memref<1x256x128xf32, #tpu.memory_space<vmem>>, vector<1x256x128xf32>
    %107 = vector.shape_cast %106 : vector<1x256x128xf32> to vector<256x128xf32>
    %108 = vector.shape_cast %105 : vector<256x128xf32> to vector<1x256x128xf32>
    tpu.vector_store %arg10[%c0_63, %c0_64, %c0_65], %108 {strides = array<i32>} : memref<1x256x128xf32, #tpu.memory_space<vmem>>, vector<1x256x128xf32>,
    return
  }
  func.func @transform_0(%arg0: i32) -> (i32, i32, i32) {
    %c0_i32 = arith.constant 0 : i32
    %c0_i32_0 = arith.constant 0 : i32
    %c0_i32_1 = arith.constant 0 : i32
    return %arg0, %c0_i32, %c0_i32_0 : i32, i32, i32
  }
  func.func @transform_1(%arg0: i32) -> (i32, i32) {
    %c0_i32 = arith.constant 0 : i32
    %c0_i32_0 = arith.constant 0 : i32
    %c0_i32_1 = arith.constant 0 : i32
    return %c0_i32, %c0_i32_0 : i32, i32
  }
  func.func @transform_2(%arg0: i32) -> (i32, i32) {
    %c0_i32 = arith.constant 0 : i32
    %c0_i32_0 = arith.constant 0 : i32
    %c0_i32_1 = arith.constant 0 : i32
    return %c0_i32, %c0_i32_0 : i32, i32
  }
  func.func @transform_3(%arg0: i32) -> (i32, i32) {
    %c0_i32 = arith.constant 0 : i32
    %c0_i32_0 = arith.constant 0 : i32
    %c0_i32_1 = arith.constant 0 : i32
    return %c0_i32, %c0_i32_0 : i32, i32
  }
  func.func @transform_4(%arg0: i32) -> (i32, i32) {
    %c0_i32 = arith.constant 0 : i32
    %c0_i32_0 = arith.constant 0 : i32
    %c0_i32_1 = arith.constant 0 : i32
    return %c0_i32, %c0_i32_0 : i32, i32
  }
  func.func @transform_5(%arg0: i32) -> (i32, i32, i32) {
    %c0_i32 = arith.constant 0 : i32
    %c0_i32_0 = arith.constant 0 : i32
    %c0_i32_1 = arith.constant 0 : i32
    %c0_i32_2 = arith.constant 0 : i32
    return %c0_i32, %c0_i32_0, %c0_i32_1 : i32, i32, i32
  }
  func.func @transform_6(%arg0: i32) -> (i32, i32, i32) {
    %c0_i32 = arith.constant 0 : i32
    %c0_i32_0 = arith.constant 0 : i32
    %c0_i32_1 = arith.constant 0 : i32
    return %arg0, %c0_i32, %c0_i32_0 : i32, i32, i32
  }
  func.func @transform_7(%arg0: i32) -> (i32, i32, i32) {
    %c0_i32 = arith.constant 0 : i32
    %c0_i32_0 = arith.constant 0 : i32
    %c0_i32_1 = arith.constant 0 : i32
    return %arg0, %c0_i32, %c0_i32_0 : i32, i32, i32
  }
  func.func @transform_8(%arg0: i32) -> (i32, i32) {
    %c0_i32 = arith.constant 0 : i32
    %c0_i32_0 = arith.constant 0 : i32
    %c0_i32_1 = arith.constant 0 : i32
    return %c0_i32, %c0_i32_0 : i32, i32
  }
  func.func @transform_9(%arg0: i32) -> (i32, i32, i32) {
    %c0_i32 = arith.constant 0 : i32
    %c0_i32_0 = arith.constant 0 : i32
    %c0_i32_1 = arith.constant 0 : i32
    return %arg0, %c0_i32, %c0_i32_0 : i32, i32, i32
  }
}

</mosaic_0001>

<bundles_post_ra>
// kernel: resnet_forward.2
= control target key start
LH: loop header
LB: loop body
LE: loop exit
PB: predicated region body
PF: predicated region fallthrough
CT: control target
= control target key end

     0   :  { %s4825_s24 = smov 0   ;;  %s6609_s0 = inlined_call_operand.vmem [shape: f32[2,256,32], index: 0, kind: input, shape index: {}]   ;;  %s6610_s1 = inlined_call_operand.vmem [shape: f32[32,32], index: 1, kind: input, shape index: {}]   ;;  %s6611_s2 = inlined_call_operand.vmem [shape: f32[32,32], index: 2, kind: input, shape index: {}]   ;;  %s6612_s3 = inlined_call_operand.vmem [shape: f32[1,32], index: 3, kind: input, shape index: {}]   ;;  %s6613_s4 = inlined_call_operand.vmem [shape: f32[1,32], index: 4, kind: input, shape index: {}]   ;;  %s6614_s5 = inlined_call_operand.vmem [shape: bf16[3,96,128], index: 5, kind: input, shape index: {}]   ;;  %s6615_s6 = inlined_call_operand.vmem [shape: f32[2,1,128], index: 6, kind: input, shape index: {}]   ;;  %s6616_s7 = inlined_call_operand.vmem [shape: bf16[2,256,128], index: 7, kind: output, shape index: {}]  }
   0x1 LB: > { %s3780_s25 = sadd.s32 4294967295, %s4778_s24   ;;  %p3784_p0 = scmp.ge.s32.totalorder %s4778_s24, 1  ;;  %s4778_s24 = sphi %s4825_s24, %s17_s24  }
   0x2   : > { %p245_p1 = scmp.lt.s32.totalorder %s4778_s24, 3 }
   0x4   : > { %p246_p2 = pnand %p3784_p0, %p245_p1 }
   0x6   : > { %249 = sbr.rel (%p246_p2) target bundleno = 1082 (0x43a), region = 48 }
   0xb   : > { %v500_v0 = vld [vmem:[%s6610_s1 + $0x18] sm:$0xff]  ;;  %p280_p3 = scmp.lt.s32.totalorder %s3780_s25, 1  ;;  %v4780_v1 = vmov 0.0   ;;  %v499_v2 = vld [vmem:[%s6610_s1 + $0x10] sm:$0xff]  ;;  %v498_v3 = vld [vmem:[%s6610_s1 + $0x8] sm:$0xff]  ;;  %vm326_vm0 = vcmask 261120  }
   0xc   : > { %4390 = vmatprep.subr.mxu0 %v4780_v1  ;;  %4401 = vmatprep.subr.mxu1 %v4780_v1  ;;  %v497_v4 = vld [vmem:[%s6610_s1] sm:$0xff]  ;;  %vm4781_vm1 = vmmov 0   ;;  %s4782_s29 = smov 32   ;;  %vm2042_vm11 = vcmask 257024   ;;  %s4783_s19 = smov 64  }
   0xd   : > { %4391 = vmatpush3.msra.mxu0 %v500_v0  ;;  %4402 = vmatpush3.msra.mxu1 %v500_v0  ;;  %s6775_s25 = smov (!%p280_p3, %s3780_s25), 1 }
   0xe   : > { %4392 = vmatprep.subr.mxu0 %v4780_v1  ;;  %4403 = vmatprep.subr.mxu1 %v4780_v1  ;;  %s4079_s11 = sshll.u32 %s6775_s25, 8  ;;  %s287_s27 = scalar_lea.vmem %s6615_s6, %s6775_s25 }
   0xf   : > { %4393 = vmatpush3.msra.mxu0 %v499_v2  ;;  %4404 = vmatpush3.msra.mxu1 %v499_v2  ;;  %s4857_s14 = scalar_lea.vmem %s6609_s0, %s4079_s11  ;;  %s4080_s28 = sshll.u32 %s6775_s25, 7 }
  0x10   : > { %4394 = vmatprep.subr.mxu0 %v4780_v1  ;;  %4405 = vmatprep.subr.mxu1 %v4780_v1  ;;  %v4862_v5 = vld [vmem:[%s4857_s14] sm:$0xff]  ;;  %v4865_v6 = vld [vmem:[%s4857_s14 + $0x8] sm:$0xff]  ;;  %v4868_v7 = vld [vmem:[%s4857_s14 + $0x10] sm:$0xff]  ;;  %s6534_s8 = scalar_lea.vmem %s6616_s7, %s4080_s28 }
  0x11   : > { %4395 = vmatpush3.msra.mxu0 %v498_v3  ;;  %4398 = vmatprep.mubr.msk.f32.mxu0 %vm4781_vm1, %v4780_v1  ;;  %v4872_v8 = vld [vmem:[%s4857_s14 + $0x18] sm:$0xff]  ;;  %v327_v9 = vsel %vm326_vm0, %v4862_v5, 0.0  ;;  %v328_v10 = vsel %vm326_vm0, %v4865_v6, 0.0  ;;  %v330_v11 = vsel %vm326_vm0, %v4868_v7, 0.0  ;;  %v4881_v12 = vld [vmem:[%s4857_s14 + $0x20] sm:$0xff]  ;;  %v4889_v15 = vld [vmem:[%s4857_s14 + $0x28] sm:$0xff]  ;;  %v396_v36 = vmul.f32 %v4862_v5, %v4862_v5 }
  0x12   : > { %4396 = vmatprep.subr.mxu0 %v4780_v1  ;;  %4406 = vmatpush3.msra.mxu1 %v498_v3  ;;  %v329_v13 = vadd.f32 %v328_v10, %v327_v9  ;;  %v332_v14 = vsel %vm326_vm0, %v4872_v8, 0.0  ;;  %v334_v17 = vsel %vm326_vm0, %v4881_v12, 0.0  ;;  %v4896_v18 = vld [vmem:[%s4857_s14 + $0x30] sm:$0xff]  ;;  %v4899_v20 = vld [vmem:[%s4857_s14 + $0x38] sm:$0xff]  ;;  %v4902_v21 = vld [vmem:[%s4857_s14 + $0x40] sm:$0xff]  ;;  %v336_v23 = vsel %vm326_vm0, %v4889_v15, 0.0 }
  0x13   : > { %4397 = vmatpush3.msra.mxu0 %v497_v4  ;;  %4407 = vmatprep.subr.mxu1 %v4780_v1  ;;  %v4905_v22 = vld [vmem:[%s4857_s14 + $0x48] sm:$0xff]  ;;  %v4910_v24 = vld [vmem:[%s4857_s14 + $0x50] sm:$0xff]  ;;  %v4913_v25 = vld [vmem:[%s4857_s14 + $0x58] sm:$0xff]  ;;  %v338_v27 = vsel %vm326_vm0, %v4896_v18, 0.0  ;;  %v340_v29 = vsel %vm326_vm0, %v4899_v20, 0.0  ;;  %v342_v30 = vsel %vm326_vm0, %v4902_v21, 0.0  ;;  %v397_v37 = vmul.f32 %v4865_v6, %v4865_v6 }
  0x14   : > { %4408 = vmatpush3.msra.mxu1 %v497_v4  ;;  %4409 = vmatprep.mubr.msk.f32.mxu1 %vm4781_vm1, %v4780_v1  ;;  %v331_v16 = vadd.f32 %v330_v11, %v329_v13  ;;  %v344_v31 = vsel %vm326_vm0, %v4905_v22, 0.0  ;;  %v346_v32 = vsel %vm326_vm0, %v4910_v24, 0.0  ;;  %v348_v33 = vsel %vm326_vm0, %v4913_v25, 0.0  ;;  %v4934_v39 = vld [vmem:[%s4857_s14 + $0x60] sm:$0xff]  ;;  %v4944_v47 = vld [vmem:[%s4857_s14 + $0x68] sm:$0xff]  ;;  %v4952_v53 = vld [vmem:[%s4857_s14 + $0x70] sm:$0xff] }
  0x15   : > { %4412 = vmatprep.subr.mxu0 %v4780_v1  ;;  %4423 = vmatprep.subr.mxu1 %v4780_v1  ;;  %v398_v38 = vmul.f32 %v4868_v7, %v4868_v7  ;;  %v399_v41 = vmul.f32 %v4872_v8, %v4872_v8  ;;  %v400_v43 = vmul.f32 %v4881_v12, %v4881_v12  ;;  %v428_v44 = vsel %vm326_vm0, %v396_v36, 0.0  ;;  %v4960_v59 = vld [vmem:[%s4857_s14 + $0x78] sm:$0xff]  ;;  %v4968_v2 = vld [vmem:[%s4857_s14 + $0x80] sm:$0xff]  ;;  %v4976_v13 = vld [vmem:[%s4857_s14 + $0x88] sm:$0xff] }
  0x16   : > { %v333_v19 = vadd.f32 %v332_v14, %v331_v16  ;;  %v429_v45 = vsel %vm326_vm0, %v397_v37, 0.0  ;;  %v350_v50 = vsel %vm326_vm0, %v4934_v39, 0.0  ;;  %v401_v51 = vmul.f32 %v4889_v15, %v4889_v15 }
  0x17   : > { %v431_v46 = vsel %vm326_vm0, %v398_v38, 0.0  ;;  %v430_v49 = vadd.f32 %v429_v45, %v428_v44  ;;  %v433_v52 = vsel %vm326_vm0, %v399_v41, 0.0  ;;  %v352_v56 = vsel %vm326_vm0, %v4944_v47, 0.0  ;;  %v5000_v38 = vld [vmem:[%s4857_s14 + $0xa0] sm:$0xff]  ;;  %v5008_v45 = vld [vmem:[%s4857_s14 + $0xa8] sm:$0xff] }
  0x18   : > { %v335_v26 = vadd.f32 %v334_v17, %v333_v19  ;;  %v402_v57 = vmul.f32 %v4896_v18, %v4896_v18  ;;  %v435_v58 = vsel %vm326_vm0, %v400_v43, 0.0  ;;  %v354_v62 = vsel %vm326_vm0, %v4952_v53, 0.0 }
  0x19   : > { %v432_v55 = vadd.f32 %v431_v46, %v430_v49  ;;  %v403_v63 = vmul.f32 %v4899_v20, %v4899_v20  ;;  %v437_v0 = vsel %vm326_vm0, %v401_v51, 0.0  ;;  %v356_v9 = vsel %vm326_vm0, %v4960_v59, 0.0 }
  0x1a   : > { %v337_v28 = vadd.f32 %v336_v23, %v335_v26  ;;  %v404_v10 = vmul.f32 %v4902_v21, %v4902_v21  ;;  %v439_v11 = vsel %vm326_vm0, %v402_v57, 0.0  ;;  %v358_v17 = vsel %vm326_vm0, %v4968_v2, 0.0  ;;  %v4984_v26 = vld [vmem:[%s4857_s14 + $0x90] sm:$0xff] }
  0x1b   : > { %v434_v61 = vadd.f32 %v433_v52, %v432_v55  ;;  %v405_v19 = vmul.f32 %v4905_v22, %v4905_v22  ;;  %v441_v23 = vsel %vm326_vm0, %v403_v63, 0.0  ;;  %v407_v36 = vmul.f32 %v4913_v25, %v4913_v25  ;;  %v5016_v52 = vld [vmem:[%s4857_s14 + $0xb0] sm:$0xff] }
  0x1c   : > { %v339_v34 = vadd.f32 %v338_v27, %v337_v28  ;;  %v408_v43 = vmul.f32 %v4934_v39, %v4934_v39  ;;  %v366_v49 = vsel %vm326_vm0, %v5000_v38, 0.0  ;;  %v410_v57 = vmul.f32 %v4952_v53, %v4952_v53 }
  0x1d   : > { %v436_v4 = vadd.f32 %v435_v58, %v434_v61  ;;  %v445_v37 = vsel %vm326_vm0, %v405_v19, 0.0  ;;  %v449_v51 = vsel %vm326_vm0, %v407_v36, 0.0  ;;  %v370_v63 = vsel %vm326_vm0, %v5016_v52, 0.0 }
  0x1e   : > { %v341_v35 = vadd.f32 %v340_v29, %v339_v34  ;;  %v360_v29 = vsel %vm326_vm0, %v4976_v13, 0.0  ;;  %v451_v58 = vsel %vm326_vm0, %v408_v43, 0.0 }
  0x1f   : > { %v438_v16 = vadd.f32 %v437_v0, %v436_v4  ;;  %v411_v0 = vmul.f32 %v4960_v59, %v4960_v59  ;;  %v5032_v4 = vld [vmem:[%s4857_s14 + $0xc0] sm:$0xff] }
  0x20   : > { %v343_v40 = vadd.f32 %v342_v30, %v341_v35  ;;  %v406_v30 = vmul.f32 %v4910_v24, %v4910_v24  ;;  %v362_v35 = vsel %vm326_vm0, %v4984_v26, 0.0 }
  0x21   : > { %v440_v28 = vadd.f32 %v439_v11, %v438_v16  ;;  %v455_v16 = vsel %vm326_vm0, %v410_v57, 0.0 }
  0x22   : > { %v345_v42 = vadd.f32 %v344_v31, %v343_v40  ;;  %v443_v31 = vsel %vm326_vm0, %v404_v10, 0.0  ;;  %v447_v44 = vsel %vm326_vm0, %v406_v30, 0.0  ;;  %v5048_v30 = vld [vmem:[%s4857_s14 + $0xd0] sm:$0xff] }
  0x23   : > { %v442_v34 = vadd.f32 %v441_v23, %v440_v28  ;;  %v413_v28 = vmul.f32 %v4976_v13, %v4976_v13 }
  0x24   : > { %v347_v48 = vadd.f32 %v346_v32, %v345_v42  ;;  %v4992_v32 = vld [vmem:[%s4857_s14 + $0x98] sm:$0xff] }
  0x25   : > { %v444_v41 = vadd.f32 %v443_v31, %v442_v34  ;;  %v364_v42 = vsel %vm326_vm0, %v4992_v32, 0.0  ;;  %v415_v43 = vmul.f32 %v4992_v32, %v4992_v32 }
  0x26   : > { %v349_v54 = vadd.f32 %v348_v33, %v347_v48 }
  0x27   : > { %v446_v48 = vadd.f32 %v445_v37, %v444_v41  ;;  %v5056_v37 = vld [vmem:[%s4857_s14 + $0xd8] sm:$0xff] }
  0x28   : > { %v351_v60 = vadd.f32 %v350_v50, %v349_v54  ;;  %v409_v50 = vmul.f32 %v4944_v47, %v4944_v47 }
  0x29   : > { %v448_v55 = vadd.f32 %v447_v44, %v446_v48  ;;  %v461_v44 = vsel %vm326_vm0, %v413_v28, 0.0 }
  0x2a   : > { %v353_v3 = vadd.f32 %v352_v56, %v351_v60  ;;  %v368_v56 = vsel %vm326_vm0, %v5008_v45, 0.0  ;;  %v5024_v60 = vld [vmem:[%s4857_s14 + $0xb8] sm:$0xff] }
  0x2b   : > { %v372_v11 = vsel %vm326_vm0, %v5024_v60, 0.0 }
  0x2c   : > { %v355_v14 = vadd.f32 %v354_v62, %v353_v3  ;;  %v450_v62 = vadd.f32 %v449_v51, %v448_v55  ;;  %v453_v3 = vsel %vm326_vm0, %v409_v50, 0.0  ;;  %v380_v50 = vsel %vm326_vm0, %v5056_v37, 0.0  ;;  %v5072_v55 = vld [vmem:[%s4857_s14 + $0xe8] sm:$0xff] }
  0x2d   : > { %v416_v51 = vmul.f32 %v5000_v38, %v5000_v38 }
  0x2e   : > { %v357_v27 = vadd.f32 %v356_v9, %v355_v14  ;;  %v452_v10 = vadd.f32 %v451_v58, %v450_v62  ;;  %v412_v14 = vmul.f32 %v4968_v2, %v4968_v2  ;;  %v465_v62 = vsel %vm326_vm0, %v415_v43, 0.0 }
  0x30   : > { %v359_v33 = vadd.f32 %v358_v17, %v357_v27  ;;  %v5040_v17 = vld [vmem:[%s4857_s14 + $0xc8] sm:$0xff]  ;;  %v454_v23 = vadd.f32 %v453_v3, %v452_v10  ;;  %v374_v27 = vsel %vm326_vm0, %v5032_v4, 0.0  ;;  %v459_v36 = vsel %vm326_vm0, %v412_v14, 0.0  ;;  %v5088_v14 = vld [vmem:[%s4857_s14 + $0xf8] sm:$0xff] }
  0x31   : > { %v376_v34 = vsel %vm326_vm0, %v5040_v17, 0.0  ;;  %v418_v10 = vmul.f32 %v5016_v52, %v5016_v52 }
  0x32   : > { %v361_v40 = vadd.f32 %v360_v29, %v359_v33  ;;  %v457_v29 = vsel %vm326_vm0, %v411_v0, 0.0  ;;  %v456_v33 = vadd.f32 %v455_v16, %v454_v23 }
  0x34   : > { %v363_v46 = vadd.f32 %v362_v35, %v361_v40  ;;  %v414_v35 = vmul.f32 %v4984_v26, %v4984_v26  ;;  %v458_v41 = vadd.f32 %v457_v29, %v456_v33  ;;  %v388_v33 = vsel %vm326_vm0, %v5088_v14, 0.0 }
  0x36   : > { %v365_v54 = vadd.f32 %v364_v42, %v363_v46  ;;  %v378_v42 = vsel %vm326_vm0, %v5048_v30, 0.0  ;;  %v5064_v46 = vld [vmem:[%s4857_s14 + $0xe0] sm:$0xff] }
  0x37   : > { %v382_v58 = vsel %vm326_vm0, %v5064_v46, 0.0 }
  0x38   : > { %v367_v61 = vadd.f32 %v366_v49, %v365_v54  ;;  %v460_v49 = vadd.f32 %v459_v36, %v458_v41  ;;  %v463_v54 = vsel %vm326_vm0, %v414_v35, 0.0  ;;  %v471_v35 = vsel %vm326_vm0, %v418_v10, 0.0 }
  0x39   : > { %v421_v41 = vmul.f32 %v5040_v17, %v5040_v17 }
  0x3a   : > { %v369_v9 = vadd.f32 %v368_v56, %v367_v61  ;;  %v462_v57 = vadd.f32 %v461_v44, %v460_v49  ;;  %v417_v61 = vmul.f32 %v5008_v45, %v5008_v45 }
  0x3c   : > { %v371_v19 = vadd.f32 %v370_v63, %v369_v9  ;;  %v5080_v63 = vld [vmem:[%s4857_s14 + $0xf0] sm:$0xff]  ;;  %v464_v3 = vadd.f32 %v463_v54, %v462_v57  ;;  %v384_v9 = vsel %vm326_vm0, %v5072_v55, 0.0  ;;  %v469_v28 = vsel %vm326_vm0, %v417_v61, 0.0 }
  0x3d   : > { %v386_v23 = vsel %vm326_vm0, %v5080_v63, 0.0  ;;  %v423_v54 = vmul.f32 %v5056_v37, %v5056_v37  ;;  %v424_v61 = vmul.f32 %v5064_v46, %v5064_v46 }
  0x3e   : > { %v373_v31 = vadd.f32 %v372_v11, %v371_v19  ;;  %v467_v11 = vsel %vm326_vm0, %v416_v51, 0.0  ;;  %v466_v19 = vadd.f32 %v465_v62, %v464_v3 }
  0x3f   : > { %v481_v10 = vsel %vm326_vm0, %v423_v54, 0.0 }
  0x40   : > { %v375_v40 = vadd.f32 %v374_v27, %v373_v31  ;;  %v419_v27 = vmul.f32 %v5024_v60, %v5024_v60  ;;  %v468_v31 = vadd.f32 %v467_v11, %v466_v19  ;;  %v426_v19 = vmul.f32 %v5080_v63, %v5080_v63 }
  0x42   : > { %v377_v48 = vadd.f32 %v376_v34, %v375_v40  ;;  %v420_v34 = vmul.f32 %v5032_v4, %v5032_v4  ;;  %v470_v40 = vadd.f32 %v469_v28, %v468_v31 }
  0x44   : > { %v379_v56 = vadd.f32 %v378_v42, %v377_v48  ;;  %v473_v42 = vsel %vm326_vm0, %v419_v27, 0.0  ;;  %v472_v44 = vadd.f32 %v471_v35, %v470_v40  ;;  %v422_v48 = vmul.f32 %v5048_v30, %v5048_v30  ;;  %v656_v35 = vld [vmem:[%s6611_s2 + $0x18] sm:$0xff] }
  0x45   : > { %v475_v49 = vsel %vm326_vm0, %v420_v34, 0.0 }
  0x46   : > { %v381_v0 = vadd.f32 %v380_v50, %v379_v56  ;;  %v474_v51 = vadd.f32 %v473_v42, %v472_v44  ;;  %v477_v56 = vsel %vm326_vm0, %v421_v41, 0.0  ;;  %v479_v62 = vsel %vm326_vm0, %v422_v48, 0.0  ;;  %v655_v41 = vld [vmem:[%s6611_s2 + $0x10] sm:$0xff] }
  0x48   : > { %v383_v16 = vadd.f32 %v382_v58, %v381_v0  ;;  %v476_v58 = vadd.f32 %v475_v49, %v474_v51 }
  0x4a   : > { %v385_v29 = vadd.f32 %v384_v9, %v383_v16  ;;  %v478_v3 = vadd.f32 %v477_v56, %v476_v58  ;;  %v425_v9 = vmul.f32 %v5072_v55, %v5072_v55  ;;  %v653_v58 = vld [vmem:[%s6611_s2] sm:$0xff] }
  0x4c   : > { %v387_v36 = vadd.f32 %v386_v23, %v385_v29  ;;  %v480_v16 = vadd.f32 %v479_v62, %v478_v3  ;;  %v483_v23 = vsel %vm326_vm0, %v424_v61, 0.0  ;;  %v427_v29 = vmul.f32 %v5088_v14, %v5088_v14 }
  0x4d   : > { %v485_v31 = vsel %vm326_vm0, %v425_v9, 0.0 }
  0x4e   : > { %v389_v43 = vadd.f32 %v388_v33, %v387_v36  ;;  %v482_v28 = vadd.f32 %v481_v10, %v480_v16  ;;  %v487_v36 = vsel %vm326_vm0, %v426_v19, 0.0  ;;  %v489_v42 = vsel %vm326_vm0, %v427_v29, 0.0 }
  0x50   : > { %v390_v50 = vrot.slane %v389_v43, 4  ;;  %v484_v34 = vadd.f32 %v483_v23, %v482_v28  ;;  %v808_v28 = vlaneseq }
  0x52   : > { %v391_v57 = vadd.f32 %v390_v50, %v389_v43  ;;  %v486_v40 = vadd.f32 %v485_v31, %v484_v34  ;;  %v5149_v29 = vshrl.u32 %v808_v28, 7  ;;  %v803_v31 = vld [vmem:[%s6612_s3] sm:$0x1] }
  0x54   : > { %v392_v0 = vrot.slane %v391_v57, 2  ;;  %v488_v43 = vadd.f32 %v487_v36, %v486_v40  ;;  %v805_v36 = vld [vmem:[%s6613_s4] sm:$0x1]  ;;  %vm1785_vm2 = vcmp.lt.s32.totalorder %v5149_v29, 7  ;;  %vm1592_vm7 = vcmp.lt.s32.totalorder %v5149_v29, 1 }
  0x56   : > { %v393_v11 = vadd.f32 %v392_v0, %v391_v57  ;;  %v490_v44 = vadd.f32 %v489_v42, %v488_v43  ;;  %v654_v57 = vld [vmem:[%s6611_s2 + $0x8] sm:$0xff] }
  0x58   : > { %v394_v27 = vrot.slane %v393_v11, 1  ;;  %v491_v48 = vrot.slane %v490_v44, 4 }
  0x5a   : > { %v395_v33 = vadd.f32 %v394_v27, %v393_v11  ;;  %v492_v49 = vadd.f32 %v491_v48, %v490_v44 }
  0x5c   : > { %4399 = vmatmul.mubr.msk.f32.vlgmr.msra.gmra.mxu0 %vm326_vm0, %v395_v33  ;;  %v493_v50 = vrot.slane %v492_v49, 2  ;;  %v810_v33 = vsub.s32 0, %v5149_v29 }
  0x5d   : > { %4413 = vmatpush3.msra.mxu0 %v656_v35  ;;  %4420 = vmatprep.mubr.msk.f32.mxu0 %vm4781_vm1, %v4780_v1 }
  0x5e   : > { %4414 = vmatprep.subr.mxu0 %v4780_v1  ;;  %v494_v51 = vadd.f32 %v493_v50, %v492_v49 }
  0x5f   : > { %4415 = vmatpush3.msra.mxu0 %v655_v41 }
  0x60   : > { %4416 = vmatprep.subr.mxu0 %v4780_v1  ;;  %v495_v54 = vrot.slane %v494_v51, 1 }
  0x61   : > { %4417 = vmatpush3.msra.mxu0 %v654_v57 }
  0x62   : > { %v496_v56 = vadd.f32 %v495_v54, %v494_v51  ;;  %4418 = vmatprep.subr.mxu0 %v4780_v1 }
  0x63   : > { %4419 = vmatpush3.msra.mxu0 %v653_v58 }
  0x64   : > { %4410 = vmatmul.mubr.msk.f32.vlgmr.msra.gmra.mxu1 %vm326_vm0, %v496_v56 }
  0x65   : > { %4424 = vmatpush3.msra.mxu1 %v656_v35  ;;  %4431 = vmatprep.mubr.msk.f32.mxu1 %vm4781_vm1, %v4780_v1 }
  0x66   : > { %4425 = vmatprep.subr.mxu1 %v4780_v1 }
  0x67   : > { %4426 = vmatpush3.msra.mxu1 %v655_v41 }
  0x68   : > { %4427 = vmatprep.subr.mxu1 %v4780_v1 }
  0x69   : > { %4428 = vmatpush3.msra.mxu1 %v654_v57 }
  0x6a   : > { %4429 = vmatprep.subr.mxu1 %v4780_v1 }
  0x6b   : > { %4430 = vmatpush3.msra.mxu1 %v653_v58 }
 0x11c   : > { %v570_v61 = vpop.f32.mrf.mxu0 }
 0x11d   : > { %v574_v62 = vmul.f32 0.00390625, %v570_v61 }
 0x11e   : > { %v4400_v0 = vpop.f32.mrf.mxu0 }
 0x11f   : > { %4421 = vmatmul.mubr.msk.f32.vlgmr.msra.gmra.mxu0 %vm326_vm0, %v574_v62  ;;  %v649_v3 = vmul.f32 %v574_v62, %v574_v62 }
 0x124   : > { %v644_v9 = vpop.f32.mrf.mxu1 }
 0x125   : > { %v648_v10 = vmul.f32 0.00390625, %v644_v9 }
 0x126   : > { %v4411_v11 = vpop.f32.mrf.mxu1 }
 0x127   : > { %v650_v16 = vsub.f32 %v648_v10, %v649_v3 }
 0x129   : > { %v651_v19 = vadd.f32 1e-05, %v650_v16 }
 0x12b   : > { %4642 = vrsqrt.f32 %v651_v19 }
 0x138   : > { %v4643_v23 = vpop.eup %4642 }
 0x139   : > { %4432 = vmatmul.mubr.msk.f32.vlgmr.msra.gmra.mxu1 %vm326_vm0, %v4643_v23 }
 0x1df   : > { %v726_v1 = vpop.f32.mrf.mxu0 }
 0x1e1   : > { %v4422_v27 = vpop.f32.mrf.mxu0 }
 0x1f9   : > { %v799_v34 = vpop.f32.mrf.mxu1 }
 0x1fa   : > { %v804_v35 = vmul.f32 %v803_v31, %v799_v34 }
 0x1fb   : > { %v4433_v40 = vpop.f32.mrf.mxu1 }
 0x1fc   : > { %v806_v41 = vmul.f32 %v804_v35, %v726_v1  ;;  %v5158_v42 = vrot.slane %v804_v35, %v810_v33 }
 0x1fe   : > { %v807_v43 = vsub.f32 %v805_v36, %v806_v41  ;;  %v830_v44 = vmul.f32 %v5158_v42, %v4984_v26  ;;  %v828_v49 = vmul.f32 %v5158_v42, %v4968_v2  ;;  %v831_v50 = vmul.f32 %v5158_v42, %v4992_v32 }
 0x1ff   : > { %v829_v51 = vmul.f32 %v5158_v42, %v4976_v13  ;;  %v813_v54 = vmul.f32 %v5158_v42, %v4865_v6  ;;  %v812_v56 = vmul.f32 %v5158_v42, %v4862_v5  ;;  %v815_v26 = vmul.f32 %v5158_v42, %v4872_v8 }
 0x200   : > { %v5162_v48 = vrot.slane %v807_v43, %v810_v33  ;;  %v814_v8 = vmul.f32 %v5158_v42, %v4868_v7  ;;  %v833_v58 = vmul.f32 %v5158_v42, %v5008_v45  ;;  %v832_v7 = vmul.f32 %v5158_v42, %v5000_v38 }
 0x201   : > { %v835_v16 = vmul.f32 %v5158_v42, %v5024_v60  ;;  %v834_v1 = vmul.f32 %v5158_v42, %v5016_v52  ;;  %v817_v28 = vmul.f32 %v5158_v42, %v4889_v15  ;;  %v816_v33 = vmul.f32 %v5158_v42, %v4881_v12 }
 0x202   : > { %v5177_v57 = vadd.f32 %v5162_v48, %v830_v44  ;;  %v5180_v2 = vadd.f32 %v5162_v48, %v828_v49  ;;  %v5183_v32 = vadd.f32 %v5162_v48, %v831_v50  ;;  %v5186_v13 = vadd.f32 %v5162_v48, %v829_v51 }
 0x203   : > { %v5189_v6 = vadd.f32 %v5162_v48, %v813_v54  ;;  %v5192_v5 = vadd.f32 %v5162_v48, %v812_v56  ;;  %v5202_v3 = vadd.f32 %v5162_v48, %v815_v26  ;;  %v5206_v10 = vadd.f32 %v5162_v48, %v814_v8 }
 0x204   : > { %v3811_v61 = vmul.f32 -1.442695, %v5177_v57  ;;  %v3809_v62 = vmul.f32 -1.442695, %v5180_v2  ;;  %v3812_v0 = vmul.f32 -1.442695, %v5183_v32  ;;  %v5212_v11 = vadd.f32 %v5162_v48, %v833_v58 }
 0x205   : > { %v3810_v9 = vmul.f32 -1.442695, %v5186_v13  ;;  %v3794_v45 = vmul.f32 -1.442695, %v5189_v6  ;;  %v3793_v19 = vmul.f32 -1.442695, %v5192_v5  ;;  %v5218_v23 = vadd.f32 %v5162_v48, %v832_v7 }
 0x206   : > { %4644 = vpow2.f32 %v3811_v61  ;;  %v3796_v38 = vmul.f32 -1.442695, %v5202_v3  ;;  %v5224_v27 = vadd.f32 %v5162_v48, %v835_v16  ;;  %v3795_v60 = vmul.f32 -1.442695, %v5206_v10 }
 0x207   : > { %4646 = vpow2.f32 %v3809_v62  ;;  %v5230_v31 = vadd.f32 %v5162_v48, %v834_v1  ;;  %v3814_v52 = vmul.f32 -1.442695, %v5212_v11  ;;  %v5236_v34 = vadd.f32 %v5162_v48, %v817_v28 }
 0x208   : > { %4648 = vpow2.f32 %v3812_v0  ;;  %v819_v35 = vmul.f32 %v5158_v42, %v4899_v20  ;;  %v3813_v15 = vmul.f32 -1.442695, %v5218_v23  ;;  %v5242_v36 = vadd.f32 %v5162_v48, %v816_v33 }
 0x209   : > { %4650 = vpow2.f32 %v3810_v9  ;;  %v818_v40 = vmul.f32 %v5158_v42, %v4896_v18  ;;  %v3816_v12 = vmul.f32 -1.442695, %v5224_v27  ;;  %v3815_v43 = vmul.f32 -1.442695, %v5230_v31 }
 0x20a   : > { %4652 = vpow2.f32 %v3794_v45  ;;  %v5248_v41 = vadd.f32 %v5162_v48, %v819_v35  ;;  %v3798_v44 = vmul.f32 -1.442695, %v5236_v34  ;;  %v3797_v49 = vmul.f32 -1.442695, %v5242_v36 }
 0x20b   : > { %4654 = vpow2.f32 %v3793_v19  ;;  %v5252_v20 = vadd.f32 %v5162_v48, %v818_v40  ;;  %v837_v62 = vmul.f32 %v5158_v42, %v5040_v17  ;;  %v836_v0 = vmul.f32 %v5158_v42, %v5032_v4 }
 0x20c   : > { %4656 = vpow2.f32 %v3796_v38  ;;  %v3800_v18 = vmul.f32 -1.442695, %v5248_v41  ;;  %v839_v45 = vmul.f32 %v5158_v42, %v5056_v37  ;;  %v838_v16 = vmul.f32 %v5158_v42, %v5048_v30 }
 0x20d   : > { %4658 = vpow2.f32 %v3795_v60  ;;  %v3799_v50 = vmul.f32 -1.442695, %v5252_v20  ;;  %v5267_v38 = vadd.f32 %v5162_v48, %v837_v62  ;;  %v5270_v17 = vadd.f32 %v5162_v48, %v836_v0 }
 0x20e   : > { %4660 = vpow2.f32 %v3814_v52  ;;  %v5273_v37 = vadd.f32 %v5162_v48, %v839_v45  ;;  %v5276_v30 = vadd.f32 %v5162_v48, %v838_v16  ;;  %v820_v40 = vmul.f32 %v5158_v42, %v4902_v21 }
 0x20f   : > { %4662 = vpow2.f32 %v3813_v15  ;;  %v821_v15 = vmul.f32 %v5158_v42, %v4905_v22  ;;  %v823_v21 = vmul.f32 %v5158_v42, %v4913_v25 }
 0x210   : > { %4664 = vpow2.f32 %v3816_v12  ;;  %v3819_v62 = vmul.f32 -1.442695, %v5276_v30 }
 0x211   : > { %4666 = vpow2.f32 %v3815_v43 }
 0x212   : > { %4668 = vpow2.f32 %v3798_v44  ;;  %v3818_v44 = vmul.f32 -1.442695, %v5267_v38 }
 0x213   : > { %v4645_v51 = vpop.eup %4644  ;;  %4670 = vpow2.f32 %v3797_v49  ;;  %v3817_v49 = vmul.f32 -1.442695, %v5270_v17 }
 0x214   : > { %v4647_v54 = vpop.eup %4646  ;;  %v996_v56 = vadd.f32 1.0, %v4645_v51  ;;  %4672 = vpow2.f32 %v3800_v18  ;;  %v5285_v51 = vadd.f32 %v5162_v48, %v821_v15 }
 0x215   : > { %v4649_v26 = vpop.eup %4648  ;;  %v994_v8 = vadd.f32 1.0, %v4647_v54  ;;  %4674 = vpow2.f32 %v3799_v50  ;;  %v5288_v54 = vadd.f32 %v5162_v48, %v820_v40 }
 0x216   : > { %v4651_v58 = vpop.eup %4650  ;;  %4676 = vrcp.f32 %v996_v56  ;;  %v997_v61 = vadd.f32 1.0, %v4649_v26  ;;  %v822_v26 = vmul.f32 %v5158_v42, %v4910_v24  ;;  %v841_v24 = vmul.f32 %v5158_v42, %v5072_v55 }
 0x217   : > { %v4653_v9 = vpop.eup %4652  ;;  %4678 = vrcp.f32 %v994_v8  ;;  %v995_v7 = vadd.f32 1.0, %v4651_v58 }
 0x218   : > { %v4655_v19 = vpop.eup %4654  ;;  %4680 = vrcp.f32 %v997_v61  ;;  %v979_v1 = vadd.f32 1.0, %v4653_v9  ;;  %v3820_v61 = vmul.f32 -1.442695, %v5273_v37  ;;  %v5300_v45 = vadd.f32 %v5162_v48, %v822_v26 }
 0x219   : > { %v4657_v28 = vpop.eup %4656  ;;  %4682 = vrcp.f32 %v995_v7  ;;  %v978_v4 = vadd.f32 1.0, %v4655_v19  ;;  %v5297_v7 = vadd.f32 %v5162_v48, %v823_v21  ;;  %v840_v19 = vmul.f32 %v5158_v42, %v5064_v46 }
 0x21a   : > { %v4659_v60 = vpop.eup %4658  ;;  %4684 = vrcp.f32 %v979_v1  ;;  %v981_v33 = vadd.f32 1.0, %v4657_v28  ;;  %v825_v26 = vmul.f32 %v5158_v42, %v4944_v47 }
 0x21b   : > { %v4661_v52 = vpop.eup %4660  ;;  %4686 = vrcp.f32 %v978_v4  ;;  %v980_v35 = vadd.f32 1.0, %v4659_v60  ;;  %v3802_v4 = vmul.f32 -1.442695, %v5285_v51  ;;  %v3801_v60 = vmul.f32 -1.442695, %v5288_v54 }
 0x21c   : > { %v4663_v12 = vpop.eup %4662  ;;  %4688 = vrcp.f32 %v981_v33  ;;  %v999_v43 = vadd.f32 1.0, %v4661_v52  ;;  %v5312_v15 = vadd.f32 %v5162_v48, %v840_v19  ;;  %v3804_v46 = vmul.f32 -1.442695, %v5297_v7 }
 0x21d   : > { %v4665_v18 = vpop.eup %4664  ;;  %4690 = vrcp.f32 %v980_v35  ;;  %v998_v50 = vadd.f32 1.0, %v4663_v12  ;;  %v5309_v35 = vadd.f32 %v5162_v48, %v841_v24  ;;  %v3803_v12 = vmul.f32 -1.442695, %v5300_v45 }
 0x21e   : > { %v4667_v22 = vpop.eup %4666  ;;  %4692 = vrcp.f32 %v999_v43  ;;  %v1001_v56 = vadd.f32 1.0, %v4665_v18  ;;  %v3821_v47 = vmul.f32 -1.442695, %v5312_v15 }
 0x21f   : > { %v4669_v8 = vpop.eup %4668  ;;  %4694 = vrcp.f32 %v998_v50  ;;  %v1000_v58 = vadd.f32 1.0, %v4667_v22  ;;  %v843_v50 = vmul.f32 %v5158_v42, %v5088_v14  ;;  %v842_v22 = vmul.f32 %v5158_v42, %v5080_v63 }
 0x220   : > { %v4671_v0 = vpop.eup %4670  ;;  %4696 = vrcp.f32 %v1001_v56  ;;  %v983_v9 = vadd.f32 1.0, %v4669_v8  ;;  %v824_v63 = vmul.f32 %v5158_v42, %v4934_v39  ;;  %v5351_v39 = vadd.f32 %v5162_v48, %v825_v26 }
 0x221   : > { %v4673_v25 = vpop.eup %4672  ;;  %4698 = vrcp.f32 %v1000_v58  ;;  %v982_v16 = vadd.f32 1.0, %v4671_v0  ;;  %v5412_v26 = vadd.s32 24, %v5149_v29 }
 0x222   : > { %v4675_v1 = vpop.eup %4674  ;;  %4700 = vrcp.f32 %v983_v9  ;;  %v985_v28 = vadd.f32 1.0, %v4673_v25 }
 0x223   : > { %v4677_v33 = vpop.eup %4676  ;;  %4702 = vrcp.f32 %v982_v16  ;;  %v984_v52 = vadd.f32 1.0, %v4675_v1  ;;  %v826_v1 = vmul.f32 %v5158_v42, %v4952_v53  ;;  %v5381_v53 = vadd.s32 136, %v5149_v29 }
 0x224   : > { %v4679_v55 = vpop.eup %4678  ;;  %v5315_v40 = vmul.f32 %v4677_v33, %v5177_v57  ;;  %4704 = vrcp.f32 %v985_v28 }
 0x225   : > { %v4681_v43 = vpop.eup %4680  ;;  %v5320_v18 = vmul.f32 %v4679_v55, %v5180_v2  ;;  %4706 = vrcp.f32 %v984_v52  ;;  %v3806_v55 = vmul.f32 -1.442695, %v5351_v39 }
 0x226   : > { %v4683_v56 = vpop.eup %4682  ;;  %v4131_v57 = vpack.c.bf16 %v5315_v40, %v5315_v40  ;;  %v5329_v21 = vmul.f32 %v4681_v43, %v5183_v32  ;;  %4708 = vpow2.f32 %v3818_v44  ;;  %v3822_v32 = vmul.f32 -1.442695, %v5309_v35 }
 0x227   : > { %v4685_v2 = vpop.eup %4684  ;;  %v4129_v8 = vpack.c.bf16 %v5320_v18, %v5320_v18  ;;  %v5336_v14 = vmul.f32 %v4683_v56, %v5186_v13  ;;  %4710 = vpow2.f32 %v3817_v49  ;;  %v5344_v44 = vadd.f32 %v5162_v48, %v843_v50 }
 0x228   : > { %v4687_v58 = vpop.eup %4686  ;;  %2207 = vrot.lane.b32.xlu1 %v4131_v57, %s4782_s29  ;;  %4712 = vpow2.f32 %v3820_v61  ;;  %v5348_v13 = vadd.f32 %v5162_v48, %v842_v22  ;;  %v5354_v49 = vadd.f32 %v5162_v48, %v824_v63  ;;  %v4132_v9 = vpack.c.bf16 %v5329_v21, %v5329_v21 }
 0x229   : > { %v4689_v0 = vpop.eup %4688  ;;  %2203 = vrot.lane.b32.xlu0 %v4129_v8, %s4782_s29  ;;  %4714 = vpow2.f32 %v3819_v62  ;;  %v5359_v25 = vmul.f32 %v4685_v2, %v5189_v6  ;;  %v827_v62 = vmul.f32 %v5158_v42, %v4960_v59  ;;  %v4130_v24 = vpack.c.bf16 %v5336_v14, %v5336_v14 }
 0x22a   : > { %v4691_v61 = vpop.eup %4690  ;;  %4716 = vpow2.f32 %v3802_v4  ;;  %v5366_v19 = vmul.f32 %v4687_v58, %v5192_v5  ;;  %v3824_v6 = vmul.f32 -1.442695, %v5344_v44  ;;  %v3823_v5 = vmul.f32 -1.442695, %v5348_v13 }
 0x22b   : > { %v4693_v16 = vpop.eup %4692  ;;  %4718 = vpow2.f32 %v3801_v60  ;;  %v5373_v4 = vadd.f32 %v5162_v48, %v827_v62  ;;  %v5378_v60 = vadd.f32 %v5162_v48, %v826_v1  ;;  %v4114_v33 = vpack.c.bf16 %v5359_v25, %v5359_v25 }
 0x22c   : > { %v4695_v28 = vpop.eup %4694  ;;  %2209 = vrot.lane.b32.xlu1 %v4132_v9, %s4782_s29  ;;  %4720 = vpow2.f32 %v3804_v46  ;;  %v5386_v52 = vmul.f32 %v4689_v0, %v5202_v3  ;;  %v5394_v48 = vmul.f32 %v4691_v61, %v5206_v10  ;;  %v3805_v43 = vmul.f32 -1.442695, %v5354_v49 }
 0x22d   : > { %v4697_v59 = vpop.eup %4696  ;;  %2205 = vrot.lane.b32.xlu0 %v4130_v24, %s4782_s29  ;;  %4722 = vpow2.f32 %v3803_v12  ;;  %v4113_v12 = vpack.c.bf16 %v5366_v19, %v5366_v19  ;;  %v3808_v3 = vmul.f32 -1.442695, %v5373_v4  ;;  %v5402_v22 = vadd.s32 152, %v5149_v29 }
 0x22e   : > { %v4699_v42 = vpop.eup %4698  ;;  %4724 = vpow2.f32 %v3822_v32  ;;  %v5405_v56 = vadd.s32 8, %v5149_v29  ;;  %v3807_v10 = vmul.f32 -1.442695, %v5378_v60  ;;  %v5415_v2 = vadd.s32 168, %v5149_v29 }
 0x22f   : > { %v5389_v46 = vpop.eup %4700  ;;  %4726 = vpow2.f32 %v3821_v47  ;;  %v4116_v63 = vpack.c.bf16 %v5386_v52, %v5386_v52  ;;  %v5422_v58 = vmul.f32 %v4693_v16, %v5212_v11  ;;  %v5425_v32 = vadd.s32 184, %v5149_v29 }
 0x230   : > { %v5397_v50 = vpop.eup %4702  ;;  %2173 = vrot.lane.b32.xlu1 %v4114_v33, %s4782_s29  ;;  %4728 = vpow2.f32 %v3824_v6  ;;  %v4115_v0 = vpack.c.bf16 %v5394_v48, %v5394_v48  ;;  %v5430_v61 = vmul.f32 %v4695_v28, %v5218_v23  ;;  %v5433_v9 = vadd.s32 40, %v5149_v29 }
 0x231   : > { %v5407_v57 = vpop.eup %4704  ;;  %2171 = vrot.lane.b32.xlu0 %v4113_v12, %s4782_s29  ;;  %4730 = vpow2.f32 %v3823_v5  ;;  %6639 = vst [vmem:[#allocation3_spill] sm:$0xff] %v5425_v32  ;;  %v5438_v24 = vadd.s32 56, %v5149_v29  ;;  %v4134_v33 = vpack.c.bf16 %v5422_v58, %v5422_v58 }
 0x232   : > { %v5417_v8 = vpop.eup %4706  ;;  %4732 = vpow2.f32 %v3806_v55  ;;  %6640 = vst [vmem:[#allocation4_spill] sm:$0xff] %v5433_v9  ;;  %v5446_v55 = vmul.f32 %v4697_v59, %v5224_v27 }
 0x233   : > { %v4709_v47 = vpop.eup %4708  ;;  %4734 = vpow2.f32 %v3805_v43  ;;  %6641 = vst [vmem:[#allocation5_spill] sm:$0xff] %v5438_v24  ;;  %v5505_v28 = vmul.f32 %v5417_v8, %v5252_v20  ;;  %v6643_v24 = vand.u32 15, %v5381_v53 }
 0x234   : > { %v4711_v62 = vpop.eup %4710  ;;  %2177 = vrot.lane.b32.xlu1 %v4116_v63, %s4782_s29  ;;  %v1003_v11 = vadd.f32 1.0, %v4709_v47  ;;  %4736 = vpow2.f32 %v3808_v3  ;;  %v4133_v3 = vpack.c.bf16 %v5430_v61, %v5430_v61  ;;  %v5451_v63 = vmul.f32 %v4699_v42, %v5230_v31 }
 0x235   : > { %v4713_v1 = vpop.eup %4712  ;;  %2175 = vrot.lane.b32.xlu0 %v4115_v0, %s4782_s29  ;;  %v1002_v6 = vadd.f32 1.0, %v4711_v62  ;;  %4738 = vpow2.f32 %v3807_v10  ;;  %vm5524_vm3 = vcmp.lt.s32.totalorder %v6643_v24, 15  ;;  %v4119_v8 = vpack.c.bf16 %v5505_v28, %v5505_v28 }
 0x236   : > { %v4715_v5 = vpop.eup %4714  ;;  %4740 = vrcp.f32 %v1003_v11  ;;  %v1005_v12 = vadd.f32 1.0, %v4713_v1  ;;  %v5499_v1 = vmul.f32 %v5407_v57, %v5248_v41  ;;  %v5539_v24 = vadd.s32 208, %v5149_v29 }
 0x237   : > { %v4717_v43 = vpop.eup %4716  ;;  %4742 = vrcp.f32 %v1002_v6  ;;  %v1004_v10 = vadd.f32 1.0, %v4715_v5  ;;  %v4136_v6 = vpack.c.bf16 %v5446_v55, %v5446_v55  ;;  %v5463_v5 = vmul.f32 %v5389_v46, %v5236_v34 }
 0x238   : > { %v4719_v47 = vpop.eup %4718  ;;  %2213 = vrot.lane.b32.xlu1 %v4134_v33, %s4782_s29  ;;  %4744 = vrcp.f32 %v1005_v12  ;;  %v987_v0 = vadd.f32 1.0, %v4717_v43  ;;  %v4135_v43 = vpack.c.bf16 %v5451_v63, %v5451_v63  ;;  %v5474_v34 = vadd.s32 200, %v5149_v29 }
 0x239   : > { %v4721_v59 = vpop.eup %4720  ;;  %2211 = vrot.lane.b32.xlu0 %v4133_v3, %s4782_s29  ;;  %4746 = vrcp.f32 %v1004_v10  ;;  %v986_v11 = vadd.f32 1.0, %v4719_v47  ;;  %v5469_v3 = vmul.f32 %v5397_v50, %v5242_v36  ;;  %v5477_v46 = vadd.s32 144, %v5149_v29 }
 0x23a   : > { %v4723_v42 = vpop.eup %4722  ;;  %4748 = vrcp.f32 %v987_v0  ;;  %v989_v33 = vadd.f32 1.0, %v4721_v59  ;;  %6642 = vst [vmem:[#allocation6_spill] sm:$0xff] %v5474_v34  ;;  %v5480_v0 = vadd.s32 128, %v5149_v29  ;;  %v5484_v36 = vadd.s32 16, %v5149_v29 }
 0x23b   : > { %v4725_v12 = vpop.eup %4724  ;;  %4750 = vrcp.f32 %v986_v11  ;;  %v988_v10 = vadd.f32 1.0, %v4723_v42  ;;  %v5487_v50 = vadd.s32 160, %v5149_v29  ;;  %v5490_v11 = vadd.s32 176, %v5149_v29 }
 0x23c   : > { %v4727_v47 = vpop.eup %4726  ;;  %2217 = vrot.lane.b32.xlu1 %v4136_v6, %s4782_s29  ;;  %v5493_v42 = vadd.s32 32, %v5149_v29  ;;  %v4118_v31 = vpack.c.bf16 %v5463_v5, %v5463_v5  ;;  %4752 = vrcp.f32 %v989_v33  ;;  %v4117_v62 = vpack.c.bf16 %v5469_v3, %v5469_v3 }
 0x23d   : > { %v4729_v59 = vpop.eup %4728  ;;  %2215 = vrot.lane.b32.xlu0 %v4135_v43, %s4782_s29  ;;  %v1007_v43 = vadd.f32 1.0, %v4725_v12  ;;  %4754 = vrcp.f32 %v988_v10  ;;  %v1006_v23 = vadd.f32 1.0, %v4727_v47  ;;  %v5513_v12 = vadd.s32 48, %v5149_v29 }
 0x23e   : > { %v4731_v6 = vpop.eup %4730  ;;  %v4120_v57 = vpack.c.bf16 %v5499_v1, %v5499_v1  ;;  %v1009_v33 = vadd.f32 1.0, %v4729_v59 }
 0x23f   : > { %v4733_v27 = vpop.eup %4732  ;;  %4756 = vrcp.f32 %v1007_v43  ;;  %v1008_v10 = vadd.f32 1.0, %v4731_v6 }
 0x240   : > { %v4735_v16 = vpop.eup %4734  ;;  %2181 = vrot.lane.b32.xlu1 %v4118_v31, %s4782_s29  ;;  %4758 = vrcp.f32 %v1006_v23  ;;  %v5531_v31 = vadd.s32 192, %v5149_v29  ;;  %v991_v53 = vadd.f32 1.0, %v4733_v27  ;;  %v5570_v27 = vadd.s32 80, %v5149_v29 }
 0x241   : > { %v4737_v34 = vpop.eup %4736  ;;  %2179 = vrot.lane.b32.xlu0 %v4117_v62, %s4782_s29 }
 0x242   : > { %v4739_v47 = vpop.eup %4738  ;;  %v993_v41 = vadd.f32 1.0, %v4737_v34 }
 0x243   : > { %v4741_v62 = vpop.eup %4740 }
 0x244   : > { %v4743_v20 = vpop.eup %4742  ;;  %2185 = vrot.lane.b32.xlu1 %v4120_v57, %s4782_s29  ;;  %v5535_v34 = vmul.f32 %v4741_v62, %v5267_v38  ;;  %4760 = vrcp.f32 %v993_v41  ;;  %v5548_v57 = vadd.s32 64, %v5149_v29 }
 0x245   : > { %v4745_v59 = vpop.eup %4744  ;;  %2183 = vrot.lane.b32.xlu0 %v4119_v8, %s4782_s29  ;;  %v5543_v23 = vmul.f32 %v4743_v20, %v5270_v17  ;;  %4762 = vrcp.f32 %v1009_v33  ;;  %v6648_v8 = vand.u32 15, %v5402_v22  ;;  %v5573_v33 = vadd.s32 224, %v5149_v29 }
 0x246   : > { %6646 = vst [vmem:[#allocation7_spill] sm:$0xff] %v5535_v34  ;;  %v4747_v38 = vpop.eup %4746  ;;  %v4138_v41 = vpack.c.bf16 %v5535_v34, %v5535_v34  ;;  %v5553_v62 = vmul.f32 %v4745_v59, %v5273_v37  ;;  %4764 = vrcp.f32 %v1008_v10  ;;  %v990_v34 = vadd.f32 1.0, %v4735_v16 }
 0x247   : > { %vm5557_vm4 = vcmp.lt.s32.totalorder %v6648_v8, 15  ;;  %v4749_v20 = vpop.eup %4748  ;;  %v4137_v6 = vpack.c.bf16 %v5543_v23, %v5543_v23  ;;  %v5564_v43 = vmul.f32 %v4747_v38, %v5276_v30  ;;  %6652 = vst [vmem:[#allocation10_spill] sm:$0xff] %v5573_v33  ;;  %v1772_v30 = vrot.slane %v5329_v21, 1 }
 0x248   : > { %6647 = vst [vmem:[#allocation8_spill] sm:$0xff] %v5553_v62  ;;  %v4751_v32 = vpop.eup %4750  ;;  %2221 = vrot.lane.b32.xlu1 %v4138_v41, %s4782_s29  ;;  %v6653_v16 = vand.u32 15, %v5405_v56  ;;  %v5586_v41 = vadd.s32 240, %v5149_v29  ;;  %v4140_v8 = vpack.c.bf16 %v5553_v62, %v5553_v62  ;;  %4766 = vrcp.f32 %v991_v53 }
 0x249   : > { %6651 = vst [vmem:[#allocation9_spill] sm:$0xff] %v5564_v43  ;;  %2219 = vrot.lane.b32.xlu0 %v4137_v6, %s4782_s29  ;;  %v5591_v6 = vmul.f32 %v4749_v20, %v5285_v51  ;;  %v6657_v22 = vrot.slane %v5315_v40, 1  ;;  %v6658_v56 = vrot.slane %v5336_v14, 1  ;;  %v6659_v37 = vand.u32 15, %v5412_v26  ;;  %v4753_v10 = vpop.eup %4752 }
 0x24a   : > { %vm5580_vm5 = vcmp.lt.s32.totalorder %v6653_v16, 15  ;;  %v4139_v62 = vpack.c.bf16 %v5564_v43, %v5564_v43  ;;  %v5608_v51 = vmul.f32 %v4751_v32, %v5288_v54  ;;  %4768 = vrcp.f32 %v990_v34  ;;  %v4755_v20 = vpop.eup %4754 }
 0x24b   : > { %6656 = vst [vmem:[#allocation11_spill] sm:$0xff] %v5591_v6  ;;  %v1799_v16 = vsel %vm1785_vm2, %v6658_v56, %v6657_v22  ;;  %vm5601_vm6 = vcmp.lt.s32.totalorder %v6659_v37, 15  ;;  %v992_v53 = vadd.f32 1.0, %v4739_v47  ;;  %v5615_v56 = vadd.s32 96, %v5149_v29 }
 0x24c   : > { %6662 = vst [vmem:[#allocation12_spill] sm:$0xff] %v5608_v51  ;;  %2225 = vrot.lane.b32.xlu1 %v4140_v8, %s4782_s29  ;;  %v5620_v54 = vsel %vm5524_vm3, %v1799_v16, 0.0  ;;  %v6664_v32 = vrot.slane %v5430_v61, 1  ;;  %v1754_v34 = vrot.slane %v5359_v25, 1  ;;  %v1755_v8 = vrot.slane %v5394_v48, 1  ;;  %v4757_v16 = vpop.eup %4756 }
 0x24d   : > { %6663 = vst [vmem:[#allocation13_spill] sm:$0xff] %v5615_v56  ;;  %2223 = vrot.lane.b32.xlu0 %v4139_v62, %s4782_s29  ;;  %v4122_v37 = vpack.c.bf16 %v5591_v6, %v5591_v6  ;;  %v5631_v26 = vmul.f32 %v4753_v10, %v5297_v7  ;;  %v1756_v62 = vrot.slane %v5386_v52, 1  ;;  %v5639_v22 = vmul.f32 %v4755_v20, %v5300_v45  ;;  %v4759_v10 = vpop.eup %4758 }
 0x24e   : > { %v1797_v47 = vsel %vm1785_vm2, %v1772_v30, %v6664_v32  ;;  %v4121_v32 = vpack.c.bf16 %v5608_v51, %v5608_v51  ;;  %4770 = vrcp.f32 %v992_v53  ;;  %v6666_v43 = vand.u32 15, %v5477_v46  ;;  %v4591_v46 = vld [vmem:[%s6614_s5 + $0x58] sm:$0xff]  }
 0x24f   : > { %6665 = vst [vmem:[#allocation14_spill] sm:$0xff] %v5631_v26  ;;  %v6669_v51 = vand.u32 15, %v5480_v0  ;;  %v5662_v53 = vadd.s32 112, %v5149_v29  ;;  %v6672_v0 = vrot.slane %v5336_v14, 1  ;;  %v1815_v9 = vsel %vm1785_vm2, %v1754_v34, %v1755_v8  ;;  %4566 = vmatprep.subr.bf16.mxu1 %v4591_v46  ;;  %4434 = vmatprep.subr.bf16.mxu0 %v4591_v46 }
 0x250   : > { %vm5643_vm8 = vcmp.gt.s32.totalorder %v6666_v43, 0  ;;  %2189 = vrot.lane.b32.xlu1 %v4122_v37, %s4782_s29  ;;  %v5677_v43 = vsel %vm5557_vm4, %v1797_v47, 0.0  ;;  %v4124_v37 = vpack.c.bf16 %v5631_v26, %v5631_v26  ;;  %v5690_v56 = vmul.f32 %v4757_v16, %v5309_v35  ;;  %4572 = vmatpush3.bf16.msra.mxu1 %v4591_v46 }
 0x251   : > { %vm5653_vm9 = vcmp.gt.s32.totalorder %v6669_v51, 0  ;;  %v4761_v20 = vpop.eup %4760  ;;  %2187 = vrot.lane.b32.xlu0 %v4121_v32, %s4782_s29  ;;  %v6673_v51 = vrot.slane %v5320_v18, 1  ;;  %v6674_v32 = vand.u32 15, %v5415_v2  ;;  %v6678_v47 = vrot.slane %v5469_v3, 1  ;;  %4435 = vmatpush3.bf16.msra.mxu0 %v4591_v46 }
 0x252   : > { %v4123_v35 = vpack.c.bf16 %v5639_v22, %v5639_v22  ;;  %v5706_v16 = vmul.f32 %v4759_v10, %v5312_v15  ;;  %v5709_v26 = vmul.f32 %v4761_v20, %v5373_v4  ;;  %v6679_v15 = vrot.slane %v5366_v19, 1  ;;  %v4592_v10 = vld [vmem:[%s6614_s5 + $0x50] sm:$0xff]  }
 0x253   : > { %v5673_v7 = vsel %vm1785_vm2, %v6673_v51, %v6672_v0  ;;  %vm5683_vm10 = vcmp.lt.s32.totalorder %v6674_v32, 15  ;;  %v6677_v0 = vrot.slane %v5315_v40, 1  ;;  %v1813_v2 = vsel %vm1785_vm2, %v1756_v62, %v6678_v47  ;;  %v4763_v51 = vpop.eup %4762  ;;  %4567 = vmatprep.subr.bf16.mxu1 %v4592_v10  ;;  %4436 = vmatprep.subr.bf16.mxu0 %v4592_v10 }
 0x254   : > { %2193 = vrot.lane.b32.xlu1 %v4124_v37, %s4782_s29  ;;  %v5718_v32 = vsel %vm5580_vm5, %v1815_v9, 0.0  ;;  %v5724_v4 = vsel %vm1785_vm2, %v6679_v15, %v1754_v34  ;;  %v5732_v20 = vsel %vm5601_vm6, %v1813_v2, 0.0  ;;  %v5736_v59 = vsel %vm1785_vm2, %v1755_v8, %v1756_v62  ;;  %4573 = vmatpush3.bf16.msra.mxu1 %v4592_v10 }
 0x255   : > { %v5696_v17 = vsel %vm1785_vm2, %v6677_v0, %v1772_v30  ;;  %v4765_v30 = vpop.eup %4764  ;;  %2191 = vrot.lane.b32.xlu0 %v4123_v35, %s4782_s29  ;;  %6680 = vst [vmem:[#allocation15_spill] sm:$0xff] %v5736_v59  ;;  %v1774_v9 = vrot.slane %v5422_v58, 1  ;;  %v6634_v34 = vrot.slane %v5451_v63, 1  ;;  %v4142_v37 = vpack.c.bf16 %v5690_v56, %v5690_v56  ;;  %4437 = vmatpush3.bf16.msra.mxu0 %v4592_v10 }
 0x256   : > { %v5743_v15 = vmul.f32 %v4763_v51, %v5344_v44  ;;  %v1577_v38 = vrot.slane %v5336_v14, 7  ;;  %v4767_v2 = vpop.eup %4766  ;;  %v4141_v8 = vpack.c.bf16 %v5706_v16, %v5706_v16  ;;  %v5751_v62 = vmul.f32 %v4765_v30, %v5348_v13 }
 0x257   : > { %v6681_v51 = vand.u32 15, %v5149_v29  ;;  %v4769_v14 = vpop.eup %4768  ;;  %v6684_v0 = vrot.slane %v5315_v40, 7  ;;  %v6686_v47 = vrot.slane %v5709_v26, 7  ;;  %v6687_v59 = vand.u32 15, %v5484_v36 }
 0x258   : > { %2229 = vrot.lane.b32.xlu1 %v4142_v37, %s4782_s29  ;;  %v1795_v37 = vsel %vm1785_vm2, %v1774_v9, %v6634_v34  ;;  %v4144_v35 = vpack.c.bf16 %v5743_v15, %v5743_v15  ;;  %v6685_v34 = vrot.slane %v5320_v18, 7  ;;  %v5806_v6 = vmul.f32 %v4769_v14, %v5354_v49 }
 0x259   : > { %vm5758_vm12 = vcmp.gt.s32.totalorder %v6681_v51, 0  ;;  %v4593_v51 = vld [vmem:[%s6614_s5 + $0x48] sm:$0xff]   ;;  %2227 = vrot.lane.b32.xlu0 %v4141_v8, %s4782_s29  ;;  %v1606_v30 = vsel %vm1592_vm7, %v1577_v38, %v6684_v0  ;;  %v5787_v8 = vmul.f32 %v4767_v2, %v5351_v39  ;;  %vm5799_vm13 = vcmp.gt.s32.totalorder %v6687_v59, 0 }
 0x25a   : > { %v1707_v44 = vsel %vm5643_vm8, %v1606_v30, 0.0  ;;  %v1608_v13 = vsel %vm1592_vm7, %v6686_v47, %v6685_v34  ;;  %4568 = vmatprep.subr.bf16.mxu1 %v4593_v51  ;;  %4438 = vmatprep.subr.bf16.mxu0 %v4593_v51  ;;  %v4143_v39 = vpack.c.bf16 %v5751_v62, %v5751_v62  ;;  %v5813_v36 = vsel %vm5683_vm10, %v1795_v37, 0.0 }
 0x25b   : > { %v4099_v10 = vpack.c.bf16 %v1707_v44, %v1707_v44  ;;  %v1705_v2 = vsel %vm5653_vm9, %v1608_v13, 0.0  ;;  %4574 = vmatpush3.bf16.msra.mxu1 %v4593_v51  ;;  %v4771_v47 = vpop.eup %4770  ;;  %v6690_v59 = vrot.slane %v5430_v61, 1  ;;  %v6691_v44 = vrot.slane %v5329_v21, 7  ;;  %v4594_v13 = vld [vmem:[%s6614_s5 + $0x40] sm:$0xff]   ;;  %4439 = vmatpush3.bf16.msra.mxu0 %v4593_v51 }
 0x25c   : > { %2233 = vrot.lane.b32.xlu1 %v4144_v35, %s4782_s29  ;;  %v4097_v49 = vpack.c.bf16 %v1705_v2, %v1705_v2  ;;  %v6692_v45 = vrot.slane %v5315_v40, 7  ;;  %v6693_v35 = vand.u32 15, %v5487_v50  ;;  %v6637_v30 = vrot.slane %v5505_v28, 1  ;;  %4569 = vmatprep.subr.bf16.mxu1 %v4594_v13 }
 0x25d   : > { %v5819_v34 = vsel %vm1785_vm2, %v6690_v59, %v1774_v9  ;;  %2231 = vrot.lane.b32.xlu0 %v4143_v39, %s4782_s29  ;;  %v6638_v9 = vrot.slane %v5543_v23, 1  ;;  %2061 = vst.msk [vmem:[#allocation2 + $0x50] sm:$0xf] %vm2042_vm11, %v4099_v10  ;;  %v6696_v37 = vrot.slane %v5320_v18, 7  ;;  %v6697_v2 = vand.u32 15, %v5490_v11  ;;  %4440 = vmatprep.subr.bf16.mxu0 %v4594_v13 }
 0x25e   : > { %v1605_v14 = vsel %vm1592_vm7, %v6692_v45, %v6691_v44  ;;  %vm5829_vm14 = vcmp.gt.s32.totalorder %v6693_v35, 0  ;;  %v4126_v39 = vpack.c.bf16 %v5787_v8, %v5787_v8  ;;  %2059 = vst.msk [vmem:[#allocation2 + $0x48] sm:$0xf] %vm2042_vm11, %v4097_v49  ;;  %v1560_v10 = vrot.slane %v5366_v19, 7 }
 0x25f   : > { %v4100_v40 = vpack.c.bf16 %v1605_v14, %v1605_v14  ;;  %v1607_v50 = vsel %vm1592_vm7, %v6696_v37, %v1577_v38  ;;  %vm5846_vm15 = vcmp.gt.s32.totalorder %v6697_v2, 0  ;;  %v1561_v45 = vrot.slane %v5359_v25, 7  ;;  %4575 = vmatpush3.bf16.msra.mxu1 %v4594_v13  ;;  %4441 = vmatpush3.bf16.msra.mxu0 %v4594_v13 }
 0x260   : > { %v4098_v44 = vpack.c.bf16 %v1607_v50, %v1607_v50  ;;  %v4125_v11 = vpack.c.bf16 %v5806_v6, %v5806_v6  ;;  %v5858_v38 = vmul.f32 %v4771_v47, %v5378_v60  ;;  %v1591_v51 = vrot.slane %v5743_v15, 7  ;;  %2197 = vrot.lane.b32.xlu1 %v4126_v39, %s4782_s29  ;;  %v4595_v47 = vld [vmem:[%s6614_s5 + $0x38] sm:$0xff]  }
 0x261   : > { %2062 = vst.msk [vmem:[#allocation2 + $0x54] sm:$0xf] %vm2042_vm11, %v4100_v40  ;;  %v1562_v14 = vrot.slane %v5394_v48, 7  ;;  %v6700_v49 = vand.u32 15, %v5493_v42  ;;  %v4166_v25 = vpack.c.bf16 %v5813_v36, %v5813_v36  ;;  %v1623_v48 = vsel %vm1592_vm7, %v1560_v10, %v1561_v45  ;;  %4570 = vmatprep.subr.bf16.mxu1 %v4595_v47  ;;  %4442 = vmatprep.subr.bf16.mxu0 %v4595_v47 }
 0x262   : > { %2060 = vst.msk [vmem:[#allocation2 + $0x4c] sm:$0xf] %vm2042_vm11, %v4098_v44  ;;  %v1563_v42 = vrot.slane %v5386_v52, 7  ;;  %2195 = vrot.lane.b32.xlu0 %v4125_v11, %s4782_s29  ;;  %v6703_v40 = vrot.slane %v5446_v55, 1  ;;  %v6704_v37 = vrot.slane %v5451_v63, 1  ;;  %v4082_v2 = vpack.c.bf16 %v1623_v48, %v1623_v48 }
 0x263   : > { %vm5865_vm0 = vcmp.gt.s32.totalorder %v6700_v49, 0  ;;  %v1624_v52 = vsel %vm1592_vm7, %v1591_v51, %v1560_v10  ;;  %v6705_v39 = vand.u32 15, %v5513_v12  ;;  %v1246_v11 = vand.u32 15, %v5662_v53  ;;  %4576 = vmatpush3.bf16.msra.mxu1 %v4595_v47  ;;  %4443 = vmatpush3.bf16.msra.mxu0 %v4595_v47 }
 0x264   : > { %v5888_v50 = vsel %vm1785_vm2, %v6704_v37, %v6703_v40  ;;  %v4128_v49 = vpack.c.bf16 %v5709_v26, %v5709_v26  ;;  %v6708_v48 = vrot.slane %v5463_v5, 1  ;;  %v1689_v10 = vsel %vm5758_vm12, %v1624_v52, 0.0  ;;  %2044 = vst.msk [vmem:[#allocation2 + $0xc] sm:$0xf] %vm2042_vm11, %v4082_v2  ;;  %v4596_v2 = vld [vmem:[%s6614_s5 + $0x30] sm:$0xff]  }
 0x265   : > { %vm5896_vm1 = vcmp.gt.s32.totalorder %v6705_v39, 0  ;;  %v6709_v37 = vand.u32 15, %v5531_v31  ;;  %v4127_v39 = vpack.c.bf16 %v5858_v38, %v5858_v38  ;;  %v4081_v31 = vpack.c.bf16 %v1689_v10, %v1689_v10  ;;  %4571 = vmatprep.subr.bf16.mxu1 %v4596_v2  ;;  %4444 = vmatprep.subr.bf16.mxu0 %v4596_v2 }
 0x266   : > { %v5909_v40 = vsel %vm1785_vm2, %v6708_v48, %v6637_v30  ;;  %v6712_v48 = vrot.slane %v5446_v55, 1  ;;  %v1621_v46 = vsel %vm1592_vm7, %v1562_v14, %v1563_v42  ;;  %2201 = vrot.lane.b32.xlu1 %v4128_v49, %s4782_s29  ;;  %v1580_v12 = vrot.slane %v5430_v61, 7 }
 0x267   : > { %vm5916_vm3 = vcmp.gt.s32.totalorder %v6709_v37, 0  ;;  %v4084_v52 = vpack.c.bf16 %v1621_v46, %v1621_v46  ;;  %v1622_v37 = vsel %vm1592_vm7, %v1561_v45, %v1562_v14  ;;  %v1581_v60 = vrot.slane %v5422_v58, 7  ;;  %2199 = vrot.lane.b32.xlu0 %v4127_v39, %s4782_s29  ;;  %2043 = vst.msk [vmem:[#allocation2 + $0x8] sm:$0xf] %vm2042_vm11, %v4081_v31  ;;  %4577 = vmatpush3.bf16.msra.mxu1 %v4596_v2 }
 0x268   : > { %v5928_v30 = vsel %vm1785_vm2, %v6712_v48, %v6638_v9  ;;  %v6713_v48 = vand.u32 15, %v5539_v24  ;;  %v1691_v45 = vsel %vm5799_vm13, %v1622_v37, 0.0  ;;  %v1582_v61 = vrot.slane %v5451_v63, 7  ;;  %4445 = vmatpush3.bf16.msra.mxu0 %v4596_v2 }
 0x269   : > { %v1583_v58 = vrot.slane %v5446_v55, 7  ;;  %v1564_v24 = vrot.slane %v5469_v3, 7  ;;  %2046 = vst.msk [vmem:[#allocation2 + $0x14] sm:$0xf] %vm2042_vm11, %v4084_v52  ;;  %v4083_v14 = vpack.c.bf16 %v1691_v45, %v1691_v45  ;;  %v1603_v49 = vsel %vm1592_vm7, %v1580_v12, %v1581_v60 }
 0x26a   : > { %vm5940_vm4 = vcmp.gt.s32.totalorder %v6713_v48, 0  ;;  %v6716_v10 = vrot.slane %v5329_v21, 7  ;;  %v1565_v0 = vrot.slane %v5463_v5, 7  ;;  %v6717_v63 = vand.u32 15, %v5548_v57 }
 0x26b   : > { %v4102_v47 = vpack.c.bf16 %v1603_v49, %v1603_v49  ;;  %v1601_v21 = vsel %vm1592_vm7, %v1582_v61, %v1583_v58  ;;  %v6720_v46 = vand.u32 15, %v5570_v27  ;;  %v6723_v52 = vpack.c.bf16 %v5620_v54, %v5620_v54  ;;  %2045 = vst.msk [vmem:[#allocation2 + $0x10] sm:$0xf] %vm2042_vm11, %v4083_v14  ;;  %v6725_v49 = vld [vmem:[#allocation10_spill] sm:$0xff] }
 0x26c   : > { %v1604_v39 = vsel %vm1592_vm7, %v6716_v10, %v1580_v12  ;;  %vm5964_vm5 = vcmp.gt.s32.totalorder %v6717_v63, 0  ;;  %v1602_v12 = vsel %vm1592_vm7, %v1581_v60, %v1582_v61  ;;  %v4104_v37 = vpack.c.bf16 %v1601_v21, %v1601_v21 }
 0x26d   : > { %v1709_v31 = vsel %vm5829_vm14, %v1604_v39, 0.0  ;;  %vm5976_vm6 = vcmp.gt.s32.totalorder %v6720_v46, 0  ;;  %2430 = vrot.lane.b32.xlu1 %v6723_v52, %s4783_s19  ;;  %v1711_v60 = vsel %vm5846_vm15, %v1602_v12, 0.0  ;;  %v1619_v27 = vsel %vm1592_vm7, %v1564_v24, %v1565_v0  ;;  %2064 = vst.msk [vmem:[#allocation2 + $0x5c] sm:$0xf] %vm2042_vm11, %v4102_v47  ;;  %v6729_v39 = vld [vmem:[#allocation3_spill] sm:$0xff] }
 0x26e   : > { %v4101_v33 = vpack.c.bf16 %v1709_v31, %v1709_v31  ;;  %v6724_v48 = vpack.c.bf16 %v5673_v7, %v5673_v7  ;;  %v4103_v45 = vpack.c.bf16 %v1711_v60, %v1711_v60  ;;  %v4086_v54 = vpack.c.bf16 %v1619_v27, %v1619_v27  ;;  %2066 = vst.msk [vmem:[#allocation2 + $0x64] sm:$0xf] %vm2042_vm11, %v4104_v37  ;;  %v6733_v31 = vld [vmem:[#allocation7_spill] sm:$0xff]  ;;  %v6734_v46 = vld [vmem:[#allocation9_spill] sm:$0xff] }
 0x26f   : > { %v1620_v61 = vsel %vm1592_vm7, %v1563_v42, %v1564_v24  ;;  %v1566_v14 = vrot.slane %v5505_v28, 7  ;;  %v6726_v59 = vand.u32 15, %v6725_v49  ;;  %v6730_v63 = vand.u32 15, %v6729_v39 }
 0x270   : > { %2428 = vrot.lane.b32.xlu0 %v6724_v48, %s4783_s19  ;;  %2063 = vst.msk [vmem:[#allocation2 + $0x58] sm:$0xf] %vm2042_vm11, %v4101_v33  ;;  %v1693_v42 = vsel %vm5865_vm0, %v1620_v61, 0.0  ;;  %v1567_v24 = vrot.slane %v5499_v1, 7  ;;  %v1584_v47 = vrot.slane %v5543_v23, 7  ;;  %v1585_v21 = vrot.slane %v6733_v31, 7 }
 0x271   : > { %vm5999_vm8 = vcmp.gt.s32.totalorder %v6726_v59, 0  ;;  %vm6005_vm9 = vcmp.lt.s32.totalorder %v6730_v63, 15  ;;  %2065 = vst.msk [vmem:[#allocation2 + $0x60] sm:$0xf] %vm2042_vm11, %v4103_v45  ;;  %2048 = vst.msk [vmem:[#allocation2 + $0x1c] sm:$0xf] %vm2042_vm11, %v4086_v54  ;;  %v4085_v2 = vpack.c.bf16 %v1693_v42, %v1693_v42  ;;  %v1618_v12 = vsel %vm1592_vm7, %v1565_v0, %v1566_v14 }
 0x272   : > { %v1586_v52 = vrot.slane %v6734_v46, 7  ;;  %v6735_v33 = vld [vmem:[#allocation8_spill] sm:$0xff]  ;;  %v6736_v35 = vpack.c.bf16 %v5677_v43, %v5677_v43  ;;  %v1617_v60 = vsel %vm1592_vm7, %v1566_v14, %v1567_v24  ;;  %v1695_v27 = vsel %vm5896_vm1, %v1618_v12, 0.0  ;;  %v6740_v43 = vld [vmem:[#allocation13_spill] sm:$0xff] }
 0x273   : > { %v1587_v37 = vrot.slane %v6735_v33, 7  ;;  %v1599_v48 = vsel %vm1592_vm7, %v1584_v47, %v1585_v21  ;;  %v1600_v0 = vsel %vm1592_vm7, %v1583_v58, %v1584_v47  ;;  %v6737_v45 = vand.u32 15, %v5586_v41  ;;  %2047 = vst.msk [vmem:[#allocation2 + $0x18] sm:$0xf] %vm2042_vm11, %v4085_v2  ;;  %v6745_v47 = vld [vmem:[#allocation12_spill] sm:$0xff]  ;;  %v6746_v2 = vld [vmem:[#allocation11_spill] sm:$0xff] }
 0x274   : > { %2434 = vrot.lane.b32.xlu1 %v6736_v35, %s4783_s19  ;;  %v6741_v61 = vand.u32 15, %v6740_v43  ;;  %v6744_v44 = vpack.c.bf16 %v5696_v17, %v5696_v17  ;;  %v4088_v58 = vpack.c.bf16 %v1617_v60, %v1617_v60  ;;  %v4087_v14 = vpack.c.bf16 %v1695_v27, %v1695_v27  ;;  %v6750_v27 = vld [vmem:[#allocation4_spill] sm:$0xff] }
 0x275   : > { %vm6036_vm10 = vcmp.gt.s32.totalorder %v6737_v45, 0  ;;  %v4106_v41 = vpack.c.bf16 %v1599_v48, %v1599_v48  ;;  %v1713_v59 = vsel %vm5916_vm3, %v1600_v0, 0.0  ;;  %v1597_v63 = vsel %vm1592_vm7, %v1586_v52, %v1587_v37 }
 0x276   : > { %vm6042_vm12 = vcmp.gt.s32.totalorder %v6741_v61, 0  ;;  %2432 = vrot.lane.b32.xlu0 %v6744_v44, %s4783_s19  ;;  %v4105_v39 = vpack.c.bf16 %v1713_v59, %v1713_v59  ;;  %v1598_v42 = vsel %vm1592_vm7, %v1585_v21, %v1586_v52  ;;  %v1568_v12 = vrot.slane %v6745_v47, 7  ;;  %2050 = vst.msk [vmem:[#allocation2 + $0x24] sm:$0xf] %vm2042_vm11, %v4088_v58  ;;  %2049 = vst.msk [vmem:[#allocation2 + $0x20] sm:$0xf] %vm2042_vm11, %v4087_v14 }
 0x277   : > { %2068 = vst.msk [vmem:[#allocation2 + $0x6c] sm:$0xf] %vm2042_vm11, %v4106_v41  ;;  %v4108_v17 = vpack.c.bf16 %v1597_v63, %v1597_v63  ;;  %v1715_v13 = vsel %vm5940_vm4, %v1598_v42, 0.0  ;;  %v1569_v35 = vrot.slane %v6746_v2, 7  ;;  %v1570_v60 = vrot.slane %v5639_v22, 7 }
 0x278   : > { %vm6067_vm13 = vcmp.gt.s32.totalorder %v1246_v11, 0  ;;  %v6749_v52 = vpack.c.bf16 %v5718_v32, %v5718_v32  ;;  %v6751_v48 = vand.u32 15, %v6750_v27  ;;  %2067 = vst.msk [vmem:[#allocation2 + $0x68] sm:$0xf] %vm2042_vm11, %v4105_v39  ;;  %v4107_v0 = vpack.c.bf16 %v1715_v13, %v1715_v13  ;;  %v6754_v11 = vld [vmem:[#allocation14_spill] sm:$0xff] }
 0x279   : > { %v1616_v53 = vsel %vm1592_vm7, %v1567_v24, %v1568_v12  ;;  %v1571_v45 = vrot.slane %v6754_v11, 7  ;;  %v1588_v43 = vrot.slane %v5706_v16, 7  ;;  %v6755_v32 = vpack.c.bf16 %v5724_v4, %v5724_v4  ;;  %2070 = vst.msk [vmem:[#allocation2 + $0x74] sm:$0xf] %vm2042_vm11, %v4108_v17 }
 0x27a   : > { %2398 = vrot.lane.b32.xlu1 %v6749_v52, %s4783_s19  ;;  %vm6077_vm14 = vcmp.lt.s32.totalorder %v6751_v48, 15  ;;  %v1615_v61 = vsel %vm1592_vm7, %v1568_v12, %v1569_v35  ;;  %v1697_v44 = vsel %vm5964_vm5, %v1616_v53, 0.0  ;;  %v1614_v24 = vsel %vm1592_vm7, %v1569_v35, %v1570_v60  ;;  %2069 = vst.msk [vmem:[#allocation2 + $0x70] sm:$0xf] %vm2042_vm11, %v4107_v0 }
 0x27b   : > { %2396 = vrot.lane.b32.xlu0 %v6755_v32, %s4783_s19  ;;  %v1589_v58 = vrot.slane %v5690_v56, 7  ;;  %v4090_v14 = vpack.c.bf16 %v1615_v61, %v1615_v61  ;;  %v4089_v41 = vpack.c.bf16 %v1697_v44, %v1697_v44  ;;  %v1613_v4 = vsel %vm1592_vm7, %v1570_v60, %v1571_v45  ;;  %v6757_v60 = vld [vmem:[#allocation15_spill] sm:$0xff] }
 0x27c   : > { %v1699_v59 = vsel %vm5976_vm6, %v1614_v24, 0.0  ;;  %v4092_v39 = vpack.c.bf16 %v1613_v4, %v1613_v4  ;;  %v1596_v42 = vsel %vm1592_vm7, %v1587_v37, %v1588_v43  ;;  %v6756_v12 = vpack.c.bf16 %v5732_v20, %v5732_v20 }
 0x27d   : > { %v4091_v63 = vpack.c.bf16 %v1699_v59, %v1699_v59  ;;  %v1595_v55 = vsel %vm1592_vm7, %v1588_v43, %v1589_v58  ;;  %2052 = vst.msk [vmem:[#allocation2 + $0x2c] sm:$0xf] %vm2042_vm11, %v4090_v14  ;;  %2051 = vst.msk [vmem:[#allocation2 + $0x28] sm:$0xf] %vm2042_vm11, %v4089_v41  ;;  %v1717_v57 = vsel %vm5999_vm8, %v1596_v42, 0.0  ;;  %v1590_v13 = vrot.slane %v5751_v62, 7 }
 0x27e   : > { %2402 = vrot.lane.b32.xlu1 %v6756_v12, %s4783_s19  ;;  %v4110_v17 = vpack.c.bf16 %v1595_v55, %v1595_v55  ;;  %v1572_v35 = vrot.slane %v5806_v6, 7  ;;  %v6758_v37 = vpack.c.bf16 %v6757_v60, %v6757_v60  ;;  %v1905_v20 = vsel %vm6005_vm9, %v5928_v30, 0.0  ;;  %2054 = vst.msk [vmem:[#allocation2 + $0x34] sm:$0xf] %vm2042_vm11, %v4092_v39  ;;  %v6761_v14 = vld [vmem:[#allocation5_spill] sm:$0xff]  ;;  %v6765_v55 = vld [vmem:[#allocation6_spill] sm:$0xff] }
 0x27f   : > { %2053 = vst.msk [vmem:[#allocation2 + $0x30] sm:$0xf] %vm2042_vm11, %v4091_v63  ;;  %v4109_v52 = vpack.c.bf16 %v1717_v57, %v1717_v57  ;;  %v1573_v10 = vrot.slane %v5787_v8, 7  ;;  %v1574_v27 = vrot.slane %v5858_v38, 7  ;;  %v1761_v48 = vrot.slane %v6745_v47, 1 }
 0x280   : > { %2400 = vrot.lane.b32.xlu0 %v6758_v37, %s4783_s19  ;;  %2072 = vst.msk [vmem:[#allocation2 + $0x7c] sm:$0xf] %vm2042_vm11, %v4110_v17  ;;  %v1593_v0 = vsel %vm1592_vm7, %v1590_v13, %v1591_v51  ;;  %v1594_v30 = vsel %vm1592_vm7, %v1589_v58, %v1590_v13  ;;  %v1612_v7 = vsel %vm1592_vm7, %v1571_v45, %v1572_v35  ;;  %v6759_v24 = vrot.slane %v5709_v26, 7 }
 0x281   : > { %2071 = vst.msk [vmem:[#allocation2 + $0x78] sm:$0xf] %vm2042_vm11, %v4109_v52  ;;  %v4112_v53 = vpack.c.bf16 %v1593_v0, %v1593_v0  ;;  %v1719_v43 = vsel %vm6036_vm10, %v1594_v30, 0.0  ;;  %v1611_v32 = vsel %vm1592_vm7, %v1572_v35, %v1573_v10  ;;  %v1701_v61 = vsel %vm6042_vm12, %v1612_v7, 0.0 }
 0x282   : > { %2438 = vrot.lane.b32.xlu1 %v4166_v25, %s4783_s19  ;;  %v4111_v51 = vpack.c.bf16 %v1719_v43, %v1719_v43  ;;  %v4094_v44 = vpack.c.bf16 %v1611_v32, %v1611_v32  ;;  %v4093_v45 = vpack.c.bf16 %v1701_v61, %v1701_v61  ;;  %v1609_v54 = vsel %vm1592_vm7, %v1574_v27, %v6759_v24  ;;  %v6225_v61 = vld [vmem:[%s6614_s5 + $0x28] sm:$0xff]  }
 0x283   : > { %v6760_v58 = vpack.c.bf16 %v5819_v34, %v5819_v34  ;;  %2074 = vst.msk [vmem:[#allocation2 + $0x84] sm:$0xf] %vm2042_vm11, %v4112_v53  ;;  %v4096_v49 = vpack.c.bf16 %v1609_v54, %v1609_v54  ;;  %v1610_v36 = vsel %vm1592_vm7, %v1573_v10, %v1574_v27  ;;  %v4168_v25 = vpack.c.bf16 %v1905_v20, %v1905_v20 }
 0x284   : > { %v6762_v41 = vand.u32 15, %v6761_v14  ;;  %v1139_v59 = vadd.s32 216, %v5149_v29  ;;  %2073 = vst.msk [vmem:[#allocation2 + $0x80] sm:$0xf] %vm2042_vm11, %v4111_v51  ;;  %2056 = vst.msk [vmem:[#allocation2 + $0x3c] sm:$0xf] %vm2042_vm11, %v4094_v44  ;;  %v4167_v39 = vpack.c.bf16 %v5888_v50, %v5888_v50  ;;  %4478 = vmatprep.subr.bf16.mxu1 %v6225_v61 }
 0x285   : > { %2436 = vrot.lane.b32.xlu0 %v6760_v58, %s4783_s19  ;;  %2055 = vst.msk [vmem:[#allocation2 + $0x38] sm:$0xf] %vm2042_vm11, %v4093_v45  ;;  %v1703_v34 = vsel %vm6067_vm13, %v1610_v36, 0.0  ;;  %v1887_v63 = vsel %vm6077_vm14, %v5909_v40, 0.0  ;;  %v1323_v42 = vand.u32 15, %v6765_v55  ;;  %v6766_v17 = vrot.slane %v5463_v5, 1 }
 0x286   : > { %vm6162_vm15 = vcmp.lt.s32.totalorder %v6762_v41, 15  ;;  %2058 = vst.msk [vmem:[#allocation2 + $0x44] sm:$0xf] %vm2042_vm11, %v4096_v49  ;;  %v4095_v12 = vpack.c.bf16 %v1703_v34, %v1703_v34  ;;  %2442 = vrot.lane.b32.xlu1 %v4168_v25, %s4783_s19  ;;  %v6767_v57 = vrot.slane %v5469_v3, 1  ;;  %v6768_v50 = vrot.slane %v5499_v1, 1  ;;  %v6239_v49 = vld [vmem:[%s6614_s5 + $0x88] sm:$0xff]  }
 0x287   : > { %v1778_v9 = vrot.slane %v6733_v31, 1  ;;  %v1779_v13 = vrot.slane %v6734_v46, 1  ;;  %v4150_v5 = vpack.c.bf16 %v1887_v63, %v1887_v63  ;;  %v1121_v3 = vadd.s32 72, %v5149_v29  ;;  %4522 = vmatprep.subr.bf16.mxu0 %v6239_v49 }
 0x288   : > { %v1812_v21 = vsel %vm1785_vm2, %v6767_v57, %v6766_v17  ;;  %v1809_v40 = vsel %vm1785_vm2, %v6768_v50, %v1761_v48  ;;  %2057 = vst.msk [vmem:[#allocation2 + $0x40] sm:$0xf] %vm2042_vm11, %v4095_v12  ;;  %vm1746_vm7 = vcmp.lt.s32.totalorder %v1323_v42, 15  ;;  %v1337_v37 = vand.u32 15, %v1139_v59 }
 0x289   : > { %2440 = vrot.lane.b32.xlu0 %v4167_v39, %s4783_s19  ;;  %v4149_v35 = vpack.c.bf16 %v1812_v21, %v1812_v21  ;;  %v1889_v60 = vsel %vm6162_vm15, %v1809_v40, 0.0  ;;  %v6769_v20 = vmov %v6768_v50  ;;  %v6770_v31 = vrot.slane %v5505_v28, 1 }
 0x28a   : > { %2406 = vrot.lane.b32.xlu1 %v4150_v5, %s4783_s19  ;;  %v1791_v52 = vsel %vm1785_vm2, %v1778_v9, %v1779_v13  ;;  %v1780_v10 = vrot.slane %v6735_v33, 1  ;;  %v1781_v27 = vrot.slane %v5706_v16, 1  ;;  %v4152_v0 = vpack.c.bf16 %v1889_v60, %v1889_v60 }
 0x28b   : > { %v1810_v46 = vsel %vm1785_vm2, %v6770_v31, %v6769_v20  ;;  %v1123_v30 = vadd.s32 88, %v5149_v29  ;;  %v1907_v53 = vsel %vm1746_vm7, %v1791_v52, 0.0  ;;  %vm1748_vm11 = vcmp.lt.s32.totalorder %v1337_v37, 15 }
 0x28c   : > { %v4151_v7 = vpack.c.bf16 %v1810_v46, %v1810_v46  ;;  %v1211_v1 = vand.u32 15, %v1121_v3  ;;  %v6771_v28 = vrot.slane %v5543_v23, 1  ;;  %v1789_v33 = vsel %vm1785_vm2, %v1780_v10, %v1781_v27 }
 0x28d   : > { %2404 = vrot.lane.b32.xlu0 %v4149_v35, %s4783_s19  ;;  %v1762_v16 = vrot.slane %v6746_v2, 1  ;;  %v1763_v32 = vrot.slane %v5639_v22, 1  ;;  %v4170_v51 = vpack.c.bf16 %v1907_v53, %v1907_v53  ;;  %v1141_v23 = vadd.s32 232, %v5149_v29 }
 0x28e   : > { %2410 = vrot.lane.b32.xlu1 %v4152_v0, %s4783_s19  ;;  %v1792_v43 = vsel %vm1785_vm2, %v6771_v28, %v1778_v9  ;;  %v1909_v45 = vsel %vm1748_vm11, %v1789_v33, 0.0  ;;  %vm1730_vm0 = vcmp.lt.s32.totalorder %v1211_v1, 15  ;;  %v1225_v24 = vand.u32 15, %v1123_v30 }
 0x28f   : > { %v4169_v44 = vpack.c.bf16 %v1792_v43, %v1792_v43  ;;  %v1790_v22 = vsel %vm1785_vm2, %v1779_v13, %v1780_v10  ;;  %v1807_v2 = vsel %vm1785_vm2, %v1762_v16, %v1763_v32  ;;  %v1764_v54 = vrot.slane %v6754_v11, 1 }
 0x290   : > { %v1765_v58 = vrot.slane %v5806_v6, 1  ;;  %v4172_v36 = vpack.c.bf16 %v1909_v45, %v1909_v45  ;;  %v1351_v25 = vand.u32 15, %v1141_v23  ;;  %v4171_v14 = vpack.c.bf16 %v1790_v22, %v1790_v22 }
 0x291   : > { %2408 = vrot.lane.b32.xlu0 %v4151_v7, %s4783_s19  ;;  %v1891_v41 = vsel %vm1730_vm0, %v1807_v2, 0.0  ;;  %vm1732_vm1 = vcmp.lt.s32.totalorder %v1225_v24, 15  ;;  %v1143_v4 = vadd.s32 248, %v5149_v29  ;;  %v1808_v6 = vsel %vm1785_vm2, %v1761_v48, %v1762_v16 }
 0x292   : > { %2446 = vrot.lane.b32.xlu1 %v4170_v51, %s4783_s19  ;;  %v1805_v11 = vsel %vm1785_vm2, %v1764_v54, %v1765_v58  ;;  %v1782_v59 = vrot.slane %v5690_v56, 1  ;;  %v1783_v34 = vrot.slane %v5751_v62, 1  ;;  %v4154_v39 = vpack.c.bf16 %v1891_v41, %v1891_v41 }
 0x293   : > { %v4153_v63 = vpack.c.bf16 %v1808_v6, %v1808_v6  ;;  %v1893_v55 = vsel %vm1732_vm1, %v1805_v11, 0.0  ;;  %v1365_v42 = vand.u32 15, %v1143_v4  ;;  %v1125_v12 = vadd.s32 104, %v5149_v29 }
 0x294   : > { %v1806_v47 = vsel %vm1785_vm2, %v1763_v32, %v1764_v54  ;;  %vm1750_vm3 = vcmp.lt.s32.totalorder %v1351_v25, 15  ;;  %v1787_v48 = vsel %vm1785_vm2, %v1782_v59, %v1783_v34  ;;  %v1784_v56 = vrot.slane %v5743_v15, 1 }
 0x295   : > { %2444 = vrot.lane.b32.xlu0 %v4169_v44, %s4783_s19  ;;  %v4156_v62 = vpack.c.bf16 %v1893_v55, %v1893_v55  ;;  %v1127_v17 = vadd.s32 120, %v5149_v29  ;;  %v4155_v57 = vpack.c.bf16 %v1806_v47, %v1806_v47  ;;  %v1911_v21 = vsel %vm1750_vm3, %v1787_v48, 0.0 }
 0x296   : > { %2450 = vrot.lane.b32.xlu1 %v4172_v36, %s4783_s19  ;;  %vm1752_vm4 = vcmp.lt.s32.totalorder %v1365_v42, 15  ;;  %v1239_v50 = vand.u32 15, %v1125_v12  ;;  %v1788_v40 = vsel %vm1785_vm2, %v1781_v27, %v1782_v59  ;;  %v6772_v9 = vrot.slane %v5366_v19, 1 }
 0x297   : > { %v1766_v15 = vrot.slane %v5787_v8, 1  ;;  %v1767_v5 = vrot.slane %v5858_v38, 1  ;;  %v4174_v3 = vpack.c.bf16 %v1911_v21, %v1911_v21  ;;  %v4173_v35 = vpack.c.bf16 %v1788_v40, %v1788_v40 }
 0x298   : > { %v1817_v13 = vsel %vm1785_vm2, %v1784_v56, %v6772_v9  ;;  %vm1734_vm5 = vcmp.lt.s32.totalorder %v1239_v50, 15  ;;  %v1253_v37 = vand.u32 15, %v1127_v17  ;;  %vm2267_vm6 = vcmask 519424  }
 0x299   : > { %2448 = vrot.lane.b32.xlu0 %v4171_v14, %s4783_s19  ;;  %v1913_v60 = vsel %vm1752_vm4, %v1817_v13, 0.0  ;;  %v1786_v19 = vsel %vm1785_vm2, %v1783_v34, %v1784_v56  ;;  %v1803_v20 = vsel %vm1785_vm2, %v1766_v15, %v1767_v5  ;;  %v1768_v8 = vrot.slane %v5709_v26, 1 }
 0x29a   : > { %2414 = vrot.lane.b32.xlu1 %v4154_v39, %s4783_s19  ;;  %v2208_v38 = vpop.permute.xlu1 %2207  ;;  %v4176_v31 = vpack.c.bf16 %v1913_v60, %v1913_v60  ;;  %v4175_v52 = vpack.c.bf16 %v1786_v19, %v1786_v19  ;;  %v1895_v10 = vsel %vm1734_vm5, %v1803_v20, 0.0  ;;  %v1804_v27 = vsel %vm1785_vm2, %v1765_v58, %v1766_v15  ;;  %v4609_v15 = vld [vmem:[%s6614_s5 + $0x20] sm:$0xff]   ;;  %v4613_v19 = vld [vmem:[%s6614_s5 + $0x18] sm:$0xff]  }
 0x29b   : > { %2286 = vst.msk [vmem:[#allocation2 + $0x50] sm:$0xf] %vm2267_vm6, %v2208_v38  ;;  %v2204_v46 = vpop.permute.xlu0 %2203  ;;  %vm1736_vm8 = vcmp.lt.s32.totalorder %v1253_v37, 15  ;;  %v6773_v0 = vrot.slane %v5320_v18, 1  ;;  %vm1106_vm9 = vcmask 781312   ;;  %v4158_v7 = vpack.c.bf16 %v1895_v10, %v1895_v10  ;;  %v4611_v20 = vld [vmem:[%s6614_s5 + $0x80] sm:$0xff]  }
 0x29c   : > { %2284 = vst.msk [vmem:[#allocation2 + $0x48] sm:$0xf] %vm2267_vm6, %v2204_v46  ;;  %v4784_v53 = vmov 0   ;;  %v4157_v28 = vpack.c.bf16 %v1804_v27, %v1804_v27  ;;  %v1802_v18 = vsel %vm1785_vm2, %v1767_v5, %v1768_v8  ;;  %vm2700_vm10 = vcmask 785408   ;;  %v4614_v46 = vld [vmem:[%s6614_s5 + $0x78] sm:$0xff]   ;;  %v4619_v10 = vld [vmem:[%s6614_s5 + $0x8] sm:$0xff]  }
 0x29d   : > { %2412 = vrot.lane.b32.xlu0 %v4153_v63, %s4783_s19  ;;  %v1801_v26 = vsel %vm1785_vm2, %v1768_v8, %v6773_v0  ;;  %1107 = vst.msk [vmem:[#allocation2] sm:$0xf] %vm1106_vm9, %v4784_v53  ;;  %1108 = vst.msk [vmem:[#allocation2 + $0x4] sm:$0xf] %vm1106_vm9, %v4784_v53  ;;  %v4159_v51 = vpack.c.bf16 %v1802_v18, %v1802_v18  ;;  %vm2492_vm2 = vcmask 781824   ;;  %v4616_v8 = vld [vmem:[%s6614_s5 + $0x10] sm:$0xff]  }
 0x29e   : > { %2418 = vrot.lane.b32.xlu1 %v4156_v62, %s4783_s19  ;;  %v2210_v30 = vpop.permute.xlu1 %2209  ;;  %1109 = vst.msk [vmem:[#allocation2 + $0x88] sm:$0xf] %vm1106_vm9, %v4784_v53  ;;  %1110 = vst.msk [vmem:[#allocation2 + $0x8c] sm:$0xf] %vm1106_vm9, %v4784_v53  ;;  %v1897_v43 = vsel %vm1736_vm8, %v1801_v26, 0.0 }
 0x29f   : > { %2287 = vst.msk [vmem:[#allocation2 + $0x54] sm:$0xf] %vm2267_vm6, %v2210_v30  ;;  %v2206_v1 = vpop.permute.xlu0 %2205  ;;  %v4160_v16 = vpack.c.bf16 %v1897_v43, %v1897_v43  ;;  %v4621_v30 = vld [vmem:[%s6614_s5] sm:$0xff]  }
 0x2a0   : > { %2285 = vst.msk [vmem:[#allocation2 + $0x4c] sm:$0xf] %vm2267_vm6, %v2206_v1 }
 0x2a1   : > { %2416 = vrot.lane.b32.xlu0 %v4155_v57, %s4783_s19 }
 0x2a2   : > { %2454 = vrot.lane.b32.xlu1 %v4174_v3, %s4783_s19  ;;  %v2174_v33 = vpop.permute.xlu1 %2173 }
 0x2a3   : > { %2269 = vst.msk [vmem:[#allocation2 + $0xc] sm:$0xf] %vm2267_vm6, %v2174_v33  ;;  %v2172_v32 = vpop.permute.xlu0 %2171 }
 0x2a4   : > { %2268 = vst.msk [vmem:[#allocation2 + $0x8] sm:$0xf] %vm2267_vm6, %v2172_v32 }
 0x2a5   : > { %2452 = vrot.lane.b32.xlu0 %v4173_v35, %s4783_s19 }
 0x2a6   : > { %2458 = vrot.lane.b32.xlu1 %v4176_v31, %s4783_s19  ;;  %v2178_v23 = vpop.permute.xlu1 %2177 }
 0x2a7   : > { %2271 = vst.msk [vmem:[#allocation2 + $0x14] sm:$0xf] %vm2267_vm6, %v2178_v23  ;;  %v2176_v44 = vpop.permute.xlu0 %2175 }
 0x2a8   : > { %2270 = vst.msk [vmem:[#allocation2 + $0x10] sm:$0xf] %vm2267_vm6, %v2176_v44 }
 0x2a9   : > { %2456 = vrot.lane.b32.xlu0 %v4175_v52, %s4783_s19 }
 0x2aa   : > { %2422 = vrot.lane.b32.xlu1 %v4158_v7, %s4783_s19  ;;  %v2214_v29 = vpop.permute.xlu1 %2213 }
 0x2ab   : > { %2289 = vst.msk [vmem:[#allocation2 + $0x5c] sm:$0xf] %vm2267_vm6, %v2214_v29  ;;  %v2212_v45 = vpop.permute.xlu0 %2211 }
 0x2ac   : > { %2288 = vst.msk [vmem:[#allocation2 + $0x58] sm:$0xf] %vm2267_vm6, %v2212_v45 }
 0x2ad   : > { %2420 = vrot.lane.b32.xlu0 %v4157_v28, %s4783_s19  ;;  %v4622_v28 = vld [vmem:[%s6614_s5 + $0x68] sm:$0xff]  }
 0x2ae   : > { %2426 = vrot.lane.b32.xlu1 %v4160_v16, %s4783_s19  ;;  %v2218_v24 = vpop.permute.xlu1 %2217  ;;  %v4626_v16 = vld [vmem:[%s6614_s5 + $0x60] sm:$0xff]  }
 0x2af   : > { %2291 = vst.msk [vmem:[#allocation2 + $0x64] sm:$0xf] %vm2267_vm6, %v2218_v24  ;;  %v2216_v22 = vpop.permute.xlu0 %2215 }
 0x2b0   : > { %2290 = vst.msk [vmem:[#allocation2 + $0x60] sm:$0xf] %vm2267_vm6, %v2216_v22 }
 0x2b1   : > { %2424 = vrot.lane.b32.xlu0 %v4159_v51, %s4783_s19 }
 0x2b2   : > { %v2182_v2 = vpop.permute.xlu1 %2181 }
 0x2b3   : > { %2273 = vst.msk [vmem:[#allocation2 + $0x1c] sm:$0xf] %vm2267_vm6, %v2182_v2  ;;  %v2180_v54 = vpop.permute.xlu0 %2179 }
 0x2b4   : > { %2272 = vst.msk [vmem:[#allocation2 + $0x18] sm:$0xf] %vm2267_vm6, %v2180_v54 }
 0x2b6   : > { %v2186_v58 = vpop.permute.xlu1 %2185 }
 0x2b7   : > { %2275 = vst.msk [vmem:[#allocation2 + $0x24] sm:$0xf] %vm2267_vm6, %v2186_v58  ;;  %v2184_v36 = vpop.permute.xlu0 %2183 }
 0x2b8   : > { %2274 = vst.msk [vmem:[#allocation2 + $0x20] sm:$0xf] %vm2267_vm6, %v2184_v36 }
 0x2ba   : > { %v2222_v25 = vpop.permute.xlu1 %2221 }
 0x2bb   : > { %2293 = vst.msk [vmem:[#allocation2 + $0x6c] sm:$0xf] %vm2267_vm6, %v2222_v25  ;;  %v2220_v14 = vpop.permute.xlu0 %2219 }
 0x2bc   : > { %2292 = vst.msk [vmem:[#allocation2 + $0x68] sm:$0xf] %vm2267_vm6, %v2220_v14 }
 0x2be   : > { %v2226_v41 = vpop.permute.xlu1 %2225 }
 0x2bf   : > { %2295 = vst.msk [vmem:[#allocation2 + $0x74] sm:$0xf] %vm2267_vm6, %v2226_v41  ;;  %v2224_v4 = vpop.permute.xlu0 %2223 }
 0x2c0   : > { %2294 = vst.msk [vmem:[#allocation2 + $0x70] sm:$0xf] %vm2267_vm6, %v2224_v4 }
 0x2c2   : > { %v2190_v6 = vpop.permute.xlu1 %2189 }
 0x2c3   : > { %2277 = vst.msk [vmem:[#allocation2 + $0x2c] sm:$0xf] %vm2267_vm6, %v2190_v6  ;;  %v2188_v11 = vpop.permute.xlu0 %2187 }
 0x2c4   : > { %2276 = vst.msk [vmem:[#allocation2 + $0x28] sm:$0xf] %vm2267_vm6, %v2188_v11 }
 0x2c6   : > { %v2194_v59 = vpop.permute.xlu1 %2193 }
 0x2c7   : > { %2279 = vst.msk [vmem:[#allocation2 + $0x34] sm:$0xf] %vm2267_vm6, %v2194_v59  ;;  %v2192_v34 = vpop.permute.xlu0 %2191  ;;  %v4623_v59 = vld [vmem:[#allocation2] sm:$0xff]  }
 0x2c8   : > { %2278 = vst.msk [vmem:[#allocation2 + $0x30] sm:$0xf] %vm2267_vm6, %v2192_v34 }
 0x2ca   : > { %v2230_v39 = vpop.permute.xlu1 %2229 }
 0x2cb   : > { %2297 = vst.msk [vmem:[#allocation2 + $0x7c] sm:$0xf] %vm2267_vm6, %v2230_v39  ;;  %v2228_v63 = vpop.permute.xlu0 %2227 }
 0x2cc   : > { %2296 = vst.msk [vmem:[#allocation2 + $0x78] sm:$0xf] %vm2267_vm6, %v2228_v63 }
 0x2ce   : > { %v2234_v55 = vpop.permute.xlu1 %2233 }
 0x2cf   : > { %2299 = vst.msk [vmem:[#allocation2 + $0x84] sm:$0xf] %vm2267_vm6, %v2234_v55  ;;  %v2232_v42 = vpop.permute.xlu0 %2231 }
 0x2d0   : > { %2298 = vst.msk [vmem:[#allocation2 + $0x80] sm:$0xf] %vm2267_vm6, %v2232_v42 }
 0x2d2   : > { %v2198_v12 = vpop.permute.xlu1 %2197 }
 0x2d3   : > { %2281 = vst.msk [vmem:[#allocation2 + $0x3c] sm:$0xf] %vm2267_vm6, %v2198_v12 }
 0x2d4   : > { %v2196_v47 = vpop.permute.xlu0 %2195 }
 0x2d5   : > { %2280 = vst.msk [vmem:[#allocation2 + $0x38] sm:$0xf] %vm2267_vm6, %v2196_v47 }
 0x2d8   : > { %v2202_v48 = vpop.permute.xlu1 %2201 }
 0x2d9   : > { %2283 = vst.msk [vmem:[#allocation2 + $0x44] sm:$0xf] %vm2267_vm6, %v2202_v48  ;;  %v2200_v56 = vpop.permute.xlu0 %2199 }
 0x2da   : > { %2282 = vst.msk [vmem:[#allocation2 + $0x40] sm:$0xf] %vm2267_vm6, %v2200_v56 }
 0x2df   : > { %v2431_v62 = vpop.permute.xlu1 %2430 }
 0x2e0   : > { %2510 = vst.msk [vmem:[#allocation2 + $0x4c] sm:$0xf] %vm2492_vm2, %v2431_v62 }
 0x2e2   : > { %v2429_v17 = vpop.permute.xlu0 %2428 }
 0x2e3   : > { %2509 = vst.msk [vmem:[#allocation2 + $0x48] sm:$0xf] %vm2492_vm2, %v2429_v17 }
 0x2e6   : > { %v2435_v57 = vpop.permute.xlu1 %2434 }
 0x2e7   : > { %2512 = vst.msk [vmem:[#allocation2 + $0x54] sm:$0xf] %vm2492_vm2, %v2435_v57 }
 0x2e8   : > { %v2433_v21 = vpop.permute.xlu0 %2432 }
 0x2e9   : > { %2511 = vst.msk [vmem:[#allocation2 + $0x50] sm:$0xf] %vm2492_vm2, %v2433_v21 }
 0x2ea   : > { %v6331_v9 = vld [vmem:[#allocation2 + $0x48] sm:$0xff]  }
 0x2eb   : > { %4462 = vmatprep.mubr.msk.bf16.mxu1 %vm2700_vm10, %v6331_v9  ;;  %v4633_v57 = vld [vmem:[#allocation2 + $0x48] sm:$0xff]  }
 0x2ec   : > { %v2399_v50 = vpop.permute.xlu1 %2398 }
 0x2ed   : > { %2494 = vst.msk [vmem:[#allocation2 + $0xc] sm:$0xf] %vm2492_vm2, %v2399_v50  ;;  %v2397_v40 = vpop.permute.xlu0 %2396 }
 0x2ee   : > { %2493 = vst.msk [vmem:[#allocation2 + $0x8] sm:$0xf] %vm2492_vm2, %v2397_v40 }
 0x2f0   : > { %v2403_v13 = vpop.permute.xlu1 %2402  ;;  %v6340_v3 = vld [vmem:[#allocation2 + $0x50] sm:$0xff]  }
 0x2f1   : > { %2496 = vst.msk [vmem:[#allocation2 + $0x14] sm:$0xf] %vm2492_vm2, %v2403_v13  ;;  %4463 = vmatmul.mubr.msk.bf16.vlgmr.msra.gmra.mxu1 %vm2700_vm10, %v6340_v3  ;;  %v4634_v21 = vld [vmem:[#allocation2 + $0x50] sm:$0xff]  }
 0x2f2   : > { %v2401_v5 = vpop.permute.xlu0 %2400  ;;  %4479 = vmatpush3.bf16.msra.mxu1 %v6225_v61 }
 0x2f3   : > { %2495 = vst.msk [vmem:[#allocation2 + $0x10] sm:$0xf] %vm2492_vm2, %v2401_v5  ;;  %4480 = vmatprep.subr.bf16.mxu1 %v4609_v15 }
 0x2f4   : > { %v2439_v35 = vpop.permute.xlu1 %2438 }
 0x2f5   : > { %2514 = vst.msk [vmem:[#allocation2 + $0x5c] sm:$0xf] %vm2492_vm2, %v2439_v35  ;;  %v6347_v37 = vld [vmem:[#allocation2 + $0x8] sm:$0xff]  }
 0x2f6   : > { %4446 = vmatprep.mubr.msk.bf16.mxu0 %vm2700_vm10, %v6347_v37  ;;  %4481 = vmatpush3.bf16.msra.mxu1 %v4609_v15 }
 0x2f7   : > { %v2437_v60 = vpop.permute.xlu0 %2436  ;;  %4482 = vmatprep.subr.bf16.mxu1 %v4613_v19 }
 0x2f8   : > { %2513 = vst.msk [vmem:[#allocation2 + $0x58] sm:$0xf] %vm2492_vm2, %v2437_v60  ;;  %v2443_v61 = vpop.permute.xlu1 %2442 }
 0x2f9   : > { %2516 = vst.msk [vmem:[#allocation2 + $0x64] sm:$0xf] %vm2492_vm2, %v2443_v61 }
 0x2fa   : > { %v6362_v31 = vld [vmem:[#allocation2 + $0x10] sm:$0xff]   ;;  %4483 = vmatpush3.bf16.msra.mxu1 %v4613_v19 }
 0x2fb   : > { %v2441_v38 = vpop.permute.xlu0 %2440  ;;  %4447 = vmatmul.mubr.msk.bf16.vlgmr.msra.gmra.mxu0 %vm2700_vm10, %v6362_v31  ;;  %4484 = vmatprep.subr.bf16.mxu1 %v4616_v8  ;;  %v4625_v42 = vld [vmem:[#allocation2 + $0x10] sm:$0xff]  }
 0x2fc   : > { %2515 = vst.msk [vmem:[#allocation2 + $0x60] sm:$0xf] %vm2492_vm2, %v2441_v38  ;;  %v2407_v52 = vpop.permute.xlu1 %2406  ;;  %4523 = vmatpush3.bf16.msra.mxu0 %v6239_v49  ;;  %v4617_v49 = vld [vmem:[%s6614_s5 + $0x70] sm:$0xff]  }
 0x2fd   : > { %2498 = vst.msk [vmem:[#allocation2 + $0x1c] sm:$0xf] %vm2492_vm2, %v2407_v52  ;;  %4524 = vmatprep.subr.bf16.mxu0 %v4611_v20 }
 0x2fe   : > { %4485 = vmatpush3.bf16.msra.mxu1 %v4616_v8 }
 0x2ff   : > { %v2405_v27 = vpop.permute.xlu0 %2404  ;;  %v6375_v0 = vld [vmem:[#allocation2 + $0x58] sm:$0xff]   ;;  %4486 = vmatprep.subr.bf16.mxu1 %v4619_v10 }
 0x300   : > { %2497 = vst.msk [vmem:[#allocation2 + $0x18] sm:$0xf] %vm2492_vm2, %v2405_v27  ;;  %4466 = vmatprep.mubr.msk.bf16.mxu1 %vm2700_vm10, %v6375_v0  ;;  %v2411_v26 = vpop.permute.xlu1 %2410  ;;  %4525 = vmatpush3.bf16.msra.mxu0 %v4611_v20  ;;  %v4635_v50 = vld [vmem:[#allocation2 + $0x58] sm:$0xff]  }
 0x301   : > { %2500 = vst.msk [vmem:[#allocation2 + $0x24] sm:$0xf] %vm2492_vm2, %v2411_v26  ;;  %4526 = vmatprep.subr.bf16.mxu0 %v4614_v46 }
 0x302   : > { %4487 = vmatpush3.bf16.msra.mxu1 %v4619_v10 }
 0x303   : > { %v2409_v7 = vpop.permute.xlu0 %2408  ;;  %v6387_v53 = vld [vmem:[#allocation2 + $0x60] sm:$0xff]   ;;  %4488 = vmatprep.subr.bf16.mxu1 %v4621_v30 }
 0x304   : > { %2499 = vst.msk [vmem:[#allocation2 + $0x20] sm:$0xf] %vm2492_vm2, %v2409_v7  ;;  %4467 = vmatmul.mubr.msk.bf16.gmra.mxu1 %vm2700_vm10, %v6387_v53  ;;  %v2447_v1 = vpop.permute.xlu1 %2446  ;;  %4527 = vmatpush3.bf16.msra.mxu0 %v4614_v46  ;;  %v4636_v40 = vld [vmem:[#allocation2 + $0x60] sm:$0xff]  }
 0x305   : > { %2518 = vst.msk [vmem:[#allocation2 + $0x6c] sm:$0xf] %vm2492_vm2, %v2447_v1  ;;  %4528 = vmatprep.subr.bf16.mxu0 %v4617_v49 }
 0x306   : > { %4489 = vmatpush3.bf16.msra.mxu1 %v4621_v30 }
 0x307   : > { %v2445_v43 = vpop.permute.xlu0 %2444  ;;  %v6396_v18 = vld [vmem:[#allocation2 + $0x18] sm:$0xff]  }
 0x308   : > { %2517 = vst.msk [vmem:[#allocation2 + $0x68] sm:$0xf] %vm2492_vm2, %v2445_v43  ;;  %4450 = vmatprep.mubr.msk.bf16.mxu0 %vm2700_vm10, %v6396_v18  ;;  %v2451_v33 = vpop.permute.xlu1 %2450  ;;  %4529 = vmatpush3.bf16.msra.mxu0 %v4617_v49  ;;  %v4627_v12 = vld [vmem:[#allocation2 + $0x18] sm:$0xff]  }
 0x309   : > { %2520 = vst.msk [vmem:[#allocation2 + $0x74] sm:$0xf] %vm2492_vm2, %v2451_v33  ;;  %4530 = vmatprep.subr.bf16.mxu0 %v4622_v28 }
 0x30b   : > { %v2449_v32 = vpop.permute.xlu0 %2448  ;;  %v4604_v51 = vld [vmem:[#allocation2 + $0x20] sm:$0xff]  }
 0x30c   : > { %2519 = vst.msk [vmem:[#allocation2 + $0x70] sm:$0xf] %vm2492_vm2, %v2449_v32  ;;  %4451 = vmatmul.mubr.msk.bf16.gmra.mxu0 %vm2700_vm10, %v4604_v51  ;;  %v2415_v23 = vpop.permute.xlu1 %2414  ;;  %v4628_v47 = vld [vmem:[#allocation2 + $0x20] sm:$0xff]  }
 0x30d   : > { %4531 = vmatpush3.bf16.msra.mxu0 %v4622_v28  ;;  %2502 = vst.msk [vmem:[#allocation2 + $0x2c] sm:$0xf] %vm2492_vm2, %v2415_v23 }
 0x30e   : > { %4532 = vmatprep.subr.bf16.mxu0 %v4626_v16 }
 0x30f   : > { %v2413_v44 = vpop.permute.xlu0 %2412  ;;  %v6408_v29 = vld [vmem:[#allocation2 + $0x68] sm:$0xff]  }
 0x310   : > { %2501 = vst.msk [vmem:[#allocation2 + $0x28] sm:$0xf] %vm2492_vm2, %v2413_v44  ;;  %4470 = vmatprep.mubr.msk.bf16.mxu1 %vm2700_vm10, %v6408_v29  ;;  %v2419_v45 = vpop.permute.xlu1 %2418 }
 0x311   : > { %4533 = vmatpush3.bf16.msra.mxu0 %v4626_v16  ;;  %2504 = vst.msk [vmem:[#allocation2 + $0x34] sm:$0xf] %vm2492_vm2, %v2419_v45 }
 0x313   : > { %v2417_v24 = vpop.permute.xlu0 %2416  ;;  %v6414_v22 = vld [vmem:[#allocation2 + $0x70] sm:$0xff]  }
 0x314   : > { %2503 = vst.msk [vmem:[#allocation2 + $0x30] sm:$0xf] %vm2492_vm2, %v2417_v24  ;;  %4471 = vmatmul.mubr.msk.bf16.gmra.mxu1 %vm2700_vm10, %v6414_v22  ;;  %v2455_v2 = vpop.permute.xlu1 %2454  ;;  %v4638_v13 = vld [vmem:[#allocation2 + $0x70] sm:$0xff]  }
 0x315   : > { %2522 = vst.msk [vmem:[#allocation2 + $0x7c] sm:$0xf] %vm2492_vm2, %v2455_v2 }
 0x317   : > { %v2453_v54 = vpop.permute.xlu0 %2452  ;;  %v4610_v58 = vld [vmem:[#allocation2 + $0x28] sm:$0xff]  }
 0x318   : > { %2521 = vst.msk [vmem:[#allocation2 + $0x78] sm:$0xf] %vm2492_vm2, %v2453_v54  ;;  %4454 = vmatprep.mubr.msk.bf16.mxu0 %vm2700_vm10, %v4610_v58  ;;  %v2459_v36 = vpop.permute.xlu1 %2458  ;;  %v4629_v48 = vld [vmem:[#allocation2 + $0x28] sm:$0xff]  }
 0x319   : > { %2524 = vst.msk [vmem:[#allocation2 + $0x84] sm:$0xf] %vm2492_vm2, %v2459_v36 }
 0x31b   : > { %v2457_v25 = vpop.permute.xlu0 %2456  ;;  %v4612_v14 = vld [vmem:[#allocation2 + $0x30] sm:$0xff]  }
 0x31c   : > { %2523 = vst.msk [vmem:[#allocation2 + $0x80] sm:$0xf] %vm2492_vm2, %v2457_v25  ;;  %4455 = vmatmul.mubr.msk.bf16.gmra.mxu0 %vm2700_vm10, %v4612_v14  ;;  %v2423_v41 = vpop.permute.xlu1 %2422  ;;  %v4630_v56 = vld [vmem:[#allocation2 + $0x30] sm:$0xff]  }
 0x31d   : > { %2506 = vst.msk [vmem:[#allocation2 + $0x3c] sm:$0xf] %vm2492_vm2, %v2423_v41 }
 0x31f   : > { %v2421_v4 = vpop.permute.xlu0 %2420  ;;  %v4615_v6 = vld [vmem:[#allocation2 + $0x78] sm:$0xff]  }
 0x320   : > { %2505 = vst.msk [vmem:[#allocation2 + $0x38] sm:$0xf] %vm2492_vm2, %v2421_v4  ;;  %4474 = vmatprep.mubr.msk.bf16.mxu1 %vm2700_vm10, %v4615_v6  ;;  %v2427_v11 = vpop.permute.xlu1 %2426  ;;  %v4639_v15 = vld [vmem:[#allocation2 + $0x78] sm:$0xff]  }
 0x321   : > { %2508 = vst.msk [vmem:[#allocation2 + $0x44] sm:$0xf] %vm2492_vm2, %v2427_v11 }
 0x323   : > { %v2425_v34 = vpop.permute.xlu0 %2424  ;;  %v4618_v39 = vld [vmem:[#allocation2 + $0x80] sm:$0xff]  }
 0x324   : > { %2507 = vst.msk [vmem:[#allocation2 + $0x40] sm:$0xf] %vm2492_vm2, %v2425_v34  ;;  %4475 = vmatmul.mubr.msk.bf16.gmra.mxu1 %vm2700_vm10, %v4618_v39  ;;  %v4640_v5 = vld [vmem:[#allocation2 + $0x80] sm:$0xff]  }
 0x325   : > { %4490 = vmatprep.mubr.msk.bf16.mxu1 %vm2700_vm10, %v4623_v59  ;;  %v6526_v34 = vld [vmem:[%s287_s27] ss:$0 sm:$0xff] }
 0x327   : > { %v4620_v63 = vld [vmem:[#allocation2 + $0x38] sm:$0xff]  }
 0x328   : > { %4458 = vmatprep.mubr.msk.bf16.mxu0 %vm2700_vm10, %v4620_v63  ;;  %v4631_v62 = vld [vmem:[#allocation2 + $0x38] sm:$0xff]  }
 0x32b   : > { %v4624_v55 = vld [vmem:[#allocation2 + $0x40] sm:$0xff]  }
 0x32c   : > { %4459 = vmatmul.mubr.msk.bf16.gmra.mxu0 %vm2700_vm10, %v4624_v55  ;;  %4491 = vmatmul.mubr.msk.bf16.vlgmr.msra.gmra.mxu1 %vm2700_vm10, %v6347_v37  ;;  %v4632_v17 = vld [vmem:[#allocation2 + $0x40] sm:$0xff]  }
 0x32d   : > { %4494 = vmatprep.mubr.msk.bf16.mxu1 %vm2700_vm10, %v6362_v31  ;;  %4534 = vmatprep.mubr.msk.bf16.mxu0 %vm2700_vm10, %v4625_v42 }
 0x334   : > { %4495 = vmatmul.mubr.msk.bf16.gmra.mxu1 %vm2700_vm10, %v6396_v18  ;;  %4535 = vmatmul.mubr.msk.bf16.vlgmr.msra.gmra.mxu0 %vm2700_vm10, %v4627_v12 }
 0x335   : > { %4498 = vmatprep.mubr.msk.bf16.mxu1 %vm2700_vm10, %v4604_v51  ;;  %4538 = vmatprep.mubr.msk.bf16.mxu0 %vm2700_vm10, %v4628_v47 }
 0x33c   : > { %4499 = vmatmul.mubr.msk.bf16.gmra.mxu1 %vm2700_vm10, %v4610_v58  ;;  %4539 = vmatmul.mubr.msk.bf16.gmra.mxu0 %vm2700_vm10, %v4629_v48 }
 0x33d   : > { %4502 = vmatprep.mubr.msk.bf16.mxu1 %vm2700_vm10, %v4612_v14  ;;  %4542 = vmatprep.mubr.msk.bf16.mxu0 %vm2700_vm10, %v4630_v56 }
 0x344   : > { %4503 = vmatmul.mubr.msk.bf16.gmra.mxu1 %vm2700_vm10, %v4620_v63  ;;  %4543 = vmatmul.mubr.msk.bf16.gmra.mxu0 %vm2700_vm10, %v4631_v62 }
 0x345   : > { %4506 = vmatprep.mubr.msk.bf16.mxu1 %vm2700_vm10, %v4624_v55  ;;  %4546 = vmatprep.mubr.msk.bf16.mxu0 %vm2700_vm10, %v4632_v17 }
 0x34c   : > { %4507 = vmatmul.mubr.msk.bf16.gmra.mxu1 %vm2700_vm10, %v6331_v9  ;;  %4547 = vmatmul.mubr.msk.bf16.gmra.mxu0 %vm2700_vm10, %v4633_v57  ;;  %v4637_v9 = vld [vmem:[#allocation2 + $0x68] sm:$0xff]  }
 0x34d   : > { %4510 = vmatprep.mubr.msk.bf16.mxu1 %vm2700_vm10, %v6340_v3  ;;  %4550 = vmatprep.mubr.msk.bf16.mxu0 %vm2700_vm10, %v4634_v21  ;;  %v4641_v3 = vld [vmem:[#allocation2 + $0x88] sm:$0xff]  }
 0x354   : > { %4511 = vmatmul.mubr.msk.bf16.gmra.mxu1 %vm2700_vm10, %v6375_v0  ;;  %4551 = vmatmul.mubr.msk.bf16.gmra.mxu0 %vm2700_vm10, %v4635_v50 }
 0x355   : > { %4514 = vmatprep.mubr.msk.bf16.mxu1 %vm2700_vm10, %v6387_v53  ;;  %4554 = vmatprep.mubr.msk.bf16.mxu0 %vm2700_vm10, %v4636_v40 }
 0x35c   : > { %4515 = vmatmul.mubr.msk.bf16.gmra.mxu1 %vm2700_vm10, %v6408_v29  ;;  %4555 = vmatmul.mubr.msk.bf16.gmra.mxu0 %vm2700_vm10, %v4637_v9 }
 0x35d   : > { %4518 = vmatprep.mubr.msk.bf16.mxu1 %vm2700_vm10, %v6414_v22  ;;  %4558 = vmatprep.mubr.msk.bf16.mxu0 %vm2700_vm10, %v4638_v13 }
 0x364   : > { %4519 = vmatmul.mubr.msk.bf16.gmra.mxu1 %vm2700_vm10, %v4615_v6  ;;  %4559 = vmatmul.mubr.msk.bf16.gmra.mxu0 %vm2700_vm10, %v4639_v15 }
 0x365   : > { %4562 = vmatprep.mubr.msk.bf16.mxu0 %vm2700_vm10, %v4640_v5 }
 0x36c   : > { %4563 = vmatmul.mubr.msk.bf16.gmra.mxu0 %vm2700_vm10, %v4641_v3 }
 0x3b1   : > { %v6474_v35 = vpop.f32.mrf.mxu1 }
 0x3b3   : > { %v6476_v60 = vpop.f32.mrf.mxu1 }
 0x3b5   : > { %v6478_v37 = vpop.f32.mrf.mxu1 }
 0x3b7   : > { %v6480_v20 = vpop.f32.mrf.mxu1 }
 0x3bb   : > { %v4448_v19 = vpop.f32.mrf.mxu0 }
 0x3bd   : > { %v2783_v61 = vpop.f32.mrf.mxu0 }
 0x3bf   : > { %v4449_v38 = vpop.f32.mrf.mxu0 }
 0x3c1   : > { %v2786_v46 = vpop.f32.mrf.mxu0 }
 0x3c4   : > { %v6482_v8 = vpop.f32.mrf.mxu1 }
 0x3c6   : > { %v6484_v31 = vpop.f32.mrf.mxu1 }
 0x3c8   : > { %v6486_v52 = vpop.f32.mrf.mxu1 }
 0x3ca   : > { %v6488_v27 = vpop.f32.mrf.mxu1 }
 0x3cc   : > { %v4452_v10 = vpop.f32.mrf.mxu0 }
 0x3ce   : > { %v2799_v0 = vpop.f32.mrf.mxu0 }
 0x3d0   : > { %v4453_v26 = vpop.f32.mrf.mxu0 }
 0x3d2   : > { %v2802_v7 = vpop.f32.mrf.mxu0 }
 0x3d4   : > { %v6490_v49 = vpop.f32.mrf.mxu1 }
 0x3d6   : > { %v6492_v30 = vpop.f32.mrf.mxu1 }
 0x3d8   : > { %v6494_v53 = vpop.f32.mrf.mxu1 }
 0x3da   : > { %v6498_v28 = vpop.f32.mrf.mxu1 }
 0x3dc   : > { %v6496_v1 = vpop.f32.mrf.mxu0 }
 0x3de   : > { %v6500_v43 = vpop.f32.mrf.mxu0 }
 0x3e0   : > { %v6504_v33 = vpop.f32.mrf.mxu0 }
 0x3e2   : > { %v6510_v51 = vpop.f32.mrf.mxu0 }
 0x3e4   : > { %v6502_v18 = vpop.f32.mrf.mxu1 }
 0x3e6   : > { %v6506_v16 = vpop.f32.mrf.mxu1 }
 0x3e8   : > { %v6508_v32 = vpop.f32.mrf.mxu1 }
 0x3ea   : > { %v6512_v23 = vpop.f32.mrf.mxu1 }
 0x3ec   : > { %v6514_v44 = vpop.f32.mrf.mxu0  ;;  %v4492_v29 = vpop.f32.mrf.mxu1 }
 0x3ed   : > { %v2997_v14 = vadd.f32 %v4492_v29, %v4448_v19 }
 0x3ee   : > { %v6516_v45 = vpop.f32.mrf.mxu0  ;;  %v2988_v24 = vpop.f32.mrf.mxu1 }
 0x3ef   : > { %v2989_v6 = vadd.f32 %v2988_v24, %v2783_v61 }
 0x3f0   : > { %v6518_v22 = vpop.f32.mrf.mxu0  ;;  %v4493_v2 = vpop.f32.mrf.mxu1 }
 0x3f1   : > { %v3000_v11 = vadd.f32 %v4493_v2, %v4449_v38 }
 0x3f2   : > { %v6520_v54 = vpop.f32.mrf.mxu0  ;;  %v2991_v58 = vpop.f32.mrf.mxu1 }
 0x3f3   : > { %v2992_v55 = vadd.f32 %v2991_v58, %v2786_v46 }
 0x3f4   : > { %v4496_v36 = vpop.f32.mrf.mxu1  ;;  %v4536_v25 = vpop.f32.mrf.mxu0 }
 0x3f5   : > { %v3487_v59 = vadd.f32 %v4536_v25, %v2997_v14  ;;  %v3013_v50 = vadd.f32 %v4496_v36, %v4452_v10 }
 0x3f6   : > { %v3004_v41 = vpop.f32.mrf.mxu1  ;;  %v3358_v4 = vpop.f32.mrf.mxu0 }
 0x3f7   : > { %v3485_v42 = vadd.f32 %v3358_v4, %v2989_v6  ;;  %v3526_v56 = vadd.f32 %v6526_v34, %v3487_v59  ;;  %v3005_v3 = vadd.f32 %v3004_v41, %v2799_v0 }
 0x3f8   : > { %v4497_v39 = vpop.f32.mrf.mxu1  ;;  %v4537_v63 = vpop.f32.mrf.mxu0 }
 0x3f9   : > { %v3488_v12 = vadd.f32 %v4537_v63, %v3000_v11  ;;  %v3524_v40 = vadd.f32 %v6526_v34, %v3485_v42  ;;  %v3016_v19 = vadd.f32 %v4497_v39, %v4453_v26 }
 0x3fa   : > { %v3007_v47 = vpop.f32.mrf.mxu1  ;;  %v3361_v48 = vpop.f32.mrf.mxu0 }
 0x3fb   : > { %v3527_v62 = vadd.f32 %v6526_v34, %v3488_v12  ;;  %v3486_v17 = vadd.f32 %v3361_v48, %v2992_v55  ;;  %v3008_v24 = vadd.f32 %v3007_v47, %v2802_v7 }
 0x3fc   : > { %v4500_v57 = vpop.f32.mrf.mxu1  ;;  %v4540_v21 = vpop.f32.mrf.mxu0 }
 0x3fd   : > { %v4217_v9 = vpack.c.bf16 %v3527_v62, %v3526_v56  ;;  %v3525_v13 = vadd.f32 %v6526_v34, %v3486_v17  ;;  %v3491_v38 = vadd.f32 %v4540_v21, %v3013_v50  ;;  %v3029_v26 = vadd.f32 %v4500_v57, %v6496_v1 }
 0x3fe   : > { %v3020_v15 = vpop.f32.mrf.mxu1  ;;  %v3374_v5 = vpop.f32.mrf.mxu0 }
 0x3ff   : > { %4289 = vst [vmem:[%s6534_s8 + $0x8] sm:$0xff] %v4217_v9   ;;  %v4212_v61 = vpack.c.bf16 %v3525_v13, %v3524_v40  ;;  %v3489_v2 = vadd.f32 %v3374_v5, %v3005_v3  ;;  %v3530_v25 = vadd.f32 %v6526_v34, %v3491_v38  ;;  %v3021_v63 = vadd.f32 %v3020_v15, %v6500_v43 }
 0x400   : > { %v4501_v46 = vpop.f32.mrf.mxu1  ;;  %v4541_v29 = vpop.f32.mrf.mxu0 }
 0x401   : > { %4213 = vst [vmem:[%s6534_s8] sm:$0xff] %v4212_v61   ;;  %v3492_v58 = vadd.f32 %v4541_v29, %v3016_v19  ;;  %v3528_v41 = vadd.f32 %v6526_v34, %v3489_v2  ;;  %v3032_v55 = vadd.f32 %v4501_v46, %v6504_v33 }
 0x402   : > { %v3023_v10 = vpop.f32.mrf.mxu1  ;;  %v3377_v36 = vpop.f32.mrf.mxu0 }
 0x403   : > { %v3531_v14 = vadd.f32 %v6526_v34, %v3492_v58  ;;  %v3490_v4 = vadd.f32 %v3377_v36, %v3008_v24  ;;  %v3024_v56 = vadd.f32 %v3023_v10, %v6510_v51 }
 0x404   : > { %v4504_v6 = vpop.f32.mrf.mxu1  ;;  %v4544_v0 = vpop.f32.mrf.mxu0 }
 0x405   : > { %v4227_v11 = vpack.c.bf16 %v3531_v14, %v3530_v25  ;;  %v3529_v7 = vadd.f32 %v6526_v34, %v3490_v4  ;;  %v3495_v12 = vadd.f32 %v4544_v0, %v3029_v26  ;;  %v3045_v9 = vadd.f32 %v4504_v6, %v6514_v44 }
 0x406   : > { %v3036_v59 = vpop.f32.mrf.mxu1  ;;  %v3390_v39 = vpop.f32.mrf.mxu0 }
 0x407   : > { %4291 = vst [vmem:[%s6534_s8 + $0x18] sm:$0xff] %v4227_v11   ;;  %v4222_v42 = vpack.c.bf16 %v3529_v7, %v3528_v41  ;;  %v3493_v1 = vadd.f32 %v3390_v39, %v3021_v63  ;;  %v3534_v21 = vadd.f32 %v6526_v34, %v3495_v12  ;;  %v3037_v19 = vadd.f32 %v3036_v59, %v6516_v45 }
 0x408   : > { %v4505_v47 = vpop.f32.mrf.mxu1  ;;  %v4545_v48 = vpop.f32.mrf.mxu0 }
 0x409   : > { %4290 = vst [vmem:[%s6534_s8 + $0x10] sm:$0xff] %v4222_v42   ;;  %v3496_v62 = vadd.f32 %v4545_v48, %v3032_v55  ;;  %v3532_v13 = vadd.f32 %v6526_v34, %v3493_v1  ;;  %v3048_v61 = vadd.f32 %v4505_v47, %v6518_v22 }
 0x40a   : > { %v3039_v17 = vpop.f32.mrf.mxu1  ;;  %v3393_v57 = vpop.f32.mrf.mxu0 }
 0x40b   : > { %v3535_v50 = vadd.f32 %v6526_v34, %v3496_v62  ;;  %v3494_v43 = vadd.f32 %v3393_v57, %v3024_v56  ;;  %v3040_v2 = vadd.f32 %v3039_v17, %v6520_v54 }
 0x40c   : > { %v4508_v40 = vpop.f32.mrf.mxu1  ;;  %v4548_v33 = vpop.f32.mrf.mxu0 }
 0x40d   : > { %v4237_v15 = vpack.c.bf16 %v3535_v50, %v3534_v21  ;;  %v3533_v51 = vadd.f32 %v6526_v34, %v3494_v43  ;;  %v3499_v46 = vadd.f32 %v4548_v33, %v3045_v9  ;;  %v3061_v6 = vadd.f32 %v4508_v40, %v6474_v35 }
 0x40e   : > { %v3052_v5 = vpop.f32.mrf.mxu1  ;;  %v3406_v3 = vpop.f32.mrf.mxu0 }
 0x40f   : > { %4293 = vst [vmem:[%s6534_s8 + $0x28] sm:$0xff] %v4237_v15   ;;  %v4232_v38 = vpack.c.bf16 %v3533_v51, %v3532_v13  ;;  %v3497_v44 = vadd.f32 %v3406_v3, %v3037_v19  ;;  %v3538_v25 = vadd.f32 %v6526_v34, %v3499_v46  ;;  %v3053_v7 = vadd.f32 %v3052_v5, %v6476_v60 }
 0x410   : > { %v4509_v29 = vpop.f32.mrf.mxu1  ;;  %v4549_v24 = vpop.f32.mrf.mxu0 }
 0x411   : > { %4292 = vst [vmem:[%s6534_s8 + $0x20] sm:$0xff] %v4232_v38   ;;  %v3500_v58 = vadd.f32 %v4549_v24, %v3048_v61  ;;  %v3536_v0 = vadd.f32 %v6526_v34, %v3497_v44  ;;  %v3064_v59 = vadd.f32 %v4509_v29, %v6478_v37 }
 0x412   : > { %v3055_v10 = vpop.f32.mrf.mxu1  ;;  %v3409_v36 = vpop.f32.mrf.mxu0 }
 0x413   : > { %v3539_v14 = vadd.f32 %v6526_v34, %v3500_v58  ;;  %v3498_v45 = vadd.f32 %v3409_v36, %v3040_v2  ;;  %v3056_v12 = vadd.f32 %v3055_v10, %v6480_v20 }
 0x414   : > { %v4512_v4 = vpop.f32.mrf.mxu1  ;;  %v4552_v22 = vpop.f32.mrf.mxu0 }
 0x415   : > { %v4247_v26 = vpack.c.bf16 %v3539_v14, %v3538_v25  ;;  %v3537_v54 = vadd.f32 %v6526_v34, %v3498_v45  ;;  %v3503_v63 = vadd.f32 %v4552_v22, %v3061_v6  ;;  %v3077_v57 = vadd.f32 %v4512_v4, %v6482_v8 }
 0x416   : > { %v3068_v41 = vpop.f32.mrf.mxu1  ;;  %v3422_v11 = vpop.f32.mrf.mxu0 }
 0x417   : > { %4295 = vst [vmem:[%s6534_s8 + $0x38] sm:$0xff] %v4247_v26   ;;  %v4242_v39 = vpack.c.bf16 %v3537_v54, %v3536_v0  ;;  %v3501_v35 = vadd.f32 %v3422_v11, %v3053_v7  ;;  %v3542_v1 = vadd.f32 %v6526_v34, %v3503_v63  ;;  %v3069_v33 = vadd.f32 %v3068_v41, %v6484_v31 }
 0x418   : > { %v4513_v55 = vpop.f32.mrf.mxu1  ;;  %v4553_v42 = vpop.f32.mrf.mxu0 }
 0x419   : > { %4294 = vst [vmem:[%s6534_s8 + $0x30] sm:$0xff] %v4242_v39   ;;  %v3504_v47 = vadd.f32 %v4553_v42, %v3064_v59  ;;  %v3540_v21 = vadd.f32 %v6526_v34, %v3501_v35  ;;  %v3080_v9 = vadd.f32 %v4513_v55, %v6486_v52 }
 0x41a   : > { %v3071_v48 = vpop.f32.mrf.mxu1  ;;  %v3425_v56 = vpop.f32.mrf.mxu0 }
 0x41b   : > { %v3543_v62 = vadd.f32 %v6526_v34, %v3504_v47  ;;  %v3502_v60 = vadd.f32 %v3425_v56, %v3056_v12  ;;  %v3072_v3 = vadd.f32 %v3071_v48, %v6488_v27 }
 0x41c   : > { %v4516_v17 = vpop.f32.mrf.mxu1  ;;  %v4556_v37 = vpop.f32.mrf.mxu0 }
 0x41d   : > { %v4257_v50 = vpack.c.bf16 %v3543_v62, %v3542_v1  ;;  %v3541_v20 = vadd.f32 %v6526_v34, %v3502_v60  ;;  %v3507_v15 = vadd.f32 %v4556_v37, %v3077_v57  ;;  %v3093_v2 = vadd.f32 %v4516_v17, %v6490_v49 }
 0x41e   : > { %v3084_v43 = vpop.f32.mrf.mxu1  ;;  %v3438_v40 = vpop.f32.mrf.mxu0 }
 0x41f   : > { %4297 = vst [vmem:[%s6534_s8 + $0x48] sm:$0xff] %v4257_v50   ;;  %v4252_v13 = vpack.c.bf16 %v3541_v20, %v3540_v21  ;;  %v3505_v8 = vadd.f32 %v3438_v40, %v3069_v33  ;;  %v3546_v46 = vadd.f32 %v6526_v34, %v3507_v15  ;;  %v3085_v25 = vadd.f32 %v3084_v43, %v6492_v30 }
 0x420   : > { %v4517_v51 = vpop.f32.mrf.mxu1  ;;  %v4557_v5 = vpop.f32.mrf.mxu0 }
 0x421   : > { %4296 = vst [vmem:[%s6534_s8 + $0x40] sm:$0xff] %v4252_v13   ;;  %v3508_v19 = vadd.f32 %v4557_v5, %v3080_v9  ;;  %v3544_v44 = vadd.f32 %v6526_v34, %v3505_v8  ;;  %v3096_v14 = vadd.f32 %v4517_v51, %v6494_v53 }
 0x422   : > { %v3087_v61 = vpop.f32.mrf.mxu1  ;;  %v3441_v38 = vpop.f32.mrf.mxu0 }
 0x423   : > { %v3547_v29 = vadd.f32 %v6526_v34, %v3508_v19  ;;  %v3506_v31 = vadd.f32 %v3441_v38, %v3072_v3  ;;  %v3088_v6 = vadd.f32 %v3087_v61, %v6498_v28 }
 0x424   : > { %v4520_v52 = vpop.f32.mrf.mxu1  ;;  %v4560_v24 = vpop.f32.mrf.mxu0 }
 0x425   : > { %v4267_v58 = vpack.c.bf16 %v3547_v29, %v3546_v46  ;;  %v3545_v27 = vadd.f32 %v6526_v34, %v3506_v31  ;;  %v3511_v4 = vadd.f32 %v4560_v24, %v3093_v2  ;;  %v3109_v53 = vadd.f32 %v4520_v52, %v6502_v18 }
 0x426   : > { %v3100_v10 = vpop.f32.mrf.mxu1  ;;  %v3454_v36 = vpop.f32.mrf.mxu0 }
 0x427   : > { %4299 = vst [vmem:[%s6534_s8 + $0x58] sm:$0xff] %v4267_v58   ;;  %v4262_v45 = vpack.c.bf16 %v3545_v27, %v3544_v44  ;;  %v3509_v0 = vadd.f32 %v3454_v36, %v3085_v25  ;;  %v3550_v41 = vadd.f32 %v6526_v34, %v3511_v4  ;;  %v3101_v42 = vadd.f32 %v3100_v10, %v6506_v16 }
 0x428   : > { %v4561_v22 = vpop.f32.mrf.mxu0  ;;  %v4521_v26 = vpop.f32.mrf.mxu1 }
 0x429   : > { %4298 = vst [vmem:[%s6534_s8 + $0x50] sm:$0xff] %v4262_v45   ;;  %v3512_v49 = vadd.f32 %v4561_v22, %v3096_v14  ;;  %v3548_v59 = vadd.f32 %v6526_v34, %v3509_v0  ;;  %v3112_v12 = vadd.f32 %v4521_v26, %v6508_v32 }
 0x42a   : > { %v3457_v54 = vpop.f32.mrf.mxu0  ;;  %v3103_v63 = vpop.f32.mrf.mxu1 }
 0x42b   : > { %v3551_v11 = vadd.f32 %v6526_v34, %v3512_v49  ;;  %v3510_v30 = vadd.f32 %v3457_v54, %v3088_v6  ;;  %v3104_v56 = vadd.f32 %v3103_v63, %v6512_v23 }
 0x42c   : > { %v4564_v7 = vpop.f32.mrf.mxu0 }
 0x42d   : > { %v4277_v39 = vpack.c.bf16 %v3551_v11, %v3550_v41  ;;  %v3549_v28 = vadd.f32 %v6526_v34, %v3510_v30  ;;  %v3515_v47 = vadd.f32 %v4564_v7, %v3109_v53 }
 0x42e   : > { %v3470_v55 = vpop.f32.mrf.mxu0 }
 0x42f   : > { %4301 = vst [vmem:[%s6534_s8 + $0x68] sm:$0xff] %v4277_v39   ;;  %v4272_v35 = vpack.c.bf16 %v3549_v28, %v3548_v59  ;;  %v3513_v18 = vadd.f32 %v3470_v55, %v3101_v42  ;;  %v3554_v60 = vadd.f32 %v6526_v34, %v3515_v47 }
 0x430   : > { %v4565_v48 = vpop.f32.mrf.mxu0 }
 0x431   : > { %4300 = vst [vmem:[%s6534_s8 + $0x60] sm:$0xff] %v4272_v35   ;;  %v3516_v1 = vadd.f32 %v4565_v48, %v3112_v12  ;;  %v3552_v16 = vadd.f32 %v6526_v34, %v3513_v18 }
 0x432   : > { %v3473_v62 = vpop.f32.mrf.mxu0 }
 0x433   : > { %v3555_v17 = vadd.f32 %v6526_v34, %v3516_v1  ;;  %v3514_v37 = vadd.f32 %v3473_v62, %v3104_v56 }
 0x435   : > { %v4287_v32 = vpack.c.bf16 %v3555_v17, %v3554_v60  ;;  %v3553_v57 = vadd.f32 %v6526_v34, %v3514_v37 }
 0x437   : > { %4303 = vst [vmem:[%s6534_s8 + $0x78] sm:$0xff] %v4287_v32   ;;  %v4282_v21 = vpack.c.bf16 %v3553_v57, %v3552_v16 }
 0x439   : > { %4302 = vst [vmem:[%s6534_s8 + $0x70] sm:$0xff] %v4282_v21  }
 0x43a PF: > { %s17_s24 = sadd.s32 1, %s4778_s24  }
 0x43b   : > { %p14_p4 = scmp.ge.s32.totalorder %s17_s24, 4  }
 0x43d   :  { %16 = sbr.rel (!%p14_p4) target bundleno = 1 (0x1), region = 83 }

// kernel: resnet_forward.3
= control target key start
LH: loop header
LB: loop body
LE: loop exit
PB: predicated region body
PF: predicated region fallthrough
CT: control target
= control target key end

     0   :  { %14 = vsyncpa [#allocation4], 0  ;;  %s9438_s0 = inlined_call_operand.vmem [shape: bf16[2,256,128], index: 0, kind: input, shape index: {}]   ;;  %s9439_s1 = inlined_call_operand.vmem [shape: f32[128,32], index: 1, kind: input, shape index: {}]   ;;  %s9440_s2 = inlined_call_operand.vmem [shape: f32[32,128], index: 2, kind: input, shape index: {}]   ;;  %s9441_s3 = inlined_call_operand.vmem [shape: f32[1,128], index: 3, kind: input, shape index: {}]   ;;  %s9442_s4 = inlined_call_operand.vmem [shape: f32[1,128], index: 4, kind: input, shape index: {}]   ;;  %s9443_s5 = inlined_call_operand.vmem [shape: bf16[3,384,128], index: 5, kind: input, shape index: {}]   ;;  %s9444_s6 = inlined_call_operand.vmem [shape: f32[2,1,128], index: 6, kind: input, shape index: {}]   ;;  %s9445_s7 = inlined_call_operand.vmem [shape: bf16[2,256,32], index: 7, kind: input, shape index: {}]   ;;  %s9446_s8 = inlined_call_operand.vmem [shape: bf16[32,128], index: 8, kind: input, shape index: {}]   ;;  %s9447_s9 = inlined_call_operand.hbm [shape: f32[2,256,128], index: 9, kind: output, shape index: {}]  }
   0x1   :  { %16 = vsyncpa [#allocation4 + $0x1], 0  ;;  %s7070_s30 = smov 0   ;;  %s7072_s10 = smov 0  }
   0x2   :  { %s7074_s11 = smov 0   ;;  %s7076_s12 = smov 0  }
   0x3 LB: > { %s7091_s13 = sadd.s32 4294967295, %s7012_s12   ;;  %s5216_s14 = sadd.s32 4294967294, %s7012_s12   ;;  %s7012_s12 = sphi %s7076_s12, %s9662_s12   ;;  %s7008_s11 = sphi %s7074_s11, %s9661_s11   ;;  %s7004_s10 = sphi %s7072_s10, %s9660_s10   ;;  %s7000_s30 = sphi %s7070_s30, %s9659_s30  }
   0x4   : > { %s7095_s15 = sadd.s32 1, %s7012_s12   ;;  %s233_s16 = sadd.s32 1, %s7008_s11 }
   0x5   : > { %s230_s17 = ssub.s32 %s7012_s12, %s7095_s15  ;;  %p243_p0 = scmp.ne.s32.totalorder %s7008_s11, %s7004_s10 }
   0x6   : > { %p231_p1 = scmp.eq.s32.totalorder %s230_s17, 0  ;;  %p244_p2 = scmp.eq.s32.totalorder %s7091_s13, 1 }
   0x7   : > { %p249_p3 = scmp.ne.s32.totalorder %s7004_s10, %s7000_s30  ;;  %p250_p4 = scmp.eq.s32.totalorder %s5216_s14, 1 }
   0x8   : > { %s7106_s18 = scalar_select %p231_p1, %s7008_s11, %s233_s16  }
   0x9   : > { %p7108_p5 = por %p244_p2, %p243_p0  ;;  %p7112_p6 = por %p250_p4, %p249_p3 }
   0xa   : > { %p5219_p7 = scmp.ge.s32.totalorder %s7012_s12, 1  ;;  %p308_p8 = scmp.lt.s32.totalorder %s7012_s12, 3 }
   0xc   : > { %p309_p9 = pnand %p5219_p7, %p308_p8 }
   0xe   : > { %312 = sbr.rel (%p309_p9) target bundleno = 1167 (0x48f), region = 56 }
  0x13   : > { %v551_v0 = vld [vmem:[%s9439_s1 + $0x78] sm:$0xff]  ;;  %p352_p10 = scmp.lt.s32.totalorder %s7091_s13, 1  ;;  %v7014_v1 = vmov 0.0   ;;  %v550_v2 = vld [vmem:[%s9439_s1 + $0x70] sm:$0xff]  ;;  %v549_v3 = vld [vmem:[%s9439_s1 + $0x68] sm:$0xff]  ;;  %vm7015_vm0 = vmmov 0  }
  0x14   : > { %6310 = vmatprep.subr.mxu0 %v7014_v1  ;;  %6345 = vmatprep.subr.mxu1 %v7014_v1  ;;  %v548_v4 = vld [vmem:[%s9439_s1 + $0x60] sm:$0xff]  ;;  %v547_v5 = vld [vmem:[%s9439_s1 + $0x58] sm:$0xff]  ;;  %v546_v7 = vld [vmem:[%s9439_s1 + $0x50] sm:$0xff]  ;;  %vm702_vm1 = vcmask 261120   ;;  %s5760_s27 = sshll.u32 %s7091_s13, 12 }
  0x15   : > { %6311 = vmatpush3.msra.mxu0 %v551_v0  ;;  %6346 = vmatpush3.msra.mxu1 %v551_v0  ;;  %s7128_s25 = scalar_select %p352_p10, %s7091_s13, 1  ;;  %v545_v9 = vld [vmem:[%s9439_s1 + $0x48] sm:$0xff]  ;;  %v544_v10 = vld [vmem:[%s9439_s1 + $0x40] sm:$0xff]  ;;  %v543_v16 = vld [vmem:[%s9439_s1 + $0x38] sm:$0xff] }
  0x16   : > { %6312 = vmatprep.subr.mxu0 %v7014_v1  ;;  %6347 = vmatprep.subr.mxu1 %v7014_v1  ;;  %v542_v20 = vld [vmem:[%s9439_s1 + $0x30] sm:$0xff]  ;;  %v541_v22 = vld [vmem:[%s9439_s1 + $0x28] sm:$0xff]  ;;  %v540_v28 = vld [vmem:[%s9439_s1 + $0x20] sm:$0xff] }
  0x17   : > { %6313 = vmatpush3.msra.mxu0 %v550_v2  ;;  %6348 = vmatpush3.msra.mxu1 %v550_v2  ;;  %s5662_s28 = sshll.u32 %s7128_s25, 7  ;;  %v539_v33 = vld [vmem:[%s9439_s1 + $0x18] sm:$0xff]  ;;  %v538_v38 = vld [vmem:[%s9439_s1 + $0x10] sm:$0xff]  ;;  %v537_v42 = vld [vmem:[%s9439_s1 + $0x8] sm:$0xff]  ;;  %s359_s23 = scalar_lea.vmem %s9444_s6, %s7128_s25 }
  0x18   : > { %6314 = vmatprep.subr.mxu0 %v7014_v1  ;;  %6349 = vmatprep.subr.mxu1 %v7014_v1  ;;  %s7146_s21 = scalar_lea.vmem %s9438_s0, %s5662_s28  ;;  %v536_v47 = vld [vmem:[%s9439_s1] sm:$0xff]  ;;  %s7358_s17 = scalar_lea.vmem %s9445_s7, %s5662_s28 }
  0x19   : > { %6315 = vmatpush3.msra.mxu0 %v549_v3  ;;  %6350 = vmatpush3.msra.mxu1 %v549_v3  ;;  %v5762_v6 = vld [vmem:[%s7146_s21] sm:$0xff]   ;;  %v5825_v8 = vld [vmem:[%s7146_s21 + $0x8] sm:$0xff]   ;;  %v5826_v14 = vld [vmem:[%s7146_s21 + $0x10] sm:$0xff]   ;;  %s349_s25 = sand.u32 1, %s7004_s10   ;;  %s9390_s28 = scalar_lea.hbm %s9447_s9, %s5760_s27 }
  0x1a   : > { %6316 = vmatprep.subr.mxu0 %v7014_v1  ;;  %6351 = vmatprep.subr.mxu1 %v7014_v1  ;;  %v7168_v11 = vunpack.c.l.bf16 %v5762_v6  ;;  %v7170_v12 = vunpack.c.h.bf16 %v5762_v6  ;;  %v7172_v13 = vunpack.c.l.bf16 %v5825_v8  ;;  %v7177_v15 = vunpack.c.h.bf16 %v5825_v8  ;;  %v5827_v26 = vld [vmem:[%s7146_s21 + $0x18] sm:$0xff]   ;;  %v5828_v32 = vld [vmem:[%s7146_s21 + $0x20] sm:$0xff]   ;;  %v5829_v41 = vld [vmem:[%s7146_s21 + $0x28] sm:$0xff]   ;;  %s5220_s24 = sshll.u32 %s349_s25, 8  ;;  %s9398_s13 = scalar_lea.sflag [#allocation4], %s349_s25 }
  0x1b   : > { %6317 = vmatpush3.msra.mxu0 %v548_v4  ;;  %6352 = vmatpush3.msra.mxu1 %v548_v4  ;;  %v7200_v23 = vunpack.c.l.bf16 %v5826_v14  ;;  %v7211_v29 = vunpack.c.h.bf16 %v5826_v14  ;;  %v7220_v34 = vunpack.c.l.bf16 %v5827_v26  ;;  %v7230_v39 = vunpack.c.h.bf16 %v5827_v26  ;;  %v5830_v50 = vld [vmem:[%s7146_s21 + $0x30] sm:$0xff]   ;;  %v5831_v58 = vld [vmem:[%s7146_s21 + $0x38] sm:$0xff]   ;;  %v5832_v4 = vld [vmem:[%s7146_s21 + $0x40] sm:$0xff]   ;;  %s9283_s26 = scalar_lea.vmem [#allocation3], %s5220_s24 }
  0x1c   : > { %6318 = vmatprep.subr.mxu0 %v7014_v1  ;;  %6353 = vmatprep.subr.mxu1 %v7014_v1  ;;  %v430_v17 = vadd.f32 %v7170_v12, %v7168_v11  ;;  %v467_v18 = vmul.f32 %v7168_v11, %v7168_v11  ;;  %v468_v19 = vmul.f32 %v7170_v12, %v7170_v12  ;;  %v7239_v43 = vunpack.c.l.bf16 %v5828_v32  ;;  %s5133_s29 = sshll.u32 %s9283_s26, 4  ;;  %s9392_s29 = int_to_ptr.vmem [resolvable:$true] %s5133_s29 }
  0x1d   : > { %6319 = vmatpush3.msra.mxu0 %v547_v5  ;;  %6354 = vmatpush3.msra.mxu1 %v547_v5  ;;  %v469_v21 = vmul.f32 %v7172_v13, %v7172_v13  ;;  %v470_v27 = vmul.f32 %v7177_v15, %v7177_v15  ;;  %v471_v36 = vmul.f32 %v7200_v23, %v7200_v23  ;;  %v7249_v48 = vunpack.c.h.bf16 %v5828_v32 }
  0x1e   : > { %6320 = vmatprep.subr.mxu0 %v7014_v1  ;;  %6355 = vmatprep.subr.mxu1 %v7014_v1  ;;  %v431_v24 = vadd.f32 %v7172_v13, %v430_v17  ;;  %v499_v25 = vadd.f32 %v468_v19, %v467_v18  ;;  %v472_v46 = vmul.f32 %v7211_v29, %v7211_v29  ;;  %v7257_v52 = vunpack.c.l.bf16 %v5829_v41  ;;  %v5833_v17 = vld [vmem:[%s7146_s21 + $0x48] sm:$0xff]  }
  0x1f   : > { %6321 = vmatpush3.msra.mxu0 %v546_v7  ;;  %6356 = vmatpush3.msra.mxu1 %v546_v7  ;;  %v473_v51 = vmul.f32 %v7220_v34, %v7220_v34  ;;  %v474_v54 = vmul.f32 %v7230_v39, %v7230_v39  ;;  %v7265_v56 = vunpack.c.h.bf16 %v5829_v41  ;;  %v475_v59 = vmul.f32 %v7239_v43, %v7239_v43 }
  0x20   : > { %6322 = vmatprep.subr.mxu0 %v7014_v1  ;;  %6357 = vmatprep.subr.mxu1 %v7014_v1  ;;  %v432_v30 = vadd.f32 %v7177_v15, %v431_v24  ;;  %v500_v31 = vadd.f32 %v499_v25, %v469_v21  ;;  %v7272_v61 = vunpack.c.l.bf16 %v5830_v50  ;;  %v476_v63 = vmul.f32 %v7249_v48, %v7249_v48 }
  0x21   : > { %6323 = vmatpush3.msra.mxu0 %v545_v9  ;;  %6358 = vmatpush3.msra.mxu1 %v545_v9  ;;  %v7281_v2 = vunpack.c.h.bf16 %v5830_v50  ;;  %v477_v5 = vmul.f32 %v7257_v52, %v7257_v52  ;;  %v7287_v7 = vunpack.c.l.bf16 %v5831_v58  ;;  %v478_v9 = vmul.f32 %v7265_v56, %v7265_v56  ;;  %v5836_v50 = vld [vmem:[%s7146_s21 + $0x60] sm:$0xff]  }
  0x22   : > { %6324 = vmatprep.subr.mxu0 %v7014_v1  ;;  %6359 = vmatprep.subr.mxu1 %v7014_v1  ;;  %v433_v35 = vadd.f32 %v7200_v23, %v432_v30  ;;  %v501_v37 = vadd.f32 %v500_v31, %v470_v27  ;;  %v7292_v14 = vunpack.c.h.bf16 %v5831_v58  ;;  %v479_v18 = vmul.f32 %v7272_v61, %v7272_v61  ;;  %v5834_v27 = vld [vmem:[%s7146_s21 + $0x50] sm:$0xff]  }
  0x23   : > { %6325 = vmatpush3.msra.mxu0 %v544_v10  ;;  %6360 = vmatpush3.msra.mxu1 %v544_v10  ;;  %v7303_v25 = vunpack.c.h.bf16 %v5832_v4  ;;  %v7309_v31 = vunpack.c.l.bf16 %v5833_v17 }
  0x24   : > { %6326 = vmatprep.subr.mxu0 %v7014_v1  ;;  %6361 = vmatprep.subr.mxu1 %v7014_v1  ;;  %v434_v40 = vadd.f32 %v7211_v29, %v433_v35  ;;  %v502_v45 = vadd.f32 %v501_v37, %v471_v36  ;;  %v7314_v36 = vunpack.c.h.bf16 %v5833_v17 }
  0x25   : > { %6327 = vmatpush3.msra.mxu0 %v543_v16  ;;  %6362 = vmatpush3.msra.mxu1 %v543_v16 }
  0x26   : > { %6328 = vmatprep.subr.mxu0 %v7014_v1  ;;  %6363 = vmatprep.subr.mxu1 %v7014_v1  ;;  %v435_v44 = vadd.f32 %v7220_v34, %v434_v40  ;;  %v503_v55 = vadd.f32 %v502_v45, %v472_v46  ;;  %v484_v45 = vmul.f32 %v7303_v25, %v7303_v25 }
  0x27   : > { %6329 = vmatpush3.msra.mxu0 %v542_v20  ;;  %6364 = vmatpush3.msra.mxu1 %v542_v20  ;;  %v7298_v20 = vunpack.c.l.bf16 %v5832_v4 }
  0x28   : > { %6330 = vmatprep.subr.mxu0 %v7014_v1  ;;  %6365 = vmatprep.subr.mxu1 %v7014_v1  ;;  %v436_v49 = vadd.f32 %v7230_v39, %v435_v44  ;;  %v504_v60 = vadd.f32 %v503_v55, %v473_v51  ;;  %v485_v51 = vmul.f32 %v7309_v31, %v7309_v31 }
  0x29   : > { %6331 = vmatpush3.msra.mxu0 %v541_v22  ;;  %6366 = vmatpush3.msra.mxu1 %v541_v22  ;;  %v480_v22 = vmul.f32 %v7281_v2, %v7281_v2  ;;  %v483_v40 = vmul.f32 %v7298_v20, %v7298_v20 }
  0x2a   : > { %6332 = vmatprep.subr.mxu0 %v7014_v1  ;;  %6367 = vmatprep.subr.mxu1 %v7014_v1  ;;  %v437_v53 = vadd.f32 %v7239_v43, %v436_v49  ;;  %v505_v0 = vadd.f32 %v504_v60, %v474_v54 }
  0x2b   : > { %6333 = vmatpush3.msra.mxu0 %v540_v28  ;;  %6368 = vmatpush3.msra.mxu1 %v540_v28  ;;  %v481_v28 = vmul.f32 %v7287_v7, %v7287_v7 }
  0x2c   : > { %6334 = vmatprep.subr.mxu0 %v7014_v1  ;;  %6369 = vmatprep.subr.mxu1 %v7014_v1  ;;  %v438_v57 = vadd.f32 %v7249_v48, %v437_v53  ;;  %v506_v6 = vadd.f32 %v505_v0, %v475_v59 }
  0x2d   : > { %6335 = vmatpush3.msra.mxu0 %v539_v33  ;;  %6370 = vmatpush3.msra.mxu1 %v539_v33  ;;  %v482_v33 = vmul.f32 %v7292_v14, %v7292_v14 }
  0x2e   : > { %6336 = vmatprep.subr.mxu0 %v7014_v1  ;;  %6371 = vmatprep.subr.mxu1 %v7014_v1  ;;  %v439_v62 = vadd.f32 %v7257_v52, %v438_v57  ;;  %v507_v10 = vadd.f32 %v506_v6, %v476_v63  ;;  %v486_v57 = vmul.f32 %v7314_v36, %v7314_v36 }
  0x2f   : > { %6337 = vmatpush3.msra.mxu0 %v538_v38  ;;  %6372 = vmatpush3.msra.mxu1 %v538_v38  ;;  %v5835_v38 = vld [vmem:[%s7146_s21 + $0x58] sm:$0xff]  }
  0x30   : > { %6338 = vmatprep.subr.mxu0 %v7014_v1  ;;  %6373 = vmatprep.subr.mxu1 %v7014_v1  ;;  %v440_v3 = vadd.f32 %v7265_v56, %v439_v62  ;;  %v508_v19 = vadd.f32 %v507_v10, %v477_v5  ;;  %v7331_v54 = vunpack.c.l.bf16 %v5835_v38  ;;  %v7336_v59 = vunpack.c.h.bf16 %v5835_v38  ;;  %v5837_v62 = vld [vmem:[%s7146_s21 + $0x68] sm:$0xff]   ;;  %v5838_v10 = vld [vmem:[%s7146_s21 + $0x70] sm:$0xff]  }
  0x31   : > { %6339 = vmatpush3.msra.mxu0 %v537_v42  ;;  %6342 = vmatprep.mubr.msk.f32.mxu0 %vm7015_vm0, %v7014_v1  ;;  %v7376_v38 = vunpack.c.h.bf16 %v5838_v10 }
  0x32   : > { %6340 = vmatprep.subr.mxu0 %v7014_v1  ;;  %6374 = vmatpush3.msra.mxu1 %v537_v42  ;;  %v441_v8 = vadd.f32 %v7272_v61, %v440_v3  ;;  %v509_v24 = vadd.f32 %v508_v19, %v478_v9  ;;  %v7320_v42 = vunpack.c.l.bf16 %v5834_v27  ;;  %v7342_v3 = vunpack.c.l.bf16 %v5836_v50 }
  0x33   : > { %6341 = vmatpush3.msra.mxu0 %v536_v47  ;;  %6375 = vmatprep.subr.mxu1 %v7014_v1 }
  0x34   : > { %6376 = vmatpush3.msra.mxu1 %v536_v47  ;;  %6377 = vmatprep.mubr.msk.f32.mxu1 %vm7015_vm0, %v7014_v1  ;;  %v442_v16 = vadd.f32 %v7281_v2, %v441_v8  ;;  %v510_v30 = vadd.f32 %v509_v24, %v479_v18  ;;  %v7325_v47 = vunpack.c.h.bf16 %v5834_v27  ;;  %v487_v63 = vmul.f32 %v7320_v42, %v7320_v42  ;;  %v5839_v27 = vld [vmem:[%s7146_s21 + $0x78] sm:$0xff]   ;;  %s6952_s21 = scalar_lea.vmem %s9392_s29, 4096 }
  0x35   : > { %6380 = vmatprep.subr.mxu0 %v7014_v1  ;;  %6391 = vmatprep.subr.mxu1 %v7014_v1  ;;  %v7347_v8 = vunpack.c.h.bf16 %v5836_v50  ;;  %v7360_v18 = vunpack.c.l.bf16 %v5837_v62  ;;  %v7365_v24 = vunpack.c.h.bf16 %v5837_v62  ;;  %p6953_p11 = scmp.ne.s32.totalorder %s9392_s29, %s6952_s21 }
  0x36   : > { %v443_v21 = vadd.f32 %v7287_v7, %v442_v16  ;;  %v511_v35 = vadd.f32 %v510_v30, %v480_v22  ;;  %v488_v5 = vmul.f32 %v7325_v47, %v7325_v47  ;;  %v489_v16 = vmul.f32 %v7331_v54, %v7331_v54 }
  0x37   : > { %p6954_p12 = pnand %p6953_p11, %p7108_p5 }
  0x38   : > { %v444_v26 = vadd.f32 %v7292_v14, %v443_v21  ;;  %v512_v41 = vadd.f32 %v511_v35, %v481_v28  ;;  %v490_v21 = vmul.f32 %v7336_v59, %v7336_v59  ;;  %v491_v28 = vmul.f32 %v7342_v3, %v7342_v3 }
  0x39   : > { %v492_v35 = vmul.f32 %v7347_v8, %v7347_v8  ;;  %p6955_p13 = pneg %p6954_p12 }
  0x3a   : > { %v445_v32 = vadd.f32 %v7298_v20, %v444_v26  ;;  %v513_v46 = vadd.f32 %v512_v41, %v482_v33  ;;  %v493_v41 = vmul.f32 %v7360_v18, %v7360_v18 }
  0x3c   : > { %v446_v37 = vadd.f32 %v7303_v25, %v445_v32  ;;  %v514_v53 = vadd.f32 %v513_v46, %v483_v40  ;;  %v7371_v32 = vunpack.c.l.bf16 %v5838_v10 }
  0x3e   : > { %v447_v44 = vadd.f32 %v7309_v31, %v446_v37  ;;  %v515_v58 = vadd.f32 %v514_v53, %v484_v45  ;;  %v7381_v45 = vunpack.c.l.bf16 %v5839_v27 }
  0x40   : > { %v448_v49 = vadd.f32 %v7314_v36, %v447_v44  ;;  %v516_v0 = vadd.f32 %v515_v58, %v485_v51  ;;  %v7386_v51 = vunpack.c.h.bf16 %v5839_v27 }
  0x42   : > { %v449_v55 = vadd.f32 %v7320_v42, %v448_v49  ;;  %v517_v6 = vadd.f32 %v516_v0, %v486_v57  ;;  %v494_v49 = vmul.f32 %v7365_v24, %v7365_v24  ;;  %v497_v0 = vmul.f32 %v7381_v45, %v7381_v45 }
  0x44   : > { %v450_v60 = vadd.f32 %v7325_v47, %v449_v55  ;;  %v518_v17 = vadd.f32 %v517_v6, %v487_v63  ;;  %v495_v55 = vmul.f32 %v7371_v32, %v7371_v32  ;;  %v498_v6 = vmul.f32 %v7386_v51, %v7386_v51 }
  0x46   : > { %v451_v4 = vadd.f32 %v7331_v54, %v450_v60  ;;  %v519_v22 = vadd.f32 %v518_v17, %v488_v5  ;;  %v496_v60 = vmul.f32 %v7376_v38, %v7376_v38 }
  0x48   : > { %v452_v9 = vadd.f32 %v7336_v59, %v451_v4  ;;  %v520_v30 = vadd.f32 %v519_v22, %v489_v16 }
  0x4a   : > { %v453_v19 = vadd.f32 %v7342_v3, %v452_v9  ;;  %v521_v37 = vadd.f32 %v520_v30, %v490_v21  ;;  %v701_v30 = vld [vmem:[%s9440_s2 + $0x18] sm:$0xff] }
  0x4c   : > { %v454_v26 = vadd.f32 %v7347_v8, %v453_v19  ;;  %v522_v44 = vadd.f32 %v521_v37, %v491_v28 }
  0x4e   : > { %v455_v33 = vadd.f32 %v7360_v18, %v454_v26  ;;  %v523_v50 = vadd.f32 %v522_v44, %v492_v35  ;;  %v700_v35 = vld [vmem:[%s9440_s2 + $0x10] sm:$0xff]  ;;  %v699_v44 = vld [vmem:[%s9440_s2 + $0x8] sm:$0xff] }
  0x50   : > { %v456_v40 = vadd.f32 %v7365_v24, %v455_v33  ;;  %v524_v57 = vadd.f32 %v523_v50, %v493_v41 }
  0x52   : > { %v457_v46 = vadd.f32 %v7371_v32, %v456_v40  ;;  %v525_v62 = vadd.f32 %v524_v57, %v494_v49 }
  0x54   : > { %v458_v53 = vadd.f32 %v7376_v38, %v457_v46  ;;  %v526_v4 = vadd.f32 %v525_v62, %v495_v55  ;;  %v698_v46 = vld [vmem:[%s9440_s2] sm:$0xff] }
  0x56   : > { %v459_v58 = vadd.f32 %v7381_v45, %v458_v53  ;;  %v527_v9 = vadd.f32 %v526_v4, %v496_v60  ;;  %v6628_v4 = vld [vmem:[%s9443_s5 + $0x178] sm:$0xff]  }
  0x58   : > { %v460_v63 = vadd.f32 %v7386_v51, %v459_v58  ;;  %v528_v16 = vadd.f32 %v527_v9, %v497_v0  ;;  %v6626_v0 = vld [vmem:[%s9443_s5 + $0x138] sm:$0xff]   ;;  %v6631_v9 = vld [vmem:[%s9443_s5 + $0x170] sm:$0xff]  }
  0x5a   : > { %v461_v5 = vrot.slane %v460_v63, 4  ;;  %v529_v19 = vadd.f32 %v528_v16, %v498_v6  ;;  %v6629_v6 = vld [vmem:[%s9443_s5 + $0x130] sm:$0xff]   ;;  %v6632_v16 = vld [vmem:[%s9443_s5 + $0x128] sm:$0xff]  }
  0x5c   : > { %v462_v10 = vadd.f32 %v461_v5, %v460_v63  ;;  %v530_v22 = vrot.slane %v529_v19, 4  ;;  %v6627_v5 = vld [vmem:[%s9443_s5 + $0xf8] sm:$0xff]  }
  0x5e   : > { %v463_v17 = vrot.slane %v462_v10, 2  ;;  %v531_v27 = vadd.f32 %v530_v22, %v529_v19  ;;  %v6633_v19 = vld [vmem:[%s9443_s5 + $0xe8] sm:$0xff]   ;;  %v6637_v22 = vld [vmem:[%s9443_s5 + $0x160] sm:$0xff]  }
  0x60   : > { %v464_v21 = vadd.f32 %v463_v17, %v462_v10  ;;  %v532_v33 = vrot.slane %v531_v27, 2  ;;  %v6630_v10 = vld [vmem:[%s9443_s5 + $0xf0] sm:$0xff]   ;;  %v6634_v17 = vld [vmem:[%s9443_s5 + $0x168] sm:$0xff]  }
  0x62   : > { %v465_v26 = vrot.slane %v464_v21, 1  ;;  %v533_v37 = vadd.f32 %v532_v33, %v531_v27  ;;  %v6638_v27 = vld [vmem:[%s9443_s5 + $0x118] sm:$0xff]   ;;  %v6641_v33 = vld [vmem:[%s9443_s5 + $0x110] sm:$0xff]  }
  0x64   : > { %v466_v28 = vadd.f32 %v465_v26, %v464_v21  ;;  %v534_v40 = vrot.slane %v533_v37, 1  ;;  %v6635_v21 = vld [vmem:[%s9443_s5 + $0x120] sm:$0xff]  }
  0x65   : > { %v6636_v26 = vld [vmem:[%s9443_s5 + $0xe0] sm:$0xff]  }
  0x66   : > { %6343 = vmatmul.mubr.f32.vlgmr.msra.gmra.mxu0 %v466_v28  ;;  %v535_v41 = vadd.f32 %v534_v40, %v533_v37  ;;  %v6640_v28 = vld [vmem:[%s9443_s5 + $0x158] sm:$0xff]   ;;  %v6642_v37 = vld [vmem:[%s9443_s5 + $0xd0] sm:$0xff]   ;;  %v6644_v40 = vld [vmem:[%s9443_s5 + $0x108] sm:$0xff]  }
  0x67   : > { %6381 = vmatpush3.msra.mxu0 %v701_v30  ;;  %6388 = vmatprep.mubr.msk.f32.mxu0 %vm7015_vm0, %v7014_v1 }
  0x68   : > { %6382 = vmatprep.subr.mxu0 %v7014_v1  ;;  %6378 = vmatmul.mubr.f32.vlgmr.msra.gmra.mxu1 %v535_v41  ;;  %v6646_v41 = vld [vmem:[%s9443_s5 + $0x148] sm:$0xff]  }
  0x69   : > { %6383 = vmatpush3.msra.mxu0 %v700_v35  ;;  %6392 = vmatpush3.msra.mxu1 %v701_v30  ;;  %v6639_v30 = vld [vmem:[%s9443_s5 + $0xd8] sm:$0xff]  }
  0x6a   : > { %6384 = vmatprep.subr.mxu0 %v7014_v1  ;;  %6399 = vmatprep.mubr.msk.f32.mxu1 %vm7015_vm0, %v7014_v1 }
  0x6b   : > { %6393 = vmatprep.subr.mxu1 %v7014_v1  ;;  %6385 = vmatpush3.msra.mxu0 %v699_v44 }
  0x6c   : > { %6394 = vmatpush3.msra.mxu1 %v700_v35  ;;  %6386 = vmatprep.subr.mxu0 %v7014_v1  ;;  %v6643_v35 = vld [vmem:[%s9443_s5 + $0x150] sm:$0xff]  }
  0x6d   : > { %6395 = vmatprep.subr.mxu1 %v7014_v1  ;;  %6387 = vmatpush3.msra.mxu0 %v698_v46 }
  0x6e   : > { %6396 = vmatpush3.msra.mxu1 %v699_v44  ;;  %5884 = vmatprep.subr.bf16.mxu0 %v6626_v0  ;;  %v6645_v44 = vld [vmem:[%s9443_s5 + $0xc8] sm:$0xff]  }
  0x6f   : > { %6397 = vmatprep.subr.mxu1 %v7014_v1 }
  0x70   : > { %6398 = vmatpush3.msra.mxu1 %v698_v46  ;;  %v6647_v46 = vld [vmem:[%s9443_s5 + $0x100] sm:$0xff]  }
  0x71   : > { %6402 = vmatprep.subr.bf16.mxu1 %v6628_v4 }
 0x126   : > { %v618_v49 = vpop.f32.mrf.mxu0 }
 0x127   : > { %v622_v50 = vmul.f32 0.001953125, %v618_v49  ;;  %v6649_v49 = vld [vmem:[%s9443_s5 + $0x140] sm:$0xff]  }
 0x128   : > { %v6344_v53 = vpop.f32.mrf.mxu0  ;;  %v689_v57 = vpop.f32.mrf.mxu1 }
 0x129   : > { %6389 = vmatmul.mubr.msk.f32.vlgmr.msra.gmra.mxu0 %vm702_vm1, %v622_v50  ;;  %v694_v55 = vmul.f32 %v622_v50, %v622_v50  ;;  %v693_v58 = vmul.f32 0.001953125, %v689_v57  ;;  %v6648_v50 = vld [vmem:[%s9443_s5 + $0xc0] sm:$0xff]   ;;  %v6654_v53 = vld [vmem:[%s9443_s5 + $0xb8] sm:$0xff]  }
 0x12a   : > { %v6379_v60 = vpop.f32.mrf.mxu1  ;;  %5885 = vmatpush3.bf16.msra.mxu0 %v6627_v5 }
 0x12b   : > { %v695_v62 = vsub.f32 %v693_v58, %v694_v55  ;;  %5886 = vmatprep.subr.bf16.mxu0 %v6629_v6  ;;  %v6659_v58 = vld [vmem:[%s9443_s5 + $0x78] sm:$0xff]   ;;  %v854_v60 = vlaneseq }
 0x12d   : > { %v696_v63 = vadd.f32 1e-05, %v695_v62  ;;  %v7501_v62 = vshrl.u32 %v854_v60, 7 }
 0x12e   : > { %5887 = vmatpush3.bf16.msra.mxu0 %v6630_v10 }
 0x12f   : > { %6818 = vrsqrt.f32 %v696_v63  ;;  %5888 = vmatprep.subr.bf16.mxu0 %v6632_v16  ;;  %v7504_v63 = vadd.s32 232, %v7501_v62  ;;  %v7510_v0 = vadd.s32 248, %v7501_v62  ;;  %v7516_v5 = vadd.s32 24, %v7501_v62 }
 0x130   : > { %v7519_v6 = vadd.s32 16, %v7501_v62  ;;  %v7525_v10 = vadd.s32 56, %v7501_v62  ;;  %v7528_v16 = vadd.s32 32, %v7501_v62  ;;  %v7562_v60 = vadd.s32 64, %v7501_v62 }
 0x131   : > { %vm1834_vm2 = vcmp.lt.s32.totalorder %v7501_v62, 7  ;;  %vm1641_vm4 = vcmp.lt.s32.totalorder %v7501_v62, 1 }
 0x132   : > { %5889 = vmatpush3.bf16.msra.mxu0 %v6633_v19  ;;  %9481 = vst [vmem:[#allocation6_spill] sm:$0xff] %v7525_v10  ;;  %9482 = vst [vmem:[#allocation7_spill] sm:$0xff] %v7528_v16  ;;  %v7619_v10 = vadd.s32 160, %v7501_v62  ;;  %v7016_v16 = vmov 0  }
 0x133   : > { %5890 = vmatprep.subr.bf16.mxu0 %v6635_v21  ;;  %9488 = vst [vmem:[#allocation13_spill] sm:$0xff] %v7562_v60  ;;  %v7582_v21 = vadd.s32 184, %v7501_v62  ;;  %1152 = vst [vmem:[#allocation2] sm:$0xff] %v7016_v16 }
 0x134   : > { %1153 = vst [vmem:[#allocation2 + $0x8] sm:$0xf] %v7016_v16  ;;  %1155 = vst [vmem:[#allocation2 + $0x14] sm:$0xf] %v7016_v16 }
 0x135   : > { %1157 = vst [vmem:[#allocation2 + $0x1a0] sm:$0xf] %v7016_v16  ;;  %1159 = vst [vmem:[#allocation2 + $0x1ac] sm:$0xf] %v7016_v16 }
 0x136   : > { %5891 = vmatpush3.bf16.msra.mxu0 %v6636_v26  ;;  %v7537_v26 = vadd.s32 88, %v7501_v62 }
 0x137   : > { %5892 = vmatprep.subr.bf16.mxu0 %v6638_v27  ;;  %v7611_v27 = vadd.s32 144, %v7501_v62 }
 0x138   : > { %9484 = vst [vmem:[#allocation9_spill] sm:$0xff] %v7537_v26  ;;  %v7594_v26 = vadd.s32 216, %v7501_v62 }
 0x139   : > { %9494 = vst [vmem:[#allocation19_spill] sm:$0xff] %v7611_v27 }
 0x13a   : > { %5893 = vmatpush3.bf16.msra.mxu0 %v6639_v30 }
 0x13b   : > { %5894 = vmatprep.subr.bf16.mxu0 %v6641_v33  ;;  %v7543_v33 = vadd.s32 48, %v7501_v62 }
 0x13c   : > { %v6819_v1 = vpop.eup %6818 }
 0x13d   : > { %6400 = vmatmul.mubr.msk.f32.vlgmr.msra.gmra.mxu1 %vm702_vm1, %v6819_v1  ;;  %v7507_v1 = vadd.s32 240, %v7501_v62  ;;  %9485 = vst [vmem:[#allocation10_spill] sm:$0xff] %v7543_v33  ;;  %v7600_v33 = vadd.s32 112, %v7501_v62 }
 0x13e   : > { %6403 = vmatpush3.bf16.msra.mxu1 %v6628_v4  ;;  %5895 = vmatpush3.bf16.msra.mxu0 %v6642_v37  ;;  %v7513_v4 = vadd.s32 8, %v7501_v62  ;;  %v7568_v37 = vadd.s32 152, %v7501_v62 }
 0x13f   : > { %6404 = vmatprep.subr.bf16.mxu1 %v6631_v9  ;;  %5896 = vmatprep.subr.bf16.mxu0 %v6644_v40  ;;  %v7575_v40 = vadd.s32 168, %v7501_v62  ;;  %9492 = vst [vmem:[#allocation17_spill] sm:$0xff] %v7600_v33 }
 0x142   : > { %6405 = vmatpush3.bf16.msra.mxu1 %v6631_v9  ;;  %5897 = vmatpush3.bf16.msra.mxu0 %v6645_v44  ;;  %v7522_v9 = vadd.s32 40, %v7501_v62  ;;  %v7552_v44 = vadd.s32 104, %v7501_v62 }
 0x143   : > { %6406 = vmatprep.subr.bf16.mxu1 %v6634_v17  ;;  %5898 = vmatprep.subr.bf16.mxu0 %v6647_v46 }
 0x144   : > { %9486 = vst [vmem:[#allocation11_spill] sm:$0xff] %v7552_v44 }
 0x146   : > { %6407 = vmatpush3.bf16.msra.mxu1 %v6634_v17  ;;  %5899 = vmatpush3.bf16.msra.mxu0 %v6648_v50  ;;  %v7531_v17 = vadd.s32 72, %v7501_v62  ;;  %v7572_v50 = vadd.s32 80, %v7501_v62 }
 0x147   : > { %6408 = vmatprep.subr.bf16.mxu1 %v6637_v22  ;;  %6450 = vmatprep.subr.bf16.mxu0 %v6654_v53  ;;  %v7558_v53 = vadd.s32 120, %v7501_v62 }
 0x148   : > { %9483 = vst [vmem:[#allocation8_spill] sm:$0xff] %v7531_v17  ;;  %9490 = vst [vmem:[#allocation15_spill] sm:$0xff] %v7572_v50 }
 0x149   : > { %9487 = vst [vmem:[#allocation12_spill] sm:$0xff] %v7558_v53 }
 0x14a   : > { %6409 = vmatpush3.bf16.msra.mxu1 %v6637_v22 }
 0x14b   : > { %6410 = vmatprep.subr.bf16.mxu1 %v6640_v28 }
 0x14e   : > { %6411 = vmatpush3.bf16.msra.mxu1 %v6640_v28  ;;  %v856_v28 = vsub.s32 0, %v7501_v62 }
 0x14f   : > { %6412 = vmatprep.subr.bf16.mxu1 %v6643_v35 }
 0x152   : > { %6413 = vmatpush3.bf16.msra.mxu1 %v6643_v35  ;;  %v849_v35 = vld [vmem:[%s9441_s3] sm:$0x1] }
 0x153   : > { %6414 = vmatprep.subr.bf16.mxu1 %v6646_v41 }
 0x156   : > { %6415 = vmatpush3.bf16.msra.mxu1 %v6646_v41  ;;  %v7565_v41 = vadd.s32 136, %v7501_v62 }
 0x157   : > { %6416 = vmatprep.subr.bf16.mxu1 %v6649_v49 }
 0x158   : > { %9489 = vst [vmem:[#allocation14_spill] sm:$0xff] %v7565_v41 }
 0x15a   : > { %6417 = vmatpush3.bf16.msra.mxu1 %v6649_v49 }
 0x15b   : > { %6020 = vmatprep.subr.bf16.mxu1 %v6659_v58  ;;  %v851_v58 = vld [vmem:[%s9442_s4] sm:$0x1] }
 0x1e9   : > { %v772_v55 = vpop.f32.mrf.mxu0 }
 0x1eb   : > { %v6390_v57 = vpop.f32.mrf.mxu0 }
 0x1fd   : > { %v845_v57 = vpop.f32.mrf.mxu1 }
 0x1fe   : > { %v850_v46 = vmul.f32 %v849_v35, %v845_v57  ;;  %v7585_v35 = vadd.s32 96, %v7501_v62  ;;  %v7588_v57 = vadd.s32 200, %v7501_v62 }
 0x1ff   : > { %v6401_v30 = vpop.f32.mrf.mxu1 }
 0x200   : > { %9491 = vst [vmem:[#allocation16_spill] sm:$0xff] %v7585_v35  ;;  %v852_v49 = vmul.f32 %v850_v46, %v772_v55  ;;  %v7590_v19 = vrot.slane %v850_v46, %v856_v28  ;;  %v7605_v46 = vadd.s32 128, %v7501_v62 }
 0x202   : > { %v853_v17 = vsub.f32 %v851_v58, %v852_v49  ;;  %9493 = vst [vmem:[#allocation18_spill] sm:$0xff] %v7605_v46  ;;  %v858_v49 = vmul.f32 %v7168_v11, %v7590_v19  ;;  %v876_v22 = vmul.f32 %v7309_v31, %v7590_v19  ;;  %v877_v53 = vmul.f32 %v7314_v36, %v7590_v19 }
 0x203   : > { %v878_v30 = vmul.f32 %v7320_v42, %v7590_v19  ;;  %v879_v11 = vmul.f32 %v7325_v47, %v7590_v19  ;;  %v880_v36 = vmul.f32 %v7331_v54, %v7590_v19  ;;  %v881_v47 = vmul.f32 %v7336_v59, %v7590_v19 }
 0x204   : > { %v7613_v44 = vrot.slane %v853_v17, %v856_v28  ;;  %v7630_v28 = vmul.f32 %v7298_v20, %v7590_v19  ;;  %v883_v31 = vmul.f32 %v7347_v8, %v7590_v19  ;;  %v870_v27 = vmul.f32 %v7272_v61, %v7590_v19 }
 0x205   : > { %v868_v50 = vmul.f32 %v7257_v52, %v7590_v19 }
 0x206   : > { %v7635_v58 = vadd.f32 %v7613_v44, %v858_v49  ;;  %v7641_v55 = vadd.f32 %v7613_v44, %v876_v22  ;;  %v7644_v42 = vadd.f32 %v7613_v44, %v877_v53  ;;  %v7647_v20 = vadd.f32 %v7613_v44, %v878_v30 }
 0x207   : > { %v882_v49 = vmul.f32 %v7342_v3, %v7590_v19  ;;  %v7656_v54 = vadd.f32 %v7613_v44, %v879_v11  ;;  %v884_v22 = vmul.f32 %v7360_v18, %v7590_v19  ;;  %v885_v53 = vmul.f32 %v7365_v24, %v7590_v19 }
 0x208   : > { %v886_v30 = vmul.f32 %v7371_v32, %v7590_v19  ;;  %v7665_v59 = vadd.f32 %v7613_v44, %v880_v36  ;;  %v887_v3 = vmul.f32 %v7376_v38, %v7590_v19  ;;  %v7670_v8 = vadd.f32 %v7613_v44, %v881_v47 }
 0x209   : > { %v5227_v11 = vmul.f32 -1.442695, %v7635_v58  ;;  %v5245_v17 = vmul.f32 -1.442695, %v7641_v55  ;;  %v888_v18 = vmul.f32 %v7381_v45, %v7590_v19  ;;  %v7677_v24 = vadd.f32 %v7613_v44, %v882_v49 }
 0x20a   : > { %v5246_v32 = vmul.f32 -1.442695, %v7644_v42  ;;  %v5247_v36 = vmul.f32 -1.442695, %v7647_v20  ;;  %v889_v38 = vmul.f32 %v7386_v51, %v7590_v19  ;;  %v7684_v47 = vadd.f32 %v7613_v44, %v883_v31 }
 0x20b   : > { %6820 = vpow2.f32 %v5227_v11  ;;  %v5248_v46 = vmul.f32 -1.442695, %v7656_v54  ;;  %v7688_v33 = vadd.f32 %v7613_v44, %v884_v22  ;;  %v7691_v45 = vadd.f32 %v7613_v44, %v885_v53 }
 0x20c   : > { %6822 = vpow2.f32 %v5245_v17  ;;  %v5249_v49 = vmul.f32 -1.442695, %v7665_v59  ;;  %v7695_v41 = vadd.f32 %v7613_v44, %v886_v30  ;;  %v7698_v51 = vadd.f32 %v7613_v44, %v887_v3 }
 0x20d   : > { %6824 = vpow2.f32 %v5246_v32  ;;  %v5250_v31 = vmul.f32 -1.442695, %v7670_v8  ;;  %v7702_v11 = vadd.f32 %v7613_v44, %v888_v18  ;;  %v5251_v22 = vmul.f32 -1.442695, %v7677_v24 }
 0x20e   : > { %6826 = vpow2.f32 %v5247_v36  ;;  %v859_v17 = vmul.f32 %v7170_v12, %v7590_v19  ;;  %v7708_v53 = vadd.f32 %v7613_v44, %v889_v38  ;;  %v5252_v30 = vmul.f32 -1.442695, %v7684_v47 }
 0x20f   : > { %6828 = vpow2.f32 %v5248_v46  ;;  %v860_v3 = vmul.f32 %v7172_v13, %v7590_v19  ;;  %v5253_v32 = vmul.f32 -1.442695, %v7688_v33  ;;  %v5254_v18 = vmul.f32 -1.442695, %v7691_v45 }
 0x210   : > { %6830 = vpow2.f32 %v5249_v49  ;;  %v7716_v36 = vadd.f32 %v7613_v44, %v859_v17  ;;  %v861_v46 = vmul.f32 %v7177_v15, %v7590_v19  ;;  %v862_v38 = vmul.f32 %v7200_v23, %v7590_v19 }
 0x211   : > { %6832 = vpow2.f32 %v5250_v31  ;;  %v7719_v12 = vadd.f32 %v7613_v44, %v860_v3  ;;  %v7727_v13 = vmul.f32 %v7303_v25, %v7590_v19  ;;  %v5255_v49 = vmul.f32 -1.442695, %v7695_v41 }
 0x212   : > { %6834 = vpow2.f32 %v5251_v22  ;;  %v5256_v17 = vmul.f32 -1.442695, %v7698_v51  ;;  %v7732_v31 = vadd.f32 %v7613_v44, %v861_v46  ;;  %v7735_v3 = vadd.f32 %v7613_v44, %v862_v38 }
 0x213   : > { %6836 = vpow2.f32 %v5252_v30  ;;  %v863_v15 = vmul.f32 %v7211_v29, %v7590_v19  ;;  %v5257_v23 = vmul.f32 -1.442695, %v7702_v11  ;;  %v5258_v25 = vmul.f32 -1.442695, %v7708_v53 }
 0x214   : > { %9495 = vst [vmem:[#allocation20_spill] sm:$0xff] %v7735_v3  ;;  %6838 = vpow2.f32 %v5253_v32  ;;  %v864_v22 = vmul.f32 %v7220_v34, %v7590_v19  ;;  %v5228_v30 = vmul.f32 -1.442695, %v7716_v36  ;;  %v7745_v46 = vmul.f32 -1.442695, %v7719_v12 }
 0x215   : > { %6840 = vpow2.f32 %v5254_v18  ;;  %v7748_v38 = vadd.f32 %v7613_v44, %v863_v15  ;;  %v865_v32 = vmul.f32 %v7230_v39, %v7590_v19  ;;  %v7758_v34 = vmul.f32 -1.442695, %v7732_v31 }
 0x216   : > { %6842 = vpow2.f32 %v5255_v49  ;;  %v7751_v29 = vadd.f32 %v7613_v44, %v864_v22  ;;  %v7761_v18 = vmul.f32 -1.442695, %v7735_v3  ;;  %v866_v15 = vmul.f32 %v7239_v43, %v7590_v19 }
 0x217   : > { %9496 = vst [vmem:[#allocation21_spill] sm:$0xff] %v7748_v38  ;;  %6844 = vpow2.f32 %v5256_v17  ;;  %v7766_v22 = vadd.f32 %v7613_v44, %v865_v32  ;;  %v867_v39 = vmul.f32 %v7249_v48, %v7590_v19  ;;  %v7771_v61 = vadd.f32 %v7613_v44, %v870_v27 }
 0x218   : > { %9497 = vst [vmem:[#allocation22_spill] sm:$0xff] %v7751_v29  ;;  %v6821_v49 = vpop.eup %6820  ;;  %6846 = vpow2.f32 %v5257_v23  ;;  %v871_v43 = vmul.f32 %v7281_v2, %v7590_v19  ;;  %v7778_v32 = vadd.f32 %v7613_v44, %v866_v15  ;;  %v869_v48 = vmul.f32 %v7265_v56, %v7590_v19 }
 0x219   : > { %9498 = vst [vmem:[#allocation23_spill] sm:$0xff] %v7766_v22  ;;  %9499 = vst [vmem:[#allocation24_spill] sm:$0xff] %v7771_v61  ;;  %v6823_v17 = vpop.eup %6822  ;;  %6848 = vpow2.f32 %v5258_v25  ;;  %v1024_v35 = vadd.f32 1.0, %v6821_v49  ;;  %v872_v25 = vmul.f32 %v7287_v7, %v7590_v19  ;;  %v7791_v15 = vadd.f32 %v7613_v44, %v7630_v28 }
 0x21a   : > { %v6825_v60 = vpop.eup %6824  ;;  %v1042_v23 = vadd.f32 1.0, %v6823_v17  ;;  %6850 = vpow2.f32 %v5228_v30  ;;  %9500 = vst [vmem:[#allocation25_spill] sm:$0xff] %v7778_v32  ;;  %v7785_v52 = vadd.f32 %v7613_v44, %v871_v43  ;;  %v873_v30 = vmul.f32 %v7292_v14, %v7590_v19 }
 0x21b   : > { %v6827_v27 = vpop.eup %6826  ;;  %v1043_v3 = vadd.f32 1.0, %v6825_v60  ;;  %6852 = vrcp.f32 %v1024_v35  ;;  %9502 = vst [vmem:[#allocation27_spill] sm:$0xff] %v7791_v15  ;;  %v7794_v60 = vadd.f32 %v7613_v44, %v867_v39  ;;  %v7797_v7 = vadd.f32 %v7613_v44, %v872_v25 }
 0x21c   : > { %9501 = vst [vmem:[#allocation26_spill] sm:$0xff] %v7785_v52  ;;  %v6829_v49 = vpop.eup %6828  ;;  %v1044_v2 = vadd.f32 1.0, %v6827_v27  ;;  %6854 = vrcp.f32 %v1042_v23  ;;  %v7800_v23 = vadd.f32 %v7613_v44, %v868_v50  ;;  %v7803_v14 = vadd.f32 %v7613_v44, %v873_v30 }
 0x21d   : > { %v6831_v56 = vpop.eup %6830  ;;  %v1045_v17 = vadd.f32 1.0, %v6829_v49  ;;  %6856 = vrcp.f32 %v1043_v3  ;;  %9503 = vst [vmem:[#allocation28_spill] sm:$0xff] %v7794_v60  ;;  %9504 = vst [vmem:[#allocation29_spill] sm:$0xff] %v7797_v7  ;;  %v7806_v3 = vadd.f32 %v7613_v44, %v869_v48  ;;  %v7810_v39 = vadd.f32 %v7613_v44, %v7727_v13 }
 0x21e   : > { %v6833_v35 = vpop.eup %6832  ;;  %v1046_v43 = vadd.f32 1.0, %v6831_v56  ;;  %6858 = vrcp.f32 %v1044_v2  ;;  %9505 = vst [vmem:[#allocation30_spill] sm:$0xff] %v7800_v23  ;;  %9506 = vst [vmem:[#allocation31_spill] sm:$0xff] %v7803_v14  ;;  %v7813_v49 = vmul.f32 -1.442695, %v7748_v38 }
 0x21f   : > { %v6835_v19 = vpop.eup %6834  ;;  %v1047_v28 = vadd.f32 1.0, %v6833_v35  ;;  %6860 = vrcp.f32 %v1045_v17  ;;  %9507 = vst [vmem:[#allocation32_spill] sm:$0xff] %v7806_v3  ;;  %9508 = vst [vmem:[#allocation33_spill] sm:$0xff] %v7810_v39  ;;  %v7816_v50 = vmul.f32 -1.442695, %v7751_v29 }
 0x220   : > { %v6837_v27 = vpop.eup %6836  ;;  %v1048_v25 = vadd.f32 1.0, %v6835_v19  ;;  %6862 = vrcp.f32 %v1046_v43  ;;  %v7819_v56 = vmul.f32 -1.442695, %v7766_v22  ;;  %v7822_v48 = vmul.f32 -1.442695, %v7778_v32 }
 0x221   : > { %v6839_v2 = vpop.eup %6838  ;;  %v1049_v30 = vadd.f32 1.0, %v6837_v27  ;;  %6864 = vrcp.f32 %v1047_v28  ;;  %v7825_v17 = vmul.f32 -1.442695, %v7794_v60  ;;  %v7828_v35 = vmul.f32 -1.442695, %v7800_v23 }
 0x222   : > { %v6841_v44 = vpop.eup %6840  ;;  %v1050_v13 = vadd.f32 1.0, %v6839_v2  ;;  %6866 = vrcp.f32 %v1048_v25  ;;  %v7831_v28 = vmul.f32 -1.442695, %v7806_v3  ;;  %v7834_v27 = vmul.f32 -1.442695, %v7771_v61 }
 0x223   : > { %v6843_v43 = vpop.eup %6842  ;;  %v1051_v19 = vadd.f32 1.0, %v6841_v44  ;;  %6868 = vrcp.f32 %v1049_v30  ;;  %v7837_v25 = vmul.f32 -1.442695, %v7785_v52  ;;  %v7840_v2 = vmul.f32 -1.442695, %v7791_v15 }
 0x224   : > { %v6845_v32 = vpop.eup %6844  ;;  %v1052_v22 = vadd.f32 1.0, %v6843_v43  ;;  %6870 = vrcp.f32 %v1050_v13  ;;  %v7844_v30 = vadd.s32 176, %v7501_v62  ;;  %v7847_v61 = vadd.s32 192, %v7501_v62 }
 0x225   : > { %v6847_v23 = vpop.eup %6846  ;;  %v1053_v44 = vadd.f32 1.0, %v6845_v32  ;;  %6872 = vrcp.f32 %v1051_v19  ;;  %v7850_v13 = vmul.f32 -1.442695, %v7797_v7  ;;  %v9509_v15 = vand.u32 15, %v7568_v37 }
 0x226   : > { %v6849_v3 = vpop.eup %6848  ;;  %v1054_v43 = vadd.f32 1.0, %v6847_v23  ;;  %6874 = vrcp.f32 %v1052_v22  ;;  %v7859_v32 = vadd.s32 208, %v7501_v62  ;;  %v7862_v29 = vmul.f32 -1.442695, %v7803_v14 }
 0x227   : > { %vm7854_vm3 = vcmp.lt.s32.totalorder %v9509_v15, 15  ;;  %v6851_v19 = vpop.eup %6850  ;;  %v1055_v60 = vadd.f32 1.0, %v6849_v3  ;;  %6876 = vrcp.f32 %v1053_v44  ;;  %v7865_v22 = vmul.f32 -1.442695, %v7810_v39 }
 0x228   : > { %v6853_v23 = vpop.eup %6852  ;;  %6878 = vrcp.f32 %v1054_v43  ;;  %v1025_v7 = vadd.f32 1.0, %v6851_v19 }
 0x229   : > { %v6855_v15 = vpop.eup %6854  ;;  %6880 = vrcp.f32 %v1055_v60  ;;  %v7869_v38 = vmul.f32 %v6853_v23, %v7635_v58  ;;  %v7878_v58 = vadd.s32 224, %v7501_v62 }
 0x22a   : > { %v6857_v39 = vpop.eup %6856  ;;  %6882 = vrcp.f32 %v1025_v7  ;;  %v7874_v43 = vmul.f32 %v6855_v15, %v7641_v55 }
 0x22b   : > { %9512 = vst [vmem:[#allocation34_spill] sm:$0xff] %v7878_v58  ;;  %v6859_v19 = vpop.eup %6858  ;;  %v5696_v16 = vpack.c.bf16 %v7869_v38, %v7869_v38  ;;  %6884 = vpow2.f32 %v7745_v46  ;;  %v7891_v15 = vmul.f32 %v6857_v39, %v7644_v42 }
 0x22c   : > { %v6861_v44 = vpop.eup %6860  ;;  %v7886_v7 = vmul.f32 %v6859_v19, %v7647_v20  ;;  %6886 = vpow2.f32 %v7758_v34  ;;  %v9474_v55 = vrot.slane %v7874_v43, 1  ;;  %v5714_v20 = vpack.c.bf16 %v7874_v43, %v7874_v43 }
 0x22d   : > { %v6863_v60 = vpop.eup %6862  ;;  %v7895_v3 = vmul.f32 %v6861_v44, %v7656_v54  ;;  %2251 = vst [vmem:[#allocation2 + $0x1c] sm:$0xf] %v5696_v16  ;;  %6888 = vpow2.f32 %v7761_v18  ;;  %v1821_v42 = vrot.slane %v7891_v15, 1  ;;  %v9561_v16 = vand.u32 15, %v7516_v5  ;;  %v8144_v5 = vld [vmem:[%s9443_s5 + $0xb0] sm:$0xff]  }
 0x22e   : > { %v6865_v34 = vpop.eup %6864  ;;  %v7902_v19 = vmul.f32 %v6863_v60, %v7665_v59  ;;  %6890 = vpow2.f32 %v7813_v49  ;;  %v9475_v39 = vrot.slane %v7886_v7, 1  ;;  %2269 = vst [vmem:[#allocation2 + $0xf4] sm:$0xf] %v5714_v20  ;;  %v9513_v59 = vand.u32 15, %v7507_v1 }
 0x22f   : > { %v6867_v54 = vpop.eup %6866  ;;  %v7908_v44 = vmul.f32 %v6865_v34, %v7670_v8  ;;  %6892 = vpow2.f32 %v7816_v50  ;;  %v1847_v50 = vsel %vm1834_vm2, %v9474_v55, %v1821_v42  ;;  %v9516_v20 = vand.u32 15, %v7501_v62 }
 0x230   : > { %v6869_v46 = vpop.eup %6868  ;;  %vm7915_vm5 = vcmp.gt.s32.totalorder %v9513_v59, 0  ;;  %v7920_v60 = vmul.f32 %v6867_v54, %v7677_v24  ;;  %6894 = vpow2.f32 %v7819_v56  ;;  %v1846_v8 = vsel %vm1834_vm2, %v1821_v42, %v9475_v39 }
 0x231   : > { %v6871_v1 = vpop.eup %6870  ;;  %vm7933_vm6 = vcmp.gt.s32.totalorder %v9516_v20, 0  ;;  %v9519_v24 = vand.u32 15, %v7504_v63  ;;  %v7944_v54 = vmul.f32 %v6869_v46, %v7684_v47  ;;  %6896 = vpow2.f32 %v7822_v48 }
 0x232   : > { %v7949_v42 = vsel %vm7854_vm3, %v1846_v8, 0.0  ;;  %v5746_v59 = vpack.c.bf16 %v1847_v50, %v1847_v50  ;;  %v6873_v20 = vpop.eup %6872  ;;  %v9522_v55 = vand.u32 15, %v7510_v0  ;;  %v7958_v63 = vmul.f32 %v6871_v1, %v7688_v33 }
 0x233   : > { %vm7939_vm7 = vcmp.lt.s32.totalorder %v9519_v24, 15  ;;  %6898 = vpow2.f32 %v7825_v17  ;;  %v6875_v52 = vpop.eup %6874  ;;  %v7964_v48 = vmul.f32 %v6873_v20, %v7691_v45  ;;  %v9528_v49 = vand.u32 15, %v7575_v40 }
 0x234   : > { %vm7953_vm8 = vcmp.lt.s32.totalorder %v9522_v55, 15  ;;  %6900 = vpow2.f32 %v7828_v35  ;;  %2429 = vst [vmem:[#allocation2 + $0xf8] sm:$0xf] %v5746_v59  ;;  %v6877_v55 = vpop.eup %6876  ;;  %v1148_v33 = vmul.f32 %v6875_v52, %v7695_v41  ;;  %vm8131_vm0 = vcmp.lt.s32.totalorder %v9561_v16, 15 }
 0x235   : > { %6902 = vpow2.f32 %v7831_v28  ;;  %v6879_v17 = vpop.eup %6878  ;;  %v1149_v45 = vmul.f32 %v6877_v55, %v7698_v51  ;;  %v9476_v24 = vrot.slane %v7964_v48, 7  ;;  %v9477_v20 = vrot.slane %v7964_v48, 1 }
 0x236   : > { %v5723_v35 = vpack.c.bf16 %v7964_v48, %v7964_v48  ;;  %v6881_v59 = vpop.eup %6880  ;;  %v1150_v47 = vmul.f32 %v6879_v17, %v7702_v11  ;;  %v1637_v41 = vrot.slane %v1148_v33, 7  ;;  %v1830_v52 = vrot.slane %v1148_v33, 1 }
 0x237   : > { %v5724_v50 = vpack.c.bf16 %v1148_v33, %v1148_v33  ;;  %v6883_v8 = vpop.eup %6882  ;;  %v1151_v46 = vmul.f32 %v6881_v59, %v7708_v53  ;;  %v1638_v28 = vrot.slane %v1149_v45, 7  ;;  %v1831_v0 = vrot.slane %v1149_v45, 1 }
 0x238   : > { %v5725_v1 = vpack.c.bf16 %v1149_v45, %v1149_v45  ;;  %2278 = vst [vmem:[#allocation2 + $0x160] sm:$0xf] %v5723_v35  ;;  %v6885_v51 = vpop.eup %6884  ;;  %v1639_v55 = vrot.slane %v1150_v47, 7  ;;  %v7984_v39 = vsel %vm1641_vm4, %v9476_v24, %v1637_v41  ;;  %v1832_v18 = vrot.slane %v1150_v47, 1 }
 0x239   : > { %9525 = vst [vmem:[#allocation35_spill] sm:$0xff] %v7984_v39  ;;  %v7990_v11 = vsel %vm1834_vm2, %v9477_v20, %v1830_v52  ;;  %2279 = vst [vmem:[#allocation2 + $0x16c] sm:$0xf] %v5724_v50  ;;  %v6887_v53 = vpop.eup %6886  ;;  %v1640_v33 = vrot.slane %v1151_v46, 7  ;;  %v1644_v17 = vsel %vm1641_vm4, %v1637_v41, %v1638_v28  ;;  %v1833_v45 = vrot.slane %v1151_v46, 1 }
 0x23a   : > { %v1837_v35 = vsel %vm1834_vm2, %v1830_v52, %v1831_v0  ;;  %2280 = vst [vmem:[#allocation2 + $0x178] sm:$0xf] %v5725_v1  ;;  %v6889_v59 = vpop.eup %6888  ;;  %v1643_v24 = vsel %vm1641_vm4, %v1638_v28, %v1639_v55  ;;  %v1836_v37 = vsel %vm1834_vm2, %v1831_v0, %v1832_v18  ;;  %v5693_v20 = vpack.c.bf16 %v1644_v17, %v1644_v17 }
 0x23b   : > { %v5726_v23 = vpack.c.bf16 %v1150_v47, %v1150_v47  ;;  %v6891_v50 = vpop.eup %6890  ;;  %v1642_v14 = vsel %vm1641_vm4, %v1639_v55, %v1640_v33  ;;  %v9526_v41 = vrot.slane %v7869_v38, 7  ;;  %v1768_v1 = vsel %vm7915_vm5, %v1643_v24, 0.0  ;;  %v6697_v24 = vld [vmem:[%s9443_s5 + $0xa0] sm:$0xff]  }
 0x23c   : > { %v1835_v52 = vsel %vm1834_vm2, %v1832_v18, %v1833_v45  ;;  %v6893_v28 = vpop.eup %6892  ;;  %v9527_v47 = vrot.slane %v7869_v38, 1  ;;  %v1960_v17 = vsel %vm7939_vm7, %v1836_v37, 0.0  ;;  %v5694_v58 = vpack.c.bf16 %v1768_v1, %v1768_v1  ;;  %2120 = vst [vmem:[#allocation2 + $0x174] sm:$0xf] %v5693_v20 }
 0x23d   : > { %v1673_v39 = vsel %vm1641_vm4, %v1640_v33, %v9526_v41  ;;  %2281 = vst [vmem:[#allocation2 + $0x184] sm:$0xf] %v5726_v23  ;;  %vm8020_vm9 = vcmp.lt.s32.totalorder %v9528_v49, 15  ;;  %v6895_v18 = vpop.eup %6894  ;;  %v5695_v33 = vpack.c.bf16 %v1642_v14, %v1642_v14  ;;  %v5727_v41 = vpack.c.bf16 %v1151_v46, %v1151_v46 }
 0x23e   : > { %v1738_v0 = vsel %vm7933_vm6, %v1673_v39, 0.0  ;;  %v1866_v55 = vsel %vm1834_vm2, %v1833_v45, %v9527_v47  ;;  %v9531_v45 = vand.u32 15, %v7582_v21  ;;  %v6897_v23 = vpop.eup %6896  ;;  %2121 = vst [vmem:[#allocation2 + $0x180] sm:$0xf] %v5694_v58  ;;  %v5756_v40 = vpack.c.bf16 %v1837_v35, %v1837_v35 }
 0x23f   : > { %v1962_v39 = vsel %vm7953_vm8, %v1866_v55, 0.0  ;;  %v5664_v34 = vpack.c.bf16 %v1738_v0, %v1738_v0  ;;  %v5757_v56 = vpack.c.bf16 %v1960_v17, %v1960_v17  ;;  %v5758_v20 = vpack.c.bf16 %v1835_v52, %v1835_v52  ;;  %2122 = vst [vmem:[#allocation2 + $0x18c] sm:$0xf] %v5695_v33  ;;  %2282 = vst [vmem:[#allocation2 + $0x190] sm:$0xf] %v5727_v41 }
 0x240   : > { %vm8028_vm10 = vcmp.lt.s32.totalorder %v9531_v45, 15  ;;  %v5759_v1 = vpack.c.bf16 %v1962_v39, %v1962_v39  ;;  %v9534_v47 = vand.u32 15, %v7588_v57  ;;  %v6899_v14 = vpop.eup %6898  ;;  %v8039_v21 = vmul.f32 %v6883_v8, %v7716_v36  ;;  %2439 = vst [vmem:[#allocation2 + $0x170] sm:$0xf] %v5756_v40 }
 0x241   : > { %2091 = vst [vmem:[#allocation2 + $0x18] sm:$0xf] %v5664_v34  ;;  %v1026_v46 = vadd.f32 1.0, %v6885_v51  ;;  %v1027_v0 = vadd.f32 1.0, %v6887_v53  ;;  %v1028_v58 = vadd.f32 1.0, %v6889_v59  ;;  %v9537_v35 = vand.u32 15, %v7594_v26  ;;  %v6901_v57 = vpop.eup %6900 }
 0x242   : > { %vm8034_vm11 = vcmp.lt.s32.totalorder %v9534_v47, 15  ;;  %2440 = vst [vmem:[#allocation2 + $0x17c] sm:$0xf] %v5757_v56  ;;  %2441 = vst [vmem:[#allocation2 + $0x188] sm:$0xf] %v5758_v20  ;;  %v1029_v55 = vadd.f32 1.0, %v6891_v50  ;;  %v6903_v36 = vpop.eup %6902  ;;  %v5697_v51 = vpack.c.bf16 %v8039_v21, %v8039_v21  ;;  %v5747_v41 = vpack.c.bf16 %v7949_v42, %v7949_v42 }
 0x243   : > { %vm8043_vm12 = vcmp.lt.s32.totalorder %v9537_v35, 15  ;;  %2442 = vst [vmem:[#allocation2 + $0x194] sm:$0xf] %v5759_v1  ;;  %v1030_v17 = vadd.f32 1.0, %v6893_v28  ;;  %v1031_v49 = vadd.f32 1.0, %v6895_v18  ;;  %v1032_v39 = vadd.f32 1.0, %v6897_v23 }
 0x244   : > { %v1610_v8 = vrot.slane %v8039_v21, 7  ;;  %6904 = vrcp.f32 %v1026_v46  ;;  %v1803_v26 = vrot.slane %v8039_v21, 1  ;;  %v1033_v53 = vadd.f32 1.0, %v6899_v14  ;;  %2252 = vst [vmem:[#allocation2 + $0x28] sm:$0xf] %v5697_v51 }
 0x245   : > { %6906 = vrcp.f32 %v1027_v0  ;;  %v1034_v59 = vadd.f32 1.0, %v6901_v57  ;;  %v1035_v34 = vadd.f32 1.0, %v6903_v36  ;;  %v9540_v50 = vrot.slane %v7869_v38, 7  ;;  %2430 = vst [vmem:[#allocation2 + $0x104] sm:$0xf] %v5747_v41 }
 0x246   : > { %v9541_v18 = vrot.slane %v7869_v38, 1  ;;  %6908 = vrcp.f32 %v1028_v58  ;;  %v1824_v40 = vrot.slane %v7902_v19, 1  ;;  %v9542_v56 = vand.u32 15, %v7619_v10 }
 0x247   : > { %v1672_v28 = vsel %vm1641_vm4, %v9540_v50, %v1610_v8  ;;  %6910 = vrcp.f32 %v1029_v55  ;;  %v9545_v38 = vrot.slane %v7895_v3, 1  ;;  %v9546_v1 = vrot.slane %v7886_v7, 1 }
 0x248   : > { %v1865_v33 = vsel %vm1834_vm2, %v9541_v18, %v1803_v26  ;;  %v5665_v45 = vpack.c.bf16 %v1672_v28, %v1672_v28  ;;  %vm8068_vm13 = vcmp.gt.s32.totalorder %v9542_v56, 0  ;;  %6912 = vrcp.f32 %v1030_v17 }
 0x249   : > { %v5728_v23 = vpack.c.bf16 %v1865_v33, %v1865_v33  ;;  %v1845_v42 = vsel %vm1834_vm2, %v9546_v1, %v9545_v38  ;;  %v1825_v47 = vrot.slane %v7908_v44, 1  ;;  %v9547_v14 = vrot.slane %v7958_v63, 1 }
 0x24a   : > { %v9548_v46 = vrot.slane %v7944_v54, 1  ;;  %2092 = vst [vmem:[#allocation2 + $0x24] sm:$0xf] %v5665_v45  ;;  %6914 = vrcp.f32 %v1031_v49  ;;  %v9549_v0 = vmov %v9545_v38  ;;  %v5748_v35 = vpack.c.bf16 %v1845_v42, %v1845_v42 }
 0x24b   : > { %2411 = vst [vmem:[#allocation2 + $0x20] sm:$0xf] %v5728_v23  ;;  %v1844_v58 = vsel %vm1834_vm2, %v9549_v0, %v1824_v40  ;;  %v9551_v55 = vrot.slane %v7920_v60, 1  ;;  %6916 = vrcp.f32 %v1032_v39  ;;  %v1843_v50 = vsel %vm1834_vm2, %v1824_v40, %v1825_v47 }
 0x24c   : > { %v1840_v10 = vsel %vm1834_vm2, %v9548_v46, %v9547_v14  ;;  %v9550_v57 = vmov %v9548_v46  ;;  %v1952_v36 = vsel %vm8020_vm9, %v1844_v58, 0.0  ;;  %6918 = vrcp.f32 %v1033_v53  ;;  %2431 = vst [vmem:[#allocation2 + $0x110] sm:$0xf] %v5748_v35 }
 0x24d   : > { %v1841_v17 = vsel %vm1834_vm2, %v9551_v55, %v9550_v57  ;;  %v9552_v51 = vmov %v9551_v55  ;;  %v5749_v28 = vpack.c.bf16 %v1952_v36, %v1952_v36  ;;  %v5750_v33 = vpack.c.bf16 %v1843_v50, %v1843_v50 }
 0x24e   : > { %v1842_v49 = vsel %vm1834_vm2, %v1825_v47, %v9552_v51  ;;  %v9553_v39 = vand.u32 15, %v7513_v4  ;;  %v9556_v41 = vand.u32 15, %v7519_v6  ;;  %6920 = vrcp.f32 %v1034_v59 }
 0x24f   : > { %v1954_v18 = vsel %vm8028_vm10, %v1842_v49, 0.0  ;;  %v1956_v23 = vsel %vm8034_vm11, %v1840_v10, 0.0  ;;  %v5752_v37 = vpack.c.bf16 %v1841_v17, %v1841_v17  ;;  %6922 = vpow2.f32 %v7834_v27  ;;  %2432 = vst [vmem:[#allocation2 + $0x11c] sm:$0xf] %v5749_v28  ;;  %2433 = vst [vmem:[#allocation2 + $0x128] sm:$0xf] %v5750_v33 }
 0x250   : > { %vm8107_vm14 = vcmp.lt.s32.totalorder %v9553_v39, 15  ;;  %vm8113_vm15 = vcmp.gt.s32.totalorder %v9556_v41, 0  ;;  %v5751_v53 = vpack.c.bf16 %v1954_v18, %v1954_v18  ;;  %v5753_v4 = vpack.c.bf16 %v1956_v23, %v1956_v23  ;;  %v6652_v10 = vld [vmem:[#allocation2 + $0x1c] ss:$12 sps:$4 sm:$0xff]   ;;  %v9574_v41 = vld [vmem:[#allocation20_spill] sm:$0xff] }
 0x251   : > { %v9559_v40 = vrot.slane %v7964_v48, 1  ;;  %v9560_v56 = vmov %v9547_v14  ;;  %v1958_v59 = vsel %vm8043_vm12, %v7990_v11, 0.0  ;;  %6924 = vrcp.f32 %v1035_v34  ;;  %2435 = vst [vmem:[#allocation2 + $0x140] sm:$0xf] %v5752_v37  ;;  %v6650_v46 = vld [vmem:[#allocation2 + $0x18] ss:$12 sps:$4 sm:$0xff]   ;;  %v6905_v35 = vpop.eup %6904  ;;  %3040 = vmatprep.mubr.bf16.mxu0 %v6652_v10 }
 0x252   : > { %2434 = vst [vmem:[#allocation2 + $0x134] sm:$0xf] %v5751_v53  ;;  %v5755_v1 = vpack.c.bf16 %v1958_v59, %v1958_v59  ;;  %v9564_v42 = vrot.slane %v7891_v15, 7  ;;  %v9565_v47 = vrot.slane %v7874_v43, 7  ;;  %6926 = vpow2.f32 %v7837_v25  ;;  %2436 = vst [vmem:[#allocation2 + $0x14c] sm:$0xf] %v5753_v4  ;;  %v6907_v51 = vpop.eup %6906  ;;  %3041 = vmatmul.mubr.bf16.vlgmr.msra.gmra.mxu0 %v6650_v46 }
 0x253   : > { %v1839_v6 = vsel %vm1834_vm2, %v9560_v56, %v9559_v40  ;;  %v5715_v52 = vpack.c.bf16 %v7891_v15, %v7891_v15  ;;  %v1629_v34 = vrot.slane %v7886_v7, 7  ;;  %6928 = vpow2.f32 %v7850_v13  ;;  %v6909_v49 = vpop.eup %6908  ;;  %v9570_v28 = vld [vmem:[#allocation7_spill] sm:$0xff]  ;;  %v9575_v4 = vld [vmem:[#allocation6_spill] sm:$0xff]  ;;  %v9593_v56 = vld [vmem:[#allocation32_spill] sm:$0xff] }
 0x254   : > { %v5754_v27 = vpack.c.bf16 %v1839_v6, %v1839_v6  ;;  %v1654_v14 = vsel %vm1641_vm4, %v9565_v47, %v9564_v42  ;;  %2438 = vst [vmem:[#allocation2 + $0x164] sm:$0xf] %v5755_v1  ;;  %v1630_v0 = vrot.slane %v7895_v3, 7  ;;  %v5716_v58 = vpack.c.bf16 %v7886_v7, %v7886_v7  ;;  %v6911_v39 = vpop.eup %6910  ;;  %v9579_v1 = vld [vmem:[#allocation21_spill] sm:$0xff] }
 0x255   : > { %v5683_v11 = vpack.c.bf16 %v1654_v14, %v1654_v14  ;;  %v5717_v25 = vpack.c.bf16 %v7895_v3, %v7895_v3  ;;  %v9566_v57 = vand.u32 15, %v7522_v9  ;;  %6930 = vpow2.f32 %v7862_v29  ;;  %2270 = vst [vmem:[#allocation2 + $0x100] sm:$0xf] %v5715_v52  ;;  %v6913_v6 = vpop.eup %6912 }
 0x256   : > { %2437 = vst [vmem:[#allocation2 + $0x158] sm:$0xf] %v5754_v27  ;;  %v9569_v13 = vmov %v9564_v42  ;;  %v1631_v7 = vrot.slane %v7902_v19, 7  ;;  %v1632_v36 = vrot.slane %v7908_v44, 7  ;;  %v1122_v9 = vmul.f32 %v6905_v35, %v7719_v12  ;;  %2271 = vst [vmem:[#allocation2 + $0x10c] sm:$0xf] %v5716_v58 }
 0x257   : > { %vm8158_vm3 = vcmp.lt.s32.totalorder %v9566_v57, 15  ;;  %2110 = vst [vmem:[#allocation2 + $0xfc] sm:$0xf] %v5683_v11  ;;  %v1653_v17 = vsel %vm1641_vm4, %v9569_v13, %v1629_v34  ;;  %6932 = vpow2.f32 %v7840_v2  ;;  %v1652_v29 = vsel %vm1641_vm4, %v1629_v34, %v1630_v0  ;;  %2272 = vst [vmem:[#allocation2 + $0x118] sm:$0xf] %v5717_v25  ;;  %v6915_v47 = vpop.eup %6914  ;;  %v9580_v34 = vld [vmem:[#allocation22_spill] sm:$0xff] }
 0x258   : > { %v1758_v15 = vsel %vm8068_vm13, %v1653_v17, 0.0  ;;  %v8178_v50 = vmul.f32 %v6907_v51, %v7732_v31  ;;  %v9571_v18 = vand.u32 15, %v9570_v28  ;;  %6934 = vpow2.f32 %v7865_v22  ;;  %v6948_v31 = vld [vmem:[%s9443_s5 + $0xb8] sm:$0xff]   ;;  %v6682_v22 = vld [vmem:[%s9443_s5 + $0xa8] sm:$0xff]   ;;  %v6917_v10 = vpop.eup %6916 }
 0x259   : > { %v5684_v2 = vpack.c.bf16 %v1758_v15, %v1758_v15  ;;  %v5685_v33 = vpack.c.bf16 %v1652_v29, %v1652_v29  ;;  %v1804_v20 = vrot.slane %v1122_v9, 1  ;;  %v8188_v53 = vmul.f32 %v6909_v49, %v9574_v41  ;;  %6451 = vmatpush3.bf16.msra.mxu0 %v6948_v31  ;;  %v6919_v35 = vpop.eup %6918  ;;  %v6662_v12 = vld [vmem:[%s9443_s5 + $0x38] sm:$0xff]  }
 0x25a   : > { %vm8182_vm5 = vcmp.gt.s32.totalorder %v9571_v18, 0  ;;  %v1611_v23 = vrot.slane %v1122_v9, 7  ;;  %v5698_v37 = vpack.c.bf16 %v1122_v9, %v1122_v9  ;;  %v9576_v40 = vand.u32 15, %v9575_v4  ;;  %6452 = vmatprep.subr.bf16.mxu0 %v8144_v5  ;;  %v9582_v18 = vld [vmem:[#allocation25_spill] sm:$0xff] }
 0x25b   : > { %v1805_v59 = vrot.slane %v8178_v50, 1  ;;  %v1612_v16 = vrot.slane %v8178_v50, 7  ;;  %v5699_v27 = vpack.c.bf16 %v8178_v50, %v8178_v50  ;;  %v8207_v42 = vmul.f32 %v6911_v39, %v9579_v1  ;;  %2111 = vst [vmem:[#allocation2 + $0x108] sm:$0xf] %v5684_v2  ;;  %2112 = vst [vmem:[#allocation2 + $0x114] sm:$0xf] %v5685_v33  ;;  %v6921_v51 = vpop.eup %6920 }
 0x25c   : > { %vm8195_vm6 = vcmp.lt.s32.totalorder %v9576_v40, 15  ;;  %v1864_v14 = vsel %vm1834_vm2, %v1803_v26, %v1804_v20  ;;  %v1806_v11 = vrot.slane %v8188_v53, 1  ;;  %v1671_v52 = vsel %vm1641_vm4, %v1610_v8, %v1611_v23  ;;  %2253 = vst [vmem:[#allocation2 + $0x34] sm:$0xf] %v5698_v37  ;;  %v6923_v49 = vpop.eup %6922  ;;  %v9583_v33 = vld [vmem:[#allocation8_spill] sm:$0xff] }
 0x25d   : > { %v8220_v46 = vmul.f32 %v6913_v6, %v9580_v34  ;;  %v1932_v58 = vsel %vm8107_vm14, %v1864_v14, 0.0  ;;  %v1863_v25 = vsel %vm1834_vm2, %v1804_v20, %v1805_v59  ;;  %v1670_v26 = vsel %vm1641_vm4, %v1611_v23, %v1612_v16  ;;  %2254 = vst [vmem:[#allocation2 + $0x40] sm:$0xf] %v5699_v27  ;;  %6453 = vmatpush3.bf16.msra.mxu0 %v8144_v5  ;;  %v9581_v5 = vld [vmem:[#allocation23_spill] sm:$0xff] }
 0x25e   : > { %v1740_v21 = vsel %vm8113_vm15, %v1671_v52, 0.0  ;;  %v5729_v8 = vpack.c.bf16 %v1932_v58, %v1932_v58  ;;  %v1862_v57 = vsel %vm1834_vm2, %v1805_v59, %v1806_v11  ;;  %v5730_v13 = vpack.c.bf16 %v1863_v25, %v1863_v25  ;;  %6454 = vmatprep.subr.bf16.mxu0 %v6682_v22  ;;  %v6925_v41 = vpop.eup %6924 }
 0x25f   : > { %v5666_v17 = vpack.c.bf16 %v1740_v21, %v1740_v21  ;;  %v1934_v9 = vsel %vm8131_vm0, %v1862_v57, 0.0  ;;  %v5667_v45 = vpack.c.bf16 %v1670_v26, %v1670_v26  ;;  %v1807_v29 = vrot.slane %v8207_v42, 1  ;;  %v8260_v40 = vpop.eup %6926 }
 0x260   : > { %v1808_v15 = vrot.slane %v8220_v46, 1  ;;  %2412 = vst [vmem:[#allocation2 + $0x2c] sm:$0xf] %v5729_v8  ;;  %v5731_v50 = vpack.c.bf16 %v1934_v9, %v1934_v9  ;;  %2413 = vst [vmem:[#allocation2 + $0x38] sm:$0xf] %v5730_v13  ;;  %v8241_v28 = vmul.f32 %v6915_v47, %v9581_v5  ;;  %v8244_v2 = vmul.f32 %v6917_v10, %v9582_v18  ;;  %v9587_v47 = vld [vmem:[#allocation10_spill] sm:$0xff]  ;;  %v8272_v52 = vpop.eup %6928 }
 0x261   : > { %2093 = vst [vmem:[#allocation2 + $0x30] sm:$0xf] %v5666_v17  ;;  %v1613_v38 = vrot.slane %v8188_v53, 7  ;;  %v9584_v39 = vand.u32 15, %v9583_v33  ;;  %2094 = vst [vmem:[#allocation2 + $0x3c] sm:$0xf] %v5667_v45  ;;  %v1861_v23 = vsel %vm1834_vm2, %v1806_v11, %v1807_v29  ;;  %v5700_v4 = vpack.c.bf16 %v8188_v53, %v8188_v53  ;;  %6455 = vmatpush3.bf16.msra.mxu0 %v6682_v22 }
 0x262   : > { %v1860_v31 = vsel %vm1834_vm2, %v1807_v29, %v1808_v15  ;;  %v1614_v37 = vrot.slane %v8207_v42, 7  ;;  %2414 = vst [vmem:[#allocation2 + $0x44] sm:$0xf] %v5731_v50  ;;  %v5732_v59 = vpack.c.bf16 %v1861_v23, %v1861_v23  ;;  %v1809_v27 = vrot.slane %v8241_v28, 1  ;;  %6456 = vmatprep.subr.bf16.mxu0 %v6697_v24  ;;  %v6712_v22 = vld [vmem:[%s9443_s5 + $0x98] sm:$0xff]   ;;  %v8285_v58 = vpop.eup %6930  ;;  %v9591_v9 = vld [vmem:[#allocation28_spill] sm:$0xff] }
 0x263   : > { %vm8249_vm7 = vcmp.lt.s32.totalorder %v9584_v39, 15  ;;  %v1936_v6 = vsel %vm8158_vm3, %v1860_v31, 0.0  ;;  %v1810_v1 = vrot.slane %v8244_v2, 1  ;;  %v9588_v14 = vand.u32 15, %v9587_v47  ;;  %2255 = vst [vmem:[#allocation2 + $0x4c] sm:$0xf] %v5700_v4 }
 0x264   : > { %v5733_v53 = vpack.c.bf16 %v1936_v6, %v1936_v6  ;;  %v1668_v55 = vsel %vm1641_vm4, %v1613_v38, %v1614_v37  ;;  %v1669_v34 = vsel %vm1641_vm4, %v1612_v16, %v1613_v38  ;;  %v5701_v10 = vpack.c.bf16 %v8207_v42, %v8207_v42  ;;  %2415 = vst [vmem:[#allocation2 + $0x50] sm:$0xf] %v5732_v59  ;;  %v8295_v8 = vpop.eup %6932  ;;  %v8337_v23 = vld [vmem:[#allocation2 + $0x34] ss:$12 sps:$4 sm:$0xff]   ;;  %v9597_v59 = vld [vmem:[#allocation13_spill] sm:$0xff] }
 0x265   : > { %vm8268_vm8 = vcmp.gt.s32.totalorder %v9588_v14, 0  ;;  %v1858_v25 = vsel %vm1834_vm2, %v1809_v27, %v1810_v1  ;;  %v1859_v16 = vsel %vm1834_vm2, %v1808_v15, %v1809_v27  ;;  %v1742_v26 = vsel %vm8182_vm5, %v1669_v34, 0.0  ;;  %v8302_v29 = vpop.eup %6934  ;;  %v9592_v15 = vld [vmem:[#allocation30_spill] sm:$0xff]  ;;  %6457 = vmatpush3.bf16.msra.mxu0 %v6697_v24  ;;  %3048 = vmatprep.mubr.bf16.mxu0 %v8337_v23  ;;  %v6674_v42 = vld [vmem:[%s9443_s5 + $0x68] sm:$0xff]  }
 0x266   : > { %v5669_v21 = vpack.c.bf16 %v1668_v55, %v1668_v55  ;;  %2416 = vst [vmem:[#allocation2 + $0x5c] sm:$0xf] %v5733_v53  ;;  %v1938_v57 = vsel %vm8195_vm6, %v1858_v25, 0.0  ;;  %v5734_v13 = vpack.c.bf16 %v1859_v16, %v1859_v16  ;;  %v5668_v17 = vpack.c.bf16 %v1742_v26, %v1742_v26  ;;  %2256 = vst [vmem:[#allocation2 + $0x58] sm:$0xf] %v5701_v10 }
 0x267   : > { %v8300_v45 = vmul.f32 %v6919_v35, %v9591_v9  ;;  %v5735_v50 = vpack.c.bf16 %v1938_v57, %v1938_v57  ;;  %v8308_v5 = vmul.f32 %v6921_v51, %v9592_v15  ;;  %v1036_v18 = vadd.f32 1.0, %v6923_v49  ;;  %v8316_v35 = vld [vmem:[%s9443_s5 + $0x90] sm:$0xff]   ;;  %v8324_v31 = vld [vmem:[#allocation2 + $0x20] ss:$12 sps:$4 sm:$0xff]   ;;  %6458 = vmatprep.subr.bf16.mxu0 %v6712_v22 }
 0x268   : > { %2096 = vst [vmem:[#allocation2 + $0x54] sm:$0xf] %v5669_v21  ;;  %v8311_v38 = vmul.f32 %v6925_v41, %v9593_v56  ;;  %v9594_v33 = vand.u32 15, %v7844_v30  ;;  %2417 = vst [vmem:[#allocation2 + $0x68] sm:$0xf] %v5734_v13  ;;  %v6666_v51 = vld [vmem:[%s9443_s5 + $0x70] sm:$0xff]   ;;  %v5702_v24 = vpack.c.bf16 %v8220_v46, %v8220_v46  ;;  %v5703_v49 = vpack.c.bf16 %v8241_v28, %v8241_v28 }
 0x269   : > { %2095 = vst [vmem:[#allocation2 + $0x48] sm:$0xf] %v5668_v17  ;;  %v5704_v30 = vpack.c.bf16 %v8244_v2, %v8244_v2  ;;  %v5705_v41 = vpack.c.bf16 %v8300_v45, %v8300_v45  ;;  %2418 = vst [vmem:[#allocation2 + $0x74] sm:$0xf] %v5735_v50  ;;  %v1811_v4 = vrot.slane %v8300_v45, 1  ;;  %v1812_v6 = vrot.slane %v8308_v5, 1  ;;  %6418 = vmatprep.mubr.bf16.mxu1 %v8324_v31 }
 0x26a   : > { %vm8320_vm9 = vcmp.gt.s32.totalorder %v9594_v33, 0  ;;  %6936 = vrcp.f32 %v1036_v18  ;;  %v9598_v27 = vand.u32 15, %v9597_v59  ;;  %v5706_v14 = vpack.c.bf16 %v8308_v5, %v8308_v5  ;;  %v8350_v53 = vld [vmem:[#allocation2 + $0x38] ss:$12 sps:$4 sm:$0xff]   ;;  %v8352_v55 = vld [vmem:[#allocation2 + $0x30] ss:$12 sps:$4 sm:$0xff]   ;;  %6459 = vmatpush3.bf16.msra.mxu0 %v6712_v22 }
 0x26b   : > { %2257 = vst [vmem:[#allocation2 + $0x64] sm:$0xf] %v5702_v24  ;;  %2258 = vst [vmem:[#allocation2 + $0x70] sm:$0xf] %v5703_v49  ;;  %v5707_v34 = vpack.c.bf16 %v8311_v38, %v8311_v38  ;;  %v8362_v10 = vsel %vm1641_vm4, %v1631_v7, %v1632_v36  ;;  %v8370_v25 = vsel %vm1641_vm4, %v1630_v0, %v1631_v7  ;;  %v9601_v26 = vand.u32 15, %v7847_v61  ;;  %v9604_v7 = vld [vmem:[#allocation15_spill] sm:$0xff] }
 0x26c   : > { %vm8343_vm10 = vcmp.gt.s32.totalorder %v9598_v27, 0  ;;  %2259 = vst [vmem:[#allocation2 + $0x7c] sm:$0xf] %v5704_v30  ;;  %2260 = vst [vmem:[#allocation2 + $0x88] sm:$0xf] %v5705_v41  ;;  %v5718_v16 = vpack.c.bf16 %v7902_v19, %v7902_v19  ;;  %v1856_v57 = vsel %vm1834_vm2, %v1811_v4, %v1812_v6  ;;  %v1857_v3 = vsel %vm1834_vm2, %v1810_v1, %v1811_v4  ;;  %v6728_v50 = vld [vmem:[%s9443_s5 + $0x88] sm:$0xff]  }
 0x26d   : > { %vm8376_vm11 = vcmp.gt.s32.totalorder %v9601_v26, 0  ;;  %v1813_v0 = vrot.slane %v8311_v38, 1  ;;  %v1615_v19 = vrot.slane %v8220_v46, 7  ;;  %v9605_v61 = vand.u32 15, %v9604_v7  ;;  %2261 = vst [vmem:[#allocation2 + $0x94] sm:$0xf] %v5706_v14  ;;  %6419 = vmatmul.mubr.bf16.vlgmr.msra.gmra.mxu1 %v8350_v53  ;;  %3049 = vmatmul.mubr.bf16.gmra.mxu0 %v8352_v55 }
 0x26e   : > { %v1940_v17 = vsel %vm8249_vm7, %v1856_v57, 0.0  ;;  %v5736_v1 = vpack.c.bf16 %v1857_v3, %v1857_v3  ;;  %v1616_v9 = vrot.slane %v8241_v28, 7  ;;  %v1037_v46 = vadd.f32 1.0, %v8260_v40  ;;  %2262 = vst [vmem:[#allocation2 + $0xa0] sm:$0xf] %v5707_v34  ;;  %6021 = vmatpush3.bf16.msra.mxu1 %v6662_v12  ;;  %v6670_v28 = vld [vmem:[%s9443_s5 + $0x30] sm:$0xff]   ;;  %6460 = vmatprep.subr.bf16.mxu0 %v8316_v35 }
 0x26f   : > { %vm8391_vm12 = vcmp.gt.s32.totalorder %v9605_v61, 0  ;;  %2273 = vst [vmem:[#allocation2 + $0x124] sm:$0xf] %v5718_v16  ;;  %v8404_v15 = vld [vmem:[#allocation2 + $0x50] ss:$12 sps:$4 sm:$0xff]   ;;  %v5737_v22 = vpack.c.bf16 %v1940_v17, %v1940_v17  ;;  %v1855_v20 = vsel %vm1834_vm2, %v1812_v6, %v1813_v0  ;;  %v1667_v40 = vsel %vm1641_vm4, %v1614_v37, %v1615_v19  ;;  %6022 = vmatprep.subr.bf16.mxu1 %v6666_v51  ;;  %v6677_v30 = vld [vmem:[%s9443_s5 + $0x28] sm:$0xff]  }
 0x270   : > { %v1038_v18 = vadd.f32 1.0, %v8272_v52  ;;  %2419 = vst [vmem:[#allocation2 + $0x80] sm:$0xf] %v5736_v1  ;;  %v5738_v12 = vpack.c.bf16 %v1855_v20, %v1855_v20  ;;  %v1666_v56 = vsel %vm1641_vm4, %v1615_v19, %v1616_v9  ;;  %v1744_v33 = vsel %vm8268_vm8, %v1667_v40, 0.0  ;;  %6422 = vmatprep.mubr.bf16.mxu1 %v8404_v15  ;;  %v8433_v51 = vld [vmem:[#allocation2 + $0x4c] ss:$12 sps:$4 sm:$0xff]   ;;  %6461 = vmatpush3.bf16.msra.mxu0 %v8316_v35 }
 0x271   : > { %6938 = vrcp.f32 %v1037_v46  ;;  %v9608_v37 = vand.u32 15, %v7859_v32  ;;  %2420 = vst [vmem:[#allocation2 + $0x8c] sm:$0xf] %v5737_v22  ;;  %v5670_v24 = vpack.c.bf16 %v1744_v33, %v1744_v33  ;;  %v5671_v49 = vpack.c.bf16 %v1666_v56, %v1666_v56  ;;  %v8443_v32 = vld [vmem:[%s9443_s5 + $0x80] sm:$0xff]   ;;  %v8445_v41 = vld [vmem:[#allocation2 + $0x68] ss:$12 sps:$4 sm:$0xff]   ;;  %6462 = vmatprep.subr.bf16.mxu0 %v6728_v50  ;;  %3056 = vmatprep.mubr.bf16.mxu0 %v8433_v51 }
 0x272   : > { %6940 = vrcp.f32 %v1038_v18  ;;  %v1039_v11 = vadd.f32 1.0, %v8285_v58  ;;  %v8447_v4 = vld [vmem:[#allocation2 + $0x48] ss:$12 sps:$4 sm:$0xff]   ;;  %2421 = vst [vmem:[#allocation2 + $0x98] sm:$0xf] %v5738_v12  ;;  %v6681_v58 = vld [vmem:[%s9443_s5 + $0x60] sm:$0xff]   ;;  %v5687_v6 = vpack.c.bf16 %v8362_v10, %v8362_v10  ;;  %v5719_v35 = vpack.c.bf16 %v7908_v44, %v7908_v44  ;;  %6023 = vmatpush3.bf16.msra.mxu1 %v6670_v28 }
 0x273   : > { %vm8428_vm13 = vcmp.gt.s32.totalorder %v9608_v37, 0  ;;  %v9611_v59 = vrot.slane %v7944_v54, 7  ;;  %v9612_v27 = vrot.slane %v7920_v60, 7  ;;  %v9614_v10 = vld [vmem:[#allocation9_spill] sm:$0xff]  ;;  %2097 = vst [vmem:[#allocation2 + $0x60] sm:$0xf] %v5670_v24  ;;  %6024 = vmatprep.subr.bf16.mxu1 %v6674_v42  ;;  %v5720_v21 = vpack.c.bf16 %v7920_v60, %v7920_v60 }
 0x274   : > { %v9615_v26 = vand.u32 15, %v9614_v10  ;;  %2098 = vst [vmem:[#allocation2 + $0x6c] sm:$0xf] %v5671_v49  ;;  %v1040_v3 = vadd.f32 1.0, %v8295_v8  ;;  %6942 = vrcp.f32 %v1039_v11  ;;  %v1617_v44 = vrot.slane %v8244_v2, 7  ;;  %6463 = vmatpush3.bf16.msra.mxu0 %v6728_v50  ;;  %v6685_v50 = vld [vmem:[%s9443_s5 + $0x20] sm:$0xff]  }
 0x275   : > { %v1648_v14 = vsel %vm1641_vm4, %v9612_v27, %v9611_v59  ;;  %v9613_v34 = vmov %v9612_v27  ;;  %v1618_v19 = vrot.slane %v8300_v45, 7  ;;  %v1041_v17 = vadd.f32 1.0, %v8302_v29  ;;  %2114 = vst [vmem:[#allocation2 + $0x12c] sm:$0xf] %v5687_v6  ;;  %2274 = vst [vmem:[#allocation2 + $0x130] sm:$0xf] %v5719_v35  ;;  %6423 = vmatmul.mubr.bf16.gmra.mxu1 %v8445_v41  ;;  %3057 = vmatmul.mubr.bf16.gmra.mxu0 %v8447_v4 }
 0x276   : > { %v1649_v16 = vsel %vm1641_vm4, %v1632_v36, %v9613_v34  ;;  %vm8471_vm14 = vcmp.lt.s32.totalorder %v9615_v26, 15  ;;  %v9618_v36 = vld [vmem:[#allocation16_spill] sm:$0xff]  ;;  %v1619_v1 = vrot.slane %v8308_v5, 7  ;;  %v1620_v46 = vrot.slane %v8311_v38, 7  ;;  %v6743_v29 = vld [vmem:[%s9443_s5 + $0x1f8] sm:$0xff]   ;;  %6025 = vmatpush3.bf16.msra.mxu1 %v6677_v30  ;;  %6464 = vmatprep.subr.bf16.mxu0 %v8443_v32  ;;  %v9631_v10 = vld [vmem:[#allocation34_spill] sm:$0xff] }
 0x277   : > { %v9619_v7 = vand.u32 15, %v9618_v36  ;;  %v1760_v8 = vsel %vm8320_vm9, %v8370_v25, 0.0  ;;  %6944 = vrcp.f32 %v1040_v3  ;;  %v1664_v2 = vsel %vm1641_vm4, %v1617_v44, %v1618_v19  ;;  %v6937_v40 = vpop.eup %6936  ;;  %6026 = vmatprep.subr.bf16.mxu1 %v6681_v58  ;;  %v6689_v56 = vld [vmem:[%s9443_s5 + $0x58] sm:$0xff]   ;;  %v9622_v37 = vld [vmem:[#allocation24_spill] sm:$0xff]  ;;  %2275 = vst [vmem:[#allocation2 + $0x13c] sm:$0xf] %v5720_v21 }
 0x278   : > { %v1665_v45 = vsel %vm1641_vm4, %v1616_v9, %v1617_v44  ;;  %v5686_v22 = vpack.c.bf16 %v1760_v8, %v1760_v8  ;;  %v5673_v39 = vpack.c.bf16 %v1664_v2, %v1664_v2  ;;  %6946 = vrcp.f32 %v1041_v17  ;;  %v8513_v18 = vld [vmem:[#allocation2 + $0x80] ss:$12 sps:$4 sm:$0xff]   ;;  %v9623_v49 = vld [vmem:[#allocation11_spill] sm:$0xff]  ;;  %6465 = vmatpush3.bf16.msra.mxu0 %v8443_v32  ;;  %v8541_v59 = vld [vmem:[#allocation2 + $0x64] ss:$12 sps:$4 sm:$0xff]  }
 0x279   : > { %vm8480_vm15 = vcmp.gt.s32.totalorder %v9619_v7, 0  ;;  %v1746_v5 = vsel %vm8343_vm10, %v1665_v45, 0.0  ;;  %v1662_v25 = vsel %vm1641_vm4, %v1619_v1, %v1620_v46  ;;  %v1663_v20 = vsel %vm1641_vm4, %v1618_v19, %v1619_v1  ;;  %6426 = vmatprep.mubr.bf16.mxu1 %v8513_v18  ;;  %6156 = vmatprep.subr.bf16.mxu0 %v6743_v29  ;;  %v6692_v3 = vld [vmem:[%s9443_s5 + $0x18] sm:$0xff]   ;;  %v6696_v36 = vld [vmem:[%s9443_s5 + $0x50] sm:$0xff]   ;;  %v9632_v1 = vld [vmem:[#allocation12_spill] sm:$0xff] }
 0x27a   : > { %v5672_v9 = vpack.c.bf16 %v1746_v5, %v1746_v5  ;;  %v5675_v28 = vpack.c.bf16 %v1662_v25, %v1662_v25  ;;  %2113 = vst [vmem:[#allocation2 + $0x120] sm:$0xf] %v5686_v22  ;;  %v1762_v47 = vsel %vm8376_vm11, %v1649_v16, 0.0  ;;  %2100 = vst [vmem:[#allocation2 + $0x84] sm:$0xf] %v5673_v39  ;;  %v1748_v12 = vsel %vm8391_vm12, %v1663_v20, 0.0  ;;  %6027 = vmatpush3.bf16.msra.mxu1 %v6685_v50 }
 0x27b   : > { %v5688_v33 = vpack.c.bf16 %v1762_v47, %v1762_v47  ;;  %v5689_v42 = vpack.c.bf16 %v1648_v14, %v1648_v14  ;;  %v8523_v24 = vmul.f32 %v6937_v40, %v9622_v37  ;;  %v9624_v11 = vand.u32 15, %v9623_v49  ;;  %3064 = vmatprep.mubr.bf16.mxu0 %v8541_v59  ;;  %v8562_v19 = vld [vmem:[#allocation2 + $0x60] ss:$12 sps:$4 sm:$0xff]   ;;  %6028 = vmatprep.subr.bf16.mxu1 %v6689_v56  ;;  %v9636_v22 = vld [vmem:[#allocation19_spill] sm:$0xff]  ;;  %v9640_v40 = vld [vmem:[#allocation14_spill] sm:$0xff] }
 0x27c   : > { %2099 = vst [vmem:[#allocation2 + $0x78] sm:$0xf] %v5672_v9  ;;  %v5674_v13 = vpack.c.bf16 %v1748_v12, %v1748_v12  ;;  %2102 = vst [vmem:[#allocation2 + $0x9c] sm:$0xf] %v5675_v28  ;;  %v5721_v58 = vpack.c.bf16 %v7944_v54, %v7944_v54  ;;  %v9627_v6 = vrot.slane %v7964_v48, 7  ;;  %v9628_v35 = vrot.slane %v7958_v63, 7 }
 0x27d   : > { %vm8527_vm0 = vcmp.lt.s32.totalorder %v9624_v11, 15  ;;  %2115 = vst [vmem:[#allocation2 + $0x138] sm:$0xf] %v5688_v33  ;;  %2116 = vst [vmem:[#allocation2 + $0x144] sm:$0xf] %v5689_v42  ;;  %v9630_v14 = vrot.slane %v7944_v54, 7  ;;  %v5722_v16 = vpack.c.bf16 %v7958_v63, %v7958_v63  ;;  %v5708_v44 = vpack.c.bf16 %v8523_v24, %v8523_v24  ;;  %3065 = vmatmul.mubr.bf16.gmra.mxu0 %v8562_v19 }
 0x27e   : > { %v1646_v60 = vsel %vm1641_vm4, %v9628_v35, %v9627_v6  ;;  %v9629_v27 = vmov %v9628_v35  ;;  %v1393_v32 = vand.u32 15, %v9631_v10  ;;  %v1814_v26 = vrot.slane %v8523_v24, 1  ;;  %2101 = vst [vmem:[#allocation2 + $0x90] sm:$0xf] %v5674_v13  ;;  %2276 = vst [vmem:[#allocation2 + $0x148] sm:$0xf] %v5721_v58  ;;  %v6939_v17 = vpop.eup %6938  ;;  %6029 = vmatpush3.bf16.msra.mxu1 %v6692_v3 }
 0x27f   : > { %v1647_v48 = vsel %vm1641_vm4, %v9630_v14, %v9629_v27  ;;  %v5691_v34 = vpack.c.bf16 %v1646_v60, %v1646_v60  ;;  %v1621_v54 = vrot.slane %v8523_v24, 7  ;;  %2277 = vst [vmem:[#allocation2 + $0x154] sm:$0xf] %v5722_v16  ;;  %v9633_v8 = vand.u32 15, %v9632_v1  ;;  %2263 = vst [vmem:[#allocation2 + $0xac] sm:$0xf] %v5708_v44  ;;  %v6941_v25 = vpop.eup %6940  ;;  %6030 = vmatprep.subr.bf16.mxu1 %v6696_v36 }
 0x280   : > { %v1764_v63 = vsel %vm8428_vm13, %v1647_v48, 0.0  ;;  %vm1605_vm3 = vcmp.gt.s32.totalorder %v1393_v32, 0  ;;  %v1854_v52 = vsel %vm1834_vm2, %v1813_v0, %v1814_v26  ;;  %v1323_v29 = vand.u32 15, %v9636_v22  ;;  %v9637_v5 = vld [vmem:[#allocation35_spill] sm:$0xff]  ;;  %v9638_v9 = vld [vmem:[#allocation26_spill] sm:$0xff]  ;;  %v9644_v49 = vld [vmem:[#allocation17_spill] sm:$0xff] }
 0x281   : > { %v5690_v7 = vpack.c.bf16 %v1764_v63, %v1764_v63  ;;  %2118 = vst [vmem:[#allocation2 + $0x15c] sm:$0xf] %v5691_v34  ;;  %vm8573_vm5 = vcmp.lt.s32.totalorder %v9633_v8, 15  ;;  %v1661_v45 = vsel %vm1641_vm4, %v1620_v46, %v1621_v54  ;;  %v1766_v39 = vsel %vm1605_vm3, %v9637_v5, 0.0  ;;  %v9639_v46 = vld [vmem:[#allocation29_spill] sm:$0xff]  ;;  %v6700_v33 = vld [vmem:[%s9443_s5 + $0x10] sm:$0xff]   ;;  %v6943_v42 = vpop.eup %6942 }
 0x282   : > { %v1942_v0 = vsel %vm8471_vm14, %v1854_v52, 0.0  ;;  %v1133_v50 = vmul.f32 %v6939_v17, %v9638_v9  ;;  %v1750_v20 = vsel %vm8480_vm15, %v1661_v45, 0.0  ;;  %v5692_v38 = vpack.c.bf16 %v1766_v39, %v1766_v39  ;;  %v8601_v21 = vld [vmem:[#allocation2 + $0x7c] ss:$12 sps:$4 sm:$0xff]   ;;  %v9649_v14 = vld [vmem:[#allocation18_spill] sm:$0xff]  ;;  %6031 = vmatpush3.bf16.msra.mxu1 %v6700_v33 }
 0x283   : > { %2117 = vst [vmem:[#allocation2 + $0x150] sm:$0xf] %v5690_v7  ;;  %v5739_v28 = vpack.c.bf16 %v1942_v0, %v1942_v0  ;;  %v1134_v47 = vmul.f32 %v6941_v25, %v9639_v46  ;;  %v9641_v12 = vand.u32 15, %v9640_v40  ;;  %v5676_v57 = vpack.c.bf16 %v1750_v20, %v1750_v20  ;;  %v6704_v58 = vld [vmem:[%s9443_s5 + $0x48] sm:$0xff]   ;;  %v9648_v35 = vld [vmem:[#allocation31_spill] sm:$0xff]  ;;  %3072 = vmatprep.mubr.bf16.mxu0 %v8601_v21  ;;  %v6710_v25 = vld [vmem:[%s9443_s5 + $0x40] sm:$0xff]  }
 0x284   : > { %v1815_v61 = vrot.slane %v1133_v50, 1  ;;  %v5709_v37 = vpack.c.bf16 %v1133_v50, %v1133_v50  ;;  %v9645_v11 = vand.u32 15, %v9644_v49  ;;  %2119 = vst [vmem:[#allocation2 + $0x168] sm:$0xf] %v5692_v38  ;;  %v8613_v60 = vmul.f32 %v6943_v42, %v9648_v35  ;;  %v6945_v16 = vpop.eup %6944  ;;  %v9655_v17 = vld [vmem:[#allocation27_spill] sm:$0xff]  ;;  %v9656_v22 = vld [vmem:[#allocation33_spill] sm:$0xff]  ;;  %6032 = vmatprep.subr.bf16.mxu1 %v6704_v58 }
 0x285   : > { %vm8594_vm6 = vcmp.lt.s32.totalorder %v9641_v12, 15  ;;  %2422 = vst [vmem:[#allocation2 + $0xa4] sm:$0xf] %v5739_v28  ;;  %v1816_v6 = vrot.slane %v1134_v47, 1  ;;  %v1622_v27 = vrot.slane %v1133_v50, 7  ;;  %v9650_v48 = vand.u32 15, %v9649_v14  ;;  %v6947_v63 = vpop.eup %6946 }
 0x286   : > { %vm8605_vm7 = vcmp.gt.s32.totalorder %v9645_v11, 0  ;;  %2103 = vst [vmem:[#allocation2 + $0xa8] sm:$0xf] %v5676_v57  ;;  %v1853_v10 = vsel %vm1834_vm2, %v1814_v26, %v1815_v61  ;;  %2264 = vst [vmem:[#allocation2 + $0xb8] sm:$0xf] %v5709_v37  ;;  %v1623_v32 = vrot.slane %v1134_v47, 7  ;;  %v5710_v3 = vpack.c.bf16 %v1134_v47, %v1134_v47 }
 0x287   : > { %vm8617_vm8 = vcmp.gt.s32.totalorder %v9650_v48, 0  ;;  %vm8624_vm9 = vcmp.gt.s32.totalorder %v1323_v29, 0  ;;  %v1852_v36 = vsel %vm1834_vm2, %v1815_v61, %v1816_v6  ;;  %v5740_v7 = vpack.c.bf16 %v1853_v10, %v1853_v10  ;;  %v8632_v8 = vld [vmem:[#allocation2 + $0x78] ss:$12 sps:$4 sm:$0xff]   ;;  %v6707_v26 = vld [vmem:[%s9443_s5 + $0x8] sm:$0xff]  }
 0x288   : > { %v1136_v52 = vmul.f32 %v6945_v16, %v9655_v17  ;;  %v1817_v1 = vrot.slane %v8613_v60, 1  ;;  %v1944_v45 = vsel %vm8527_vm0, %v1852_v36, 0.0  ;;  %v1137_v29 = vmul.f32 %v6947_v63, %v9656_v22  ;;  %2265 = vst [vmem:[#allocation2 + $0xc4] sm:$0xf] %v5710_v3  ;;  %v8650_v50 = vld [vmem:[#allocation2 + $0x94] ss:$12 sps:$4 sm:$0xff]   ;;  %3073 = vmatmul.mubr.bf16.gmra.mxu0 %v8632_v8  ;;  %6033 = vmatpush3.bf16.msra.mxu1 %v6707_v26 }
 0x289   : > { %v1660_v5 = vsel %vm1641_vm4, %v1621_v54, %v1622_v27  ;;  %v1624_v39 = vrot.slane %v8613_v60, 7  ;;  %v5741_v0 = vpack.c.bf16 %v1944_v45, %v1944_v45  ;;  %2423 = vst [vmem:[#allocation2 + $0xb0] sm:$0xf] %v5740_v7  ;;  %v1659_v28 = vsel %vm1641_vm4, %v1622_v27, %v1623_v32  ;;  %3080 = vmatprep.mubr.bf16.mxu0 %v8650_v50  ;;  %v6711_v57 = vld [vmem:[%s9443_s5] sm:$0xff]   ;;  %v8670_v33 = vld [vmem:[%s9443_s5 + $0x238] sm:$0xff]  }
 0x28a   : > { %v1818_v9 = vrot.slane %v1136_v52, 1  ;;  %v1851_v30 = vsel %vm1834_vm2, %v1816_v6, %v1817_v1  ;;  %v5677_v24 = vpack.c.bf16 %v1660_v5, %v1660_v5  ;;  %v1819_v38 = vrot.slane %v1137_v29, 1  ;;  %6034 = vmatprep.subr.bf16.mxu1 %v6710_v25  ;;  %v8685_v16 = vld [vmem:[#allocation2 + $0x90] ss:$12 sps:$4 sm:$0xff]   ;;  %v8719_v45 = vld [vmem:[#allocation2 + $0xf8] ss:$12 sps:$4 sm:$0xff]  }
 0x28b   : > { %v5742_v20 = vpack.c.bf16 %v1851_v30, %v1851_v30  ;;  %v1658_v54 = vsel %vm1641_vm4, %v1623_v32, %v1624_v39  ;;  %2424 = vst [vmem:[#allocation2 + $0xbc] sm:$0xf] %v5741_v0  ;;  %v1752_v47 = vsel %vm8605_vm7, %v1659_v28, 0.0  ;;  %v5711_v12 = vpack.c.bf16 %v8613_v60, %v8613_v60  ;;  %v8721_v22 = vld [vmem:[#allocation2 + $0x110] ss:$12 sps:$4 sm:$0xff]  }
 0x28c   : > { %v1850_v46 = vsel %vm1834_vm2, %v1817_v1, %v1818_v9  ;;  %2104 = vst [vmem:[#allocation2 + $0xb4] sm:$0xf] %v5677_v24  ;;  %v5679_v40 = vpack.c.bf16 %v1658_v54, %v1658_v54  ;;  %v8672_v42 = vld [vmem:[#allocation2 + $0x98] ss:$12 sps:$4 sm:$0xff]   ;;  %v9657_v37 = vrot.slane %v7874_v43, 1  ;;  %v1849_v11 = vsel %vm1834_vm2, %v1818_v9, %v1819_v38  ;;  %6035 = vmatpush3.bf16.msra.mxu1 %v6711_v57  ;;  %v6724_v57 = vld [vmem:[%s9443_s5 + $0x230] sm:$0xff]  }
 0x28d   : > { %v1946_v61 = vsel %vm8573_vm5, %v1850_v46, 0.0  ;;  %2425 = vst [vmem:[#allocation2 + $0xc8] sm:$0xf] %v5742_v20  ;;  %v5678_v13 = vpack.c.bf16 %v1752_v47, %v1752_v47  ;;  %v5744_v35 = vpack.c.bf16 %v1849_v11, %v1849_v11  ;;  %2266 = vst [vmem:[#allocation2 + $0xd0] sm:$0xf] %v5711_v12  ;;  %v1625_v2 = vrot.slane %v1136_v52, 7  ;;  %6427 = vmatmul.mubr.bf16.gmra.mxu1 %v8672_v42 }
 0x28e   : > { %v1848_v49 = vsel %vm1834_vm2, %v1819_v38, %v9657_v37  ;;  %v5743_v58 = vpack.c.bf16 %v1946_v61, %v1946_v61  ;;  %2106 = vst [vmem:[#allocation2 + $0xcc] sm:$0xf] %v5679_v40  ;;  %v1626_v27 = vrot.slane %v1137_v29, 7  ;;  %v5712_v14 = vpack.c.bf16 %v1136_v52, %v1136_v52  ;;  %6498 = vmatprep.subr.bf16.mxu1 %v8670_v33  ;;  %v8703_v1 = vld [vmem:[#allocation2 + $0xac] ss:$12 sps:$4 sm:$0xff]   ;;  %v6949_v54 = vld [vmem:[#allocation2] sm:$0xff] }
 0x28f   : > { %v1948_v6 = vsel %vm8594_vm6, %v1848_v49, 0.0  ;;  %2105 = vst [vmem:[#allocation2 + $0xc0] sm:$0xf] %v5678_v13  ;;  %v5713_v48 = vpack.c.bf16 %v1137_v29, %v1137_v29  ;;  %2427 = vst [vmem:[#allocation2 + $0xe0] sm:$0xf] %v5744_v35  ;;  %v1657_v10 = vsel %vm1641_vm4, %v1624_v39, %v1625_v2  ;;  %v9658_v3 = vrot.slane %v7874_v43, 7 }
 0x290   : > { %v5745_v60 = vpack.c.bf16 %v1948_v6, %v1948_v6  ;;  %2426 = vst [vmem:[#allocation2 + $0xd4] sm:$0xf] %v5743_v58  ;;  %v1656_v56 = vsel %vm1641_vm4, %v1625_v2, %v1626_v27  ;;  %v1754_v32 = vsel %vm8617_vm8, %v1657_v10, 0.0  ;;  %2267 = vst [vmem:[#allocation2 + $0xdc] sm:$0xf] %v5712_v14  ;;  %3081 = vmatmul.mubr.bf16.gmra.mxu0 %v8685_v16  ;;  %v6732_v11 = vld [vmem:[%s9443_s5 + $0x228] sm:$0xff]  }
 0x291   : > { %2268 = vst [vmem:[#allocation2 + $0xe8] sm:$0xf] %v5713_v48  ;;  %v1655_v63 = vsel %vm1641_vm4, %v1626_v27, %v9658_v3  ;;  %v5680_v36 = vpack.c.bf16 %v1754_v32, %v1754_v32  ;;  %v5681_v7 = vpack.c.bf16 %v1656_v56, %v1656_v56  ;;  %3088 = vmatprep.mubr.bf16.mxu0 %v8703_v1  ;;  %v8731_v39 = vld [vmem:[#allocation2 + $0x128] ss:$12 sps:$4 sm:$0xff]   ;;  %v8733_v25 = vld [vmem:[#allocation2 + $0x140] ss:$12 sps:$4 sm:$0xff]  }
 0x292   : > { %2428 = vst [vmem:[#allocation2 + $0xec] sm:$0xf] %v5745_v60  ;;  %v1756_v17 = vsel %vm8624_vm9, %v1655_v63, 0.0  ;;  %v8700_v52 = vld [vmem:[#allocation2 + $0xb0] ss:$12 sps:$4 sm:$0xff]   ;;  %v8755_v28 = vcombine.high %v6949_v54, %v6949_v54  ;;  %v8764_v12 = vcombine.low %v6949_v54, %v6949_v54  ;;  %v6740_v13 = vld [vmem:[%s9443_s5 + $0x220] sm:$0xff]  }
 0x293   : > { %v5682_v34 = vpack.c.bf16 %v1756_v17, %v1756_v17  ;;  %2107 = vst [vmem:[#allocation2 + $0xd8] sm:$0xf] %v5680_v36  ;;  %2108 = vst [vmem:[#allocation2 + $0xe4] sm:$0xf] %v5681_v7  ;;  %6430 = vmatprep.mubr.bf16.mxu1 %v8700_v52  ;;  %v8712_v44 = vld [vmem:[#allocation2 + $0xa8] ss:$12 sps:$4 sm:$0xff]  }
 0x294   : > { %v8715_v26 = vld [vmem:[#allocation2 + $0xc4] ss:$12 sps:$4 sm:$0xff]   ;;  %v8739_v9 = vld [vmem:[#allocation2 + $0xf4] ss:$12 sps:$4 sm:$0xff]   ;;  %v8751_v38 = vld [vmem:[#allocation2 + $0x10c] ss:$12 sps:$4 sm:$0xff]  }
 0x295   : > { %2109 = vst [vmem:[#allocation2 + $0xf0] sm:$0xf] %v5682_v34  ;;  %v8743_v30 = vld [vmem:[#allocation2 + $0x158] ss:$12 sps:$4 sm:$0xff]   ;;  %v8745_v24 = vld [vmem:[#allocation2 + $0x170] ss:$12 sps:$4 sm:$0xff]  }
 0x296   : > { %v8724_v29 = vld [vmem:[#allocation2 + $0xc0] ss:$12 sps:$4 sm:$0xff]   ;;  %v6706_v46 = vld [vmem:[#allocation2 + $0x188] ss:$12 sps:$4 sm:$0xff]   ;;  %v8760_v40 = vld [vmem:[#allocation2 + $0x124] ss:$12 sps:$4 sm:$0xff]  }
 0x297   : > { %v8707_v62 = vld [vmem:[#allocation2 + $0xc8] ss:$12 sps:$4 sm:$0xff]   ;;  %v8770_v61 = vld [vmem:[#allocation2 + $0x120] ss:$12 sps:$4 sm:$0xff]   ;;  %v6951_v58 = vld [vmem:[#allocation2 + $0x18] ss:$12 sps:$4 sm:$0xff]  }
 0x298   : > { %6431 = vmatmul.mubr.bf16.gmra.mxu1 %v8707_v62  ;;  %3089 = vmatmul.mubr.bf16.gmra.mxu0 %v8712_v44  ;;  %v8727_v5 = vld [vmem:[#allocation2 + $0xdc] ss:$12 sps:$4 sm:$0xff]   ;;  %v8786_v6 = vld [vmem:[#allocation2 + $0x154] ss:$12 sps:$4 sm:$0xff]   ;;  %v8800_v60 = vld [vmem:[#allocation2 + $0x16c] ss:$12 sps:$4 sm:$0xff]  }
 0x299   : > { %v8709_v43 = vld [vmem:[#allocation2 + $0xe0] ss:$12 sps:$4 sm:$0xff]   ;;  %3096 = vmatprep.mubr.bf16.mxu0 %v8715_v26  ;;  %v8757_v47 = vld [vmem:[#allocation2 + $0x108] ss:$12 sps:$4 sm:$0xff]   ;;  %v6746_v35 = vld [vmem:[%s9443_s5 + $0x218] sm:$0xff]  }
 0x29a   : > { %6434 = vmatprep.mubr.bf16.mxu1 %v8709_v43  ;;  %v8736_v0 = vld [vmem:[#allocation2 + $0xd8] ss:$12 sps:$4 sm:$0xff]   ;;  %v6950_v37 = vld [vmem:[#allocation2 + $0x1c] ss:$12 sps:$4 sm:$0xff]   ;;  %v6751_v2 = vld [vmem:[%s9443_s5 + $0x210] sm:$0xff]  }
 0x29b   : > { %v8773_v49 = vld [vmem:[#allocation2 + $0x13c] ss:$12 sps:$4 sm:$0xff]   ;;  %v8814_v14 = vld [vmem:[#allocation2 + $0x184] ss:$12 sps:$4 sm:$0xff]   ;;  %v6765_v36 = vld [vmem:[#allocation2 + $0x34] ss:$12 sps:$4 sm:$0xff]  }
 0x29c   : > { %v8748_v20 = vld [vmem:[#allocation2 + $0xf0] ss:$12 sps:$4 sm:$0xff]   ;;  %v6756_v27 = vld [vmem:[%s9443_s5 + $0x208] sm:$0xff]  }
 0x29d   : > { %v8820_v48 = vld [vmem:[%s9446_s8 + $0x8] sm:$0xff]   ;;  %v6744_v10 = vld [vmem:[%s9443_s5 + $0x1b8] sm:$0xff]   ;;  %v6745_v56 = vld [vmem:[%s9443_s5 + $0x1f0] sm:$0xff]  }
 0x29e   : > { %v6758_v32 = vld [vmem:[%s9443_s5 + $0x1c8] sm:$0xff]  }
 0x29f   : > { %v6759_v3 = vld [vmem:[%s9443_s5 + $0x188] sm:$0xff]  }
 0x2a0   : > { %6435 = vmatmul.mubr.bf16.gmra.mxu1 %v8719_v45  ;;  %3097 = vmatmul.mubr.bf16.gmra.mxu0 %v8724_v29 }
 0x2a1   : > { %6438 = vmatprep.mubr.bf16.mxu1 %v8721_v22  ;;  %3104 = vmatprep.mubr.bf16.mxu0 %v8727_v5 }
 0x2a8   : > { %6439 = vmatmul.mubr.bf16.gmra.mxu1 %v8731_v39  ;;  %3105 = vmatmul.mubr.bf16.gmra.mxu0 %v8736_v0 }
 0x2a9   : > { %6442 = vmatprep.mubr.bf16.mxu1 %v8733_v25  ;;  %3112 = vmatprep.mubr.bf16.mxu0 %v8739_v9 }
 0x2b0   : > { %6443 = vmatmul.mubr.bf16.gmra.mxu1 %v8743_v30  ;;  %3113 = vmatmul.mubr.bf16.gmra.mxu0 %v8748_v20 }
 0x2b1   : > { %6446 = vmatprep.mubr.bf16.mxu1 %v8745_v24  ;;  %3120 = vmatprep.mubr.bf16.mxu0 %v8751_v38 }
 0x2b8   : > { %6447 = vmatmul.mubr.bf16.gmra.mxu1 %v6706_v46  ;;  %3121 = vmatmul.mubr.bf16.gmra.mxu0 %v8757_v47  ;;  %v6766_v46 = vld [vmem:[#allocation2 + $0x38] ss:$12 sps:$4 sm:$0xff]  }
 0x2b9   : > { %3522 = vmatprep.mubr.bf16.mxu1 %v8755_v28  ;;  %3128 = vmatprep.mubr.bf16.mxu0 %v8760_v40 }
 0x2c0   : > { %3523 = vmatmul.mubr.bf16.vlgmr.msra.gmra.mxu1 %v8764_v12  ;;  %3129 = vmatmul.mubr.bf16.gmra.mxu0 %v8770_v61 }
 0x2c1   : > { %3530 = vmatprep.mubr.bf16.mxu1 %v6950_v37  ;;  %6499 = vmatpush3.bf16.msra.mxu1 %v8670_v33  ;;  %v8783_v33 = vld [vmem:[#allocation2 + $0x138] ss:$12 sps:$4 sm:$0xff]  }
 0x2c2   : > { %6500 = vmatprep.subr.bf16.mxu1 %v6724_v57  ;;  %3136 = vmatprep.mubr.bf16.mxu0 %v8773_v49 }
 0x2c5   : > { %6501 = vmatpush3.bf16.msra.mxu1 %v6724_v57 }
 0x2c6   : > { %6502 = vmatprep.subr.bf16.mxu1 %v6732_v11 }
 0x2c8   : > { %3531 = vmatmul.mubr.bf16.gmra.mxu1 %v6951_v58  ;;  %3137 = vmatmul.mubr.bf16.gmra.mxu0 %v8783_v33 }
 0x2c9   : > { %3538 = vmatprep.mubr.bf16.mxu1 %v8337_v23  ;;  %6503 = vmatpush3.bf16.msra.mxu1 %v6732_v11  ;;  %v8797_v23 = vld [vmem:[#allocation2 + $0x150] ss:$12 sps:$4 sm:$0xff]  }
 0x2ca   : > { %6504 = vmatprep.subr.bf16.mxu1 %v6740_v13  ;;  %3144 = vmatprep.mubr.bf16.mxu0 %v8786_v6 }
 0x2cd   : > { %6505 = vmatpush3.bf16.msra.mxu1 %v6740_v13  ;;  %v6777_v13 = vld [vmem:[#allocation2 + $0x60] ss:$12 sps:$4 sm:$0xff]  }
 0x2ce   : > { %6506 = vmatprep.subr.bf16.mxu1 %v6746_v35 }
 0x2d0   : > { %3539 = vmatmul.mubr.bf16.gmra.mxu1 %v8352_v55  ;;  %3145 = vmatmul.mubr.bf16.gmra.mxu0 %v8797_v23  ;;  %v6761_v55 = vld [vmem:[%s9443_s5 + $0x200] sm:$0xff]  }
 0x2d1   : > { %3546 = vmatprep.mubr.bf16.mxu1 %v8433_v51  ;;  %6507 = vmatpush3.bf16.msra.mxu1 %v6746_v35  ;;  %v8811_v51 = vld [vmem:[#allocation2 + $0x168] ss:$12 sps:$4 sm:$0xff]  }
 0x2d2   : > { %6508 = vmatprep.subr.bf16.mxu1 %v6751_v2  ;;  %3152 = vmatprep.mubr.bf16.mxu0 %v8800_v60 }
 0x2d5   : > { %6509 = vmatpush3.bf16.msra.mxu1 %v6751_v2  ;;  %v6781_v2 = vld [vmem:[#allocation2 + $0x7c] ss:$12 sps:$4 sm:$0xff]  }
 0x2d6   : > { %6510 = vmatprep.subr.bf16.mxu1 %v6756_v27 }
 0x2d8   : > { %3547 = vmatmul.mubr.bf16.gmra.mxu1 %v8447_v4  ;;  %3153 = vmatmul.mubr.bf16.gmra.mxu0 %v8811_v51  ;;  %v6742_v4 = vld [vmem:[#allocation2 + $0x8] ss:$12 sps:$4 sm:$0xff]  }
 0x2d9   : > { %3554 = vmatprep.mubr.bf16.mxu1 %v8541_v59  ;;  %6511 = vmatpush3.bf16.msra.mxu1 %v6756_v27  ;;  %v8825_v59 = vld [vmem:[#allocation2 + $0x180] ss:$12 sps:$4 sm:$0xff]  }
 0x2da   : > { %6512 = vmatprep.subr.bf16.mxu1 %v6761_v55  ;;  %3160 = vmatprep.mubr.bf16.mxu0 %v8814_v14 }
 0x2dd   : > { %6513 = vmatpush3.bf16.msra.mxu1 %v6761_v55 }
 0x2de   : > { %6546 = vmatprep.subr.bf16.mxu1 %v8820_v48 }
 0x2e0   : > { %3555 = vmatmul.mubr.bf16.gmra.mxu1 %v8562_v19  ;;  %3161 = vmatmul.mubr.bf16.gmra.mxu0 %v8825_v59  ;;  %v6747_v19 = vld [vmem:[%s9443_s5 + $0x1b0] sm:$0xff]  }
 0x2e1   : > { %3562 = vmatprep.mubr.bf16.mxu1 %v8601_v21  ;;  %6466 = vmatprep.mubr.bf16.mxu0 %v6742_v4  ;;  %v6748_v21 = vld [vmem:[%s9443_s5 + $0x1e8] sm:$0xff]  }
 0x2e8   : > { %3563 = vmatmul.mubr.bf16.gmra.mxu1 %v8632_v8  ;;  %6467 = vmatmul.mubr.bf16.vlgmr.msra.gmra.mxu0 %v8324_v31  ;;  %v6749_v8 = vld [vmem:[%s9443_s5 + $0x1a8] sm:$0xff]   ;;  %v6750_v31 = vld [vmem:[%s9443_s5 + $0x1e0] sm:$0xff]  }
 0x2e9   : > { %3570 = vmatprep.mubr.bf16.mxu1 %v8650_v50  ;;  %6157 = vmatpush3.bf16.msra.mxu0 %v6744_v10  ;;  %v6753_v50 = vld [vmem:[%s9443_s5 + $0x1d8] sm:$0xff]  }
 0x2ea   : > { %6470 = vmatprep.mubr.bf16.mxu0 %v8350_v53  ;;  %6158 = vmatprep.subr.bf16.mxu0 %v6745_v56  ;;  %v6752_v53 = vld [vmem:[%s9443_s5 + $0x1a0] sm:$0xff]  }
 0x2ed   : > { %6159 = vmatpush3.bf16.msra.mxu0 %v6747_v19 }
 0x2ee   : > { %6160 = vmatprep.subr.bf16.mxu0 %v6748_v21  ;;  %v6767_v21 = vld [vmem:[#allocation2 + $0x50] ss:$12 sps:$4 sm:$0xff]  }
 0x2f0   : > { %3571 = vmatmul.mubr.bf16.gmra.mxu1 %v8685_v16  ;;  %6471 = vmatmul.mubr.bf16.gmra.mxu0 %v8404_v15  ;;  %v6754_v16 = vld [vmem:[%s9443_s5 + $0x198] sm:$0xff]   ;;  %v6755_v15 = vld [vmem:[%s9443_s5 + $0x1d0] sm:$0xff]  }
 0x2f1   : > { %3578 = vmatprep.mubr.bf16.mxu1 %v8703_v1  ;;  %6474 = vmatprep.mubr.bf16.mxu0 %v8445_v41  ;;  %v6757_v41 = vld [vmem:[%s9443_s5 + $0x190] sm:$0xff]  }
 0x2f2   : > { %6161 = vmatpush3.bf16.msra.mxu0 %v6749_v8 }
 0x2f3   : > { %6162 = vmatprep.subr.bf16.mxu0 %v6750_v31 }
 0x2f6   : > { %6163 = vmatpush3.bf16.msra.mxu0 %v6752_v53  ;;  %v6793_v53 = vld [vmem:[%s9446_s8] sm:$0xff]  }
 0x2f7   : > { %6164 = vmatprep.subr.bf16.mxu0 %v6753_v50  ;;  %v6770_v50 = vld [vmem:[#allocation2 + $0x68] ss:$12 sps:$4 sm:$0xff]  }
 0x2f8   : > { %3579 = vmatmul.mubr.bf16.gmra.mxu1 %v8712_v44  ;;  %6475 = vmatmul.mubr.bf16.gmra.mxu0 %v8513_v18  ;;  %v6760_v18 = vld [vmem:[%s9443_s5 + $0x1c0] sm:$0xff]   ;;  %v6772_v44 = vld [vmem:[#allocation2 + $0x48] ss:$12 sps:$4 sm:$0xff]  }
 0x2f9   : > { %3586 = vmatprep.mubr.bf16.mxu1 %v8715_v26  ;;  %6478 = vmatprep.mubr.bf16.mxu0 %v8672_v42  ;;  %v6762_v42 = vld [vmem:[%s9443_s5 + $0x180] sm:$0xff]  }
 0x2fa   : > { %6165 = vmatpush3.bf16.msra.mxu0 %v6754_v16  ;;  %v6774_v26 = vld [vmem:[#allocation2 + $0x64] ss:$12 sps:$4 sm:$0xff]  }
 0x2fb   : > { %6166 = vmatprep.subr.bf16.mxu0 %v6755_v15  ;;  %v6779_v15 = vld [vmem:[#allocation2 + $0x78] ss:$12 sps:$4 sm:$0xff]  }
 0x2fe   : > { %6167 = vmatpush3.bf16.msra.mxu0 %v6757_v41 }
 0x2ff   : > { %6168 = vmatprep.subr.bf16.mxu0 %v6758_v32 }
 0x300   : > { %3587 = vmatmul.mubr.bf16.gmra.mxu1 %v8724_v29  ;;  %6479 = vmatmul.mubr.bf16.gmra.mxu0 %v8700_v52 }
 0x301   : > { %3594 = vmatprep.mubr.bf16.mxu1 %v8727_v5  ;;  %6482 = vmatprep.mubr.bf16.mxu0 %v8707_v62  ;;  %v6763_v62 = vld [vmem:[#allocation2 + $0x30] ss:$12 sps:$4 sm:$0xff]  }
 0x302   : > { %6169 = vmatpush3.bf16.msra.mxu0 %v6759_v3  ;;  %v6786_v3 = vld [vmem:[#allocation2 + $0x94] ss:$12 sps:$4 sm:$0xff]  }
 0x303   : > { %6170 = vmatprep.subr.bf16.mxu0 %v6760_v18 }
 0x306   : > { %6171 = vmatpush3.bf16.msra.mxu0 %v6762_v42 }
 0x308   : > { %3595 = vmatmul.mubr.bf16.gmra.mxu1 %v8736_v0  ;;  %6483 = vmatmul.mubr.bf16.gmra.mxu0 %v8709_v43  ;;  %v6768_v43 = vld [vmem:[#allocation2 + $0x4c] ss:$12 sps:$4 sm:$0xff]  }
 0x309   : > { %3602 = vmatprep.mubr.bf16.mxu1 %v8739_v9  ;;  %6486 = vmatprep.mubr.bf16.mxu0 %v8719_v45 }
 0x310   : > { %3603 = vmatmul.mubr.bf16.gmra.mxu1 %v8748_v20  ;;  %6487 = vmatmul.mubr.bf16.gmra.mxu0 %v8721_v22 }
 0x311   : > { %3610 = vmatprep.mubr.bf16.mxu1 %v8751_v38  ;;  %6490 = vmatprep.mubr.bf16.mxu0 %v8731_v39 }
 0x312   : > { %v5900_v63 = vpop.f32.mrf.mxu0 }
 0x314   : > { %v5901_v7 = vpop.f32.mrf.mxu0 }
 0x315   : > { %v5902_v17 = vadd.f32 %v5901_v7, %v5900_v63 }
 0x316   : > { %v5903_v52 = vpop.f32.mrf.mxu0 }
 0x318   : > { %3611 = vmatmul.mubr.bf16.gmra.mxu1 %v8757_v47  ;;  %6491 = vmatmul.mubr.bf16.gmra.mxu0 %v8733_v25  ;;  %v5904_v34 = vpop.f32.mrf.mxu0 }
 0x319   : > { %3618 = vmatprep.mubr.bf16.mxu1 %v8760_v40  ;;  %6494 = vmatprep.mubr.bf16.mxu0 %v8743_v30  ;;  %v5905_v1 = vadd.f32 %v5904_v34, %v5903_v52  ;;  %v6776_v34 = vld [vmem:[#allocation2 + $0x98] ss:$12 sps:$4 sm:$0xff]  }
 0x320   : > { %3619 = vmatmul.mubr.bf16.gmra.mxu1 %v8770_v61  ;;  %6495 = vmatmul.mubr.bf16.gmra.mxu0 %v8745_v24 }
 0x321   : > { %3626 = vmatprep.mubr.bf16.mxu1 %v8773_v49  ;;  %4357 = vmatprep.mubr.bf16.mxu0 %v6765_v36 }
 0x328   : > { %3627 = vmatmul.mubr.bf16.gmra.mxu1 %v8783_v33  ;;  %4358 = vmatmul.mubr.bf16.vlgmr.msra.gmra.mxu0 %v6763_v62  ;;  %v6784_v62 = vld [vmem:[#allocation2 + $0x90] ss:$12 sps:$4 sm:$0xff]  }
 0x329   : > { %3634 = vmatprep.mubr.bf16.mxu1 %v8786_v6  ;;  %4365 = vmatprep.mubr.bf16.mxu0 %v6768_v43 }
 0x32d   : > { %v6420_v45 = vpop.f32.mrf.mxu1  ;;  %v5906_v22 = vpop.f32.mrf.mxu0 }
 0x32f   : > { %v3203_v29 = vpop.f32.mrf.mxu1  ;;  %v5907_v39 = vpop.f32.mrf.mxu0 }
 0x330   : > { %3635 = vmatmul.mubr.bf16.gmra.mxu1 %v8797_v23  ;;  %4366 = vmatmul.mubr.bf16.gmra.mxu0 %v6772_v44  ;;  %v8909_v25 = vadd.f32 %v5902_v17, %v3203_v29  ;;  %v5908_v30 = vadd.f32 %v5907_v39, %v5906_v22  ;;  %v6773_v17 = vld [vmem:[#allocation2 + $0x80] ss:$12 sps:$4 sm:$0xff]  }
 0x331   : > { %3642 = vmatprep.mubr.bf16.mxu1 %v8800_v60  ;;  %4373 = vmatprep.mubr.bf16.mxu0 %v6774_v26  ;;  %v6421_v24 = vpop.f32.mrf.mxu1  ;;  %v5909_v54 = vpop.f32.mrf.mxu0  ;;  %v6791_v44 = vld [vmem:[#allocation2 + $0xac] ss:$12 sps:$4 sm:$0xff]  }
 0x332   : > { %v8911_v57 = vadd.f32 %v6420_v45, %v5908_v30  ;;  %v6778_v30 = vld [vmem:[#allocation2 + $0xb0] ss:$12 sps:$4 sm:$0xff]  }
 0x333   : > { %v3206_v37 = vpop.f32.mrf.mxu1  ;;  %v5910_v11 = vpop.f32.mrf.mxu0 }
 0x334   : > { %v8914_v58 = vadd.f32 %v5905_v1, %v3206_v37  ;;  %v5911_v35 = vadd.f32 %v5910_v11, %v5909_v54  ;;  %v6782_v54 = vld [vmem:[#allocation2 + $0xc8] ss:$12 sps:$4 sm:$0xff]  }
 0x335   : > { %v6424_v27 = vpop.f32.mrf.mxu1  ;;  %v5912_v55 = vpop.f32.mrf.mxu0  ;;  %v6789_v37 = vld [vmem:[#allocation2 + $0xa8] ss:$12 sps:$4 sm:$0xff]  }
 0x336   : > { %v8916_v4 = vadd.f32 %v6421_v24, %v5911_v35 }
 0x337   : > { %v3219_v10 = vpop.f32.mrf.mxu1  ;;  %v5913_v56 = vpop.f32.mrf.mxu0 }
 0x338   : > { %3643 = vmatmul.mubr.bf16.gmra.mxu1 %v8811_v51  ;;  %4374 = vmatmul.mubr.bf16.gmra.mxu0 %v6777_v13  ;;  %v5914_v19 = vadd.f32 %v5913_v56, %v5912_v55 }
 0x339   : > { %6514 = vmatprep.mubr.bf16.mxu1 %v6766_v46  ;;  %4381 = vmatprep.mubr.bf16.mxu0 %v6781_v2  ;;  %v6425_v8 = vpop.f32.mrf.mxu1  ;;  %v5915_v31 = vpop.f32.mrf.mxu0  ;;  %v6797_v2 = vld [vmem:[#allocation2 + $0xc4] ss:$12 sps:$4 sm:$0xff]  }
 0x33a   : > { %v8921_v16 = vadd.f32 %v5914_v19, %v3219_v10 }
 0x33b   : > { %v5916_v41 = vpop.f32.mrf.mxu0  ;;  %v3222_v18 = vpop.f32.mrf.mxu1 }
 0x33c   : > { %v5917_v32 = vadd.f32 %v5916_v41, %v5915_v31  ;;  %v6795_v41 = vld [vmem:[#allocation2 + $0xc0] ss:$12 sps:$4 sm:$0xff]  }
 0x33d   : > { %v5918_v42 = vpop.f32.mrf.mxu0 }
 0x33e   : > { %v8924_v63 = vadd.f32 %v5917_v32, %v3222_v18 }
 0x33f   : > { %v5919_v36 = vpop.f32.mrf.mxu0 }
 0x340   : > { %6515 = vmatmul.mubr.bf16.vlgmr.msra.gmra.mxu1 %v6767_v21  ;;  %4382 = vmatmul.mubr.bf16.gmra.mxu0 %v6779_v15  ;;  %v5920_v7 = vadd.f32 %v5919_v36, %v5918_v42 }
 0x341   : > { %6518 = vmatprep.mubr.bf16.mxu1 %v6770_v50  ;;  %6547 = vmatpush3.bf16.msra.mxu1 %v8820_v48  ;;  %v5921_v52 = vpop.f32.mrf.mxu0 }
 0x342   : > { %6548 = vmatprep.subr.bf16.mxu1 %v6793_v53  ;;  %4389 = vmatprep.mubr.bf16.mxu0 %v6786_v3  ;;  %v8926_v1 = vadd.f32 %v6424_v27, %v5920_v7 }
 0x343   : > { %v5922_v48 = vpop.f32.mrf.mxu0 }
 0x344   : > { %v5923_v43 = vadd.f32 %v5922_v48, %v5921_v52 }
 0x345   : > { %6549 = vmatpush3.bf16.msra.mxu1 %v6793_v53  ;;  %v6787_v53 = vld [vmem:[#allocation2 + $0xf8] ss:$12 sps:$4 sm:$0xff]  }
 0x346   : > { %v8928_v45 = vadd.f32 %v6425_v8, %v5923_v43  ;;  %v6783_v8 = vld [vmem:[#allocation2 + $0xe0] ss:$12 sps:$4 sm:$0xff]   ;;  %v6792_v43 = vld [vmem:[#allocation2 + $0x128] ss:$12 sps:$4 sm:$0xff]  }
 0x348   : > { %6519 = vmatmul.mubr.bf16.gmra.mxu1 %v6773_v17  ;;  %v5924_v26 = vpop.f32.mrf.mxu0  ;;  %4390 = vmatmul.mubr.bf16.gmra.mxu0 %v6784_v62  ;;  %v6788_v62 = vld [vmem:[#allocation2 + $0x110] ss:$12 sps:$4 sm:$0xff]  }
 0x349   : > { %6522 = vmatprep.mubr.bf16.mxu1 %v6776_v34  ;;  %4397 = vmatprep.mubr.bf16.mxu0 %v6791_v44 }
 0x34a   : > { %v5925_v22 = vpop.f32.mrf.mxu0 }
 0x34b   : > { %v5926_v29 = vadd.f32 %v5925_v22, %v5924_v26 }
 0x34c   : > { %v5927_v24 = vpop.f32.mrf.mxu0 }
 0x34d   : > { %v6428_v39 = vpop.f32.mrf.mxu1 }
 0x34e   : > { %v5928_v11 = vpop.f32.mrf.mxu0 }
 0x34f   : > { %v3235_v46 = vpop.f32.mrf.mxu1  ;;  %v5929_v35 = vadd.f32 %v5928_v11, %v5927_v24  ;;  %v6794_v11 = vld [vmem:[#allocation2 + $0x140] ss:$12 sps:$4 sm:$0xff]  }
 0x350   : > { %6523 = vmatmul.mubr.bf16.gmra.mxu1 %v6778_v30  ;;  %v8930_v13 = vadd.f32 %v5926_v29, %v3235_v46  ;;  %v5930_v55 = vpop.f32.mrf.mxu0  ;;  %4398 = vmatmul.mubr.bf16.gmra.mxu0 %v6789_v37 }
 0x351   : > { %6526 = vmatprep.mubr.bf16.mxu1 %v6782_v54  ;;  %v6429_v27 = vpop.f32.mrf.mxu1  ;;  %4405 = vmatprep.mubr.bf16.mxu0 %v6797_v2  ;;  %v6798_v2 = vld [vmem:[#allocation2 + $0x158] ss:$12 sps:$4 sm:$0xff]  }
 0x352   : > { %v5931_v56 = vpop.f32.mrf.mxu0 }
 0x353   : > { %v3238_v10 = vpop.f32.mrf.mxu1  ;;  %v5932_v21 = vadd.f32 %v5931_v56, %v5930_v55 }
 0x354   : > { %v8932_v19 = vadd.f32 %v5929_v35, %v3238_v10  ;;  %v5933_v31 = vpop.f32.mrf.mxu0 }
 0x355   : > { %v8934_v50 = vadd.f32 %v6428_v39, %v5932_v21 }
 0x356   : > { %v5934_v32 = vpop.f32.mrf.mxu0 }
 0x357   : > { %v5935_v3 = vadd.f32 %v5934_v32, %v5933_v31 }
 0x358   : > { %v6432_v15 = vpop.f32.mrf.mxu1  ;;  %6527 = vmatmul.mubr.bf16.gmra.mxu1 %v6783_v8  ;;  %v5936_v42 = vpop.f32.mrf.mxu0  ;;  %4406 = vmatmul.mubr.bf16.gmra.mxu0 %v6795_v41  ;;  %v6799_v41 = vld [vmem:[#allocation2 + $0x170] ss:$12 sps:$4 sm:$0xff]  }
 0x359   : > { %6530 = vmatprep.mubr.bf16.mxu1 %v6787_v53  ;;  %v8936_v36 = vadd.f32 %v6429_v27, %v5935_v3  ;;  %4413 = vmatprep.mubr.bf16.mxu0 %v8727_v5  ;;  %v6800_v3 = vld [vmem:[#allocation2 + $0x188] ss:$12 sps:$4 sm:$0xff]  }
 0x35a   : > { %v3251_v18 = vpop.f32.mrf.mxu1  ;;  %v5937_v17 = vpop.f32.mrf.mxu0 }
 0x35b   : > { %v5938_v52 = vadd.f32 %v5937_v17, %v5936_v42 }
 0x35c   : > { %v6433_v7 = vpop.f32.mrf.mxu1  ;;  %v5939_v48 = vpop.f32.mrf.mxu0 }
 0x35d   : > { %v8939_v44 = vadd.f32 %v5938_v52, %v3251_v18 }
 0x35e   : > { %v3254_v34 = vpop.f32.mrf.mxu1  ;;  %v5940_v22 = vpop.f32.mrf.mxu0 }
 0x35f   : > { %v5941_v29 = vadd.f32 %v5940_v22, %v5939_v48 }
 0x360   : > { %v6436_v26 = vpop.f32.mrf.mxu1  ;;  %6531 = vmatmul.mubr.bf16.gmra.mxu1 %v6788_v62  ;;  %v5942_v30 = vpop.f32.mrf.mxu0  ;;  %4414 = vmatmul.mubr.bf16.gmra.mxu0 %v8736_v0  ;;  %v6801_v62 = vld [vmem:[#allocation2 + $0x1a0] ss:$12 sps:$4 sm:$0xff]  }
 0x361   : > { %6534 = vmatprep.mubr.bf16.mxu1 %v6792_v43  ;;  %v8942_v24 = vadd.f32 %v5941_v29, %v3254_v34  ;;  %4421 = vmatprep.mubr.bf16.mxu0 %v8739_v9  ;;  %v6802_v43 = vld [vmem:[%s7358_s17] sm:$0xff]  }
 0x362   : > { %v3267_v39 = vpop.f32.mrf.mxu1  ;;  %v5943_v54 = vpop.f32.mrf.mxu0 }
 0x363   : > { %v5944_v46 = vadd.f32 %v5943_v54, %v5942_v30 }
 0x364   : > { %v6437_v5 = vpop.f32.mrf.mxu1  ;;  %v5945_v35 = vpop.f32.mrf.mxu0 }
 0x365   : > { %v8945_v27 = vadd.f32 %v6432_v15, %v5944_v46 }
 0x366   : > { %v3270_v37 = vpop.f32.mrf.mxu1  ;;  %v5946_v10 = vpop.f32.mrf.mxu0 }
 0x367   : > { %v5947_v56 = vadd.f32 %v5946_v10, %v5945_v35  ;;  %v6804_v10 = vld [vmem:[%s7358_s17 + $0x10] sm:$0xff]  }
 0x368   : > { %v8947_v55 = vpop.f32.mrf.mxu1  ;;  %6535 = vmatmul.mubr.bf16.gmra.mxu1 %v6794_v11  ;;  %v5948_v21 = vpop.f32.mrf.mxu0  ;;  %4422 = vmatmul.mubr.bf16.gmra.mxu0 %v8748_v20 }
 0x369   : > { %6538 = vmatprep.mubr.bf16.mxu1 %v6798_v2  ;;  %v8950_v9 = vadd.f32 %v6433_v7, %v5947_v56  ;;  %4429 = vmatprep.mubr.bf16.mxu0 %v8751_v38 }
 0x36a   : > { %v3283_v0 = vpop.f32.mrf.mxu1  ;;  %v5949_v31 = vpop.f32.mrf.mxu0 }
 0x36b   : > { %v5950_v53 = vadd.f32 %v5949_v31, %v5948_v21 }
 0x36c   : > { %v8953_v8 = vpop.f32.mrf.mxu1  ;;  %v5951_v32 = vpop.f32.mrf.mxu0 }
 0x36d   : > { %v8955_v18 = vadd.f32 %v5950_v53, %v3267_v39 }
 0x36e   : > { %v3286_v15 = vpop.f32.mrf.mxu1  ;;  %v5952_v17 = vpop.f32.mrf.mxu0 }
 0x36f   : > { %v5953_v20 = vadd.f32 %v5952_v17, %v5951_v32 }
 0x370   : > { %v8957_v42 = vpop.f32.mrf.mxu1  ;;  %6539 = vmatmul.mubr.bf16.gmra.mxu1 %v6799_v41  ;;  %v5954_v38 = vpop.f32.mrf.mxu0  ;;  %4430 = vmatmul.mubr.bf16.gmra.mxu0 %v8757_v47 }
 0x371   : > { %6542 = vmatprep.mubr.bf16.mxu1 %v6800_v3  ;;  %v8962_v52 = vadd.f32 %v5953_v20, %v3270_v37  ;;  %4437 = vmatprep.mubr.bf16.mxu0 %v8760_v40 }
 0x372   : > { %v8959_v7 = vpop.f32.mrf.mxu1  ;;  %v5955_v48 = vpop.f32.mrf.mxu0 }
 0x373   : > { %v5956_v22 = vadd.f32 %v5955_v48, %v5954_v38  ;;  %v6805_v38 = vld [vmem:[%s7358_s17 + $0x18] sm:$0xff]  }
 0x374   : > { %v8965_v34 = vpop.f32.mrf.mxu1  ;;  %v5957_v39 = vpop.f32.mrf.mxu0 }
 0x375   : > { %v8970_v30 = vadd.f32 %v6436_v26, %v5956_v22  ;;  %v6803_v26 = vld [vmem:[%s7358_s17 + $0x8] sm:$0xff]  }
 0x376   : > { %v8968_v29 = vpop.f32.mrf.mxu1  ;;  %v5958_v47 = vpop.f32.mrf.mxu0 }
 0x377   : > { %v5959_v40 = vadd.f32 %v5958_v47, %v5957_v39 }
 0x378   : > { %v8972_v54 = vpop.f32.mrf.mxu1  ;;  %6543 = vmatmul.mubr.bf16.gmra.mxu1 %v6801_v62  ;;  %v5960_v37 = vpop.f32.mrf.mxu0  ;;  %4438 = vmatmul.mubr.bf16.gmra.mxu0 %v8770_v61  ;;  %v6806_v62 = vld [vmem:[%s7358_s17 + $0x20] sm:$0xff]  }
 0x379   : > { %6550 = vmatprep.mubr.msk.bf16.mxu1 %vm702_vm1, %v6802_v43  ;;  %v8978_v11 = vadd.f32 %v6437_v5, %v5959_v40  ;;  %4445 = vmatprep.mubr.bf16.mxu0 %v8773_v49 }
 0x37a   : > { %v8975_v46 = vpop.f32.mrf.mxu1  ;;  %v5961_v2 = vpop.f32.mrf.mxu0 }
 0x37b   : > { %v5962_v56 = vadd.f32 %v5961_v2, %v5960_v37 }
 0x37c   : > { %v8981_v35 = vpop.f32.mrf.mxu1  ;;  %v5963_v31 = vpop.f32.mrf.mxu0 }
 0x37d   : > { %v8987_v53 = vadd.f32 %v5962_v56, %v3283_v0  ;;  %v6807_v56 = vld [vmem:[%s7358_s17 + $0x28] sm:$0xff]  }
 0x37e   : > { %v8985_v21 = vpop.f32.mrf.mxu1  ;;  %v5964_v61 = vpop.f32.mrf.mxu0 }
 0x37f   : > { %v5965_v49 = vadd.f32 %v5964_v61, %v5963_v31 }
 0x380   : > { %v6036_v41 = vpop.f32.mrf.mxu1  ;;  %6551 = vmatmul.mubr.msk.bf16.vlgmr.msra.gmra.mxu1 %vm702_vm1, %v6803_v26  ;;  %v5966_v32 = vpop.f32.mrf.mxu0  ;;  %4446 = vmatmul.mubr.bf16.gmra.mxu0 %v8783_v33 }
 0x381   : > { %6554 = vmatprep.mubr.msk.bf16.mxu1 %vm702_vm1, %v6804_v10  ;;  %v8992_v17 = vadd.f32 %v5965_v49, %v3286_v15  ;;  %4453 = vmatprep.mubr.bf16.mxu0 %v8786_v6 }
 0x382   : > { %v6037_v5 = vpop.f32.mrf.mxu1  ;;  %v5967_v0 = vpop.f32.mrf.mxu0 }
 0x383   : > { %v6038_v3 = vadd.f32 %v6037_v5, %v6036_v41  ;;  %v5968_v48 = vadd.f32 %v5967_v0, %v5966_v32  ;;  %v6808_v41 = vld [vmem:[%s7358_s17 + $0x30] sm:$0xff]  }
 0x384   : > { %v6039_v20 = vpop.f32.mrf.mxu1  ;;  %v5969_v39 = vpop.f32.mrf.mxu0 }
 0x385   : > { %v8998_v43 = vadd.f32 %v6038_v3, %v8909_v25  ;;  %v9001_v40 = vadd.f32 %v8947_v55, %v5968_v48  ;;  %v6809_v48 = vld [vmem:[%s7358_s17 + $0x38] sm:$0xff]  }
 0x386   : > { %v6040_v22 = vpop.f32.mrf.mxu1  ;;  %v5970_v6 = vpop.f32.mrf.mxu0 }
 0x387   : > { %v6041_v47 = vadd.f32 %v6040_v22, %v6039_v20  ;;  %v5971_v15 = vadd.f32 %v5970_v6, %v5969_v39  ;;  %v6810_v39 = vld [vmem:[%s7358_s17 + $0x40] sm:$0xff]  }
 0x388   : > { %v6042_v33 = vpop.f32.mrf.mxu1  ;;  %6555 = vmatmul.mubr.msk.bf16.gmra.mxu1 %vm702_vm1, %v6805_v38  ;;  %v5972_v26 = vpop.f32.mrf.mxu0  ;;  %4454 = vmatmul.mubr.bf16.gmra.mxu0 %v8797_v23 }
 0x389   : > { %6558 = vmatprep.mubr.msk.bf16.mxu1 %vm702_vm1, %v6806_v62  ;;  %v9006_v37 = vadd.f32 %v6041_v47, %v8914_v58  ;;  %v9010_v10 = vadd.f32 %v8953_v8, %v5971_v15  ;;  %4461 = vmatprep.mubr.bf16.mxu0 %v8800_v60 }
 0x38a   : > { %v6043_v25 = vpop.f32.mrf.mxu1  ;;  %v5973_v31 = vpop.f32.mrf.mxu0 }
 0x38b   : > { %v6044_v2 = vadd.f32 %v6043_v25, %v6042_v33  ;;  %v5974_v61 = vadd.f32 %v5973_v31, %v5972_v26  ;;  %v6811_v31 = vld [vmem:[%s7358_s17 + $0x48] sm:$0xff]  }
 0x38c   : > { %v6045_v55 = vpop.f32.mrf.mxu1  ;;  %v5975_v5 = vpop.f32.mrf.mxu0 }
 0x38d   : > { %v9016_v49 = vadd.f32 %v6044_v2, %v8911_v57  ;;  %v9019_v23 = vadd.f32 %v5974_v61, %v8959_v7  ;;  %v6812_v61 = vld [vmem:[%s7358_s17 + $0x50] sm:$0xff]  }
 0x38e   : > { %v6046_v58 = vpop.f32.mrf.mxu1  ;;  %v5976_v60 = vpop.f32.mrf.mxu0 }
 0x38f   : > { %v6047_v32 = vadd.f32 %v6046_v58, %v6045_v55  ;;  %v5977_v3 = vadd.f32 %v5976_v60, %v5975_v5 }
 0x390   : > { %v6048_v8 = vpop.f32.mrf.mxu1  ;;  %6559 = vmatmul.mubr.msk.bf16.gmra.mxu1 %vm702_vm1, %v6807_v56  ;;  %v5978_v38 = vpop.f32.mrf.mxu0  ;;  %4462 = vmatmul.mubr.bf16.gmra.mxu0 %v8811_v51 }
 0x391   : > { %6562 = vmatprep.mubr.msk.bf16.mxu1 %vm702_vm1, %v6808_v41  ;;  %v9024_v20 = vadd.f32 %v6047_v32, %v8916_v4  ;;  %v9028_v62 = vadd.f32 %v5977_v3, %v8968_v29  ;;  %4469 = vmatprep.mubr.bf16.mxu0 %v8814_v14 }
 0x392   : > { %v6049_v57 = vpop.f32.mrf.mxu1  ;;  %v5979_v22 = vpop.f32.mrf.mxu0 }
 0x393   : > { %v6050_v0 = vadd.f32 %v6049_v57, %v6048_v8  ;;  %v5980_v47 = vadd.f32 %v5979_v22, %v5978_v38  ;;  %v6814_v22 = vld [vmem:[%s7358_s17 + $0x60] sm:$0xff]  }
 0x394   : > { %v6051_v7 = vpop.f32.mrf.mxu1  ;;  %v5981_v6 = vpop.f32.mrf.mxu0 }
 0x395   : > { %v9034_v33 = vadd.f32 %v6050_v0, %v8921_v16  ;;  %v9037_v51 = vadd.f32 %v8957_v42, %v5980_v47 }
 0x396   : > { %v6052_v4 = vpop.f32.mrf.mxu1  ;;  %v5982_v14 = vpop.f32.mrf.mxu0 }
 0x397   : > { %v6053_v15 = vadd.f32 %v6052_v4, %v6051_v7  ;;  %v5983_v25 = vadd.f32 %v5982_v14, %v5981_v6 }
 0x398   : > { %v6054_v29 = vpop.f32.mrf.mxu1  ;;  %6563 = vmatmul.mubr.msk.bf16.gmra.mxu1 %vm702_vm1, %v6809_v48  ;;  %v5984_v2 = vpop.f32.mrf.mxu0  ;;  %4470 = vmatmul.mubr.bf16.gmra.mxu0 %v8825_v59 }
 0x399   : > { %6566 = vmatprep.mubr.msk.bf16.mxu1 %vm702_vm1, %v6810_v39  ;;  %v9042_v26 = vadd.f32 %v6053_v15, %v8924_v63  ;;  %v9046_v56 = vadd.f32 %v8965_v34, %v5983_v25  ;;  %4477 = vmatprep.mubr.bf16.mxu0 %v8755_v28 }
 0x39a   : > { %v6055_v16 = vpop.f32.mrf.mxu1  ;;  %v5985_v41 = vpop.f32.mrf.mxu0 }
 0x39b   : > { %v6056_v55 = vadd.f32 %v6055_v16, %v6054_v29  ;;  %v5986_v58 = vadd.f32 %v5985_v41, %v5984_v2  ;;  %v6816_v41 = vld [vmem:[%s7358_s17 + $0x70] sm:$0xff]  }
 0x39c   : > { %v6057_v42 = vpop.f32.mrf.mxu1  ;;  %v5987_v63 = vpop.f32.mrf.mxu0 }
 0x39d   : > { %v3549_v5 = vadd.f32 %v6056_v55, %v8926_v1  ;;  %v9053_v59 = vadd.f32 %v5986_v58, %v8975_v46  ;;  %v6813_v46 = vld [vmem:[%s7358_s17 + $0x58] sm:$0xff]  }
 0x39e   : > { %v6058_v32 = vpop.f32.mrf.mxu1  ;;  %v5988_v34 = vpop.f32.mrf.mxu0 }
 0x39f   : > { %v6059_v8 = vadd.f32 %v6058_v32, %v6057_v42  ;;  %v5989_v28 = vadd.f32 %v5988_v34, %v5987_v63  ;;  %v6815_v42 = vld [vmem:[%s7358_s17 + $0x68] sm:$0xff]  }
 0x3a0   : > { %v6060_v60 = vpop.f32.mrf.mxu1  ;;  %6567 = vmatmul.mubr.msk.bf16.gmra.mxu1 %vm702_vm1, %v6811_v31  ;;  %v5990_v38 = vpop.f32.mrf.mxu0  ;;  %4478 = vmatmul.mubr.bf16.gmra.mxu0 %v8764_v12 }
 0x3a1   : > { %6570 = vmatprep.mubr.msk.bf16.mxu1 %vm702_vm1, %v6812_v61  ;;  %v3552_v3 = vadd.f32 %v6059_v8, %v8928_v45  ;;  %v9060_v0 = vadd.f32 %v5989_v28, %v8985_v21 }
 0x3a2   : > { %v6061_v57 = vpop.f32.mrf.mxu1  ;;  %v5991_v48 = vpop.f32.mrf.mxu0 }
 0x3a3   : > { %v6062_v1 = vadd.f32 %v6061_v57, %v6060_v60  ;;  %v5992_v39 = vadd.f32 %v5991_v48, %v5990_v38 }
 0x3a4   : > { %v6063_v7 = vpop.f32.mrf.mxu1  ;;  %v5993_v6 = vpop.f32.mrf.mxu0 }
 0x3a5   : > { %v3557_v47 = vadd.f32 %v6062_v1, %v8930_v13  ;;  %v9066_v45 = vadd.f32 %v8972_v54, %v5992_v39  ;;  %v6817_v1 = vld [vmem:[%s7358_s17 + $0x78] sm:$0xff]   ;;  %s7017_s17 = smov [#allocation3]  }
 0x3a6   : > { %v6064_v4 = vpop.f32.mrf.mxu1  ;;  %v5994_v21 = vpop.f32.mrf.mxu0  ;;  %s6956_s22 = sshll.u32 %s7017_s17, 4  ;;  %s6957_s22 = int_to_ptr.vmem [resolvable:$false] %s6956_s22 }
 0x3a7   : > { %v6065_v15 = vadd.f32 %v6064_v4, %v6063_v7  ;;  %v5995_v29 = vadd.f32 %v5994_v21, %v5993_v6  ;;  %p6959_p0 = scmp.lt.s32.totalorder %s9392_s29, %s6957_s22 }
 0x3a8   : > { %v6066_v12 = vpop.f32.mrf.mxu1  ;;  %6571 = vmatmul.mubr.msk.bf16.gmra.mxu1 %vm702_vm1, %v6813_v46  ;;  %v6468_v16 = vpop.f32.mrf.mxu0 }
 0x3a9   : > { %6574 = vmatprep.mubr.msk.bf16.mxu1 %vm702_vm1, %v6814_v22  ;;  %v3560_v14 = vadd.f32 %v6065_v15, %v8932_v19  ;;  %v9072_v2 = vadd.f32 %v8981_v35, %v5995_v29  ;;  %v9075_v55 = vadd.f32 %v6468_v16, %v9016_v49 }
 0x3aa   : > { %v6067_v25 = vpop.f32.mrf.mxu1  ;;  %v3685_v31 = vpop.f32.mrf.mxu0 }
 0x3ab   : > { %v6068_v13 = vadd.f32 %v6067_v25, %v6066_v12  ;;  %v9080_v61 = vadd.f32 %v3685_v31, %v8998_v43 }
 0x3ac   : > { %v6069_v54 = vpop.f32.mrf.mxu1  ;;  %v6469_v32 = vpop.f32.mrf.mxu0 }
 0x3ad   : > { %v3565_v58 = vadd.f32 %v6068_v13, %v8934_v50  ;;  %v9084_v8 = vadd.f32 %v6469_v32, %v9024_v20 }
 0x3ae   : > { %v6070_v19 = vpop.f32.mrf.mxu1  ;;  %v3688_v49 = vpop.f32.mrf.mxu0 }
 0x3af   : > { %v6071_v63 = vadd.f32 %v6070_v19, %v6069_v54  ;;  %v9089_v60 = vadd.f32 %v3688_v49, %v9006_v37 }
 0x3b0   : > { %v6072_v35 = vpop.f32.mrf.mxu1  ;;  %6575 = vmatmul.mubr.msk.bf16.gmra.mxu1 %vm702_vm1, %v6815_v42  ;;  %v6472_v50 = vpop.f32.mrf.mxu0 }
 0x3b1   : > { %6578 = vmatprep.mubr.msk.bf16.mxu1 %vm702_vm1, %v6816_v41  ;;  %v3568_v43 = vadd.f32 %v6071_v63, %v8936_v36  ;;  %v9092_v57 = vadd.f32 %v6472_v50, %v3549_v5 }
 0x3b2   : > { %v6073_v34 = vpop.f32.mrf.mxu1  ;;  %v3701_v20 = vpop.f32.mrf.mxu0 }
 0x3b3   : > { %v6074_v28 = vadd.f32 %v6073_v34, %v6072_v35  ;;  %v9096_v7 = vadd.f32 %v3701_v20, %v9034_v33 }
 0x3b4   : > { %v6075_v38 = vpop.f32.mrf.mxu1  ;;  %v6473_v22 = vpop.f32.mrf.mxu0 }
 0x3b5   : > { %v3573_v46 = vadd.f32 %v6074_v28, %v8939_v44  ;;  %v9099_v37 = vadd.f32 %v6473_v22, %v3552_v3 }
 0x3b6   : > { %v6076_v48 = vpop.f32.mrf.mxu1  ;;  %v3704_v36 = vpop.f32.mrf.mxu0 }
 0x3b7   : > { %v6077_v39 = vadd.f32 %v6076_v48, %v6075_v38  ;;  %v9103_v5 = vadd.f32 %v3704_v36, %v9042_v26 }
 0x3b8   : > { %v6078_v4 = vpop.f32.mrf.mxu1  ;;  %6579 = vmatmul.mubr.msk.bf16.gmra.mxu1 %vm702_vm1, %v6817_v1  ;;  %v6476_v12 = vpop.f32.mrf.mxu0 }
 0x3b9   : > { %v3576_v6 = vadd.f32 %v6077_v39, %v8942_v24  ;;  %v9106_v21 = vadd.f32 %v6476_v12, %v3565_v58 }
 0x3ba   : > { %v6079_v15 = vpop.f32.mrf.mxu1  ;;  %v3717_v29 = vpop.f32.mrf.mxu0 }
 0x3bb   : > { %v6080_v33 = vadd.f32 %v6079_v15, %v6078_v4  ;;  %v9108_v25 = vadd.f32 %v3717_v29, %v3557_v47 }
 0x3bc   : > { %v6081_v44 = vpop.f32.mrf.mxu1  ;;  %v6477_v13 = vpop.f32.mrf.mxu0 }
 0x3bd   : > { %v3581_v3 = vadd.f32 %v6080_v33, %v8945_v27  ;;  %v9111_v42 = vadd.f32 %v6477_v13, %v3568_v43 }
 0x3be   : > { %v6082_v16 = vpop.f32.mrf.mxu1  ;;  %v3720_v31 = vpop.f32.mrf.mxu0 }
 0x3bf   : > { %v6083_v54 = vadd.f32 %v6082_v16, %v6081_v44  ;;  %v9113_v41 = vadd.f32 %v3720_v31, %v3560_v14 }
 0x3c0   : > { %v6084_v26 = vpop.f32.mrf.mxu1  ;;  %v6480_v58 = vpop.f32.mrf.mxu0 }
 0x3c1   : > { %v3584_v24 = vadd.f32 %v6083_v54, %v8950_v9  ;;  %v9116_v63 = vadd.f32 %v6480_v58, %v3581_v3 }
 0x3c2   : > { %v6085_v19 = vpop.f32.mrf.mxu1  ;;  %v3733_v35 = vpop.f32.mrf.mxu0 }
 0x3c3   : > { %v6086_v32 = vadd.f32 %v6085_v19, %v6084_v26  ;;  %v9118_v49 = vadd.f32 %v3733_v35, %v3573_v46 }
 0x3c4   : > { %v6087_v47 = vpop.f32.mrf.mxu1  ;;  %v6481_v43 = vpop.f32.mrf.mxu0 }
 0x3c5   : > { %v3589_v27 = vadd.f32 %v6086_v32, %v8955_v18  ;;  %v9121_v28 = vadd.f32 %v6481_v43, %v3584_v24 }
 0x3c6   : > { %v6088_v34 = vpop.f32.mrf.mxu1  ;;  %v3736_v38 = vpop.f32.mrf.mxu0 }
 0x3c7   : > { %v6089_v50 = vadd.f32 %v6088_v34, %v6087_v47  ;;  %v9123_v1 = vadd.f32 %v3736_v38, %v3576_v6 }
 0x3c8   : > { %v6090_v14 = vpop.f32.mrf.mxu1  ;;  %v6484_v48 = vpop.f32.mrf.mxu0 }
 0x3c9   : > { %v3592_v9 = vadd.f32 %v6089_v50, %v8962_v52 }
 0x3ca   : > { %v6091_v20 = vpop.f32.mrf.mxu1  ;;  %v3749_v4 = vpop.f32.mrf.mxu0 }
 0x3cb   : > { %v6092_v22 = vadd.f32 %v6091_v20, %v6090_v14  ;;  %v9127_v36 = vadd.f32 %v3749_v4, %v3589_v27 }
 0x3cc   : > { %v6093_v39 = vpop.f32.mrf.mxu1  ;;  %v6485_v15 = vpop.f32.mrf.mxu0 }
 0x3cd   : > { %v3597_v46 = vadd.f32 %v6092_v22, %v8970_v30 }
 0x3ce   : > { %v6094_v18 = vpop.f32.mrf.mxu1  ;;  %v3752_v29 = vpop.f32.mrf.mxu0 }
 0x3cf   : > { %v6095_v12 = vadd.f32 %v6094_v18, %v6093_v39  ;;  %v9129_v33 = vadd.f32 %v6484_v48, %v3597_v46  ;;  %v9132_v3 = vadd.f32 %v3752_v29, %v3592_v9 }
 0x3d0   : > { %v6096_v44 = vpop.f32.mrf.mxu1  ;;  %v6488_v16 = vpop.f32.mrf.mxu0 }
 0x3d1   : > { %v3600_v6 = vadd.f32 %v6095_v12, %v8978_v11 }
 0x3d2   : > { %v6097_v52 = vpop.f32.mrf.mxu1  ;;  %v3765_v30 = vpop.f32.mrf.mxu0 }
 0x3d3   : > { %v6098_v13 = vadd.f32 %v6097_v52, %v6096_v44  ;;  %v9134_v54 = vadd.f32 %v6485_v15, %v3600_v6 }
 0x3d4   : > { %v6099_v26 = vpop.f32.mrf.mxu1  ;;  %v6489_v19 = vpop.f32.mrf.mxu0 }
 0x3d5   : > { %v3605_v31 = vadd.f32 %v6098_v13, %v8987_v53 }
 0x3d6   : > { %v6100_v24 = vpop.f32.mrf.mxu1  ;;  %v3768_v35 = vpop.f32.mrf.mxu0 }
 0x3d7   : > { %v6101_v58 = vadd.f32 %v6100_v24, %v6099_v26  ;;  %v9137_v32 = vadd.f32 %v3765_v30, %v3605_v31 }
 0x3d8   : > { %v6102_v47 = vpop.f32.mrf.mxu1  ;;  %v6492_v34 = vpop.f32.mrf.mxu0 }
 0x3d9   : > { %v3608_v11 = vadd.f32 %v6101_v58, %v8992_v17 }
 0x3da   : > { %v6103_v27 = vpop.f32.mrf.mxu1  ;;  %v3781_v38 = vpop.f32.mrf.mxu0 }
 0x3db   : > { %v6104_v43 = vadd.f32 %v6103_v27, %v6102_v47  ;;  %v9140_v50 = vadd.f32 %v3768_v35, %v3608_v11 }
 0x3dc   : > { %v6105_v14 = vpop.f32.mrf.mxu1  ;;  %v6493_v53 = vpop.f32.mrf.mxu0 }
 0x3dd   : > { %v3613_v9 = vadd.f32 %v6104_v43, %v9001_v40 }
 0x3de   : > { %v6106_v20 = vpop.f32.mrf.mxu1  ;;  %v3784_v4 = vpop.f32.mrf.mxu0 }
 0x3df   : > { %v6107_v48 = vadd.f32 %v6106_v20, %v6105_v14  ;;  %v9143_v22 = vadd.f32 %v6488_v16, %v3613_v9 }
 0x3e0   : > { %v6108_v39 = vpop.f32.mrf.mxu1  ;;  %v6496_v17 = vpop.f32.mrf.mxu0 }
 0x3e1   : > { %v3616_v46 = vadd.f32 %v6107_v48, %v9010_v10 }
 0x3e2   : > { %v6109_v18 = vpop.f32.mrf.mxu1  ;;  %v3797_v29 = vpop.f32.mrf.mxu0 }
 0x3e3   : > { %v6110_v15 = vadd.f32 %v6109_v18, %v6108_v39  ;;  %v9146_v12 = vadd.f32 %v6489_v19, %v3616_v46 }
 0x3e4   : > { %v6111_v44 = vpop.f32.mrf.mxu1  ;;  %v6497_v40 = vpop.f32.mrf.mxu0 }
 0x3e5   : > { %v3621_v6 = vadd.f32 %v6110_v15, %v9019_v23 }
 0x3e6   : > { %v6112_v52 = vpop.f32.mrf.mxu1  ;;  %v3800_v30 = vpop.f32.mrf.mxu0 }
 0x3e7   : > { %v6113_v13 = vadd.f32 %v6112_v52, %v6111_v44  ;;  %v9149_v26 = vadd.f32 %v3781_v38, %v3621_v6 }
 0x3e8   : > { %v6114_v16 = vpop.f32.mrf.mxu1  ;;  %v6172_v10 = vpop.f32.mrf.mxu0 }
 0x3e9   : > { %v3624_v31 = vadd.f32 %v6113_v13, %v9028_v62 }
 0x3ea   : > { %v6115_v24 = vpop.f32.mrf.mxu1  ;;  %v6173_v35 = vpop.f32.mrf.mxu0 }
 0x3eb   : > { %v6116_v58 = vadd.f32 %v6115_v24, %v6114_v16  ;;  %v9152_v47 = vadd.f32 %v3784_v4, %v3624_v31  ;;  %v6174_v27 = vadd.f32 %v6173_v35, %v6172_v10 }
 0x3ec   : > { %v6117_v19 = vpop.f32.mrf.mxu1  ;;  %v6175_v43 = vpop.f32.mrf.mxu0 }
 0x3ed   : > { %v3629_v11 = vadd.f32 %v6116_v58, %v9037_v51 }
 0x3ee   : > { %v6118_v23 = vpop.f32.mrf.mxu1  ;;  %v6176_v20 = vpop.f32.mrf.mxu0 }
 0x3ef   : > { %v6119_v14 = vadd.f32 %v6118_v23, %v6117_v19  ;;  %v9155_v9 = vadd.f32 %v6492_v34, %v3629_v11  ;;  %v6177_v62 = vadd.f32 %v6176_v20, %v6175_v43 }
 0x3f0   : > { %v6120_v38 = vpop.f32.mrf.mxu1  ;;  %v6178_v46 = vpop.f32.mrf.mxu0 }
 0x3f1   : > { %v3632_v48 = vadd.f32 %v6119_v14, %v9046_v56 }
 0x3f2   : > { %v6121_v39 = vpop.f32.mrf.mxu1  ;;  %v6179_v44 = vpop.f32.mrf.mxu0 }
 0x3f3   : > { %v6122_v18 = vadd.f32 %v6121_v39, %v6120_v38  ;;  %v9158_v4 = vadd.f32 %v6493_v53, %v3632_v48 }
 0x3f4   : > { %v6123_v15 = vpop.f32.mrf.mxu1  ;;  %v6181_v52 = vpop.f32.mrf.mxu0 }
 0x3f5   : > { %v3637_v51 = vadd.f32 %v6122_v18, %v9053_v59  ;;  %v6180_v59 = vadd.f32 %v6179_v44, %v6178_v46 }
 0x3f6   : > { %v6124_v6 = vpop.f32.mrf.mxu1  ;;  %v6182_v31 = vpop.f32.mrf.mxu0 }
 0x3f7   : > { %v6125_v13 = vadd.f32 %v6124_v6, %v6123_v15  ;;  %v9161_v16 = vadd.f32 %v3797_v29, %v3637_v51  ;;  %v6183_v48 = vadd.f32 %v6182_v31, %v6181_v52 }
 0x3f8   : > { %v6126_v34 = vpop.f32.mrf.mxu1  ;;  %v6184_v10 = vpop.f32.mrf.mxu0 }
 0x3f9   : > { %v3640_v56 = vadd.f32 %v6125_v13, %v9060_v0 }
 0x3fa   : > { %v6127_v24 = vpop.f32.mrf.mxu1  ;;  %v6185_v35 = vpop.f32.mrf.mxu0 }
 0x3fb   : > { %v6128_v58 = vadd.f32 %v6127_v24, %v6126_v34  ;;  %v9164_v19 = vadd.f32 %v3800_v30, %v3640_v56  ;;  %v6186_v24 = vadd.f32 %v6185_v35, %v6184_v10 }
 0x3fc   : > { %v6129_v53 = vpop.f32.mrf.mxu1  ;;  %v6187_v43 = vpop.f32.mrf.mxu0 }
 0x3fd   : > { %v3645_v11 = vadd.f32 %v6128_v58, %v9066_v45 }
 0x3fe   : > { %v6130_v23 = vpop.f32.mrf.mxu1  ;;  %v6188_v20 = vpop.f32.mrf.mxu0 }
 0x3ff   : > { %v9167_v14 = vadd.f32 %v6496_v17, %v3645_v11  ;;  %v6131_v29 = vadd.f32 %v6130_v23, %v6129_v53  ;;  %v9177_v17 = vld [vmem:[%s359_s23] ss:$0 sm:$0xff]  ;;  %s6958_s23 = scalar_lea.vmem %s6957_s22, 8192 }
 0x400   : > { %v6516_v38 = vpop.f32.mrf.mxu1  ;;  %v6190_v18 = vpop.f32.mrf.mxu0  ;;  %p6960_p1 = scmp.lt.s32.totalorder %s6958_s23, %s6952_s21 }
 0x401   : > { %v3648_v0 = vadd.f32 %v6131_v29, %v9072_v2  ;;  %v4529_v30 = vadd.f32 %v6516_v38, %v6180_v59 }
 0x402   : > { %v4520_v39 = vpop.f32.mrf.mxu1  ;;  %v6191_v51 = vpop.f32.mrf.mxu0  ;;  %p6961_p2 = por %p6960_p1, %p6959_p0 }
 0x403   : > { %v9174_v15 = vadd.f32 %v6497_v40, %v3648_v0  ;;  %v4521_v45 = vadd.f32 %v6174_v27, %v4520_v39  ;;  %v4649_v46 = vadd.f32 %v4529_v30, %v9075_v55  ;;  %v6192_v34 = vadd.f32 %v6191_v51, %v6190_v18 }
 0x404   : > { %v6517_v44 = vpop.f32.mrf.mxu1  ;;  %v6193_v52 = vpop.f32.mrf.mxu0  ;;  %v6189_v0 = vadd.f32 %v6188_v20, %v6187_v43  ;;  %p6962_p3 = pnand %p6961_p2, %p6955_p13 }
 0x405   : > { %v4647_v6 = vadd.f32 %v4521_v45, %v9080_v61  ;;  %v4532_v13 = vadd.f32 %v6517_v44, %v6183_v48  ;;  %v9181_v56 = vadd.f32 %v9177_v17, %v4649_v46 }
 0x406   : > { %v4523_v2 = vpop.f32.mrf.mxu1  ;;  %v6194_v58 = vpop.f32.mrf.mxu0 }
 0x407   : > { %v4524_v31 = vadd.f32 %v6177_v62, %v4523_v2  ;;  %v9184_v40 = vadd.f32 %v9177_v17, %v4647_v6  ;;  %v4650_v55 = vadd.f32 %v4532_v13, %v9084_v8  ;;  %v6195_v61 = vadd.f32 %v6194_v58, %v6193_v52 }
 0x408   : > { %v6520_v27 = vpop.f32.mrf.mxu1  ;;  %v6196_v29 = vpop.f32.mrf.mxu0 }
 0x409   : > { %v4648_v53 = vadd.f32 %v4524_v31, %v9089_v60  ;;  %v4545_v11 = vadd.f32 %v6520_v27, %v6192_v34  ;;  %v9189_v59 = vadd.f32 %v9177_v17, %v4650_v55 }
 0x40a   : > { %v4536_v23 = vpop.f32.mrf.mxu1  ;;  %v6197_v8 = vpop.f32.mrf.mxu0 }
 0x40b   : > { %v4537_v38 = vadd.f32 %v6186_v24, %v4536_v23  ;;  %v9192_v62 = vadd.f32 %v9177_v17, %v4648_v53  ;;  %v4653_v10 = vadd.f32 %v4545_v11, %v9092_v57  ;;  %v6198_v46 = vadd.f32 %v6197_v8, %v6196_v29 }
 0x40c   : > { %v6521_v35 = vpop.f32.mrf.mxu1  ;;  %v6199_v18 = vpop.f32.mrf.mxu0 }
 0x40d   : > { %v4548_v30 = vadd.f32 %v6521_v35, %v6195_v61  ;;  %v9196_v48 = vadd.f32 %v9177_v17, %v4653_v10  ;;  %v4651_v60 = vadd.f32 %v4537_v38, %v9096_v7 }
 0x40e   : > { %v4539_v39 = vpop.f32.mrf.mxu1  ;;  %v6200_v51 = vpop.f32.mrf.mxu0 }
 0x40f   : > { %v4540_v45 = vadd.f32 %v6189_v0, %v4539_v39  ;;  %v9200_v44 = vadd.f32 %v9177_v17, %v4651_v60  ;;  %v4654_v43 = vadd.f32 %v4548_v30, %v9099_v37  ;;  %v6201_v7 = vadd.f32 %v6200_v51, %v6199_v18 }
 0x410   : > { %v6524_v20 = vpop.f32.mrf.mxu1  ;;  %v6202_v34 = vpop.f32.mrf.mxu0 }
 0x411   : > { %v9204_v57 = vadd.f32 %v9177_v17, %v4654_v43  ;;  %v4652_v6 = vadd.f32 %v4540_v45, %v9103_v5 }
 0x412   : > { %v4552_v13 = vpop.f32.mrf.mxu1  ;;  %v6203_v24 = vpop.f32.mrf.mxu0 }
 0x413   : > { %v4553_v2 = vadd.f32 %v6198_v46, %v4552_v13  ;;  %v9208_v52 = vadd.f32 %v9177_v17, %v4652_v6  ;;  %v6204_v55 = vadd.f32 %v6203_v24, %v6202_v34 }
 0x414   : > { %v6525_v31 = vpop.f32.mrf.mxu1  ;;  %v6205_v58 = vpop.f32.mrf.mxu0 }
 0x415   : > { %v4655_v27 = vadd.f32 %v4553_v2, %v9108_v25  ;;  %v4561_v11 = vadd.f32 %v6524_v20, %v6204_v55 }
 0x416   : > { %v4555_v37 = vpop.f32.mrf.mxu1  ;;  %v6206_v23 = vpop.f32.mrf.mxu0 }
 0x417   : > { %v4556_v53 = vadd.f32 %v6201_v7, %v4555_v37  ;;  %v9212_v61 = vadd.f32 %v9177_v17, %v4655_v27  ;;  %v6207_v29 = vadd.f32 %v6206_v23, %v6205_v58  ;;  %v4657_v38 = vadd.f32 %v4561_v11, %v9106_v21 }
 0x418   : > { %v6528_v5 = vpop.f32.mrf.mxu1  ;;  %v6208_v35 = vpop.f32.mrf.mxu0 }
 0x419   : > { %v4656_v0 = vadd.f32 %v4556_v53, %v9113_v41  ;;  %v4564_v8 = vadd.f32 %v6525_v31, %v6207_v29  ;;  %v9217_v30 = vadd.f32 %v9177_v17, %v4657_v38 }
 0x41a   : > { %v4568_v10 = vpop.f32.mrf.mxu1  ;;  %v6209_v39 = vpop.f32.mrf.mxu0 }
 0x41b   : > { %v9220_v25 = vadd.f32 %v9177_v17, %v4656_v0  ;;  %v6210_v18 = vadd.f32 %v6209_v39, %v6208_v35  ;;  %v4658_v45 = vadd.f32 %v4564_v8, %v9111_v42 }
 0x41c   : > { %v6529_v60 = vpop.f32.mrf.mxu1  ;;  %v6211_v43 = vpop.f32.mrf.mxu0 }
 0x41d   : > { %v4569_v20 = vadd.f32 %v6210_v18, %v4568_v10  ;;  %v9224_v21 = vadd.f32 %v9177_v17, %v4658_v45 }
 0x41e   : > { %v4571_v46 = vpop.f32.mrf.mxu1  ;;  %v6212_v51 = vpop.f32.mrf.mxu0 }
 0x41f   : > { %v6213_v6 = vadd.f32 %v6212_v51, %v6211_v43  ;;  %v4659_v13 = vadd.f32 %v4569_v20, %v9118_v49 }
 0x420   : > { %v6532_v41 = vpop.f32.mrf.mxu1  ;;  %v6214_v2 = vpop.f32.mrf.mxu0 }
 0x421   : > { %v4572_v7 = vadd.f32 %v6213_v6, %v4571_v46  ;;  %v9228_v31 = vadd.f32 %v9177_v17, %v4659_v13 }
 0x422   : > { %v4584_v34 = vpop.f32.mrf.mxu1  ;;  %v6215_v55 = vpop.f32.mrf.mxu0 }
 0x423   : > { %v6216_v42 = vadd.f32 %v6215_v55, %v6214_v2  ;;  %v4660_v27 = vadd.f32 %v4572_v7, %v9123_v1 }
 0x424   : > { %v6533_v24 = vpop.f32.mrf.mxu1  ;;  %v6217_v58 = vpop.f32.mrf.mxu0 }
 0x425   : > { %v4577_v53 = vadd.f32 %v6528_v5, %v6216_v42  ;;  %v9232_v11 = vadd.f32 %v9177_v17, %v4660_v27 }
 0x426   : > { %v4587_v37 = vpop.f32.mrf.mxu1  ;;  %v6218_v49 = vpop.f32.mrf.mxu0 }
 0x427   : > { %v6219_v29 = vadd.f32 %v6218_v49, %v6217_v58  ;;  %v4661_v38 = vadd.f32 %v4577_v53, %v9116_v63 }
 0x428   : > { %v9234_v23 = vpop.f32.mrf.mxu1  ;;  %v6220_v10 = vpop.f32.mrf.mxu0 }
 0x429   : > { %v4580_v35 = vadd.f32 %v6529_v60, %v6219_v29  ;;  %v9238_v8 = vadd.f32 %v9177_v17, %v4661_v38 }
 0x42a   : > { %v4600_v0 = vpop.f32.mrf.mxu1  ;;  %v6221_v1 = vpop.f32.mrf.mxu0 }
 0x42b   : > { %v6222_v18 = vadd.f32 %v6221_v1, %v6220_v10  ;;  %v4662_v5 = vadd.f32 %v4580_v35, %v9121_v28 }
 0x42c   : > { %v9240_v39 = vpop.f32.mrf.mxu1  ;;  %v6223_v46 = vpop.f32.mrf.mxu0 }
 0x42d   : > { %v4585_v43 = vadd.f32 %v6222_v18, %v4584_v34  ;;  %v9244_v20 = vadd.f32 %v9177_v17, %v4662_v5 }
 0x42e   : > { %v4603_v45 = vpop.f32.mrf.mxu1  ;;  %v6224_v63 = vpop.f32.mrf.mxu0 }
 0x42f   : > { %v6225_v6 = vadd.f32 %v6224_v63, %v6223_v46  ;;  %v4663_v60 = vadd.f32 %v4585_v43, %v9127_v36 }
 0x430   : > { %v9246_v51 = vpop.f32.mrf.mxu1  ;;  %v6226_v2 = vpop.f32.mrf.mxu0 }
 0x431   : > { %v4588_v7 = vadd.f32 %v6225_v6, %v4587_v37  ;;  %v9252_v55 = vadd.f32 %v9177_v17, %v4663_v60 }
 0x432   : > { %v9249_v13 = vpop.f32.mrf.mxu1  ;;  %v6227_v34 = vpop.f32.mrf.mxu0 }
 0x433   : > { %v6228_v42 = vadd.f32 %v6227_v34, %v6226_v2  ;;  %v4664_v27 = vadd.f32 %v4588_v7, %v9132_v3 }
 0x434   : > { %v9254_v28 = vpop.f32.mrf.mxu1  ;;  %v6229_v53 = vpop.f32.mrf.mxu0 }
 0x435   : > { %v4593_v49 = vadd.f32 %v6532_v41, %v6228_v42  ;;  %v9260_v36 = vadd.f32 %v9177_v17, %v4664_v27 }
 0x436   : > { %v9257_v58 = vpop.f32.mrf.mxu1  ;;  %v6230_v37 = vpop.f32.mrf.mxu0 }
 0x437   : > { %v6231_v38 = vadd.f32 %v6230_v37, %v6229_v53  ;;  %v4665_v10 = vadd.f32 %v4593_v49, %v9129_v33 }
 0x438   : > { %v9262_v29 = vpop.f32.mrf.mxu1  ;;  %v6232_v1 = vpop.f32.mrf.mxu0 }
 0x439   : > { %v4596_v18 = vadd.f32 %v6533_v24, %v6231_v38  ;;  %v9269_v3 = vadd.f32 %v9177_v17, %v4665_v10 }
 0x43a   : > { %v9265_v35 = vpop.f32.mrf.mxu1  ;;  %v6233_v41 = vpop.f32.mrf.mxu0 }
 0x43b   : > { %v6234_v46 = vadd.f32 %v6233_v41, %v6232_v1  ;;  %v4666_v43 = vadd.f32 %v4596_v18, %v9134_v54 }
 0x43c   : > { %v9271_v5 = vpop.f32.mrf.mxu1  ;;  %v6235_v6 = vpop.f32.mrf.mxu0 }
 0x43d   : > { %v4601_v33 = vadd.f32 %v6234_v46, %v4600_v0  ;;  %v9279_v60 = vadd.f32 %v9177_v17, %v4666_v43 }
 0x43e   : > { %v9276_v63 = vpop.f32.mrf.mxu1  ;;  %v6236_v24 = vpop.f32.mrf.mxu0 }
 0x43f   : > { %v6237_v34 = vadd.f32 %v6236_v24, %v6235_v6  ;;  %v4667_v42 = vadd.f32 %v4601_v33, %v9137_v32 }
 0x440   : > { %v6552_v2 = vpop.f32.mrf.mxu1  ;;  %v6238_v53 = vpop.f32.mrf.mxu0 }
 0x441   : > { %v5057_v7 = vadd.f32 %v6552_v2, %v9181_v56  ;;  %v4604_v0 = vadd.f32 %v6237_v34, %v4603_v45  ;;  %v9288_v49 = vadd.f32 %v9177_v17, %v4667_v42 }
 0x442   : > { %v4928_v27 = vpop.f32.mrf.mxu1  ;;  %v6239_v56 = vpop.f32.mrf.mxu0 }
 0x443   : > { %5089 = vst [vmem:[%s9283_s26 + $0x10] sm:$0xff] %v5057_v7  ;;  %v5055_v54 = vadd.f32 %v4928_v27, %v9184_v40  ;;  %v6240_v38 = vadd.f32 %v6239_v56, %v6238_v53  ;;  %v4668_v10 = vadd.f32 %v4604_v0, %v9140_v50 }
 0x444   : > { %v6553_v37 = vpop.f32.mrf.mxu1  ;;  %v6241_v18 = vpop.f32.mrf.mxu0 }
 0x445   : > { %5087 = vst [vmem:[%s9283_s26] sm:$0xff] %v5055_v54  ;;  %v5058_v32 = vadd.f32 %v6553_v37, %v9189_v59  ;;  %v4609_v40 = vadd.f32 %v9234_v23, %v6240_v38  ;;  %v9297_v45 = vadd.f32 %v9177_v17, %v4668_v10 }
 0x446   : > { %v4931_v1 = vpop.f32.mrf.mxu1  ;;  %v6242_v43 = vpop.f32.mrf.mxu0 }
 0x447   : > { %5090 = vst [vmem:[%s9283_s26 + $0x18] sm:$0xff] %v5058_v32  ;;  %v5056_v41 = vadd.f32 %v4931_v1, %v9192_v62  ;;  %v6243_v6 = vadd.f32 %v6242_v43, %v6241_v18  ;;  %v4669_v50 = vadd.f32 %v4609_v40, %v9143_v22 }
 0x448   : > { %v6556_v46 = vpop.f32.mrf.mxu1  ;;  %v6244_v2 = vpop.f32.mrf.mxu0 }
 0x449   : > { %5088 = vst [vmem:[%s9283_s26 + $0x8] sm:$0xff] %v5056_v41  ;;  %v5061_v59 = vadd.f32 %v6556_v46, %v9196_v48  ;;  %v4612_v23 = vadd.f32 %v9240_v39, %v6243_v6  ;;  %v9306_v24 = vadd.f32 %v9177_v17, %v4669_v50 }
 0x44a   : > { %v4944_v33 = vpop.f32.mrf.mxu1  ;;  %v6245_v34 = vpop.f32.mrf.mxu0 }
 0x44b   : > { %5093 = vst [vmem:[%s9283_s26 + $0x30] sm:$0xff] %v5061_v59  ;;  %v5059_v62 = vadd.f32 %v4944_v33, %v9200_v44  ;;  %v6246_v42 = vadd.f32 %v6245_v34, %v6244_v2  ;;  %v4670_v22 = vadd.f32 %v4612_v23, %v9146_v12 }
 0x44c   : > { %v6557_v7 = vpop.f32.mrf.mxu1  ;;  %v6247_v53 = vpop.f32.mrf.mxu0 }
 0x44d   : > { %5091 = vst [vmem:[%s9283_s26 + $0x20] sm:$0xff] %v5059_v62  ;;  %v5062_v48 = vadd.f32 %v6557_v7, %v9204_v57  ;;  %v4617_v39 = vadd.f32 %v6246_v42, %v9249_v13  ;;  %v9315_v54 = vadd.f32 %v9177_v17, %v4670_v22 }
 0x44e   : > { %v4947_v27 = vpop.f32.mrf.mxu1  ;;  %v6248_v37 = vpop.f32.mrf.mxu0 }
 0x44f   : > { %5094 = vst [vmem:[%s9283_s26 + $0x38] sm:$0xff] %v5062_v48  ;;  %v5060_v44 = vadd.f32 %v4947_v27, %v9208_v52  ;;  %v6249_v56 = vadd.f32 %v6248_v37, %v6247_v53  ;;  %v4671_v12 = vadd.f32 %v4617_v39, %v9149_v26 }
 0x450   : > { %v6560_v0 = vpop.f32.mrf.mxu1  ;;  %v6250_v38 = vpop.f32.mrf.mxu0 }
 0x451   : > { %5092 = vst [vmem:[%s9283_s26 + $0x28] sm:$0xff] %v5060_v44  ;;  %v5065_v57 = vadd.f32 %v6560_v0, %v9217_v30  ;;  %v4620_v13 = vadd.f32 %v6249_v56, %v9257_v58  ;;  %v9324_v10 = vadd.f32 %v9177_v17, %v4671_v12 }
 0x452   : > { %v4960_v32 = vpop.f32.mrf.mxu1  ;;  %v6251_v18 = vpop.f32.mrf.mxu0 }
 0x453   : > { %5097 = vst [vmem:[%s9283_s26 + $0x50] sm:$0xff] %v5065_v57  ;;  %v5063_v52 = vadd.f32 %v4960_v32, %v9212_v61  ;;  %v6252_v41 = vadd.f32 %v6251_v18, %v6250_v38  ;;  %v4672_v26 = vadd.f32 %v4620_v13, %v9152_v47 }
 0x454   : > { %v6561_v1 = vpop.f32.mrf.mxu1  ;;  %v6253_v46 = vpop.f32.mrf.mxu0 }
 0x455   : > { %5095 = vst [vmem:[%s9283_s26 + $0x40] sm:$0xff] %v5063_v52  ;;  %v5066_v30 = vadd.f32 %v6561_v1, %v9224_v21  ;;  %v4625_v58 = vadd.f32 %v9246_v51, %v6252_v41  ;;  %v9333_v43 = vadd.f32 %v9177_v17, %v4672_v26 }
 0x456   : > { %v4963_v40 = vpop.f32.mrf.mxu1  ;;  %v6254_v6 = vpop.f32.mrf.mxu0 }
 0x457   : > { %5098 = vst [vmem:[%s9283_s26 + $0x58] sm:$0xff] %v5066_v30  ;;  %v5064_v61 = vadd.f32 %v4963_v40, %v9220_v25  ;;  %v6255_v50 = vadd.f32 %v6254_v6, %v6253_v46  ;;  %v4673_v47 = vadd.f32 %v4625_v58, %v9155_v9 }
 0x458   : > { %v6564_v59 = vpop.f32.mrf.mxu1  ;;  %v6256_v2 = vpop.f32.mrf.mxu0 }
 0x459   : > { %5096 = vst [vmem:[%s9283_s26 + $0x48] sm:$0xff] %v5064_v61  ;;  %v5069_v21 = vadd.f32 %v6564_v59, %v9238_v8  ;;  %v4628_v51 = vadd.f32 %v9254_v28, %v6255_v50  ;;  %v4712_v62 = vadd.f32 %v9177_v17, %v4673_v47 }
 0x45a   : > { %v4976_v33 = vpop.f32.mrf.mxu1  ;;  %v6257_v7 = vpop.f32.mrf.mxu0 }
 0x45b   : > { %5101 = vst [vmem:[%s9283_s26 + $0x70] sm:$0xff] %v5069_v21  ;;  %v5067_v25 = vadd.f32 %v4976_v33, %v9228_v31  ;;  %v6258_v8 = vadd.f32 %v6257_v7, %v6256_v2  ;;  %v4674_v48 = vadd.f32 %v4628_v51, %v9158_v4 }
 0x45c   : > { %v6565_v23 = vpop.f32.mrf.mxu1  ;;  %v6259_v42 = vpop.f32.mrf.mxu0 }
 0x45d   : > { %5099 = vst [vmem:[%s9283_s26 + $0x60] sm:$0xff] %v5067_v25  ;;  %v5070_v34 = vadd.f32 %v6565_v23, %v9244_v20  ;;  %v4633_v31 = vadd.f32 %v6258_v8, %v9265_v35  ;;  %v4713_v28 = vadd.f32 %v9177_v17, %v4674_v48 }
 0x45e   : > { %v4979_v9 = vpop.f32.mrf.mxu1  ;;  %v6260_v53 = vpop.f32.mrf.mxu0 }
 0x45f   : > { %5102 = vst [vmem:[%s9283_s26 + $0x78] sm:$0xff] %v5070_v34  ;;  %v5068_v22 = vadd.f32 %v4979_v9, %v9232_v11  ;;  %v6261_v20 = vadd.f32 %v6260_v53, %v6259_v42  ;;  %v4675_v39 = vadd.f32 %v4633_v31, %v9161_v16 }
 0x460   : > { %v6568_v27 = vpop.f32.mrf.mxu1  ;;  %v6262_v0 = vpop.f32.mrf.mxu0 }
 0x461   : > { %5100 = vst [vmem:[%s9283_s26 + $0x68] sm:$0xff] %v5068_v22  ;;  %v5073_v44 = vadd.f32 %v6568_v27, %v9269_v3  ;;  %v4636_v11 = vadd.f32 %v6261_v20, %v9276_v63  ;;  %v4714_v35 = vadd.f32 %v9177_v17, %v4675_v39 }
 0x462   : > { %v4992_v4 = vpop.f32.mrf.mxu1  ;;  %v6263_v56 = vpop.f32.mrf.mxu0 }
 0x463   : > { %5105 = vst [vmem:[%s9283_s26 + $0x90] sm:$0xff] %v5073_v44  ;;  %v5071_v37 = vadd.f32 %v4992_v4, %v9252_v55  ;;  %v6264_v3 = vadd.f32 %v6263_v56, %v6262_v0  ;;  %v4676_v32 = vadd.f32 %v4636_v11, %v9164_v19 }
 0x464   : > { %v6569_v57 = vpop.f32.mrf.mxu1  ;;  %v6265_v38 = vpop.f32.mrf.mxu0 }
 0x465   : > { %5103 = vst [vmem:[%s9283_s26 + $0x80] sm:$0xff] %v5071_v37  ;;  %v5074_v12 = vadd.f32 %v6569_v57, %v9279_v60  ;;  %v4641_v63 = vadd.f32 %v9262_v29, %v6264_v3  ;;  %v4715_v52 = vadd.f32 %v9177_v17, %v4676_v32 }
 0x466   : > { %v4995_v16 = vpop.f32.mrf.mxu1  ;;  %v6266_v1 = vpop.f32.mrf.mxu0 }
 0x467   : > { %5106 = vst [vmem:[%s9283_s26 + $0x98] sm:$0xff] %v5074_v12  ;;  %v5072_v55 = vadd.f32 %v4995_v16, %v9260_v36  ;;  %v4677_v18 = vadd.f32 %v4641_v63, %v9167_v14  ;;  %v6267_v19 = vadd.f32 %v6266_v1, %v6265_v38 }
 0x468   : > { %v6572_v13 = vpop.f32.mrf.mxu1 }
 0x469   : > { %5104 = vst [vmem:[%s9283_s26 + $0x88] sm:$0xff] %v5072_v55  ;;  %v5077_v60 = vadd.f32 %v6572_v13, %v9306_v24  ;;  %v4716_v36 = vadd.f32 %v9177_v17, %v4677_v18  ;;  %v4644_v29 = vadd.f32 %v9271_v5, %v6267_v19 }
 0x46a   : > { %v5008_v30 = vpop.f32.mrf.mxu1 }
 0x46b   : > { %5109 = vst [vmem:[%s9283_s26 + $0xb0] sm:$0xff] %v5077_v60  ;;  %v5075_v41 = vadd.f32 %v5008_v30, %v9288_v49  ;;  %v4678_v24 = vadd.f32 %v4644_v29, %v9174_v15 }
 0x46c   : > { %v6573_v26 = vpop.f32.mrf.mxu1 }
 0x46d   : > { %5107 = vst [vmem:[%s9283_s26 + $0xa0] sm:$0xff] %v5075_v41  ;;  %v5078_v40 = vadd.f32 %v6573_v26, %v9315_v54  ;;  %v4717_v61 = vadd.f32 %v9177_v17, %v4678_v24 }
 0x46e   : > { %v5011_v14 = vpop.f32.mrf.mxu1 }
 0x46f   : > { %5110 = vst [vmem:[%s9283_s26 + $0xb8] sm:$0xff] %v5078_v40  ;;  %v5076_v46 = vadd.f32 %v5011_v14, %v9297_v45 }
 0x470   : > { %v6576_v49 = vpop.f32.mrf.mxu1 }
 0x471   : > { %5108 = vst [vmem:[%s9283_s26 + $0xa8] sm:$0xff] %v5076_v46  ;;  %v5081_v58 = vadd.f32 %v6576_v49, %v4712_v62 }
 0x472   : > { %v5024_v5 = vpop.f32.mrf.mxu1 }
 0x473   : > { %5113 = vst [vmem:[%s9283_s26 + $0xd0] sm:$0xff] %v5081_v58  ;;  %v5079_v54 = vadd.f32 %v5024_v5, %v9324_v10 }
 0x474   : > { %v6577_v59 = vpop.f32.mrf.mxu1 }
 0x475   : > { %5111 = vst [vmem:[%s9283_s26 + $0xc0] sm:$0xff] %v5079_v54  ;;  %v5082_v15 = vadd.f32 %v6577_v59, %v4713_v28 }
 0x476   : > { %v5027_v6 = vpop.f32.mrf.mxu1 }
 0x477   : > { %5114 = vst [vmem:[%s9283_s26 + $0xd8] sm:$0xff] %v5082_v15  ;;  %v5080_v45 = vadd.f32 %v5027_v6, %v9333_v43 }
 0x478   : > { %v6580_v17 = vpop.f32.mrf.mxu1 }
 0x479   : > { %5112 = vst [vmem:[%s9283_s26 + $0xc8] sm:$0xff] %v5080_v45  ;;  %v5085_v21 = vadd.f32 %v6580_v17, %v4716_v36 }
 0x47a   : > { %v5040_v50 = vpop.f32.mrf.mxu1 }
 0x47b   : > { %5117 = vst [vmem:[%s9283_s26 + $0xf0] sm:$0xff] %v5085_v21  ;;  %v5083_v47 = vadd.f32 %v5040_v50, %v4714_v35 }
 0x47c   : > { %v6581_v10 = vpop.f32.mrf.mxu1 }
 0x47d   : > { %5115 = vst [vmem:[%s9283_s26 + $0xe0] sm:$0xff] %v5083_v47  ;;  %v5086_v33 = vadd.f32 %v6581_v10, %v4717_v61 }
 0x47e   : > { %v5043_v2 = vpop.f32.mrf.mxu1 }
 0x47f   : > { %5118 = vst [vmem:[%s9283_s26 + $0xf8] sm:$0xff] %v5086_v33  ;;  %v5084_v43 = vadd.f32 %v5043_v2, %v4715_v52 }
 0x481   : > { %5116 = vst [vmem:[%s9283_s26 + $0xe8] sm:$0xff] %v5084_v43 }
 0x482   : > { %6965 = shalt.err (!%p6962_p3)
}
 0x483   : > { %s6966_s25 = scalar_lea.hbm %s9390_s28, 4096  ;;  %s6970_s27 = scalar_lea.hbm %s9447_s9, 8192 }
 0x484   : > { %p6967_p4 = scmp.ne.s32.totalorder %s9390_s28, %s6966_s25  ;;  %p6971_p9 = scmp.lt.s32.totalorder %s9390_s28, %s9447_s9 }
 0x485   : > { %p6972_p10 = scmp.lt.s32.totalorder %s6970_s27, %s6966_s25 }
 0x486   : > { %p6968_p7 = pnand %p6967_p4, %p7108_p5 }
 0x487   : > { %p6973_p11 = por %p6972_p10, %p6971_p9 }
 0x488   : > { %p6969_p8 = pneg %p6968_p7 }
 0x48a   : > { %p6974_p12 = pnand %p6973_p11, %p6969_p8 }
 0x48c   : > { %6977 = shalt.err (!%p6974_p12)
}
 0x48d   : > { %s7018_s21 = smov 128   ;;  %s7019_s17 = smov 8  }
 0x48e   : > { %6582 = dma.vmem_to_hbm [thread:$0]  (%p7108_p5), %s9392_s29, 4096, %s9390_s28, %s9398_s13, %s7018_s21, %s7018_s21, %s7019_s17  }
 0x48f PF: > { %p6588_p13 = scmp.ge.s32.totalorder %s7012_s12, 2  ;;  %s5148_s22 = sand.u32 1, %s7000_s30  }
 0x490   : > { %s5149_s23 = scalar_lea.sflag [#allocation4], %s5148_s22 }
 0x491   : > { %p6585_p0 = pnand %p6588_p13, %p7112_p6 }
 0x493   : > { %p6586_p1 = pneg %p6585_p0 }
 0x495   : > { %6995 = dma.done.wait (%p6586_p1), %s5149_s23, 4096  }
 0x496   : > { %6997 = vsyncadd (%p6586_p1), %s5149_s23, 4294963200  ;;  %p19_p2 = scmp.ge.s32.totalorder %s7095_s15, 4   ;;  %s9659_s30 = smov %s7004_s10 }
 0x497   : > { %s9660_s10 = smov %s7008_s11  ;;  %s9661_s11 = smov %s7106_s18 }
 0x498   : > { %s9662_s12 = smov %s7095_s15  ;;  %21 = sbr.rel (!%p19_p2) target bundleno = 3 (0x3), region = 99 }
 0x49d   :  { %5154 = vsyncpa [#allocation4], 1 }
 0x49e   :  { %5156 = vsyncpa [#allocation4 + $0x1], 1 }

</bundles_post_ra>
